<compile_context>
chip_gen: v7x
topology: tpu7x:2x2x1
jax: 0.10.0
libtpu: 0.0.40
codegen_flags: <defaults>
</compile_context>

<pallas_src>
import functools

import jax
import jax.numpy as jnp
from jax.experimental import pallas as pl
from jax.experimental.pallas import tpu as pltpu


# Static per-layer config: (Cin, Cout, K, pad, pool_after)
_CONV_CFG = (
    (1, 16, 5, 2, False),
    (16, 32, 5, 2, False),
    (32, 64, 3, 1, True),     # pool1 after conv3
    (64, 128, 3, 1, False),
    (128, 256, 3, 1, False),
    (256, 512, 3, 1, True),   # pool2 after conv6
    (512, 512, 3, 1, False),
    (512, 512, 3, 1, False),
    (512, 512, 3, 1, True),   # pool3 after conv9 (fused with global avg pool)
)
_BN_EPS = 1e-5
_CIN0_PAD = 8        # layer-1 Cin padded 1 -> 8 with zero channels (exact)
_FEAT = 512          # feature width emitted by the kernel


# ---------------------------------------------------------------------------
# In-kernel helpers
# ---------------------------------------------------------------------------
def _shift_rows(x, s, use_roll):
    """y[i, :] = x[i + s, :] with zero fill outside [0, L) (static s)."""
    if s == 0:
        return x
    L, C = x.shape
    if use_roll:
        y = pltpu.roll(x, -s, axis=0)                    # y[i] = x[(i + s) % L]  (XLU)
        row = jax.lax.broadcasted_iota(jnp.int32, (L, C), 0)
        if s > 0:
            return jnp.where(row < L - s, y, 0.0)
        return jnp.where(row >= -s, y, 0.0)
    # Compatibility fallback (exact, numerically identical): one-hot selection matmul.
    rows = jax.lax.broadcasted_iota(jnp.int32, (L, L), 0)
    cols = jax.lax.broadcasted_iota(jnp.int32, (L, L), 1)
    m = (cols == rows + s).astype(x.dtype)
    return jnp.dot(m, x, preferred_element_type=jnp.float32)


def _maxpool2(x, use_roll):
    """MaxPool1d(kernel=2, stride=2) over rows.

    Pairwise max off the MXU, then one bf16 even-row one-hot selection matmul
    (exact: it only picks already-bf16-rounded rows)."""
    L, _ = x.shape
    m = jnp.maximum(x, _shift_rows(x, 1, use_roll)).astype(jnp.bfloat16)
    rows = jax.lax.broadcasted_iota(jnp.int32, (L // 2, L), 0)
    cols = jax.lax.broadcasted_iota(jnp.int32, (L // 2, L), 1)
    sel = (cols == 2 * rows).astype(jnp.bfloat16)
    return jnp.dot(sel, m, preferred_element_type=jnp.float32)


# ---------------------------------------------------------------------------
# Fused conv-stack kernel (one batch element per grid step)
# ---------------------------------------------------------------------------
def _fused_kernel(*refs, cfg, use_roll):
    n_conv = len(cfg)
    x_ref = refs[0]
    conv_refs = refs[1:1 + 3 * n_conv]
    o_ref = refs[-1]

    x = x_ref[0]                                          # (L0, 8) f32
    for li, (_cin, cout, K, pad, pool) in enumerate(cfg):
        w_ref = conv_refs[3 * li]                         # (K*Cin_p, Cout) bf16 (im2col layout)
        scale = conv_refs[3 * li + 1][...]                # (1, Cout) f32   (folded BN scale)
        shift = conv_refs[3 * li + 2][...]                # (1, Cout) f32   (conv bias + BN shift)
        L, cin_p = x.shape
        taps = [_shift_rows(x, k - pad, use_roll).astype(jnp.bfloat16) for k in range(K)]
        if cin_p % 128 == 0:
            # Single im2col matmul (tap pieces are 128-lane aligned -> safe lane concat).
            xi = jnp.concatenate(taps, axis=-1)           # (L, K*cin_p) bf16
            acc = jnp.dot(xi, w_ref[...], preferred_element_type=jnp.float32)
        else:
            # Tiny early layers: K small dots, weight rows sliced at 8-aligned offsets.
            acc = jnp.zeros((L, cout), jnp.float32)
            for k in range(K):
                acc = acc + jnp.dot(taps[k], w_ref[k * cin_p:(k + 1) * cin_p, :],
                                    preferred_element_type=jnp.float32)
        # BN affine + ReLU in f32 (dropout_conv is identity at inference).
        x = jnp.maximum(acc * scale + shift, 0.0)
        if pool and li < n_conv - 1:
            x = _maxpool2(x, use_roll)

    # pool3 fused with AdaptiveAvgPool1d(1): masked even-row sum of pairwise maxima.
    L, C = x.shape
    m = jnp.maximum(x, _shift_rows(x, 1, use_roll))
    rows = jax.lax.broadcasted_iota(jnp.int32, (L, C), 0)
    even = jnp.bitwise_and(rows, 1) == 0
    g = jnp.sum(jnp.where(even, m, 0.0), axis=0, keepdims=True) * (2.0 / L)
    o_ref[0] = g                                          # lane-dense (1, 512) store


# ---------------------------------------------------------------------------
# Wrapper
# ---------------------------------------------------------------------------
def _const_map(nd):
    return lambda n: (0,) * nd


def _cost_estimate(n_batch, l0, bytes_in, bytes_out):
    flops = 0
    weight_bytes = 0
    l = l0
    cin = _CIN0_PAD
    for (_c, cout, k, _p, pool) in _CONV_CFG:
        flops += 2 * l * (k * cin) * cout
        weight_bytes += k * cin * cout * 2 + 2 * cout * 4
        if pool:
            flops += 2 * (l // 2) * l * cout              # pool selection matmul
            l //= 2
        cin = cout
    return pl.CostEstimate(flops=n_batch * flops, transcendentals=0,
                           bytes_accessed=bytes_in + bytes_out + weight_bytes)


def _fc_head(params, feats):
    """global-avg-pool features (N, 512) -> fc1 -> ReLU -> (dropout_fc = id) -> fc2."""
    h = jnp.dot(feats.astype(jnp.bfloat16), params["fc1_w"],
                preferred_element_type=jnp.float32) + params["fc1_b"]
    h = jnp.maximum(h, 0.0)
    return jnp.dot(h.astype(jnp.bfloat16), params["fc2_w"],
                   preferred_element_type=jnp.float32) + params["fc2_b"]


def forward_pallas(params, x_ncl, *, single_buffer_weights=True, use_roll=True):
    """x_ncl: (N, 1, L) as in PyTorch. Returns logits (N, num_classes)."""
    N, _, L0 = x_ncl.shape
    assert L0 % 8 == 0, "input_length must be divisible by 8 (three MaxPool1d(2))"
    x = jnp.transpose(x_ncl, (0, 2, 1)).astype(jnp.float32)        # (N, L0, 1)
    x = jnp.pad(x, ((0, 0), (0, 0), (0, _CIN0_PAD - 1)))           # (N, L0, 8) zero channels

    # Constant-index blocks never change -> single buffer (saves ~half the weight VMEM).
    wspec_kwargs = {"pipeline_mode": pl.Buffered(1)} if single_buffer_weights else {}

    operands = [x]
    in_specs = [pl.BlockSpec((1, L0, _CIN0_PAD), lambda n: (n, 0, 0))]
    for p in params["conv"]:
        for arr in (p["w"], p["scale"], p["shift"]):
            operands.append(arr)
            in_specs.append(pl.BlockSpec(arr.shape, _const_map(arr.ndim), **wspec_kwargs))

    feats = pl.pallas_call(
        functools.partial(_fused_kernel, cfg=_CONV_CFG, use_roll=use_roll),
        out_shape=jax.ShapeDtypeStruct((N, 1, _FEAT), jnp.float32),
        grid=(N,),
        in_specs=in_specs,
        out_specs=pl.BlockSpec((1, 1, _FEAT), lambda n: (n, 0, 0)),
        compiler_params=pltpu.CompilerParams(dimension_semantics=("parallel",)),
        cost_estimate=_cost_estimate(N, L0, x.size * 4, N * _FEAT * 4),
    )(*operands)
    return _fc_head(params, feats[:, 0, :])


# ---------------------------------------------------------------------------
# Deterministic parameters (BN folded; weights bf16, im2col layout)
# ---------------------------------------------------------------------------
def make_params(key, num_classes=10):
    params = {"conv": []}
    for (cin, cout, k, _pad, _pool) in _CONV_CFG:
        key, k1, k2, k3, k4, k5, k6 = jax.random.split(key, 7)
        w = jax.random.normal(k1, (cout, cin, k), jnp.float32) * 0.05   # torch (Cout, Cin, K)
        b = jax.random.normal(k2, (cout,), jnp.float32) * 0.05
        gamma = 1.0 + 0.1 * jax.random.normal(k3, (cout,), jnp.float32)
        beta = 0.1 * jax.random.normal(k4, (cout,), jnp.float32)
        r_mean = 0.1 * jax.random.normal(k5, (cout,), jnp.float32)
        r_var = jnp.abs(jax.random.normal(k6, (cout,), jnp.float32)) + 0.5
        scale = gamma / jnp.sqrt(r_var + _BN_EPS)                        # (Cout,)
        shift = (b - r_mean) * scale + beta                              # (Cout,)
        w_kco = jnp.transpose(w, (2, 1, 0))                              # (K, Cin, Cout)
        cin_p = cin
        if cin == 1:
            w_kco = jnp.pad(w_kco, ((0, 0), (0, _CIN0_PAD - 1), (0, 0)))
            cin_p = _CIN0_PAD
        params["conv"].append(dict(
            w=w_kco.reshape(k * cin_p, cout).astype(jnp.bfloat16),       # im2col (K*Cin, Cout)
            scale=scale[None, :].astype(jnp.float32),
            shift=shift[None, :].astype(jnp.float32),
        ))
    key, k1, k2, k3, k4 = jax.random.split(key, 5)
    fc1_w = jax.random.normal(k1, (128, _FEAT), jnp.float32) * 0.05      # torch (out, in)
    fc1_b = jax.random.normal(k2, (128,), jnp.float32) * 0.05
    fc2_w = jax.random.normal(k3, (num_classes, 128), jnp.float32) * 0.05
    fc2_b = jax.random.normal(k4, (num_classes,), jnp.float32) * 0.05
    params["fc1_w"] = fc1_w.T.astype(jnp.bfloat16)                       # (512, 128)
    params["fc1_b"] = fc1_b.astype(jnp.float32)                          # (128,)
    params["fc2_w"] = fc2_w.T.astype(jnp.bfloat16)                       # (128, num_classes)
    params["fc2_b"] = fc2_b.astype(jnp.float32)                          # (num_classes,)
    return params


# ---------------------------------------------------------------------------
# Pure-JAX reference with matching numerics (bf16 dot inputs, f32 accumulation)
# ---------------------------------------------------------------------------
def forward_ref(params, x_ncl):
    x = jnp.transpose(x_ncl, (0, 2, 1)).astype(jnp.float32)
    x = jnp.pad(x, ((0, 0), (0, 0), (0, _CIN0_PAD - 1)))
    n_conv = len(_CONV_CFG)
    for li, (_cin, _cout, K, pad, pool) in enumerate(_CONV_CFG):
        p = params["conv"][li]
        L = x.shape[1]
        xp = jnp.pad(x, ((0, 0), (pad, pad), (0, 0)))
        xi = jnp.concatenate(
            [xp[:, k:k + L, :].astype(jnp.bfloat16) for k in range(K)], axis=-1)
        acc = jnp.einsum("nlk,kc->nlc", xi, p["w"], preferred_element_type=jnp.float32)
        x = jnp.maximum(acc * p["scale"][None] + p["shift"][None], 0.0)
        if pool:
            x = jnp.maximum(x[:, 0::2, :], x[:, 1::2, :])
            if li < n_conv - 1:
                # matches the kernel's bf16 even-row selection (exact bf16 rounding)
                x = x.astype(jnp.bfloat16).astype(jnp.float32)
    g = jnp.mean(x, axis=1)                                              # (N, 512)
    return _fc_head(params, g)


# ---------------------------------------------------------------------------
if __name__ == "__main__":
    key = jax.random.PRNGKey(0)
    kp, kx = jax.random.split(key)

    num_classes = 10
    batch = 2            # even batch: keeps both v7x TensorCores busy under "parallel"
    input_length = 64    # small; divisible by 8 so the three MaxPool1d(2) stay exact

    params = make_params(kp, num_classes=num_classes)
    x = jax.random.normal(kx, (batch, 1, input_length), jnp.float32)     # PyTorch NCL layout

    # Compatibility ladder: full-speed config first, then graceful degradations
    # (identical numerics) for jax versions missing pipeline_mode / roll lowering.
    attempts = (
        dict(single_buffer_weights=True, use_roll=True),
        dict(single_buffer_weights=False, use_roll=True),
        dict(single_buffer_weights=False, use_roll=False),
    )
    out = None
    last_err = None
    for kw in attempts:
        try:
            fwd = jax.jit(functools.partial(forward_pallas, **kw))
            out = jax.block_until_ready(fwd(params, x))
            break
        except Exception as e:          # pragma: no cover - compatibility fallback
            last_err = e
    if out is None:
        raise last_err
    assert out.shape == (batch, num_classes), out.shape

    ref = forward_ref(params, x)
    max_err = float(jnp.max(jnp.abs(out - ref)))
    assert jnp.allclose(out, ref, rtol=1e-2, atol=1e-2), ("mismatch vs JAX reference", max_err)

    # TODO(synk): Dropout / BatchNorm training-mode (batch-statistics) paths are intentionally
    # not implemented; this is the inference forward pass.
    print("KERNEL_OK")
</pallas_src>

<mosaic_0001>
module attributes {stable_mosaic.version = 11 : i64} {
  func.func @_fused_kernel(%arg0: i32, %arg1: memref<1x64x8xf32, #tpu.memory_space<vmem>>, %arg2: memref<40x16xbf16, #tpu.memory_space<vmem>>, %arg3: memref<1x16xf32, #tpu.memory_space<vmem>>, %arg4: memref<1x16xf32, #tpu.memory_space<vmem>>, %arg5: memref<80x32xbf16, #tpu.memory_space<vmem>>, %arg6: memref<1x32xf32, #tpu.memory_space<vmem>>, %arg7: memref<1x32xf32, #tpu.memory_space<vmem>>, %arg8: memref<96x64xbf16, #tpu.memory_space<vmem>>, %arg9: memref<1x64xf32, #tpu.memory_space<vmem>>, %arg10: memref<1x64xf32, #tpu.memory_space<vmem>>, %arg11: memref<192x128xbf16, #tpu.memory_space<vmem>>, %arg12: memref<1x128xf32, #tpu.memory_space<vmem>>, %arg13: memref<1x128xf32, #tpu.memory_space<vmem>>, %arg14: memref<384x256xbf16, #tpu.memory_space<vmem>>, %arg15: memref<1x256xf32, #tpu.memory_space<vmem>>, %arg16: memref<1x256xf32, #tpu.memory_space<vmem>>, %arg17: memref<768x512xbf16, #tpu.memory_space<vmem>>, %arg18: memref<1x512xf32, #tpu.memory_space<vmem>>, %arg19: memref<1x512xf32, #tpu.memory_space<vmem>>, %arg20: memref<1536x512xbf16, #tpu.memory_space<vmem>>, %arg21: memref<1x512xf32, #tpu.memory_space<vmem>>, %arg22: memref<1x512xf32, #tpu.memory_space<vmem>>, %arg23: memref<1536x512xbf16, #tpu.memory_space<vmem>>, %arg24: memref<1x512xf32, #tpu.memory_space<vmem>>, %arg25: memref<1x512xf32, #tpu.memory_space<vmem>>, %arg26: memref<1536x512xbf16, #tpu.memory_space<vmem>>, %arg27: memref<1x512xf32, #tpu.memory_space<vmem>>, %arg28: memref<1x512xf32, #tpu.memory_space<vmem>>, %arg29: memref<1x1x512xf32, #tpu.memory_space<vmem>>) attributes {dimension_semantics = [#tpu.dimension_semantics<parallel>], iteration_bounds = array<i64: 2>, scalar_prefetch = 0 : i64, scratch_operands = 0 : i64, tpu.core_type = #tpu.core_type<tc>, window_params = [{transform_indices = @transform_0, window_bounds = array<i64: 1, 64, 8>}, {pipeline_mode = #tpu.pipeline_mode<synchronous>, transform_indices = @transform_1, window_bounds = array<i64: 40, 16>}, {pipeline_mode = #tpu.pipeline_mode<synchronous>, transform_indices = @transform_2, window_bounds = array<i64: 1, 16>}, {pipeline_mode = #tpu.pipeline_mode<synchronous>, transform_indices = @transform_3, window_bounds = array<i64: 1, 16>}, {pipeline_mode = #tpu.pipeline_mode<synchronous>, transform_indices = @transform_4, window_bounds = array<i64: 80, 32>}, {pipeline_mode = #tpu.pipeline_mode<synchronous>, transform_indices = @transform_5, window_bounds = array<i64: 1, 32>}, {pipeline_mode = #tpu.pipeline_mode<synchronous>, transform_indices = @transform_6, window_bounds = array<i64: 1, 32>}, {pipeline_mode = #tpu.pipeline_mode<synchronous>, transform_indices = @transform_7, window_bounds = array<i64: 96, 64>}, {pipeline_mode = #tpu.pipeline_mode<synchronous>, transform_indices = @transform_8, window_bounds = array<i64: 1, 64>}, {pipeline_mode = #tpu.pipeline_mode<synchronous>, transform_indices = @transform_9, window_bounds = array<i64: 1, 64>}, {pipeline_mode = #tpu.pipeline_mode<synchronous>, transform_indices = @transform_10, window_bounds = array<i64: 192, 128>}, {pipeline_mode = #tpu.pipeline_mode<synchronous>, transform_indices = @transform_11, window_bounds = array<i64: 1, 128>}, {pipeline_mode = #tpu.pipeline_mode<synchronous>, transform_indices = @transform_12, window_bounds = array<i64: 1, 128>}, {pipeline_mode = #tpu.pipeline_mode<synchronous>, transform_indices = @transform_13, window_bounds = array<i64: 384, 256>}, {pipeline_mode = #tpu.pipeline_mode<synchronous>, transform_indices = @transform_14, window_bounds = array<i64: 1, 256>}, {pipeline_mode = #tpu.pipeline_mode<synchronous>, transform_indices = @transform_15, window_bounds = array<i64: 1, 256>}, {pipeline_mode = #tpu.pipeline_mode<synchronous>, transform_indices = @transform_16, window_bounds = array<i64: 768, 512>}, {pipeline_mode = #tpu.pipeline_mode<synchronous>, transform_indices = @transform_17, window_bounds = array<i64: 1, 512>}, {pipeline_mode = #tpu.pipeline_mode<synchronous>, transform_indices = @transform_18, window_bounds = array<i64: 1, 512>}, {pipeline_mode = #tpu.pipeline_mode<synchronous>, transform_indices = @transform_19, window_bounds = array<i64: 1536, 512>}, {pipeline_mode = #tpu.pipeline_mode<synchronous>, transform_indices = @transform_20, window_bounds = array<i64: 1, 512>}, {pipeline_mode = #tpu.pipeline_mode<synchronous>, transform_indices = @transform_21, window_bounds = array<i64: 1, 512>}, {pipeline_mode = #tpu.pipeline_mode<synchronous>, transform_indices = @transform_22, window_bounds = array<i64: 1536, 512>}, {pipeline_mode = #tpu.pipeline_mode<synchronous>, transform_indices = @transform_23, window_bounds = array<i64: 1, 512>}, {pipeline_mode = #tpu.pipeline_mode<synchronous>, transform_indices = @transform_24, window_bounds = array<i64: 1, 512>}, {pipeline_mode = #tpu.pipeline_mode<synchronous>, transform_indices = @transform_25, window_bounds = array<i64: 1536, 512>}, {pipeline_mode = #tpu.pipeline_mode<synchronous>, transform_indices = @transform_26, window_bounds = array<i64: 1, 512>}, {pipeline_mode = #tpu.pipeline_mode<synchronous>, transform_indices = @transform_27, window_bounds = array<i64: 1, 512>}, {transform_indices = @transform_28, window_bounds = array<i64: 1, 1, 512>}]} {
    %c0 = arith.constant 0 : index
    %c0_0 = arith.constant 0 : index
    %c0_1 = arith.constant 0 : index
    %0 = vector.load %arg1[%c0, %c0_0, %c0_1] : memref<1x64x8xf32, #tpu.memory_space<vmem>>, vector<1x64x8xf32>
    %1 = vector.shape_cast %0 : vector<1x64x8xf32> to vector<64x8xf32>
    %c0_2 = arith.constant 0 : index
    %c0_3 = arith.constant 0 : index
    %2 = vector.load %arg3[%c0_2, %c0_3] : memref<1x16xf32, #tpu.memory_space<vmem>>, vector<1x16xf32>
    %c0_4 = arith.constant 0 : index
    %c0_5 = arith.constant 0 : index
    %3 = vector.load %arg4[%c0_4, %c0_5] : memref<1x16xf32, #tpu.memory_space<vmem>>, vector<1x16xf32>
    %4 = tpu.iota {dimensions = array<i32: 0>} : vector<64x64xi32>
    %5 = tpu.iota {dimensions = array<i32: 1>} : vector<64x64xi32>
    %c-2_i32 = arith.constant -2 : i32
    %6 = vector.broadcast %c-2_i32 : i32 to vector<64x64xi32>
    %7 = arith.addi %4, %6 : vector<64x64xi32>
    %8 = arith.cmpi eq, %5, %7 : vector<64x64xi32>
    %9 = arith.extui %8 : vector<64x64xi1> to vector<64x64xi32>
    %10 = arith.sitofp %9 : vector<64x64xi32> to vector<64x64xf32>
    %cst = arith.constant dense<0.000000e+00> : vector<64x8xf32>
    %11 = tpu.matmul %10, %1, %cst {dimension_numbers = #tpu.dot_dimension_numbers<[1], [0], [0], [1], [0, 0, 1, 1], [], []>} : vector<64x64xf32>, vector<64x8xf32>, vector<64x8xf32> -> vector<64x8xf32>
    %12 = arith.truncf %11 : vector<64x8xf32> to vector<64x8xbf16>
    %13 = tpu.iota {dimensions = array<i32: 0>} : vector<64x64xi32>
    %14 = tpu.iota {dimensions = array<i32: 1>} : vector<64x64xi32>
    %c-1_i32 = arith.constant -1 : i32
    %15 = vector.broadcast %c-1_i32 : i32 to vector<64x64xi32>
    %16 = arith.addi %13, %15 : vector<64x64xi32>
    %17 = arith.cmpi eq, %14, %16 : vector<64x64xi32>
    %18 = arith.extui %17 : vector<64x64xi1> to vector<64x64xi32>
    %19 = arith.sitofp %18 : vector<64x64xi32> to vector<64x64xf32>
    %cst_6 = arith.constant dense<0.000000e+00> : vector<64x8xf32>
    %20 = tpu.matmul %19, %1, %cst_6 {dimension_numbers = #tpu.dot_dimension_numbers<[1], [0], [0], [1], [0, 0, 1, 1], [], []>} : vector<64x64xf32>, vector<64x8xf32>, vector<64x8xf32> -> vector<64x8xf32>
    %21 = arith.truncf %20 : vector<64x8xf32> to vector<64x8xbf16>
    %22 = arith.truncf %1 : vector<64x8xf32> to vector<64x8xbf16>
    %23 = tpu.iota {dimensions = array<i32: 0>} : vector<64x64xi32>
    %24 = tpu.iota {dimensions = array<i32: 1>} : vector<64x64xi32>
    %c1_i32 = arith.constant 1 : i32
    %25 = vector.broadcast %c1_i32 : i32 to vector<64x64xi32>
    %26 = arith.addi %23, %25 : vector<64x64xi32>
    %27 = arith.cmpi eq, %24, %26 : vector<64x64xi32>
    %28 = arith.extui %27 : vector<64x64xi1> to vector<64x64xi32>
    %29 = arith.sitofp %28 : vector<64x64xi32> to vector<64x64xf32>
    %cst_7 = arith.constant dense<0.000000e+00> : vector<64x8xf32>
    %30 = tpu.matmul %29, %1, %cst_7 {dimension_numbers = #tpu.dot_dimension_numbers<[1], [0], [0], [1], [0, 0, 1, 1], [], []>} : vector<64x64xf32>, vector<64x8xf32>, vector<64x8xf32> -> vector<64x8xf32>
    %31 = arith.truncf %30 : vector<64x8xf32> to vector<64x8xbf16>
    %32 = tpu.iota {dimensions = array<i32: 0>} : vector<64x64xi32>
    %33 = tpu.iota {dimensions = array<i32: 1>} : vector<64x64xi32>
    %c2_i32 = arith.constant 2 : i32
    %34 = vector.broadcast %c2_i32 : i32 to vector<64x64xi32>
    %35 = arith.addi %32, %34 : vector<64x64xi32>
    %36 = arith.cmpi eq, %33, %35 : vector<64x64xi32>
    %37 = arith.extui %36 : vector<64x64xi1> to vector<64x64xi32>
    %38 = arith.sitofp %37 : vector<64x64xi32> to vector<64x64xf32>
    %cst_8 = arith.constant dense<0.000000e+00> : vector<64x8xf32>
    %39 = tpu.matmul %38, %1, %cst_8 {dimension_numbers = #tpu.dot_dimension_numbers<[1], [0], [0], [1], [0, 0, 1, 1], [], []>} : vector<64x64xf32>, vector<64x8xf32>, vector<64x8xf32> -> vector<64x8xf32>
    %40 = arith.truncf %39 : vector<64x8xf32> to vector<64x8xbf16>
    %cst_9 = arith.constant 0.000000e+00 : f32
    %41 = vector.broadcast %cst_9 : f32 to vector<64x16xf32>
    %c0_10 = arith.constant 0 : index
    %c0_11 = arith.constant 0 : index
    %42 = vector.load %arg2[%c0_10, %c0_11] : memref<40x16xbf16, #tpu.memory_space<vmem>>, vector<8x16xbf16>
    %cst_12 = arith.constant dense<0.000000e+00> : vector<64x16xf32>
    %43 = tpu.matmul %12, %42, %cst_12 {dimension_numbers = #tpu.dot_dimension_numbers<[1], [0], [0], [1], [0, 0, 1, 1], [], []>} : vector<64x8xbf16>, vector<8x16xbf16>, vector<64x16xf32> -> vector<64x16xf32>
    %44 = arith.addf %41, %43 : vector<64x16xf32>
    %c8 = arith.constant 8 : index
    %c0_13 = arith.constant 0 : index
    %45 = vector.load %arg2[%c8, %c0_13] : memref<40x16xbf16, #tpu.memory_space<vmem>>, vector<8x16xbf16>
    %cst_14 = arith.constant dense<0.000000e+00> : vector<64x16xf32>
    %46 = tpu.matmul %21, %45, %cst_14 {dimension_numbers = #tpu.dot_dimension_numbers<[1], [0], [0], [1], [0, 0, 1, 1], [], []>} : vector<64x8xbf16>, vector<8x16xbf16>, vector<64x16xf32> -> vector<64x16xf32>
    %47 = arith.addf %44, %46 : vector<64x16xf32>
    %c16 = arith.constant 16 : index
    %c0_15 = arith.constant 0 : index
    %48 = vector.load %arg2[%c16, %c0_15] : memref<40x16xbf16, #tpu.memory_space<vmem>>, vector<8x16xbf16>
    %cst_16 = arith.constant dense<0.000000e+00> : vector<64x16xf32>
    %49 = tpu.matmul %22, %48, %cst_16 {dimension_numbers = #tpu.dot_dimension_numbers<[1], [0], [0], [1], [0, 0, 1, 1], [], []>} : vector<64x8xbf16>, vector<8x16xbf16>, vector<64x16xf32> -> vector<64x16xf32>
    %50 = arith.addf %47, %49 : vector<64x16xf32>
    %c24 = arith.constant 24 : index
    %c0_17 = arith.constant 0 : index
    %51 = vector.load %arg2[%c24, %c0_17] : memref<40x16xbf16, #tpu.memory_space<vmem>>, vector<8x16xbf16>
    %cst_18 = arith.constant dense<0.000000e+00> : vector<64x16xf32>
    %52 = tpu.matmul %31, %51, %cst_18 {dimension_numbers = #tpu.dot_dimension_numbers<[1], [0], [0], [1], [0, 0, 1, 1], [], []>} : vector<64x8xbf16>, vector<8x16xbf16>, vector<64x16xf32> -> vector<64x16xf32>
    %53 = arith.addf %50, %52 : vector<64x16xf32>
    %c32 = arith.constant 32 : index
    %c0_19 = arith.constant 0 : index
    %54 = vector.load %arg2[%c32, %c0_19] : memref<40x16xbf16, #tpu.memory_space<vmem>>, vector<8x16xbf16>
    %cst_20 = arith.constant dense<0.000000e+00> : vector<64x16xf32>
    %55 = tpu.matmul %40, %54, %cst_20 {dimension_numbers = #tpu.dot_dimension_numbers<[1], [0], [0], [1], [0, 0, 1, 1], [], []>} : vector<64x8xbf16>, vector<8x16xbf16>, vector<64x16xf32> -> vector<64x16xf32>
    %56 = arith.addf %53, %55 : vector<64x16xf32>
    %57 = vector.broadcast %2 : vector<1x16xf32> to vector<64x16xf32>
    %58 = arith.mulf %56, %57 : vector<64x16xf32>
    %59 = vector.broadcast %3 : vector<1x16xf32> to vector<64x16xf32>
    %60 = arith.addf %58, %59 : vector<64x16xf32>
    %cst_21 = arith.constant 0.000000e+00 : f32
    %61 = vector.broadcast %cst_21 : f32 to vector<64x16xf32>
    %62 = arith.maximumf %60, %61 : vector<64x16xf32>
    %c0_22 = arith.constant 0 : index
    %c0_23 = arith.constant 0 : index
    %63 = vector.load %arg6[%c0_22, %c0_23] : memref<1x32xf32, #tpu.memory_space<vmem>>, vector<1x32xf32>
    %c0_24 = arith.constant 0 : index
    %c0_25 = arith.constant 0 : index
    %64 = vector.load %arg7[%c0_24, %c0_25] : memref<1x32xf32, #tpu.memory_space<vmem>>, vector<1x32xf32>
    %65 = tpu.iota {dimensions = array<i32: 0>} : vector<64x64xi32>
    %66 = tpu.iota {dimensions = array<i32: 1>} : vector<64x64xi32>
    %c-2_i32_26 = arith.constant -2 : i32
    %67 = vector.broadcast %c-2_i32_26 : i32 to vector<64x64xi32>
    %68 = arith.addi %65, %67 : vector<64x64xi32>
    %69 = arith.cmpi eq, %66, %68 : vector<64x64xi32>
    %70 = arith.extui %69 : vector<64x64xi1> to vector<64x64xi32>
    %71 = arith.sitofp %70 : vector<64x64xi32> to vector<64x64xf32>
    %cst_27 = arith.constant dense<0.000000e+00> : vector<64x16xf32>
    %72 = tpu.matmul %71, %62, %cst_27 {dimension_numbers = #tpu.dot_dimension_numbers<[1], [0], [0], [1], [0, 0, 1, 1], [], []>} : vector<64x64xf32>, vector<64x16xf32>, vector<64x16xf32> -> vector<64x16xf32>
    %73 = arith.truncf %72 : vector<64x16xf32> to vector<64x16xbf16>
    %74 = tpu.iota {dimensions = array<i32: 0>} : vector<64x64xi32>
    %75 = tpu.iota {dimensions = array<i32: 1>} : vector<64x64xi32>
    %c-1_i32_28 = arith.constant -1 : i32
    %76 = vector.broadcast %c-1_i32_28 : i32 to vector<64x64xi32>
    %77 = arith.addi %74, %76 : vector<64x64xi32>
    %78 = arith.cmpi eq, %75, %77 : vector<64x64xi32>
    %79 = arith.extui %78 : vector<64x64xi1> to vector<64x64xi32>
    %80 = arith.sitofp %79 : vector<64x64xi32> to vector<64x64xf32>
    %cst_29 = arith.constant dense<0.000000e+00> : vector<64x16xf32>
    %81 = tpu.matmul %80, %62, %cst_29 {dimension_numbers = #tpu.dot_dimension_numbers<[1], [0], [0], [1], [0, 0, 1, 1], [], []>} : vector<64x64xf32>, vector<64x16xf32>, vector<64x16xf32> -> vector<64x16xf32>
    %82 = arith.truncf %81 : vector<64x16xf32> to vector<64x16xbf16>
    %83 = arith.truncf %62 : vector<64x16xf32> to vector<64x16xbf16>
    %84 = tpu.iota {dimensions = array<i32: 0>} : vector<64x64xi32>
    %85 = tpu.iota {dimensions = array<i32: 1>} : vector<64x64xi32>
    %c1_i32_30 = arith.constant 1 : i32
    %86 = vector.broadcast %c1_i32_30 : i32 to vector<64x64xi32>
    %87 = arith.addi %84, %86 : vector<64x64xi32>
    %88 = arith.cmpi eq, %85, %87 : vector<64x64xi32>
    %89 = arith.extui %88 : vector<64x64xi1> to vector<64x64xi32>
    %90 = arith.sitofp %89 : vector<64x64xi32> to vector<64x64xf32>
    %cst_31 = arith.constant dense<0.000000e+00> : vector<64x16xf32>
    %91 = tpu.matmul %90, %62, %cst_31 {dimension_numbers = #tpu.dot_dimension_numbers<[1], [0], [0], [1], [0, 0, 1, 1], [], []>} : vector<64x64xf32>, vector<64x16xf32>, vector<64x16xf32> -> vector<64x16xf32>
    %92 = arith.truncf %91 : vector<64x16xf32> to vector<64x16xbf16>
    %93 = tpu.iota {dimensions = array<i32: 0>} : vector<64x64xi32>
    %94 = tpu.iota {dimensions = array<i32: 1>} : vector<64x64xi32>
    %c2_i32_32 = arith.constant 2 : i32
    %95 = vector.broadcast %c2_i32_32 : i32 to vector<64x64xi32>
    %96 = arith.addi %93, %95 : vector<64x64xi32>
    %97 = arith.cmpi eq, %94, %96 : vector<64x64xi32>
    %98 = arith.extui %97 : vector<64x64xi1> to vector<64x64xi32>
    %99 = arith.sitofp %98 : vector<64x64xi32> to vector<64x64xf32>
    %cst_33 = arith.constant dense<0.000000e+00> : vector<64x16xf32>
    %100 = tpu.matmul %99, %62, %cst_33 {dimension_numbers = #tpu.dot_dimension_numbers<[1], [0], [0], [1], [0, 0, 1, 1], [], []>} : vector<64x64xf32>, vector<64x16xf32>, vector<64x16xf32> -> vector<64x16xf32>
    %101 = arith.truncf %100 : vector<64x16xf32> to vector<64x16xbf16>
    %cst_34 = arith.constant 0.000000e+00 : f32
    %102 = vector.broadcast %cst_34 : f32 to vector<64x32xf32>
    %c0_35 = arith.constant 0 : index
    %c0_36 = arith.constant 0 : index
    %103 = vector.load %arg5[%c0_35, %c0_36] : memref<80x32xbf16, #tpu.memory_space<vmem>>, vector<16x32xbf16>
    %cst_37 = arith.constant dense<0.000000e+00> : vector<64x32xf32>
    %104 = tpu.matmul %73, %103, %cst_37 {dimension_numbers = #tpu.dot_dimension_numbers<[1], [0], [0], [1], [0, 0, 1, 1], [], []>} : vector<64x16xbf16>, vector<16x32xbf16>, vector<64x32xf32> -> vector<64x32xf32>
    %105 = arith.addf %102, %104 : vector<64x32xf32>
    %c16_38 = arith.constant 16 : index
    %c0_39 = arith.constant 0 : index
    %106 = vector.load %arg5[%c16_38, %c0_39] : memref<80x32xbf16, #tpu.memory_space<vmem>>, vector<16x32xbf16>
    %cst_40 = arith.constant dense<0.000000e+00> : vector<64x32xf32>
    %107 = tpu.matmul %82, %106, %cst_40 {dimension_numbers = #tpu.dot_dimension_numbers<[1], [0], [0], [1], [0, 0, 1, 1], [], []>} : vector<64x16xbf16>, vector<16x32xbf16>, vector<64x32xf32> -> vector<64x32xf32>
    %108 = arith.addf %105, %107 : vector<64x32xf32>
    %c32_41 = arith.constant 32 : index
    %c0_42 = arith.constant 0 : index
    %109 = vector.load %arg5[%c32_41, %c0_42] : memref<80x32xbf16, #tpu.memory_space<vmem>>, vector<16x32xbf16>
    %cst_43 = arith.constant dense<0.000000e+00> : vector<64x32xf32>
    %110 = tpu.matmul %83, %109, %cst_43 {dimension_numbers = #tpu.dot_dimension_numbers<[1], [0], [0], [1], [0, 0, 1, 1], [], []>} : vector<64x16xbf16>, vector<16x32xbf16>, vector<64x32xf32> -> vector<64x32xf32>
    %111 = arith.addf %108, %110 : vector<64x32xf32>
    %c48 = arith.constant 48 : index
    %c0_44 = arith.constant 0 : index
    %112 = vector.load %arg5[%c48, %c0_44] : memref<80x32xbf16, #tpu.memory_space<vmem>>, vector<16x32xbf16>
    %cst_45 = arith.constant dense<0.000000e+00> : vector<64x32xf32>
    %113 = tpu.matmul %92, %112, %cst_45 {dimension_numbers = #tpu.dot_dimension_numbers<[1], [0], [0], [1], [0, 0, 1, 1], [], []>} : vector<64x16xbf16>, vector<16x32xbf16>, vector<64x32xf32> -> vector<64x32xf32>
    %114 = arith.addf %111, %113 : vector<64x32xf32>
    %c64 = arith.constant 64 : index
    %c0_46 = arith.constant 0 : index
    %115 = vector.load %arg5[%c64, %c0_46] : memref<80x32xbf16, #tpu.memory_space<vmem>>, vector<16x32xbf16>
    %cst_47 = arith.constant dense<0.000000e+00> : vector<64x32xf32>
    %116 = tpu.matmul %101, %115, %cst_47 {dimension_numbers = #tpu.dot_dimension_numbers<[1], [0], [0], [1], [0, 0, 1, 1], [], []>} : vector<64x16xbf16>, vector<16x32xbf16>, vector<64x32xf32> -> vector<64x32xf32>
    %117 = arith.addf %114, %116 : vector<64x32xf32>
    %118 = vector.broadcast %63 : vector<1x32xf32> to vector<64x32xf32>
    %119 = arith.mulf %117, %118 : vector<64x32xf32>
    %120 = vector.broadcast %64 : vector<1x32xf32> to vector<64x32xf32>
    %121 = arith.addf %119, %120 : vector<64x32xf32>
    %cst_48 = arith.constant 0.000000e+00 : f32
    %122 = vector.broadcast %cst_48 : f32 to vector<64x32xf32>
    %123 = arith.maximumf %121, %122 : vector<64x32xf32>
    %c0_49 = arith.constant 0 : index
    %c0_50 = arith.constant 0 : index
    %124 = vector.load %arg9[%c0_49, %c0_50] : memref<1x64xf32, #tpu.memory_space<vmem>>, vector<1x64xf32>
    %c0_51 = arith.constant 0 : index
    %c0_52 = arith.constant 0 : index
    %125 = vector.load %arg10[%c0_51, %c0_52] : memref<1x64xf32, #tpu.memory_space<vmem>>, vector<1x64xf32>
    %126 = tpu.iota {dimensions = array<i32: 0>} : vector<64x64xi32>
    %127 = tpu.iota {dimensions = array<i32: 1>} : vector<64x64xi32>
    %c-1_i32_53 = arith.constant -1 : i32
    %128 = vector.broadcast %c-1_i32_53 : i32 to vector<64x64xi32>
    %129 = arith.addi %126, %128 : vector<64x64xi32>
    %130 = arith.cmpi eq, %127, %129 : vector<64x64xi32>
    %131 = arith.extui %130 : vector<64x64xi1> to vector<64x64xi32>
    %132 = arith.sitofp %131 : vector<64x64xi32> to vector<64x64xf32>
    %cst_54 = arith.constant dense<0.000000e+00> : vector<64x32xf32>
    %133 = tpu.matmul %132, %123, %cst_54 {dimension_numbers = #tpu.dot_dimension_numbers<[1], [0], [0], [1], [0, 0, 1, 1], [], []>} : vector<64x64xf32>, vector<64x32xf32>, vector<64x32xf32> -> vector<64x32xf32>
    %134 = arith.truncf %133 : vector<64x32xf32> to vector<64x32xbf16>
    %135 = arith.truncf %123 : vector<64x32xf32> to vector<64x32xbf16>
    %136 = tpu.iota {dimensions = array<i32: 0>} : vector<64x64xi32>
    %137 = tpu.iota {dimensions = array<i32: 1>} : vector<64x64xi32>
    %c1_i32_55 = arith.constant 1 : i32
    %138 = vector.broadcast %c1_i32_55 : i32 to vector<64x64xi32>
    %139 = arith.addi %136, %138 : vector<64x64xi32>
    %140 = arith.cmpi eq, %137, %139 : vector<64x64xi32>
    %141 = arith.extui %140 : vector<64x64xi1> to vector<64x64xi32>
    %142 = arith.sitofp %141 : vector<64x64xi32> to vector<64x64xf32>
    %cst_56 = arith.constant dense<0.000000e+00> : vector<64x32xf32>
    %143 = tpu.matmul %142, %123, %cst_56 {dimension_numbers = #tpu.dot_dimension_numbers<[1], [0], [0], [1], [0, 0, 1, 1], [], []>} : vector<64x64xf32>, vector<64x32xf32>, vector<64x32xf32> -> vector<64x32xf32>
    %144 = arith.truncf %143 : vector<64x32xf32> to vector<64x32xbf16>
    %cst_57 = arith.constant 0.000000e+00 : f32
    %145 = vector.broadcast %cst_57 : f32 to vector<64x64xf32>
    %c0_58 = arith.constant 0 : index
    %c0_59 = arith.constant 0 : index
    %146 = vector.load %arg8[%c0_58, %c0_59] : memref<96x64xbf16, #tpu.memory_space<vmem>>, vector<32x64xbf16>
    %cst_60 = arith.constant dense<0.000000e+00> : vector<64x64xf32>
    %147 = tpu.matmul %134, %146, %cst_60 {dimension_numbers = #tpu.dot_dimension_numbers<[1], [0], [0], [1], [0, 0, 1, 1], [], []>} : vector<64x32xbf16>, vector<32x64xbf16>, vector<64x64xf32> -> vector<64x64xf32>
    %148 = arith.addf %145, %147 : vector<64x64xf32>
    %c32_61 = arith.constant 32 : index
    %c0_62 = arith.constant 0 : index
    %149 = vector.load %arg8[%c32_61, %c0_62] : memref<96x64xbf16, #tpu.memory_space<vmem>>, vector<32x64xbf16>
    %cst_63 = arith.constant dense<0.000000e+00> : vector<64x64xf32>
    %150 = tpu.matmul %135, %149, %cst_63 {dimension_numbers = #tpu.dot_dimension_numbers<[1], [0], [0], [1], [0, 0, 1, 1], [], []>} : vector<64x32xbf16>, vector<32x64xbf16>, vector<64x64xf32> -> vector<64x64xf32>
    %151 = arith.addf %148, %150 : vector<64x64xf32>
    %c64_64 = arith.constant 64 : index
    %c0_65 = arith.constant 0 : index
    %152 = vector.load %arg8[%c64_64, %c0_65] : memref<96x64xbf16, #tpu.memory_space<vmem>>, vector<32x64xbf16>
    %cst_66 = arith.constant dense<0.000000e+00> : vector<64x64xf32>
    %153 = tpu.matmul %144, %152, %cst_66 {dimension_numbers = #tpu.dot_dimension_numbers<[1], [0], [0], [1], [0, 0, 1, 1], [], []>} : vector<64x32xbf16>, vector<32x64xbf16>, vector<64x64xf32> -> vector<64x64xf32>
    %154 = arith.addf %151, %153 : vector<64x64xf32>
    %155 = vector.broadcast %124 : vector<1x64xf32> to vector<64x64xf32>
    %156 = arith.mulf %154, %155 : vector<64x64xf32>
    %157 = vector.broadcast %125 : vector<1x64xf32> to vector<64x64xf32>
    %158 = arith.addf %156, %157 : vector<64x64xf32>
    %cst_67 = arith.constant 0.000000e+00 : f32
    %159 = vector.broadcast %cst_67 : f32 to vector<64x64xf32>
    %160 = arith.maximumf %158, %159 : vector<64x64xf32>
    %161 = tpu.iota {dimensions = array<i32: 0>} : vector<64x64xi32>
    %162 = tpu.iota {dimensions = array<i32: 1>} : vector<64x64xi32>
    %c1_i32_68 = arith.constant 1 : i32
    %163 = vector.broadcast %c1_i32_68 : i32 to vector<64x64xi32>
    %164 = arith.addi %161, %163 : vector<64x64xi32>
    %165 = arith.cmpi eq, %162, %164 : vector<64x64xi32>
    %166 = arith.extui %165 : vector<64x64xi1> to vector<64x64xi32>
    %167 = arith.sitofp %166 : vector<64x64xi32> to vector<64x64xf32>
    %cst_69 = arith.constant dense<0.000000e+00> : vector<64x64xf32>
    %168 = tpu.matmul %167, %160, %cst_69 {dimension_numbers = #tpu.dot_dimension_numbers<[1], [0], [0], [1], [0, 0, 1, 1], [], []>} : vector<64x64xf32>, vector<64x64xf32>, vector<64x64xf32> -> vector<64x64xf32>
    %169 = arith.maximumf %160, %168 : vector<64x64xf32>
    %170 = arith.truncf %169 : vector<64x64xf32> to vector<64x64xbf16>
    %171 = tpu.iota {dimensions = array<i32: 0>} : vector<32x64xi32>
    %172 = tpu.iota {dimensions = array<i32: 1>} : vector<32x64xi32>
    %c2_i32_70 = arith.constant 2 : i32
    %173 = vector.broadcast %c2_i32_70 : i32 to vector<32x64xi32>
    %174 = arith.muli %173, %171 : vector<32x64xi32>
    %175 = arith.cmpi eq, %172, %174 : vector<32x64xi32>
    %176 = arith.extui %175 : vector<32x64xi1> to vector<32x64xi32>
    %177 = arith.sitofp %176 : vector<32x64xi32> to vector<32x64xf32>
    %178 = arith.truncf %177 : vector<32x64xf32> to vector<32x64xbf16>
    %cst_71 = arith.constant dense<0.000000e+00> : vector<32x64xf32>
    %179 = tpu.matmul %178, %170, %cst_71 {dimension_numbers = #tpu.dot_dimension_numbers<[1], [0], [0], [1], [0, 0, 1, 1], [], []>} : vector<32x64xbf16>, vector<64x64xbf16>, vector<32x64xf32> -> vector<32x64xf32>
    %c0_72 = arith.constant 0 : index
    %c0_73 = arith.constant 0 : index
    %180 = vector.load %arg12[%c0_72, %c0_73] : memref<1x128xf32, #tpu.memory_space<vmem>>, vector<1x128xf32>
    %c0_74 = arith.constant 0 : index
    %c0_75 = arith.constant 0 : index
    %181 = vector.load %arg13[%c0_74, %c0_75] : memref<1x128xf32, #tpu.memory_space<vmem>>, vector<1x128xf32>
    %182 = tpu.iota {dimensions = array<i32: 0>} : vector<32x32xi32>
    %183 = tpu.iota {dimensions = array<i32: 1>} : vector<32x32xi32>
    %c-1_i32_76 = arith.constant -1 : i32
    %184 = vector.broadcast %c-1_i32_76 : i32 to vector<32x32xi32>
    %185 = arith.addi %182, %184 : vector<32x32xi32>
    %186 = arith.cmpi eq, %183, %185 : vector<32x32xi32>
    %187 = arith.extui %186 : vector<32x32xi1> to vector<32x32xi32>
    %188 = arith.sitofp %187 : vector<32x32xi32> to vector<32x32xf32>
    %cst_77 = arith.constant dense<0.000000e+00> : vector<32x64xf32>
    %189 = tpu.matmul %188, %179, %cst_77 {dimension_numbers = #tpu.dot_dimension_numbers<[1], [0], [0], [1], [0, 0, 1, 1], [], []>} : vector<32x32xf32>, vector<32x64xf32>, vector<32x64xf32> -> vector<32x64xf32>
    %190 = arith.truncf %189 : vector<32x64xf32> to vector<32x64xbf16>
    %191 = arith.truncf %179 : vector<32x64xf32> to vector<32x64xbf16>
    %192 = tpu.iota {dimensions = array<i32: 0>} : vector<32x32xi32>
    %193 = tpu.iota {dimensions = array<i32: 1>} : vector<32x32xi32>
    %c1_i32_78 = arith.constant 1 : i32
    %194 = vector.broadcast %c1_i32_78 : i32 to vector<32x32xi32>
    %195 = arith.addi %192, %194 : vector<32x32xi32>
    %196 = arith.cmpi eq, %193, %195 : vector<32x32xi32>
    %197 = arith.extui %196 : vector<32x32xi1> to vector<32x32xi32>
    %198 = arith.sitofp %197 : vector<32x32xi32> to vector<32x32xf32>
    %cst_79 = arith.constant dense<0.000000e+00> : vector<32x64xf32>
    %199 = tpu.matmul %198, %179, %cst_79 {dimension_numbers = #tpu.dot_dimension_numbers<[1], [0], [0], [1], [0, 0, 1, 1], [], []>} : vector<32x32xf32>, vector<32x64xf32>, vector<32x64xf32> -> vector<32x64xf32>
    %200 = arith.truncf %199 : vector<32x64xf32> to vector<32x64xbf16>
    %cst_80 = arith.constant 0.000000e+00 : f32
    %201 = vector.broadcast %cst_80 : f32 to vector<32x128xf32>
    %c0_81 = arith.constant 0 : index
    %c0_82 = arith.constant 0 : index
    %202 = vector.load %arg11[%c0_81, %c0_82] : memref<192x128xbf16, #tpu.memory_space<vmem>>, vector<64x128xbf16>
    %cst_83 = arith.constant dense<0.000000e+00> : vector<32x128xf32>
    %203 = tpu.matmul %190, %202, %cst_83 {dimension_numbers = #tpu.dot_dimension_numbers<[1], [0], [0], [1], [0, 0, 1, 1], [], []>} : vector<32x64xbf16>, vector<64x128xbf16>, vector<32x128xf32> -> vector<32x128xf32>
    %204 = arith.addf %201, %203 : vector<32x128xf32>
    %c64_84 = arith.constant 64 : index
    %c0_85 = arith.constant 0 : index
    %205 = vector.load %arg11[%c64_84, %c0_85] : memref<192x128xbf16, #tpu.memory_space<vmem>>, vector<64x128xbf16>
    %cst_86 = arith.constant dense<0.000000e+00> : vector<32x128xf32>
    %206 = tpu.matmul %191, %205, %cst_86 {dimension_numbers = #tpu.dot_dimension_numbers<[1], [0], [0], [1], [0, 0, 1, 1], [], []>} : vector<32x64xbf16>, vector<64x128xbf16>, vector<32x128xf32> -> vector<32x128xf32>
    %207 = arith.addf %204, %206 : vector<32x128xf32>
    %c128 = arith.constant 128 : index
    %c0_87 = arith.constant 0 : index
    %208 = vector.load %arg11[%c128, %c0_87] : memref<192x128xbf16, #tpu.memory_space<vmem>>, vector<64x128xbf16>
    %cst_88 = arith.constant dense<0.000000e+00> : vector<32x128xf32>
    %209 = tpu.matmul %200, %208, %cst_88 {dimension_numbers = #tpu.dot_dimension_numbers<[1], [0], [0], [1], [0, 0, 1, 1], [], []>} : vector<32x64xbf16>, vector<64x128xbf16>, vector<32x128xf32> -> vector<32x128xf32>
    %210 = arith.addf %207, %209 : vector<32x128xf32>
    %211 = vector.broadcast %180 : vector<1x128xf32> to vector<32x128xf32>
    %212 = arith.mulf %210, %211 : vector<32x128xf32>
    %213 = vector.broadcast %181 : vector<1x128xf32> to vector<32x128xf32>
    %214 = arith.addf %212, %213 : vector<32x128xf32>
    %cst_89 = arith.constant 0.000000e+00 : f32
    %215 = vector.broadcast %cst_89 : f32 to vector<32x128xf32>
    %216 = arith.maximumf %214, %215 : vector<32x128xf32>
    %c0_90 = arith.constant 0 : index
    %c0_91 = arith.constant 0 : index
    %217 = vector.load %arg15[%c0_90, %c0_91] : memref<1x256xf32, #tpu.memory_space<vmem>>, vector<1x256xf32>
    %c0_92 = arith.constant 0 : index
    %c0_93 = arith.constant 0 : index
    %218 = vector.load %arg16[%c0_92, %c0_93] : memref<1x256xf32, #tpu.memory_space<vmem>>, vector<1x256xf32>
    %219 = tpu.iota {dimensions = array<i32: 0>} : vector<32x32xi32>
    %220 = tpu.iota {dimensions = array<i32: 1>} : vector<32x32xi32>
    %c-1_i32_94 = arith.constant -1 : i32
    %221 = vector.broadcast %c-1_i32_94 : i32 to vector<32x32xi32>
    %222 = arith.addi %219, %221 : vector<32x32xi32>
    %223 = arith.cmpi eq, %220, %222 : vector<32x32xi32>
    %224 = arith.extui %223 : vector<32x32xi1> to vector<32x32xi32>
    %225 = arith.sitofp %224 : vector<32x32xi32> to vector<32x32xf32>
    %cst_95 = arith.constant dense<0.000000e+00> : vector<32x128xf32>
    %226 = tpu.matmul %225, %216, %cst_95 {dimension_numbers = #tpu.dot_dimension_numbers<[1], [0], [0], [1], [0, 0, 1, 1], [], []>} : vector<32x32xf32>, vector<32x128xf32>, vector<32x128xf32> -> vector<32x128xf32>
    %227 = arith.truncf %226 : vector<32x128xf32> to vector<32x128xbf16>
    %228 = arith.truncf %216 : vector<32x128xf32> to vector<32x128xbf16>
    %229 = tpu.iota {dimensions = array<i32: 0>} : vector<32x32xi32>
    %230 = tpu.iota {dimensions = array<i32: 1>} : vector<32x32xi32>
    %c1_i32_96 = arith.constant 1 : i32
    %231 = vector.broadcast %c1_i32_96 : i32 to vector<32x32xi32>
    %232 = arith.addi %229, %231 : vector<32x32xi32>
    %233 = arith.cmpi eq, %230, %232 : vector<32x32xi32>
    %234 = arith.extui %233 : vector<32x32xi1> to vector<32x32xi32>
    %235 = arith.sitofp %234 : vector<32x32xi32> to vector<32x32xf32>
    %cst_97 = arith.constant dense<0.000000e+00> : vector<32x128xf32>
    %236 = tpu.matmul %235, %216, %cst_97 {dimension_numbers = #tpu.dot_dimension_numbers<[1], [0], [0], [1], [0, 0, 1, 1], [], []>} : vector<32x32xf32>, vector<32x128xf32>, vector<32x128xf32> -> vector<32x128xf32>
    %237 = arith.truncf %236 : vector<32x128xf32> to vector<32x128xbf16>
    %238 = tpu.concatenate %227, %228, %237 in 1 : vector<32x128xbf16>, vector<32x128xbf16>, vector<32x128xbf16> -> vector<32x384xbf16>
    %c0_98 = arith.constant 0 : index
    %c0_99 = arith.constant 0 : index
    %239 = vector.load %arg14[%c0_98, %c0_99] : memref<384x256xbf16, #tpu.memory_space<vmem>>, vector<384x256xbf16>
    %cst_100 = arith.constant dense<0.000000e+00> : vector<32x256xf32>
    %240 = tpu.matmul %238, %239, %cst_100 {dimension_numbers = #tpu.dot_dimension_numbers<[1], [0], [0], [1], [0, 0, 1, 1], [], []>} : vector<32x384xbf16>, vector<384x256xbf16>, vector<32x256xf32> -> vector<32x256xf32>
    %241 = vector.broadcast %217 : vector<1x256xf32> to vector<32x256xf32>
    %242 = arith.mulf %240, %241 : vector<32x256xf32>
    %243 = vector.broadcast %218 : vector<1x256xf32> to vector<32x256xf32>
    %244 = arith.addf %242, %243 : vector<32x256xf32>
    %cst_101 = arith.constant 0.000000e+00 : f32
    %245 = vector.broadcast %cst_101 : f32 to vector<32x256xf32>
    %246 = arith.maximumf %244, %245 : vector<32x256xf32>
    %c0_102 = arith.constant 0 : index
    %c0_103 = arith.constant 0 : index
    %247 = vector.load %arg18[%c0_102, %c0_103] : memref<1x512xf32, #tpu.memory_space<vmem>>, vector<1x512xf32>
    %c0_104 = arith.constant 0 : index
    %c0_105 = arith.constant 0 : index
    %248 = vector.load %arg19[%c0_104, %c0_105] : memref<1x512xf32, #tpu.memory_space<vmem>>, vector<1x512xf32>
    %249 = tpu.iota {dimensions = array<i32: 0>} : vector<32x32xi32>
    %250 = tpu.iota {dimensions = array<i32: 1>} : vector<32x32xi32>
    %c-1_i32_106 = arith.constant -1 : i32
    %251 = vector.broadcast %c-1_i32_106 : i32 to vector<32x32xi32>
    %252 = arith.addi %249, %251 : vector<32x32xi32>
    %253 = arith.cmpi eq, %250, %252 : vector<32x32xi32>
    %254 = arith.extui %253 : vector<32x32xi1> to vector<32x32xi32>
    %255 = arith.sitofp %254 : vector<32x32xi32> to vector<32x32xf32>
    %cst_107 = arith.constant dense<0.000000e+00> : vector<32x256xf32>
    %256 = tpu.matmul %255, %246, %cst_107 {dimension_numbers = #tpu.dot_dimension_numbers<[1], [0], [0], [1], [0, 0, 1, 1], [], []>} : vector<32x32xf32>, vector<32x256xf32>, vector<32x256xf32> -> vector<32x256xf32>
    %257 = arith.truncf %256 : vector<32x256xf32> to vector<32x256xbf16>
    %258 = arith.truncf %246 : vector<32x256xf32> to vector<32x256xbf16>
    %259 = tpu.iota {dimensions = array<i32: 0>} : vector<32x32xi32>
    %260 = tpu.iota {dimensions = array<i32: 1>} : vector<32x32xi32>
    %c1_i32_108 = arith.constant 1 : i32
    %261 = vector.broadcast %c1_i32_108 : i32 to vector<32x32xi32>
    %262 = arith.addi %259, %261 : vector<32x32xi32>
    %263 = arith.cmpi eq, %260, %262 : vector<32x32xi32>
    %264 = arith.extui %263 : vector<32x32xi1> to vector<32x32xi32>
    %265 = arith.sitofp %264 : vector<32x32xi32> to vector<32x32xf32>
    %cst_109 = arith.constant dense<0.000000e+00> : vector<32x256xf32>
    %266 = tpu.matmul %265, %246, %cst_109 {dimension_numbers = #tpu.dot_dimension_numbers<[1], [0], [0], [1], [0, 0, 1, 1], [], []>} : vector<32x32xf32>, vector<32x256xf32>, vector<32x256xf32> -> vector<32x256xf32>
    %267 = arith.truncf %266 : vector<32x256xf32> to vector<32x256xbf16>
    %268 = tpu.concatenate %257, %258, %267 in 1 : vector<32x256xbf16>, vector<32x256xbf16>, vector<32x256xbf16> -> vector<32x768xbf16>
    %c0_110 = arith.constant 0 : index
    %c0_111 = arith.constant 0 : index
    %269 = vector.load %arg17[%c0_110, %c0_111] : memref<768x512xbf16, #tpu.memory_space<vmem>>, vector<768x512xbf16>
    %cst_112 = arith.constant dense<0.000000e+00> : vector<32x512xf32>
    %270 = tpu.matmul %268, %269, %cst_112 {dimension_numbers = #tpu.dot_dimension_numbers<[1], [0], [0], [1], [0, 0, 1, 1], [], []>} : vector<32x768xbf16>, vector<768x512xbf16>, vector<32x512xf32> -> vector<32x512xf32>
    %271 = vector.broadcast %247 : vector<1x512xf32> to vector<32x512xf32>
    %272 = arith.mulf %270, %271 : vector<32x512xf32>
    %273 = vector.broadcast %248 : vector<1x512xf32> to vector<32x512xf32>
    %274 = arith.addf %272, %273 : vector<32x512xf32>
    %cst_113 = arith.constant 0.000000e+00 : f32
    %275 = vector.broadcast %cst_113 : f32 to vector<32x512xf32>
    %276 = arith.maximumf %274, %275 : vector<32x512xf32>
    %277 = tpu.iota {dimensions = array<i32: 0>} : vector<32x32xi32>
    %278 = tpu.iota {dimensions = array<i32: 1>} : vector<32x32xi32>
    %c1_i32_114 = arith.constant 1 : i32
    %279 = vector.broadcast %c1_i32_114 : i32 to vector<32x32xi32>
    %280 = arith.addi %277, %279 : vector<32x32xi32>
    %281 = arith.cmpi eq, %278, %280 : vector<32x32xi32>
    %282 = arith.extui %281 : vector<32x32xi1> to vector<32x32xi32>
    %283 = arith.sitofp %282 : vector<32x32xi32> to vector<32x32xf32>
    %cst_115 = arith.constant dense<0.000000e+00> : vector<32x512xf32>
    %284 = tpu.matmul %283, %276, %cst_115 {dimension_numbers = #tpu.dot_dimension_numbers<[1], [0], [0], [1], [0, 0, 1, 1], [], []>} : vector<32x32xf32>, vector<32x512xf32>, vector<32x512xf32> -> vector<32x512xf32>
    %285 = arith.maximumf %276, %284 : vector<32x512xf32>
    %286 = arith.truncf %285 : vector<32x512xf32> to vector<32x512xbf16>
    %287 = tpu.iota {dimensions = array<i32: 0>} : vector<16x32xi32>
    %288 = tpu.iota {dimensions = array<i32: 1>} : vector<16x32xi32>
    %c2_i32_116 = arith.constant 2 : i32
    %289 = vector.broadcast %c2_i32_116 : i32 to vector<16x32xi32>
    %290 = arith.muli %289, %287 : vector<16x32xi32>
    %291 = arith.cmpi eq, %288, %290 : vector<16x32xi32>
    %292 = arith.extui %291 : vector<16x32xi1> to vector<16x32xi32>
    %293 = arith.sitofp %292 : vector<16x32xi32> to vector<16x32xf32>
    %294 = arith.truncf %293 : vector<16x32xf32> to vector<16x32xbf16>
    %cst_117 = arith.constant dense<0.000000e+00> : vector<16x512xf32>
    %295 = tpu.matmul %294, %286, %cst_117 {dimension_numbers = #tpu.dot_dimension_numbers<[1], [0], [0], [1], [0, 0, 1, 1], [], []>} : vector<16x32xbf16>, vector<32x512xbf16>, vector<16x512xf32> -> vector<16x512xf32>
    %c0_118 = arith.constant 0 : index
    %c0_119 = arith.constant 0 : index
    %296 = vector.load %arg21[%c0_118, %c0_119] : memref<1x512xf32, #tpu.memory_space<vmem>>, vector<1x512xf32>
    %c0_120 = arith.constant 0 : index
    %c0_121 = arith.constant 0 : index
    %297 = vector.load %arg22[%c0_120, %c0_121] : memref<1x512xf32, #tpu.memory_space<vmem>>, vector<1x512xf32>
    %298 = tpu.iota {dimensions = array<i32: 0>} : vector<16x16xi32>
    %299 = tpu.iota {dimensions = array<i32: 1>} : vector<16x16xi32>
    %c-1_i32_122 = arith.constant -1 : i32
    %300 = vector.broadcast %c-1_i32_122 : i32 to vector<16x16xi32>
    %301 = arith.addi %298, %300 : vector<16x16xi32>
    %302 = arith.cmpi eq, %299, %301 : vector<16x16xi32>
    %303 = arith.extui %302 : vector<16x16xi1> to vector<16x16xi32>
    %304 = arith.sitofp %303 : vector<16x16xi32> to vector<16x16xf32>
    %cst_123 = arith.constant dense<0.000000e+00> : vector<16x512xf32>
    %305 = tpu.matmul %304, %295, %cst_123 {dimension_numbers = #tpu.dot_dimension_numbers<[1], [0], [0], [1], [0, 0, 1, 1], [], []>} : vector<16x16xf32>, vector<16x512xf32>, vector<16x512xf32> -> vector<16x512xf32>
    %306 = arith.truncf %305 : vector<16x512xf32> to vector<16x512xbf16>
    %307 = arith.truncf %295 : vector<16x512xf32> to vector<16x512xbf16>
    %308 = tpu.iota {dimensions = array<i32: 0>} : vector<16x16xi32>
    %309 = tpu.iota {dimensions = array<i32: 1>} : vector<16x16xi32>
    %c1_i32_124 = arith.constant 1 : i32
    %310 = vector.broadcast %c1_i32_124 : i32 to vector<16x16xi32>
    %311 = arith.addi %308, %310 : vector<16x16xi32>
    %312 = arith.cmpi eq, %309, %311 : vector<16x16xi32>
    %313 = arith.extui %312 : vector<16x16xi1> to vector<16x16xi32>
    %314 = arith.sitofp %313 : vector<16x16xi32> to vector<16x16xf32>
    %cst_125 = arith.constant dense<0.000000e+00> : vector<16x512xf32>
    %315 = tpu.matmul %314, %295, %cst_125 {dimension_numbers = #tpu.dot_dimension_numbers<[1], [0], [0], [1], [0, 0, 1, 1], [], []>} : vector<16x16xf32>, vector<16x512xf32>, vector<16x512xf32> -> vector<16x512xf32>
    %316 = arith.truncf %315 : vector<16x512xf32> to vector<16x512xbf16>
    %317 = tpu.concatenate %306, %307, %316 in 1 : vector<16x512xbf16>, vector<16x512xbf16>, vector<16x512xbf16> -> vector<16x1536xbf16>
    %c0_126 = arith.constant 0 : index
    %c0_127 = arith.constant 0 : index
    %318 = vector.load %arg20[%c0_126, %c0_127] : memref<1536x512xbf16, #tpu.memory_space<vmem>>, vector<1536x512xbf16>
    %cst_128 = arith.constant dense<0.000000e+00> : vector<16x512xf32>
    %319 = tpu.matmul %317, %318, %cst_128 {dimension_numbers = #tpu.dot_dimension_numbers<[1], [0], [0], [1], [0, 0, 1, 1], [], []>} : vector<16x1536xbf16>, vector<1536x512xbf16>, vector<16x512xf32> -> vector<16x512xf32>
    %320 = vector.broadcast %296 : vector<1x512xf32> to vector<16x512xf32>
    %321 = arith.mulf %319, %320 : vector<16x512xf32>
    %322 = vector.broadcast %297 : vector<1x512xf32> to vector<16x512xf32>
    %323 = arith.addf %321, %322 : vector<16x512xf32>
    %cst_129 = arith.constant 0.000000e+00 : f32
    %324 = vector.broadcast %cst_129 : f32 to vector<16x512xf32>
    %325 = arith.maximumf %323, %324 : vector<16x512xf32>
    %c0_130 = arith.constant 0 : index
    %c0_131 = arith.constant 0 : index
    %326 = vector.load %arg24[%c0_130, %c0_131] : memref<1x512xf32, #tpu.memory_space<vmem>>, vector<1x512xf32>
    %c0_132 = arith.constant 0 : index
    %c0_133 = arith.constant 0 : index
    %327 = vector.load %arg25[%c0_132, %c0_133] : memref<1x512xf32, #tpu.memory_space<vmem>>, vector<1x512xf32>
    %328 = tpu.iota {dimensions = array<i32: 0>} : vector<16x16xi32>
    %329 = tpu.iota {dimensions = array<i32: 1>} : vector<16x16xi32>
    %c-1_i32_134 = arith.constant -1 : i32
    %330 = vector.broadcast %c-1_i32_134 : i32 to vector<16x16xi32>
    %331 = arith.addi %328, %330 : vector<16x16xi32>
    %332 = arith.cmpi eq, %329, %331 : vector<16x16xi32>
    %333 = arith.extui %332 : vector<16x16xi1> to vector<16x16xi32>
    %334 = arith.sitofp %333 : vector<16x16xi32> to vector<16x16xf32>
    %cst_135 = arith.constant dense<0.000000e+00> : vector<16x512xf32>
    %335 = tpu.matmul %334, %325, %cst_135 {dimension_numbers = #tpu.dot_dimension_numbers<[1], [0], [0], [1], [0, 0, 1, 1], [], []>} : vector<16x16xf32>, vector<16x512xf32>, vector<16x512xf32> -> vector<16x512xf32>
    %336 = arith.truncf %335 : vector<16x512xf32> to vector<16x512xbf16>
    %337 = arith.truncf %325 : vector<16x512xf32> to vector<16x512xbf16>
    %338 = tpu.iota {dimensions = array<i32: 0>} : vector<16x16xi32>
    %339 = tpu.iota {dimensions = array<i32: 1>} : vector<16x16xi32>
    %c1_i32_136 = arith.constant 1 : i32
    %340 = vector.broadcast %c1_i32_136 : i32 to vector<16x16xi32>
    %341 = arith.addi %338, %340 : vector<16x16xi32>
    %342 = arith.cmpi eq, %339, %341 : vector<16x16xi32>
    %343 = arith.extui %342 : vector<16x16xi1> to vector<16x16xi32>
    %344 = arith.sitofp %343 : vector<16x16xi32> to vector<16x16xf32>
    %cst_137 = arith.constant dense<0.000000e+00> : vector<16x512xf32>
    %345 = tpu.matmul %344, %325, %cst_137 {dimension_numbers = #tpu.dot_dimension_numbers<[1], [0], [0], [1], [0, 0, 1, 1], [], []>} : vector<16x16xf32>, vector<16x512xf32>, vector<16x512xf32> -> vector<16x512xf32>
    %346 = arith.truncf %345 : vector<16x512xf32> to vector<16x512xbf16>
    %347 = tpu.concatenate %336, %337, %346 in 1 : vector<16x512xbf16>, vector<16x512xbf16>, vector<16x512xbf16> -> vector<16x1536xbf16>
    %c0_138 = arith.constant 0 : index
    %c0_139 = arith.constant 0 : index
    %348 = vector.load %arg23[%c0_138, %c0_139] : memref<1536x512xbf16, #tpu.memory_space<vmem>>, vector<1536x512xbf16>
    %cst_140 = arith.constant dense<0.000000e+00> : vector<16x512xf32>
    %349 = tpu.matmul %347, %348, %cst_140 {dimension_numbers = #tpu.dot_dimension_numbers<[1], [0], [0], [1], [0, 0, 1, 1], [], []>} : vector<16x1536xbf16>, vector<1536x512xbf16>, vector<16x512xf32> -> vector<16x512xf32>
    %350 = vector.broadcast %326 : vector<1x512xf32> to vector<16x512xf32>
    %351 = arith.mulf %349, %350 : vector<16x512xf32>
    %352 = vector.broadcast %327 : vector<1x512xf32> to vector<16x512xf32>
    %353 = arith.addf %351, %352 : vector<16x512xf32>
    %cst_141 = arith.constant 0.000000e+00 : f32
    %354 = vector.broadcast %cst_141 : f32 to vector<16x512xf32>
    %355 = arith.maximumf %353, %354 : vector<16x512xf32>
    %c0_142 = arith.constant 0 : index
    %c0_143 = arith.constant 0 : index
    %356 = vector.load %arg27[%c0_142, %c0_143] : memref<1x512xf32, #tpu.memory_space<vmem>>, vector<1x512xf32>
    %c0_144 = arith.constant 0 : index
    %c0_145 = arith.constant 0 : index
    %357 = vector.load %arg28[%c0_144, %c0_145] : memref<1x512xf32, #tpu.memory_space<vmem>>, vector<1x512xf32>
    %358 = tpu.iota {dimensions = array<i32: 0>} : vector<16x16xi32>
    %359 = tpu.iota {dimensions = array<i32: 1>} : vector<16x16xi32>
    %c-1_i32_146 = arith.constant -1 : i32
    %360 = vector.broadcast %c-1_i32_146 : i32 to vector<16x16xi32>
    %361 = arith.addi %358, %360 : vector<16x16xi32>
    %362 = arith.cmpi eq, %359, %361 : vector<16x16xi32>
    %363 = arith.extui %362 : vector<16x16xi1> to vector<16x16xi32>
    %364 = arith.sitofp %363 : vector<16x16xi32> to vector<16x16xf32>
    %cst_147 = arith.constant dense<0.000000e+00> : vector<16x512xf32>
    %365 = tpu.matmul %364, %355, %cst_147 {dimension_numbers = #tpu.dot_dimension_numbers<[1], [0], [0], [1], [0, 0, 1, 1], [], []>} : vector<16x16xf32>, vector<16x512xf32>, vector<16x512xf32> -> vector<16x512xf32>
    %366 = arith.truncf %365 : vector<16x512xf32> to vector<16x512xbf16>
    %367 = arith.truncf %355 : vector<16x512xf32> to vector<16x512xbf16>
    %368 = tpu.iota {dimensions = array<i32: 0>} : vector<16x16xi32>
    %369 = tpu.iota {dimensions = array<i32: 1>} : vector<16x16xi32>
    %c1_i32_148 = arith.constant 1 : i32
    %370 = vector.broadcast %c1_i32_148 : i32 to vector<16x16xi32>
    %371 = arith.addi %368, %370 : vector<16x16xi32>
    %372 = arith.cmpi eq, %369, %371 : vector<16x16xi32>
    %373 = arith.extui %372 : vector<16x16xi1> to vector<16x16xi32>
    %374 = arith.sitofp %373 : vector<16x16xi32> to vector<16x16xf32>
    %cst_149 = arith.constant dense<0.000000e+00> : vector<16x512xf32>
    %375 = tpu.matmul %374, %355, %cst_149 {dimension_numbers = #tpu.dot_dimension_numbers<[1], [0], [0], [1], [0, 0, 1, 1], [], []>} : vector<16x16xf32>, vector<16x512xf32>, vector<16x512xf32> -> vector<16x512xf32>
    %376 = arith.truncf %375 : vector<16x512xf32> to vector<16x512xbf16>
    %377 = tpu.concatenate %366, %367, %376 in 1 : vector<16x512xbf16>, vector<16x512xbf16>, vector<16x512xbf16> -> vector<16x1536xbf16>
    %c0_150 = arith.constant 0 : index
    %c0_151 = arith.constant 0 : index
    %378 = vector.load %arg26[%c0_150, %c0_151] : memref<1536x512xbf16, #tpu.memory_space<vmem>>, vector<1536x512xbf16>
    %cst_152 = arith.constant dense<0.000000e+00> : vector<16x512xf32>
    %379 = tpu.matmul %377, %378, %cst_152 {dimension_numbers = #tpu.dot_dimension_numbers<[1], [0], [0], [1], [0, 0, 1, 1], [], []>} : vector<16x1536xbf16>, vector<1536x512xbf16>, vector<16x512xf32> -> vector<16x512xf32>
    %380 = vector.broadcast %356 : vector<1x512xf32> to vector<16x512xf32>
    %381 = arith.mulf %379, %380 : vector<16x512xf32>
    %382 = vector.broadcast %357 : vector<1x512xf32> to vector<16x512xf32>
    %383 = arith.addf %381, %382 : vector<16x512xf32>
    %cst_153 = arith.constant 0.000000e+00 : f32
    %384 = vector.broadcast %cst_153 : f32 to vector<16x512xf32>
    %385 = arith.maximumf %383, %384 : vector<16x512xf32>
    %386 = tpu.iota {dimensions = array<i32: 0>} : vector<16x16xi32>
    %387 = tpu.iota {dimensions = array<i32: 1>} : vector<16x16xi32>
    %c1_i32_154 = arith.constant 1 : i32
    %388 = vector.broadcast %c1_i32_154 : i32 to vector<16x16xi32>
    %389 = arith.addi %386, %388 : vector<16x16xi32>
    %390 = arith.cmpi eq, %387, %389 : vector<16x16xi32>
    %391 = arith.extui %390 : vector<16x16xi1> to vector<16x16xi32>
    %392 = arith.sitofp %391 : vector<16x16xi32> to vector<16x16xf32>
    %cst_155 = arith.constant dense<0.000000e+00> : vector<16x512xf32>
    %393 = tpu.matmul %392, %385, %cst_155 {dimension_numbers = #tpu.dot_dimension_numbers<[1], [0], [0], [1], [0, 0, 1, 1], [], []>} : vector<16x16xf32>, vector<16x512xf32>, vector<16x512xf32> -> vector<16x512xf32>
    %394 = arith.maximumf %385, %393 : vector<16x512xf32>
    %395 = tpu.iota {dimensions = array<i32: 0>} : vector<16x512xi32>
    %c1_i32_156 = arith.constant 1 : i32
    %396 = vector.broadcast %c1_i32_156 : i32 to vector<16x512xi32>
    %397 = arith.andi %395, %396 : vector<16x512xi32>
    %c0_i32 = arith.constant 0 : i32
    %398 = vector.broadcast %c0_i32 : i32 to vector<16x512xi32>
    %399 = arith.cmpi eq, %397, %398 : vector<16x512xi32>
    %cst_157 = arith.constant 0.000000e+00 : f32
    %400 = vector.broadcast %cst_157 : f32 to vector<16x512xf32>
    %401 = arith.select %399, %394, %400 : vector<16x512xi1>, vector<16x512xf32>
    %cst_158 = arith.constant dense<0.000000e+00> : vector<512xf32>
    %402 = vector.multi_reduction <add>, %401, %cst_158 [0] : vector<16x512xf32> to vector<512xf32>
    %403 = vector.shape_cast %402 : vector<512xf32> to vector<1x512xf32>
    %cst_159 = arith.constant 1.250000e-01 : f32
    %404 = vector.broadcast %cst_159 : f32 to vector<1x512xf32>
    %405 = arith.mulf %403, %404 : vector<1x512xf32>
    %c0_160 = arith.constant 0 : index
    %c0_161 = arith.constant 0 : index
    %c0_162 = arith.constant 0 : index
    %406 = vector.load %arg29[%c0_160, %c0_161, %c0_162] : memref<1x1x512xf32, #tpu.memory_space<vmem>>, vector<1x1x512xf32>
    %407 = vector.shape_cast %406 : vector<1x1x512xf32> to vector<1x512xf32>
    %408 = vector.shape_cast %405 : vector<1x512xf32> to vector<1x1x512xf32>
    tpu.vector_store %arg29[%c0_160, %c0_161, %c0_162], %408 {strides = array<i32>} : memref<1x1x512xf32, #tpu.memory_space<vmem>>, vector<1x1x512xf32>,
    return
  }
  func.func @transform_0(%arg0: i32) -> (i32, i32, i32) {
    %c0_i32 = arith.constant 0 : i32
    %c0_i32_0 = arith.constant 0 : i32
    %c0_i32_1 = arith.constant 0 : i32
    return %arg0, %c0_i32, %c0_i32_0 : i32, i32, i32
  }
  func.func @transform_1(%arg0: i32) -> (i32, i32) {
    %c0_i32 = arith.constant 0 : i32
    %c0_i32_0 = arith.constant 0 : i32
    %c0_i32_1 = arith.constant 0 : i32
    return %c0_i32, %c0_i32_0 : i32, i32
  }
  func.func @transform_2(%arg0: i32) -> (i32, i32) {
    %c0_i32 = arith.constant 0 : i32
    %c0_i32_0 = arith.constant 0 : i32
    %c0_i32_1 = arith.constant 0 : i32
    return %c0_i32, %c0_i32_0 : i32, i32
  }
  func.func @transform_3(%arg0: i32) -> (i32, i32) {
    %c0_i32 = arith.constant 0 : i32
    %c0_i32_0 = arith.constant 0 : i32
    %c0_i32_1 = arith.constant 0 : i32
    return %c0_i32, %c0_i32_0 : i32, i32
  }
  func.func @transform_4(%arg0: i32) -> (i32, i32) {
    %c0_i32 = arith.constant 0 : i32
    %c0_i32_0 = arith.constant 0 : i32
    %c0_i32_1 = arith.constant 0 : i32
    return %c0_i32, %c0_i32_0 : i32, i32
  }
  func.func @transform_5(%arg0: i32) -> (i32, i32) {
    %c0_i32 = arith.constant 0 : i32
    %c0_i32_0 = arith.constant 0 : i32
    %c0_i32_1 = arith.constant 0 : i32
    return %c0_i32, %c0_i32_0 : i32, i32
  }
  func.func @transform_6(%arg0: i32) -> (i32, i32) {
    %c0_i32 = arith.constant 0 : i32
    %c0_i32_0 = arith.constant 0 : i32
    %c0_i32_1 = arith.constant 0 : i32
    return %c0_i32, %c0_i32_0 : i32, i32
  }
  func.func @transform_7(%arg0: i32) -> (i32, i32) {
    %c0_i32 = arith.constant 0 : i32
    %c0_i32_0 = arith.constant 0 : i32
    %c0_i32_1 = arith.constant 0 : i32
    return %c0_i32, %c0_i32_0 : i32, i32
  }
  func.func @transform_8(%arg0: i32) -> (i32, i32) {
    %c0_i32 = arith.constant 0 : i32
    %c0_i32_0 = arith.constant 0 : i32
    %c0_i32_1 = arith.constant 0 : i32
    return %c0_i32, %c0_i32_0 : i32, i32
  }
  func.func @transform_9(%arg0: i32) -> (i32, i32) {
    %c0_i32 = arith.constant 0 : i32
    %c0_i32_0 = arith.constant 0 : i32
    %c0_i32_1 = arith.constant 0 : i32
    return %c0_i32, %c0_i32_0 : i32, i32
  }
  func.func @transform_10(%arg0: i32) -> (i32, i32) {
    %c0_i32 = arith.constant 0 : i32
    %c0_i32_0 = arith.constant 0 : i32
    %c0_i32_1 = arith.constant 0 : i32
    return %c0_i32, %c0_i32_0 : i32, i32
  }
  func.func @transform_11(%arg0: i32) -> (i32, i32) {
    %c0_i32 = arith.constant 0 : i32
    %c0_i32_0 = arith.constant 0 : i32
    %c0_i32_1 = arith.constant 0 : i32
    return %c0_i32, %c0_i32_0 : i32, i32
  }
  func.func @transform_12(%arg0: i32) -> (i32, i32) {
    %c0_i32 = arith.constant 0 : i32
    %c0_i32_0 = arith.constant 0 : i32
    %c0_i32_1 = arith.constant 0 : i32
    return %c0_i32, %c0_i32_0 : i32, i32
  }
  func.func @transform_13(%arg0: i32) -> (i32, i32) {
    %c0_i32 = arith.constant 0 : i32
    %c0_i32_0 = arith.constant 0 : i32
    %c0_i32_1 = arith.constant 0 : i32
    return %c0_i32, %c0_i32_0 : i32, i32
  }
  func.func @transform_14(%arg0: i32) -> (i32, i32) {
    %c0_i32 = arith.constant 0 : i32
    %c0_i32_0 = arith.constant 0 : i32
    %c0_i32_1 = arith.constant 0 : i32
    return %c0_i32, %c0_i32_0 : i32, i32
  }
  func.func @transform_15(%arg0: i32) -> (i32, i32) {
    %c0_i32 = arith.constant 0 : i32
    %c0_i32_0 = arith.constant 0 : i32
    %c0_i32_1 = arith.constant 0 : i32
    return %c0_i32, %c0_i32_0 : i32, i32
  }
  func.func @transform_16(%arg0: i32) -> (i32, i32) {
    %c0_i32 = arith.constant 0 : i32
    %c0_i32_0 = arith.constant 0 : i32
    %c0_i32_1 = arith.constant 0 : i32
    return %c0_i32, %c0_i32_0 : i32, i32
  }
  func.func @transform_17(%arg0: i32) -> (i32, i32) {
    %c0_i32 = arith.constant 0 : i32
    %c0_i32_0 = arith.constant 0 : i32
    %c0_i32_1 = arith.constant 0 : i32
    return %c0_i32, %c0_i32_0 : i32, i32
  }
  func.func @transform_18(%arg0: i32) -> (i32, i32) {
    %c0_i32 = arith.constant 0 : i32
    %c0_i32_0 = arith.constant 0 : i32
    %c0_i32_1 = arith.constant 0 : i32
    return %c0_i32, %c0_i32_0 : i32, i32
  }
  func.func @transform_19(%arg0: i32) -> (i32, i32) {
    %c0_i32 = arith.constant 0 : i32
    %c0_i32_0 = arith.constant 0 : i32
    %c0_i32_1 = arith.constant 0 : i32
    return %c0_i32, %c0_i32_0 : i32, i32
  }
  func.func @transform_20(%arg0: i32) -> (i32, i32) {
    %c0_i32 = arith.constant 0 : i32
    %c0_i32_0 = arith.constant 0 : i32
    %c0_i32_1 = arith.constant 0 : i32
    return %c0_i32, %c0_i32_0 : i32, i32
  }
  func.func @transform_21(%arg0: i32) -> (i32, i32) {
    %c0_i32 = arith.constant 0 : i32
    %c0_i32_0 = arith.constant 0 : i32
    %c0_i32_1 = arith.constant 0 : i32
    return %c0_i32, %c0_i32_0 : i32, i32
  }
  func.func @transform_22(%arg0: i32) -> (i32, i32) {
    %c0_i32 = arith.constant 0 : i32
    %c0_i32_0 = arith.constant 0 : i32
    %c0_i32_1 = arith.constant 0 : i32
    return %c0_i32, %c0_i32_0 : i32, i32
  }
  func.func @transform_23(%arg0: i32) -> (i32, i32) {
    %c0_i32 = arith.constant 0 : i32
    %c0_i32_0 = arith.constant 0 : i32
    %c0_i32_1 = arith.constant 0 : i32
    return %c0_i32, %c0_i32_0 : i32, i32
  }
  func.func @transform_24(%arg0: i32) -> (i32, i32) {
    %c0_i32 = arith.constant 0 : i32
    %c0_i32_0 = arith.constant 0 : i32
    %c0_i32_1 = arith.constant 0 : i32
    return %c0_i32, %c0_i32_0 : i32, i32
  }
  func.func @transform_25(%arg0: i32) -> (i32, i32) {
    %c0_i32 = arith.constant 0 : i32
    %c0_i32_0 = arith.constant 0 : i32
    %c0_i32_1 = arith.constant 0 : i32
    return %c0_i32, %c0_i32_0 : i32, i32
  }
  func.func @transform_26(%arg0: i32) -> (i32, i32) {
    %c0_i32 = arith.constant 0 : i32
    %c0_i32_0 = arith.constant 0 : i32
    %c0_i32_1 = arith.constant 0 : i32
    return %c0_i32, %c0_i32_0 : i32, i32
  }
  func.func @transform_27(%arg0: i32) -> (i32, i32) {
    %c0_i32 = arith.constant 0 : i32
    %c0_i32_0 = arith.constant 0 : i32
    %c0_i32_1 = arith.constant 0 : i32
    return %c0_i32, %c0_i32_0 : i32, i32
  }
  func.func @transform_28(%arg0: i32) -> (i32, i32, i32) {
    %c0_i32 = arith.constant 0 : i32
    %c0_i32_0 = arith.constant 0 : i32
    %c0_i32_1 = arith.constant 0 : i32
    return %arg0, %c0_i32, %c0_i32_0 : i32, i32, i32
  }
}

</mosaic_0001>

<bundles_post_ra>
// kernel: forward_pallas.1
= control target key start
LH: loop header
LB: loop body
LE: loop exit
PB: predicated region body
PF: predicated region fallthrough
CT: control target
= control target key end

     0   :  { %s25428_s0 = inlined_call_operand.vmem [shape: f32[2,64,8], index: 0, kind: input, shape index: {}]   ;;  %s25429_s1 = inlined_call_operand.vmem [shape: bf16[40,16], index: 1, kind: input, shape index: {}]   ;;  %s25430_s2 = inlined_call_operand.hbm [shape: f32[1,16], index: 2, kind: input, shape index: {}]   ;;  %s25431_s3 = inlined_call_operand.hbm [shape: f32[1,16], index: 3, kind: input, shape index: {}]   ;;  %s25432_s4 = inlined_call_operand.vmem [shape: bf16[80,32], index: 4, kind: input, shape index: {}]   ;;  %s25433_s5 = inlined_call_operand.hbm [shape: f32[1,32], index: 5, kind: input, shape index: {}]   ;;  %s25434_s6 = inlined_call_operand.hbm [shape: f32[1,32], index: 6, kind: input, shape index: {}]   ;;  %s25435_s7 = inlined_call_operand.vmem [shape: bf16[96,64], index: 7, kind: input, shape index: {}]   ;;  %s25436_s8 = inlined_call_operand.hbm [shape: f32[1,64], index: 8, kind: input, shape index: {}]   ;;  %s25437_s9 = inlined_call_operand.hbm [shape: f32[1,64], index: 9, kind: input, shape index: {}]   ;;  %s25438_s10 = inlined_call_operand.hbm [shape: bf16[192,128], index: 10, kind: input, shape index: {}]   ;;  %s25439_s11 = inlined_call_operand.hbm [shape: f32[1,128], index: 11, kind: input, shape index: {}]   ;;  %s25440_s12 = inlined_call_operand.hbm [shape: f32[1,128], index: 12, kind: input, shape index: {}]   ;;  %s25441_s13 = inlined_call_operand.hbm [shape: bf16[384,256], index: 13, kind: input, shape index: {}]   ;;  %s25442_s14 = inlined_call_operand.hbm [shape: f32[1,256], index: 14, kind: input, shape index: {}]   ;;  %s25443_s15 = inlined_call_operand.hbm [shape: f32[1,256], index: 15, kind: input, shape index: {}]   ;;  %s25444_s16 = inlined_call_operand.hbm [shape: bf16[768,512], index: 16, kind: input, shape index: {}]   ;;  %s25445_s17 = inlined_call_operand.hbm [shape: f32[1,512], index: 17, kind: input, shape index: {}]   ;;  %s25446_s18 = inlined_call_operand.hbm [shape: f32[1,512], index: 18, kind: input, shape index: {}]   ;;  %s25447_s19 = inlined_call_operand.hbm [shape: bf16[1536,512], index: 19, kind: input, shape index: {}]   ;;  %s25448_s20 = inlined_call_operand.hbm [shape: f32[1,512], index: 20, kind: input, shape index: {}]   ;;  %s25449_s21 = inlined_call_operand.hbm [shape: f32[1,512], index: 21, kind: input, shape index: {}]   ;;  %s25450_s22 = inlined_call_operand.hbm [shape: bf16[1536,512], index: 22, kind: input, shape index: {}]   ;;  %s25451_s23 = inlined_call_operand.hbm [shape: f32[1,512], index: 23, kind: input, shape index: {}]   ;;  %s25452_s24 = inlined_call_operand.hbm [shape: f32[1,512], index: 24, kind: input, shape index: {}]   ;;  %s25453_s25 = inlined_call_operand.hbm [shape: bf16[1536,512], index: 25, kind: input, shape index: {}]   ;;  %s25454_s26 = inlined_call_operand.hbm [shape: f32[1,512], index: 26, kind: input, shape index: {}]   ;;  %s25455_s27 = inlined_call_operand.hbm [shape: f32[1,512], index: 27, kind: input, shape index: {}]   ;;  %s25456_s28 = inlined_call_operand.vmem [shape: f32[2,1,512], index: 28, kind: output, shape index: {}]  }
   0x1   :  { %25488 = sst [smem:[#allocation55_spill]] %s25428_s0 }
   0x2   :  { %25489 = sst [smem:[#allocation56_spill]] %s25429_s1 }
   0x3   :  { %25490 = sst [smem:[#allocation57_spill]] %s25430_s2 }
   0x4   :  { %25491 = sst [smem:[#allocation58_spill]] %s25431_s3 }
   0x5   :  { %25492 = sst [smem:[#allocation59_spill]] %s25432_s4 }
   0x6   :  { %25493 = sst [smem:[#allocation60_spill]] %s25433_s5 }
   0x7   :  { %25494 = sst [smem:[#allocation61_spill]] %s25434_s6 }
   0x8   :  { %25495 = sst [smem:[#allocation62_spill]] %s25435_s7 }
   0x9   :  { %25496 = sst [smem:[#allocation63_spill]] %s25436_s8 }
   0xa   :  { %25497 = sst [smem:[#allocation64_spill]] %s25437_s9 }
   0xb   :  { %25498 = sst [smem:[#allocation65_spill]] %s25438_s10 }
   0xc   :  { %25499 = sst [smem:[#allocation66_spill]] %s25439_s11 }
   0xd   :  { %25500 = sst [smem:[#allocation67_spill]] %s25440_s12 }
   0xe   :  { %25501 = sst [smem:[#allocation68_spill]] %s25441_s13 }
   0xf   :  { %25502 = sst [smem:[#allocation69_spill]] %s25443_s15 }
  0x10   :  { %25503 = sst [smem:[#allocation70_spill]] %s25445_s17 }
  0x11   :  { %25504 = sst [smem:[#allocation71_spill]] %s25455_s27 }
  0x12   :  { %25505 = sst [smem:[#allocation72_spill]] %s25456_s28 }
  0x13   :  { %33 = vsyncpa [#allocation3], 0 }
  0x14   :  { %34 = vsyncpa [#allocation5], 0 }
  0x15   :  { %35 = vsyncpa [#allocation8], 0 }
  0x16   :  { %36 = vsyncpa [#allocation11], 0 }
  0x17   :  { %37 = vsyncpa [#allocation14], 0 }
  0x18   :  { %38 = vsyncpa [#allocation17], 0 }
  0x19   :  { %39 = vsyncpa [#allocation20], 0 }
  0x1a   :  { %40 = vsyncpa [#allocation23], 0 }
  0x1b   :  { %41 = vsyncpa [#allocation26], 0 }
  0x1c   :  { %42 = vsyncpa [#allocation29], 0 }
  0x1d   :  { %43 = vsyncpa [#allocation32], 0 }
  0x1e   :  { %44 = vsyncpa [#allocation35], 0 }
  0x1f   :  { %45 = vsyncpa [#allocation38], 0  ;;  %s23680_s8 = smov 0  }
  0x20 LB: > { %25506 = sst [smem:[#allocation52_spill]] %s23500_s8  ;;  %s23502_s5 = smov [#allocation4]   ;;  %s23500_s8 = sphi %s23680_s8, %s51_s8  }
  0x21   : > { %s702_s9 = sshll.u32 %s23502_s5, 4  ;;  %s23686_s30 = sadd.s32 4294967295, %s23500_s8   ;;  %s23691_s9 = int_to_ptr.vmem [resolvable:$true] %s702_s9 }
  0x22   : > { %25507 = sst [smem:[#allocation53_spill]] %s23686_s30  ;;  %p17278_p0 = scmp.ge.s32.totalorder %s23500_s8, 1 }
  0x23   : > { %p675_p1 = scmp.lt.s32.totalorder %s23500_s8, 3  ;;  %p25475_p2 = scmp.eq.s32.totalorder %s23686_s30, 0 }
  0x24   : > { %s23503_s6 = smov [#allocation7]   ;;  %s23504_s0 = smov [#allocation10]  }
  0x25   : > { %p23693_p3 = pnand %p17278_p0, %p675_p1  ;;  %s727_s10 = sshll.u32 %s23503_s6, 4  ;;  %s23699_s10 = int_to_ptr.vmem [resolvable:$true] %s727_s10 }
  0x26   : > { %s752_s11 = sshll.u32 %s23504_s0, 4  ;;  %s23505_s2 = smov [#allocation13]   ;;  %s23707_s11 = int_to_ptr.vmem [resolvable:$true] %s752_s11 }
  0x27   : > { %s25508_s3 = scalar_select %p23693_p3, 1, 0 }
  0x28   : > { %p20497_p4 = pneg %p23693_p3  ;;  %s776_s7 = sshll.u32 %s23505_s2, 4  ;;  %s23709_s7 = int_to_ptr.vmem [resolvable:$true] %s776_s7 }
  0x29   : > { %25509 = sst [smem:[#allocation54_spill]] %s25508_s3  ;;  %s25511_s4 = sld [smem:[#allocation58_spill]] }
  0x2a   : > { %p23703_p5 = pnand %p25475_p2, %p20497_p4 }
  0x2c   : > { %p23719_p7 = pneg %p23703_p5 }
  0x2f   : > { %s22770_s5 = scalar_lea.hbm %s25511_s4, 16 }
  0x30   : > { %p22771_p6 = scmp.ne.s32.totalorder %s25511_s4, %s22770_s5  ;;  %p22777_p10 = scmp.lt.u32.totalorder %s22770_s5, %s25511_s4 }
  0x32   : > { %p22773_p8 = pnand %p23719_p7, %p22771_p6 }
  0x34   : > { %p22774_p9 = pneg %p22773_p8 }
  0x36   : > { %p22779_p11 = pnand %p22777_p10, %p22774_p9 }
  0x38   : > { %22782 = shalt.err (!%p22779_p11)
}
  0x39   : > { %s22783_s8 = scalar_lea.vmem %s23691_s9, 16  ;;  %s22790_s12 = scalar_lea.vmem %s23691_s9, 32 }
  0x3a   : > { %p22784_p12 = scmp.ne.s32.totalorder %s23691_s9, %s22783_s8  ;;  %p22791_p1 = scmp.lt.s32.totalorder %s23691_s9, %s23691_s9 }
  0x3b   : > { %p22792_p4 = scmp.lt.s32.totalorder %s22790_s12, %s22783_s8 }
  0x3c   : > { %p22786_p13 = pnand %p22784_p12, %p23719_p7 }
  0x3d   : > { %p22793_p6 = por %p22792_p4, %p22791_p1 }
  0x3e   : > { %p22787_p0 = pneg %p22786_p13 }
  0x40   : > { %p22794_p8 = pnand %p22793_p6, %p22787_p0 }
  0x42   : > { %22797 = shalt.err (!%p22794_p8)
}
  0x43   : > { %20503 = dma.hbm_to_vmem [thread:$0]  (!%p23703_p5), %s25511_s4, 16, %s23691_s9, [#allocation5]  }
  0x44   : > { %s25513_s2 = sld [smem:[#allocation61_spill]] }
  0x4a   : > { %s22798_s30 = scalar_lea.hbm %s25513_s2, 16 }
  0x4b   : > { %p22799_p9 = scmp.ne.s32.totalorder %s25513_s2, %s22798_s30  ;;  %p22805_p12 = scmp.lt.u32.totalorder %s22798_s30, %s25513_s2 }
  0x4d   : > { %p22801_p10 = pnand %p22799_p9, %p23719_p7 }
  0x4f   : > { %p22802_p11 = pneg %p22801_p10 }
  0x51   : > { %p22807_p13 = pnand %p22805_p12, %p22802_p11 }
  0x53   : > { %22810 = shalt.err (!%p22807_p13)
}
  0x54   : > { %s22811_s9 = scalar_lea.vmem %s23699_s10, 16  ;;  %s22818_s27 = scalar_lea.vmem %s23699_s10, 32 }
  0x55   : > { %p22812_p0 = scmp.ne.s32.totalorder %s23699_s10, %s22811_s9  ;;  %p22819_p6 = scmp.lt.s32.totalorder %s23699_s10, %s23699_s10 }
  0x56   : > { %p22820_p8 = scmp.lt.s32.totalorder %s22818_s27, %s22811_s9 }
  0x57   : > { %p22814_p1 = pnand %p22812_p0, %p23719_p7 }
  0x58   : > { %p22821_p9 = por %p22820_p8, %p22819_p6 }
  0x59   : > { %p22815_p4 = pneg %p22814_p1 }
  0x5b   : > { %p22822_p10 = pnand %p22821_p9, %p22815_p4 }
  0x5d   : > { %22825 = shalt.err (!%p22822_p10)
}
  0x5e   : > { %20509 = dma.hbm_to_vmem [thread:$0]  (!%p23703_p5), %s25513_s2, 16, %s23699_s10, [#allocation8]  }
  0x5f   : > { %s25514_s5 = sld [smem:[#allocation64_spill]] }
  0x65   : > { %s22826_s6 = scalar_lea.hbm %s25514_s5, 16 }
  0x66   : > { %p22827_p11 = scmp.ne.s32.totalorder %s25514_s5, %s22826_s6  ;;  %p22833_p0 = scmp.lt.u32.totalorder %s22826_s6, %s25514_s5 }
  0x68   : > { %p22829_p12 = pnand %p22827_p11, %p23719_p7 }
  0x6a   : > { %p22830_p13 = pneg %p22829_p12 }
  0x6c   : > { %p22835_p1 = pnand %p22833_p0, %p22830_p13 }
  0x6e   : > { %22838 = shalt.err (!%p22835_p1)
}
  0x6f   : > { %s22839_s10 = scalar_lea.vmem %s23707_s11, 16  ;;  %s22846_s30 = scalar_lea.vmem %s23707_s11, 32 }
  0x70   : > { %p22840_p4 = scmp.ne.s32.totalorder %s23707_s11, %s22839_s10  ;;  %p22847_p9 = scmp.lt.s32.totalorder %s23707_s11, %s23707_s11 }
  0x71   : > { %p22848_p10 = scmp.lt.s32.totalorder %s22846_s30, %s22839_s10 }
  0x72   : > { %p22842_p6 = pnand %p22840_p4, %p23719_p7 }
  0x73   : > { %p22849_p11 = por %p22848_p10, %p22847_p9 }
  0x74   : > { %p22843_p8 = pneg %p22842_p6 }
  0x76   : > { %p22850_p12 = pnand %p22849_p11, %p22843_p8 }
  0x78   : > { %22853 = shalt.err (!%p22850_p12)
}
  0x79   : > { %20515 = dma.hbm_to_vmem [thread:$0]  (!%p23703_p5), %s25514_s5, 16, %s23707_s11, [#allocation11]  }
  0x7a   : > { %s25515_s8 = sld [smem:[#allocation66_spill]] }
  0x80   : > { %s25516_s12 = smov %s25515_s8  ;;  %s22854_s9 = scalar_lea.hbm %s25515_s8, 16 }
  0x81   : > { %p22855_p13 = scmp.ne.s32.totalorder %s25516_s12, %s22854_s9  ;;  %p22861_p4 = scmp.lt.u32.totalorder %s22854_s9, %s25516_s12 }
  0x83   : > { %p22857_p0 = pnand %p22855_p13, %p23719_p7 }
  0x85   : > { %p22858_p1 = pneg %p22857_p0 }
  0x87   : > { %p22863_p6 = pnand %p22861_p4, %p22858_p1 }
  0x89   : > { %22866 = shalt.err (!%p22863_p6)
}
  0x8a   : > { %s22867_s11 = scalar_lea.vmem %s23709_s7, 16  ;;  %s22874_s2 = scalar_lea.vmem %s23709_s7, 32 }
  0x8b   : > { %p22868_p8 = scmp.ne.s32.totalorder %s23709_s7, %s22867_s11  ;;  %p22875_p11 = scmp.lt.s32.totalorder %s23709_s7, %s23709_s7 }
  0x8c   : > { %p22876_p12 = scmp.lt.s32.totalorder %s22874_s2, %s22867_s11 }
  0x8d   : > { %p22870_p9 = pnand %p22868_p8, %p23719_p7 }
  0x8e   : > { %p22877_p13 = por %p22876_p12, %p22875_p11 }
  0x8f   : > { %p22871_p10 = pneg %p22870_p9 }
  0x91   : > { %p22878_p0 = pnand %p22877_p13, %p22871_p10 }
  0x93   : > { %22881 = shalt.err (!%p22878_p0)
}
  0x94   : > { %20521 = dma.hbm_to_vmem [thread:$0]  (!%p23703_p5), %s25516_s12, 16, %s23709_s7, [#allocation14]  }
  0x95   : > { %s23506_s1 = smov [#allocation16]   ;;  %s25517_s13 = sld [smem:[#allocation68_spill]] }
  0x96   : > { %s797_s6 = sshll.u32 %s23506_s1, 4  ;;  %s798_s6 = int_to_ptr.vmem [resolvable:$true] %s797_s6 }
  0x9b   : > { %s22882_s27 = scalar_lea.hbm %s25517_s13, 6144 }
  0x9c   : > { %p22883_p1 = scmp.ne.s32.totalorder %s25517_s13, %s22882_s27  ;;  %p22889_p8 = scmp.lt.u32.totalorder %s22882_s27, %s25517_s13 }
  0x9e   : > { %p22885_p4 = pnand %p22883_p1, %p23719_p7 }
  0xa0   : > { %p22886_p6 = pneg %p22885_p4 }
  0xa2   : > { %p22891_p9 = pnand %p22889_p8, %p22886_p6 }
  0xa4   : > { %22894 = shalt.err (!%p22891_p9)
}
  0xa5   : > { %s22895_s7 = scalar_lea.vmem %s798_s6, 6144  ;;  %p22903_p13 = scmp.lt.s32.totalorder %s798_s6, %s798_s6 }
  0xa6   : > { %p22896_p10 = scmp.ne.s32.totalorder %s798_s6, %s22895_s7  ;;  %p22904_p0 = scmp.lt.s32.totalorder %s22895_s7, %s22895_s7 }
  0xa8   : > { %p22898_p11 = pnand %p22896_p10, %p23719_p7  ;;  %p22905_p2 = por %p22904_p0, %p22903_p13 }
  0xaa   : > { %p22899_p12 = pneg %p22898_p11 }
  0xac   : > { %p22906_p3 = pnand %p22905_p2, %p22899_p12 }
  0xae   : > { %22909 = shalt.err (!%p22906_p3)
}
  0xaf   : > { %s23507_s3 = smov 128   ;;  %s23508_s28 = smov 8  }
  0xb0   : > { %20527 = dma.hbm_to_vmem [thread:$0]  (!%p23703_p5), %s25517_s13, 6144, %s798_s6, [#allocation17], %s23507_s3, %s23507_s3, %s23508_s28  }
  0xb1   : > { %s23509_s9 = smov [#allocation19]   ;;  %s23510_s10 = smov [#allocation22]  }
  0xb2   : > { %s822_s27 = sshll.u32 %s23509_s9, 4  ;;  %s846_s30 = sshll.u32 %s23510_s10, 4  ;;  %s823_s27 = int_to_ptr.vmem [resolvable:$true] %s822_s27  ;;  %s23831_s30 = int_to_ptr.vmem [resolvable:$true] %s846_s30 }
  0xb3   : > { %s25518_s15 = sld [smem:[#allocation69_spill]] }
  0xb9   : > { %s22910_s7 = scalar_lea.hbm %s25518_s15, 32 }
  0xba   : > { %p22911_p2 = scmp.ne.s32.totalorder %s25518_s15, %s22910_s7  ;;  %p22917_p4 = scmp.lt.u32.totalorder %s22910_s7, %s25518_s15 }
  0xbc   : > { %p22913_p3 = pnand %p22911_p2, %p23719_p7 }
  0xbe   : > { %p22914_p1 = pneg %p22913_p3 }
  0xc0   : > { %p22919_p6 = pnand %p22917_p4, %p22914_p1 }
  0xc2   : > { %22922 = shalt.err (!%p22919_p6)
}
  0xc3   : > { %s22923_s3 = scalar_lea.vmem %s823_s27, 32  ;;  %p22931_p11 = scmp.lt.s32.totalorder %s823_s27, %s823_s27 }
  0xc4   : > { %p22924_p8 = scmp.ne.s32.totalorder %s823_s27, %s22923_s3  ;;  %p22932_p12 = scmp.lt.s32.totalorder %s22923_s3, %s22923_s3 }
  0xc6   : > { %p22926_p9 = pnand %p22924_p8, %p23719_p7  ;;  %p22933_p13 = por %p22932_p12, %p22931_p11 }
  0xc8   : > { %p22927_p10 = pneg %p22926_p9 }
  0xca   : > { %p22934_p0 = pnand %p22933_p13, %p22927_p10 }
  0xcc   : > { %22937 = shalt.err (!%p22934_p0)
}
  0xcd   : > { %20533 = dma.hbm_to_vmem [thread:$0]  (!%p23703_p5), %s25518_s15, 32, %s823_s27, [#allocation20]  }
  0xce   : > { %s25519_s17 = sld [smem:[#allocation70_spill]] }
  0xd4   : > { %s22938_s9 = scalar_lea.hbm %s25519_s17, 64 }
  0xd5   : > { %p22939_p2 = scmp.ne.s32.totalorder %s25519_s17, %s22938_s9  ;;  %p22945_p4 = scmp.lt.u32.totalorder %s22938_s9, %s25519_s17 }
  0xd7   : > { %p22941_p3 = pnand %p22939_p2, %p23719_p7 }
  0xd9   : > { %p22942_p1 = pneg %p22941_p3 }
  0xdb   : > { %p22947_p6 = pnand %p22945_p4, %p22942_p1 }
  0xdd   : > { %22950 = shalt.err (!%p22947_p6)
}
  0xde   : > { %s22951_s27 = scalar_lea.vmem %s23831_s30, 64  ;;  %p22959_p11 = scmp.lt.s32.totalorder %s23831_s30, %s23831_s30 }
  0xdf   : > { %p22952_p8 = scmp.ne.s32.totalorder %s23831_s30, %s22951_s27  ;;  %p22960_p12 = scmp.lt.s32.totalorder %s22951_s27, %s22951_s27 }
  0xe1   : > { %p22954_p9 = pnand %p22952_p8, %p23719_p7  ;;  %p22961_p13 = por %p22960_p12, %p22959_p11 }
  0xe3   : > { %p22955_p10 = pneg %p22954_p9 }
  0xe5   : > { %p22962_p0 = pnand %p22961_p13, %p22955_p10 }
  0xe7   : > { %22965 = shalt.err (!%p22962_p0)
}
  0xe8   : > { %20539 = dma.hbm_to_vmem [thread:$0]  (!%p23703_p5), %s25519_s17, 64, %s23831_s30, [#allocation23]  }
  0xe9   : > { %s23511_s3 = smov [#allocation25]   ;;  %s23512_s5 = smov [#allocation28]  }
  0xea   : > { %s867_s4 = sshll.u32 %s23511_s3, 4  ;;  %s892_s28 = sshll.u32 %s23512_s5, 4  ;;  %s868_s4 = int_to_ptr.vmem [resolvable:$true] %s867_s4  ;;  %s23874_s28 = int_to_ptr.vmem [resolvable:$true] %s892_s28 }
  0xeb   : > { %s22966_s10 = scalar_lea.hbm %s25447_s19, 49152 }
  0xec   : > { %p22967_p2 = scmp.ne.s32.totalorder %s25447_s19, %s22966_s10  ;;  %p22973_p4 = scmp.lt.u32.totalorder %s22966_s10, %s25447_s19 }
  0xee   : > { %p22969_p3 = pnand %p22967_p2, %p23719_p7 }
  0xf0   : > { %p22970_p1 = pneg %p22969_p3 }
  0xf2   : > { %p22975_p6 = pnand %p22973_p4, %p22970_p1 }
  0xf4   : > { %22978 = shalt.err (!%p22975_p6)
}
  0xf5   : > { %s22979_s27 = scalar_lea.vmem %s868_s4, 49152  ;;  %p22987_p11 = scmp.lt.s32.totalorder %s868_s4, %s868_s4 }
  0xf6   : > { %p22980_p8 = scmp.ne.s32.totalorder %s868_s4, %s22979_s27  ;;  %p22988_p12 = scmp.lt.s32.totalorder %s22979_s27, %s22979_s27 }
  0xf8   : > { %p22982_p9 = pnand %p22980_p8, %p23719_p7  ;;  %p22989_p13 = por %p22988_p12, %p22987_p11 }
  0xfa   : > { %p22983_p10 = pneg %p22982_p9 }
  0xfc   : > { %p22990_p0 = pnand %p22989_p13, %p22983_p10 }
  0xfe   : > { %22993 = shalt.err (!%p22990_p0)
}
  0xff   : > { %s25480_s1 = smov 256   ;;  %s25482_s6 = smov 16  }
 0x100   : > { %20545 = dma.hbm_to_vmem [thread:$0]  (!%p23703_p5), %s25447_s19, 49152, %s868_s4, [#allocation26], %s25480_s1, %s25480_s1, %s25482_s6  }
 0x101   : > { %s22994_s10 = scalar_lea.hbm %s25449_s21, 64 }
 0x102   : > { %p22995_p2 = scmp.ne.s32.totalorder %s25449_s21, %s22994_s10  ;;  %p23001_p4 = scmp.lt.u32.totalorder %s22994_s10, %s25449_s21 }
 0x104   : > { %p22997_p3 = pnand %p22995_p2, %p23719_p7 }
 0x106   : > { %p22998_p1 = pneg %p22997_p3 }
 0x108   : > { %p23003_p6 = pnand %p23001_p4, %p22998_p1 }
 0x10a   : > { %23006 = shalt.err (!%p23003_p6)
}
 0x10b   : > { %s23007_s4 = scalar_lea.vmem %s23874_s28, 64  ;;  %p23015_p11 = scmp.lt.s32.totalorder %s23874_s28, %s23874_s28 }
 0x10c   : > { %p23008_p8 = scmp.ne.s32.totalorder %s23874_s28, %s23007_s4  ;;  %p23016_p12 = scmp.lt.s32.totalorder %s23007_s4, %s23007_s4 }
 0x10e   : > { %p23010_p9 = pnand %p23008_p8, %p23719_p7  ;;  %p23017_p13 = por %p23016_p12, %p23015_p11 }
 0x110   : > { %p23011_p10 = pneg %p23010_p9 }
 0x112   : > { %p23018_p0 = pnand %p23017_p13, %p23011_p10 }
 0x114   : > { %23021 = shalt.err (!%p23018_p0)
}
 0x115   : > { %20551 = dma.hbm_to_vmem [thread:$0]  (!%p23703_p5), %s25449_s21, 64, %s23874_s28, [#allocation29]  }
 0x116   : > { %s23515_s5 = smov [#allocation31]   ;;  %s23516_s9 = smov [#allocation34]  }
 0x117   : > { %s916_s8 = sshll.u32 %s23515_s5, 4  ;;  %s937_s10 = sshll.u32 %s23516_s9, 4  ;;  %s917_s8 = int_to_ptr.vmem [resolvable:$true] %s916_s8  ;;  %s23920_s10 = int_to_ptr.vmem [resolvable:$true] %s937_s10 }
 0x118   : > { %s23022_s7 = scalar_lea.hbm %s25451_s23, 64 }
 0x119   : > { %p23023_p2 = scmp.ne.s32.totalorder %s25451_s23, %s23022_s7  ;;  %p23029_p4 = scmp.lt.u32.totalorder %s23022_s7, %s25451_s23 }
 0x11b   : > { %p23025_p3 = pnand %p23023_p2, %p23719_p7 }
 0x11d   : > { %p23026_p1 = pneg %p23025_p3 }
 0x11f   : > { %p23031_p6 = pnand %p23029_p4, %p23026_p1 }
 0x121   : > { %23034 = shalt.err (!%p23031_p6)
}
 0x122   : > { %s23035_s3 = scalar_lea.vmem %s917_s8, 64  ;;  %p23043_p11 = scmp.lt.s32.totalorder %s917_s8, %s917_s8 }
 0x123   : > { %p23036_p8 = scmp.ne.s32.totalorder %s917_s8, %s23035_s3  ;;  %p23044_p12 = scmp.lt.s32.totalorder %s23035_s3, %s23035_s3 }
 0x125   : > { %p23038_p9 = pnand %p23036_p8, %p23719_p7  ;;  %p23045_p13 = por %p23044_p12, %p23043_p11 }
 0x127   : > { %p23039_p10 = pneg %p23038_p9 }
 0x129   : > { %p23046_p0 = pnand %p23045_p13, %p23039_p10 }
 0x12b   : > { %23049 = shalt.err (!%p23046_p0)
}
 0x12c   : > { %20557 = dma.hbm_to_vmem [thread:$0]  (!%p23703_p5), %s25451_s23, 64, %s917_s8, [#allocation32]  }
 0x12d   : > { %s23050_s7 = scalar_lea.hbm %s25453_s25, 49152 }
 0x12e   : > { %p23051_p2 = scmp.ne.s32.totalorder %s25453_s25, %s23050_s7  ;;  %p23057_p4 = scmp.lt.u32.totalorder %s23050_s7, %s25453_s25 }
 0x130   : > { %p23053_p3 = pnand %p23051_p2, %p23719_p7 }
 0x132   : > { %p23054_p1 = pneg %p23053_p3 }
 0x134   : > { %p23059_p6 = pnand %p23057_p4, %p23054_p1 }
 0x136   : > { %23062 = shalt.err (!%p23059_p6)
}
 0x137   : > { %s23063_s8 = scalar_lea.vmem %s23920_s10, 49152  ;;  %p23071_p11 = scmp.lt.s32.totalorder %s23920_s10, %s23920_s10 }
 0x138   : > { %p23064_p8 = scmp.ne.s32.totalorder %s23920_s10, %s23063_s8  ;;  %p23072_p12 = scmp.lt.s32.totalorder %s23063_s8, %s23063_s8 }
 0x13a   : > { %p23066_p9 = pnand %p23064_p8, %p23719_p7  ;;  %p23073_p13 = por %p23072_p12, %p23071_p11 }
 0x13c   : > { %p23067_p10 = pneg %p23066_p9 }
 0x13e   : > { %p23074_p0 = pnand %p23073_p13, %p23067_p10 }
 0x140   : > { %23077 = shalt.err (!%p23074_p0)
}
 0x141   : > { %20563 = dma.hbm_to_vmem [thread:$0]  (!%p23703_p5), %s25453_s25, 49152, %s23920_s10, [#allocation35], %s25480_s1, %s25480_s1, %s25482_s6  }
 0x142   : > { %s23517_s9 = smov [#allocation2]   ;;  %s23518_s2 = smov [#allocation6]  }
 0x143   : > { %s691_s11 = sshll.u32 %s23517_s9, 4  ;;  %s716_s7 = sshll.u32 %s23518_s2, 4  ;;  %s692_s11 = int_to_ptr.vmem [resolvable:$true] %s691_s11  ;;  %s23966_s7 = int_to_ptr.vmem [resolvable:$true] %s716_s7 }
 0x144   : > { %s25520_s27 = sld [smem:[#allocation57_spill]] }
 0x14a   : > { %s23078_s28 = scalar_lea.hbm %s25520_s27, 16 }
 0x14b   : > { %p23079_p2 = scmp.ne.s32.totalorder %s25520_s27, %s23078_s28  ;;  %p23085_p4 = scmp.lt.u32.totalorder %s23078_s28, %s25520_s27 }
 0x14d   : > { %p23081_p3 = pnand %p23079_p2, %p23719_p7 }
 0x14f   : > { %p23082_p1 = pneg %p23081_p3 }
 0x151   : > { %p23087_p6 = pnand %p23085_p4, %p23082_p1 }
 0x153   : > { %23090 = shalt.err (!%p23087_p6)
}
 0x154   : > { %s23091_s5 = scalar_lea.vmem %s692_s11, 16  ;;  %s23098_s9 = scalar_lea.vmem %s692_s11, 32 }
 0x155   : > { %p23092_p8 = scmp.ne.s32.totalorder %s692_s11, %s23091_s5  ;;  %p23099_p11 = scmp.lt.s32.totalorder %s692_s11, %s692_s11 }
 0x156   : > { %p23100_p12 = scmp.lt.s32.totalorder %s23098_s9, %s23091_s5 }
 0x157   : > { %p23094_p9 = pnand %p23092_p8, %p23719_p7 }
 0x158   : > { %p23101_p13 = por %p23100_p12, %p23099_p11 }
 0x159   : > { %p23095_p10 = pneg %p23094_p9 }
 0x15b   : > { %p23102_p0 = pnand %p23101_p13, %p23095_p10 }
 0x15d   : > { %23105 = shalt.err (!%p23102_p0)
}
 0x15e   : > { %20500 = dma.hbm_to_vmem [thread:$0]  (!%p23703_p5), %s25520_s27, 16, %s692_s11, [#allocation3]  }
 0x15f   : > { %s25521_s28 = sld [smem:[#allocation60_spill]] }
 0x165   : > { %s23106_s8 = scalar_lea.hbm %s25521_s28, 16 }
 0x166   : > { %p23107_p2 = scmp.ne.s32.totalorder %s25521_s28, %s23106_s8  ;;  %p23113_p4 = scmp.lt.u32.totalorder %s23106_s8, %s25521_s28 }
 0x168   : > { %p23109_p3 = pnand %p23107_p2, %p23719_p7 }
 0x16a   : > { %p23110_p1 = pneg %p23109_p3 }
 0x16c   : > { %p23115_p6 = pnand %p23113_p4, %p23110_p1 }
 0x16e   : > { %23118 = shalt.err (!%p23115_p6)
}
 0x16f   : > { %s23119_s11 = scalar_lea.vmem %s23966_s7, 16  ;;  %s23126_s12 = scalar_lea.vmem %s23966_s7, 32 }
 0x170   : > { %p23120_p8 = scmp.ne.s32.totalorder %s23966_s7, %s23119_s11  ;;  %p23127_p11 = scmp.lt.s32.totalorder %s23966_s7, %s23966_s7 }
 0x171   : > { %p23128_p12 = scmp.lt.s32.totalorder %s23126_s12, %s23119_s11 }
 0x172   : > { %p23122_p9 = pnand %p23120_p8, %p23719_p7 }
 0x173   : > { %p23129_p13 = por %p23128_p12, %p23127_p11 }
 0x174   : > { %p23123_p10 = pneg %p23122_p9 }
 0x176   : > { %p23130_p0 = pnand %p23129_p13, %p23123_p10 }
 0x178   : > { %23133 = shalt.err (!%p23130_p0)
}
 0x179   : > { %20506 = dma.hbm_to_vmem [thread:$0]  (!%p23703_p5), %s25521_s28, 16, %s23966_s7, [#allocation5]  }
 0x17a   : > { %s23519_s4 = smov [#allocation9]   ;;  %s23520_s3 = smov [#allocation12]  }
 0x17b   : > { %s741_s8 = sshll.u32 %s23519_s4, 4  ;;  %s762_s10 = sshll.u32 %s23520_s3, 4  ;;  %s742_s8 = int_to_ptr.vmem [resolvable:$true] %s741_s8  ;;  %s24010_s10 = int_to_ptr.vmem [resolvable:$true] %s762_s10 }
 0x17c   : > { %s25522_s11 = sld [smem:[#allocation63_spill]] }
 0x182   : > { %s23134_s12 = scalar_lea.hbm %s25522_s11, 16 }
 0x183   : > { %p23135_p2 = scmp.ne.s32.totalorder %s25522_s11, %s23134_s12  ;;  %p23141_p4 = scmp.lt.u32.totalorder %s23134_s12, %s25522_s11 }
 0x185   : > { %p23137_p3 = pnand %p23135_p2, %p23719_p7 }
 0x187   : > { %p23138_p1 = pneg %p23137_p3 }
 0x189   : > { %p23143_p6 = pnand %p23141_p4, %p23138_p1 }
 0x18b   : > { %23146 = shalt.err (!%p23143_p6)
}
 0x18c   : > { %s23147_s30 = scalar_lea.vmem %s742_s8, 16  ;;  %s23154_s4 = scalar_lea.vmem %s742_s8, 32 }
 0x18d   : > { %p23148_p8 = scmp.ne.s32.totalorder %s742_s8, %s23147_s30  ;;  %p23155_p11 = scmp.lt.s32.totalorder %s742_s8, %s742_s8 }
 0x18e   : > { %p23156_p12 = scmp.lt.s32.totalorder %s23154_s4, %s23147_s30 }
 0x18f   : > { %p23150_p9 = pnand %p23148_p8, %p23719_p7 }
 0x190   : > { %p23157_p13 = por %p23156_p12, %p23155_p11 }
 0x191   : > { %p23151_p10 = pneg %p23150_p9 }
 0x193   : > { %p23158_p0 = pnand %p23157_p13, %p23151_p10 }
 0x195   : > { %23161 = shalt.err (!%p23158_p0)
}
 0x196   : > { %20512 = dma.hbm_to_vmem [thread:$0]  (!%p23703_p5), %s25522_s11, 16, %s742_s8, [#allocation8]  }
 0x197   : > { %s25523_s9 = sld [smem:[#allocation65_spill]] }
 0x19d   : > { %s23162_s12 = scalar_lea.hbm %s25523_s9, 1536 }
 0x19e   : > { %p23163_p2 = scmp.ne.s32.totalorder %s25523_s9, %s23162_s12  ;;  %p23169_p4 = scmp.lt.u32.totalorder %s23162_s12, %s25523_s9 }
 0x1a0   : > { %p23165_p3 = pnand %p23163_p2, %p23719_p7 }
 0x1a2   : > { %p23166_p1 = pneg %p23165_p3 }
 0x1a4   : > { %p23171_p6 = pnand %p23169_p4, %p23166_p1 }
 0x1a6   : > { %23174 = shalt.err (!%p23171_p6)
}
 0x1a7   : > { %s23175_s8 = scalar_lea.vmem %s24010_s10, 1536  ;;  %p23183_p11 = scmp.lt.s32.totalorder %s24010_s10, %s24010_s10 }
 0x1a8   : > { %p23176_p8 = scmp.ne.s32.totalorder %s24010_s10, %s23175_s8  ;;  %p23184_p12 = scmp.lt.s32.totalorder %s23175_s8, %s23175_s8 }
 0x1aa   : > { %p23178_p9 = pnand %p23176_p8, %p23719_p7  ;;  %p23185_p13 = por %p23184_p12, %p23183_p11 }
 0x1ac   : > { %p23179_p10 = pneg %p23178_p9 }
 0x1ae   : > { %p23186_p0 = pnand %p23185_p13, %p23179_p10 }
 0x1b0   : > { %23189 = shalt.err (!%p23186_p0)
}
 0x1b1   : > { %s23521_s1 = smov 64   ;;  %s23522_s6 = smov 4  }
 0x1b2   : > { %20518 = dma.hbm_to_vmem [thread:$0]  (!%p23703_p5), %s25523_s9, 1536, %s24010_s10, [#allocation11], %s23521_s1, %s23521_s1, %s23522_s6  }
 0x1b3   : > { %s23523_s12 = smov [#allocation15]   ;;  %s23524_s7 = smov [#allocation18]  }
 0x1b4   : > { %s787_s2 = sshll.u32 %s23523_s12, 4  ;;  %s811_s30 = sshll.u32 %s23524_s7, 4  ;;  %s788_s2 = int_to_ptr.vmem [resolvable:$true] %s787_s2  ;;  %s24053_s30 = int_to_ptr.vmem [resolvable:$true] %s811_s30 }
 0x1b5   : > { %s25524_s11 = sld [smem:[#allocation67_spill]] }
 0x1bb   : > { %s23190_s13 = scalar_lea.hbm %s25524_s11, 16 }
 0x1bc   : > { %p23191_p2 = scmp.ne.s32.totalorder %s25524_s11, %s23190_s13  ;;  %p23197_p4 = scmp.lt.u32.totalorder %s23190_s13, %s25524_s11 }
 0x1be   : > { %p23193_p3 = pnand %p23191_p2, %p23719_p7 }
 0x1c0   : > { %p23194_p1 = pneg %p23193_p3 }
 0x1c2   : > { %p23199_p6 = pnand %p23197_p4, %p23194_p1 }
 0x1c4   : > { %23202 = shalt.err (!%p23199_p6)
}
 0x1c5   : > { %s23203_s1 = scalar_lea.vmem %s788_s2, 16  ;;  %s23210_s6 = scalar_lea.vmem %s788_s2, 32 }
 0x1c6   : > { %p23204_p8 = scmp.ne.s32.totalorder %s788_s2, %s23203_s1  ;;  %p23211_p11 = scmp.lt.s32.totalorder %s788_s2, %s788_s2 }
 0x1c7   : > { %p23212_p12 = scmp.lt.s32.totalorder %s23210_s6, %s23203_s1 }
 0x1c8   : > { %p23206_p9 = pnand %p23204_p8, %p23719_p7 }
 0x1c9   : > { %p23213_p13 = por %p23212_p12, %p23211_p11 }
 0x1ca   : > { %p23207_p10 = pneg %p23206_p9 }
 0x1cc   : > { %p23214_p0 = pnand %p23213_p13, %p23207_p10 }
 0x1ce   : > { %23217 = shalt.err (!%p23214_p0)
}
 0x1cf   : > { %20524 = dma.hbm_to_vmem [thread:$0]  (!%p23703_p5), %s25524_s11, 16, %s788_s2, [#allocation14]  }
 0x1d0   : > { %s23218_s12 = scalar_lea.hbm %s25442_s14, 32 }
 0x1d1   : > { %p23219_p2 = scmp.ne.s32.totalorder %s25442_s14, %s23218_s12  ;;  %p23225_p4 = scmp.lt.u32.totalorder %s23218_s12, %s25442_s14 }
 0x1d3   : > { %p23221_p3 = pnand %p23219_p2, %p23719_p7 }
 0x1d5   : > { %p23222_p1 = pneg %p23221_p3 }
 0x1d7   : > { %p23227_p6 = pnand %p23225_p4, %p23222_p1 }
 0x1d9   : > { %23230 = shalt.err (!%p23227_p6)
}
 0x1da   : > { %s23231_s2 = scalar_lea.vmem %s24053_s30, 32  ;;  %p23239_p11 = scmp.lt.s32.totalorder %s24053_s30, %s24053_s30 }
 0x1db   : > { %p23232_p8 = scmp.ne.s32.totalorder %s24053_s30, %s23231_s2  ;;  %p23240_p12 = scmp.lt.s32.totalorder %s23231_s2, %s23231_s2 }
 0x1dd   : > { %p23234_p9 = pnand %p23232_p8, %p23719_p7  ;;  %p23241_p13 = por %p23240_p12, %p23239_p11 }
 0x1df   : > { %p23235_p10 = pneg %p23234_p9 }
 0x1e1   : > { %p23242_p0 = pnand %p23241_p13, %p23235_p10 }
 0x1e3   : > { %23245 = shalt.err (!%p23242_p0)
}
 0x1e4   : > { %20530 = dma.hbm_to_vmem [thread:$0]  (!%p23703_p5), %s25442_s14, 32, %s24053_s30, [#allocation17]  }
 0x1e5   : > { %s23525_s6 = smov [#allocation21]   ;;  %s23526_s17 = smov [#allocation24]  }
 0x1e6   : > { %s832_s15 = sshll.u32 %s23525_s6, 4  ;;  %s857_s13 = sshll.u32 %s23526_s17, 4  ;;  %s833_s15 = int_to_ptr.vmem [resolvable:$true] %s832_s15  ;;  %s24096_s13 = int_to_ptr.vmem [resolvable:$true] %s857_s13 }
 0x1e7   : > { %s23246_s7 = scalar_lea.hbm %s25444_s16, 24576 }
 0x1e8   : > { %p23247_p2 = scmp.ne.s32.totalorder %s25444_s16, %s23246_s7  ;;  %p23253_p4 = scmp.lt.u32.totalorder %s23246_s7, %s25444_s16 }
 0x1ea   : > { %p23249_p3 = pnand %p23247_p2, %p23719_p7 }
 0x1ec   : > { %p23250_p1 = pneg %p23249_p3 }
 0x1ee   : > { %p23255_p6 = pnand %p23253_p4, %p23250_p1 }
 0x1f0   : > { %23258 = shalt.err (!%p23255_p6)
}
 0x1f1   : > { %s23259_s2 = scalar_lea.vmem %s833_s15, 24576  ;;  %p23267_p11 = scmp.lt.s32.totalorder %s833_s15, %s833_s15 }
 0x1f2   : > { %p23260_p8 = scmp.ne.s32.totalorder %s833_s15, %s23259_s2  ;;  %p23268_p12 = scmp.lt.s32.totalorder %s23259_s2, %s23259_s2 }
 0x1f4   : > { %p23262_p9 = pnand %p23260_p8, %p23719_p7  ;;  %p23269_p13 = por %p23268_p12, %p23267_p11 }
 0x1f6   : > { %p23263_p10 = pneg %p23262_p9 }
 0x1f8   : > { %p23270_p0 = pnand %p23269_p13, %p23263_p10 }
 0x1fa   : > { %23273 = shalt.err (!%p23270_p0)
}
 0x1fb   : > { %s25525_s10 = smov 16   ;;  %s25526_s1 = smov 256  }
 0x1fc   : > { %20536 = dma.hbm_to_vmem [thread:$0]  (!%p23703_p5), %s25444_s16, 24576, %s833_s15, [#allocation20], %s25526_s1, %s25526_s1, %s25525_s10  }
 0x1fd   : > { %s23274_s7 = scalar_lea.hbm %s25446_s18, 64 }
 0x1fe   : > { %p23275_p2 = scmp.ne.s32.totalorder %s25446_s18, %s23274_s7  ;;  %p23281_p4 = scmp.lt.u32.totalorder %s23274_s7, %s25446_s18 }
 0x200   : > { %p23277_p3 = pnand %p23275_p2, %p23719_p7 }
 0x202   : > { %p23278_p1 = pneg %p23277_p3 }
 0x204   : > { %p23283_p6 = pnand %p23281_p4, %p23278_p1 }
 0x206   : > { %23286 = shalt.err (!%p23283_p6)
}
 0x207   : > { %s23287_s15 = scalar_lea.vmem %s24096_s13, 64  ;;  %p23295_p11 = scmp.lt.s32.totalorder %s24096_s13, %s24096_s13 }
 0x208   : > { %p23288_p8 = scmp.ne.s32.totalorder %s24096_s13, %s23287_s15  ;;  %p23296_p12 = scmp.lt.s32.totalorder %s23287_s15, %s23287_s15 }
 0x20a   : > { %p23290_p9 = pnand %p23288_p8, %p23719_p7  ;;  %p23297_p13 = por %p23296_p12, %p23295_p11 }
 0x20c   : > { %p23291_p10 = pneg %p23290_p9 }
 0x20e   : > { %p23298_p0 = pnand %p23297_p13, %p23291_p10 }
 0x210   : > { %23301 = shalt.err (!%p23298_p0)
}
 0x211   : > { %20542 = dma.hbm_to_vmem [thread:$0]  (!%p23703_p5), %s25446_s18, 64, %s24096_s13, [#allocation23]  }
 0x212   : > { %s23527_s17 = smov [#allocation27]   ;;  %s23528_s12 = smov [#allocation30]  }
 0x213   : > { %s881_s5 = sshll.u32 %s23527_s17, 4  ;;  %s902_s7 = sshll.u32 %s23528_s12, 4  ;;  %s882_s5 = int_to_ptr.vmem [resolvable:$true] %s881_s5  ;;  %s24142_s7 = int_to_ptr.vmem [resolvable:$true] %s902_s7 }
 0x214   : > { %s23302_s3 = scalar_lea.hbm %s25448_s20, 64 }
 0x215   : > { %p23303_p2 = scmp.ne.s32.totalorder %s25448_s20, %s23302_s3  ;;  %p23309_p4 = scmp.lt.u32.totalorder %s23302_s3, %s25448_s20 }
 0x217   : > { %p23305_p3 = pnand %p23303_p2, %p23719_p7 }
 0x219   : > { %p23306_p1 = pneg %p23305_p3 }
 0x21b   : > { %p23311_p6 = pnand %p23309_p4, %p23306_p1 }
 0x21d   : > { %23314 = shalt.err (!%p23311_p6)
}
 0x21e   : > { %s23315_s6 = scalar_lea.vmem %s882_s5, 64  ;;  %p23323_p11 = scmp.lt.s32.totalorder %s882_s5, %s882_s5 }
 0x21f   : > { %p23316_p8 = scmp.ne.s32.totalorder %s882_s5, %s23315_s6  ;;  %p23324_p12 = scmp.lt.s32.totalorder %s23315_s6, %s23315_s6 }
 0x221   : > { %p23318_p9 = pnand %p23316_p8, %p23719_p7  ;;  %p23325_p13 = por %p23324_p12, %p23323_p11 }
 0x223   : > { %p23319_p10 = pneg %p23318_p9 }
 0x225   : > { %p23326_p0 = pnand %p23325_p13, %p23319_p10 }
 0x227   : > { %23329 = shalt.err (!%p23326_p0)
}
 0x228   : > { %20548 = dma.hbm_to_vmem [thread:$0]  (!%p23703_p5), %s25448_s20, 64, %s882_s5, [#allocation26]  }
 0x229   : > { %s23330_s3 = scalar_lea.hbm %s25450_s22, 49152 }
 0x22a   : > { %p23331_p2 = scmp.ne.s32.totalorder %s25450_s22, %s23330_s3  ;;  %p23337_p4 = scmp.lt.u32.totalorder %s23330_s3, %s25450_s22 }
 0x22c   : > { %p23333_p3 = pnand %p23331_p2, %p23719_p7 }
 0x22e   : > { %p23334_p1 = pneg %p23333_p3 }
 0x230   : > { %p23339_p6 = pnand %p23337_p4, %p23334_p1 }
 0x232   : > { %23342 = shalt.err (!%p23339_p6)
}
 0x233   : > { %s23343_s5 = scalar_lea.vmem %s24142_s7, 49152  ;;  %p23351_p11 = scmp.lt.s32.totalorder %s24142_s7, %s24142_s7 }
 0x234   : > { %p23344_p8 = scmp.ne.s32.totalorder %s24142_s7, %s23343_s5  ;;  %p23352_p12 = scmp.lt.s32.totalorder %s23343_s5, %s23343_s5 }
 0x236   : > { %p23346_p9 = pnand %p23344_p8, %p23719_p7  ;;  %p23353_p13 = por %p23352_p12, %p23351_p11 }
 0x238   : > { %p23347_p10 = pneg %p23346_p9 }
 0x23a   : > { %p23354_p0 = pnand %p23353_p13, %p23347_p10 }
 0x23c   : > { %23357 = shalt.err (!%p23354_p0)
}
 0x23d   : > { %20554 = dma.hbm_to_vmem [thread:$0]  (!%p23703_p5), %s25450_s22, 49152, %s24142_s7, [#allocation29], %s25526_s1, %s25526_s1, %s25525_s10  }
 0x23e   : > { %s23529_s12 = smov [#allocation33]   ;;  %s23530_s8 = smov [#allocation36]  }
 0x23f   : > { %s927_s4 = sshll.u32 %s23529_s12, 4  ;;  %s951_s3 = sshll.u32 %s23530_s8, 4  ;;  %s928_s4 = int_to_ptr.vmem [resolvable:$true] %s927_s4  ;;  %s24188_s3 = int_to_ptr.vmem [resolvable:$true] %s951_s3 }
 0x240   : > { %s23358_s2 = scalar_lea.hbm %s25452_s24, 64 }
 0x241   : > { %p23359_p2 = scmp.ne.s32.totalorder %s25452_s24, %s23358_s2  ;;  %p23365_p4 = scmp.lt.u32.totalorder %s23358_s2, %s25452_s24 }
 0x243   : > { %p23361_p3 = pnand %p23359_p2, %p23719_p7 }
 0x245   : > { %p23362_p1 = pneg %p23361_p3 }
 0x247   : > { %p23367_p6 = pnand %p23365_p4, %p23362_p1 }
 0x249   : > { %23370 = shalt.err (!%p23367_p6)
}
 0x24a   : > { %s23371_s1 = scalar_lea.vmem %s928_s4, 64  ;;  %p23379_p11 = scmp.lt.s32.totalorder %s928_s4, %s928_s4 }
 0x24b   : > { %p23372_p8 = scmp.ne.s32.totalorder %s928_s4, %s23371_s1  ;;  %p23380_p12 = scmp.lt.s32.totalorder %s23371_s1, %s23371_s1 }
 0x24d   : > { %p23374_p9 = pnand %p23372_p8, %p23719_p7  ;;  %p23381_p13 = por %p23380_p12, %p23379_p11 }
 0x24f   : > { %p23375_p10 = pneg %p23374_p9 }
 0x251   : > { %p23382_p0 = pnand %p23381_p13, %p23375_p10 }
 0x253   : > { %23385 = shalt.err (!%p23382_p0)
}
 0x254   : > { %20560 = dma.hbm_to_vmem [thread:$0]  (!%p23703_p5), %s25452_s24, 64, %s928_s4, [#allocation32]  }
 0x255   : > { %s23386_s30 = scalar_lea.hbm %s25454_s26, 64 }
 0x256   : > { %p23387_p2 = scmp.ne.s32.totalorder %s25454_s26, %s23386_s30  ;;  %p23393_p4 = scmp.lt.u32.totalorder %s23386_s30, %s25454_s26 }
 0x258   : > { %p23389_p3 = pnand %p23387_p2, %p23719_p7 }
 0x25a   : > { %p23390_p1 = pneg %p23389_p3 }
 0x25c   : > { %p23395_p6 = pnand %p23393_p4, %p23390_p1 }
 0x25e   : > { %23398 = shalt.err (!%p23395_p6)
}
 0x25f   : > { %s23399_s4 = scalar_lea.vmem %s24188_s3, 64  ;;  %p23407_p11 = scmp.lt.s32.totalorder %s24188_s3, %s24188_s3 }
 0x260   : > { %p23400_p8 = scmp.ne.s32.totalorder %s24188_s3, %s23399_s4  ;;  %p23408_p12 = scmp.lt.s32.totalorder %s23399_s4, %s23399_s4 }
 0x262   : > { %p23402_p9 = pnand %p23400_p8, %p23719_p7  ;;  %p23409_p13 = por %p23408_p12, %p23407_p11 }
 0x264   : > { %p23403_p10 = pneg %p23402_p9 }
 0x266   : > { %p23410_p0 = pnand %p23409_p13, %p23403_p10 }
 0x268   : > { %23413 = shalt.err (!%p23410_p0)
}
 0x269   : > { %20566 = dma.hbm_to_vmem [thread:$0]  (!%p23703_p5), %s25454_s26, 64, %s24188_s3, [#allocation35]  }
 0x26a   : > { %s23531_s1 = smov [#allocation37]   ;;  %s25527_s8 = sld [smem:[#allocation71_spill]] }
 0x26b   : > { %s962_s7 = sshll.u32 %s23531_s1, 4  ;;  %s963_s7 = int_to_ptr.vmem [resolvable:$true] %s962_s7 }
 0x270   : > { %s25528_s30 = smov %s25527_s8  ;;  %s23414_s15 = scalar_lea.hbm %s25527_s8, 64 }
 0x271   : > { %p23415_p2 = scmp.ne.s32.totalorder %s25528_s30, %s23414_s15  ;;  %p23421_p4 = scmp.lt.u32.totalorder %s23414_s15, %s25528_s30 }
 0x273   : > { %p23417_p3 = pnand %p23415_p2, %p23719_p7 }
 0x275   : > { %p23418_p1 = pneg %p23417_p3 }
 0x277   : > { %p23423_p6 = pnand %p23421_p4, %p23418_p1 }
 0x279   : > { %23426 = shalt.err (!%p23423_p6)
}
 0x27a   : > { %s23427_s3 = scalar_lea.vmem %s963_s7, 64  ;;  %p23435_p11 = scmp.lt.s32.totalorder %s963_s7, %s963_s7 }
 0x27b   : > { %p23428_p8 = scmp.ne.s32.totalorder %s963_s7, %s23427_s3  ;;  %p23436_p12 = scmp.lt.s32.totalorder %s23427_s3, %s23427_s3 }
 0x27d   : > { %p23430_p9 = pnand %p23428_p8, %p23719_p7  ;;  %p23437_p13 = por %p23436_p12, %p23435_p11 }
 0x27f   : > { %p23431_p10 = pneg %p23430_p9 }
 0x281   : > { %p23438_p0 = pnand %p23437_p13, %p23431_p10 }
 0x283   : > { %23441 = shalt.err (!%p23438_p0)
}
 0x284   : > { %20569 = dma.hbm_to_vmem [thread:$0]  (!%p23703_p5), %s25528_s30, 64, %s963_s7, [#allocation38]  }
 0x285   : > { %s25529_s1 = sld [smem:[#allocation54_spill]] }
 0x28b   : > { %p25530_p2 = scmp.ne.s32.totalorder %s25529_s1, 0 }
 0x28c   : > { %s25531_s17 = sld [smem:[#allocation53_spill]] (!%p25530_p2) }
 0x28d   : > { %983 = sbr.rel (%p25530_p2) target bundleno = 7247 (0x1c4f), region = 132 }
 0x292   : > { %p25532_p3 = scmp.eq.s32.totalorder (!%p25530_p2), %s25531_s17, 0 }
 0x294   : > { %23447 = dma.done.wait (%p25532_p3), [#allocation3], 16   ;;  %p25533_p7 = pmov %p25532_p3 }
 0x295   : > { %p25534_p1 = pmov %p25532_p3 }
 0x296   : > { %23449 = vsyncadd (%p25533_p7), [#allocation3], 4294967280 }
 0x297   : > { %23451 = dma.done.wait (%p25534_p1), [#allocation5], 32   ;;  %p25535_p4 = pmov %p25534_p1 }
 0x298   : > { %p25536_p6 = pmov %p25534_p1 }
 0x299   : > { %23453 = vsyncadd (%p25535_p4), [#allocation5], 4294967264 }
 0x29a   : > { %23455 = dma.done.wait (%p25536_p6), [#allocation8], 32   ;;  %p25537_p5 = pmov %p25534_p1 }
 0x29b   : > { %p25538_p8 = pmov %p25534_p1 }
 0x29c   : > { %23457 = vsyncadd (%p25537_p5), [#allocation8], 4294967264 }
 0x29d   : > { %23459 = dma.done.wait (%p25538_p8), [#allocation11], 1552   ;;  %p25539_p9 = pmov %p25534_p1 }
 0x29e   : > { %p25540_p10 = pmov %p25534_p1 }
 0x29f   : > { %23461 = vsyncadd (%p25539_p9), [#allocation11], 4294965744 }
 0x2a0   : > { %23463 = dma.done.wait (%p25540_p10), [#allocation14], 32   ;;  %p25541_p11 = pmov %p25534_p1 }
 0x2a1   : > { %p25542_p12 = pmov %p25534_p1 }
 0x2a2   : > { %23465 = vsyncadd (%p25541_p11), [#allocation14], 4294967264 }
 0x2a3   : > { %23467 = dma.done.wait (%p25542_p12), [#allocation17], 6176   ;;  %p25543_p13 = pmov %p25534_p1 }
 0x2a4   : > { %p25544_p0 = pmov %p25534_p1 }
 0x2a5   : > { %23469 = vsyncadd (%p25543_p13), [#allocation17], 4294961120 }
 0x2a6   : > { %23471 = dma.done.wait (%p25544_p0), [#allocation20], 24608   ;;  %p25545_p2 = pmov %p25544_p0 }
 0x2a7   : > { %p25546_p3 = pmov %p25544_p0 }
 0x2a8   : > { %23473 = vsyncadd (%p25545_p2), [#allocation20], 4294942688 }
 0x2a9   : > { %23475 = dma.done.wait (%p25546_p3), [#allocation23], 128   ;;  %p25547_p7 = pmov %p25544_p0 }
 0x2aa   : > { %p25548_p1 = pmov %p25544_p0 }
 0x2ab   : > { %23477 = vsyncadd (%p25547_p7), [#allocation23], 4294967168 }
 0x2ac   : > { %23479 = dma.done.wait (%p25548_p1), [#allocation26], 49216   ;;  %p25549_p4 = pmov %p25544_p0 }
 0x2ad   : > { %p25550_p6 = pmov %p25544_p0 }
 0x2ae   : > { %23481 = vsyncadd (%p25549_p4), [#allocation26], 4294918080 }
 0x2af   : > { %23483 = dma.done.wait (%p25550_p6), [#allocation29], 49216   ;;  %p25551_p5 = pmov %p25544_p0 }
 0x2b0   : > { %p25552_p8 = pmov %p25544_p0 }
 0x2b1   : > { %23485 = vsyncadd (%p25551_p5), [#allocation29], 4294918080 }
 0x2b2   : > { %23487 = dma.done.wait (%p25552_p8), [#allocation32], 128   ;;  %p25553_p9 = pmov %p25544_p0 }
 0x2b3   : > { %p25554_p10 = pmov %p25544_p0 }
 0x2b4   : > { %23489 = vsyncadd (%p25553_p9), [#allocation32], 4294967168 }
 0x2b5   : > { %23491 = dma.done.wait (%p25554_p10), [#allocation35], 49216   ;;  %p25555_p11 = pmov %p25544_p0 }
 0x2b6   : > { %p25556_p12 = pmov %p25544_p0 }
 0x2b7   : > { %23493 = vsyncadd (%p25555_p11), [#allocation35], 4294918080 }
 0x2b8   : > { %23495 = dma.done.wait (%p25556_p12), [#allocation38], 64   ;;  %p25557_p13 = pmov %p25544_p0 }
 0x2b9   : > { %p1148_p0 = scmp.lt.s32.totalorder %s25531_s17, 1  ;;  %v25485_v0 = vlaneseq  ;;  %s25558_s12 = sld [smem:[#allocation55_spill]]  ;;  %vm1211_vm0 = vcmask 523264   ;;  %v25486_v7 = vmov 0.0  }
 0x2ba   : > { %23497 = vsyncadd (%p25557_p13), [#allocation38], 4294967232  ;;  %s25559_s13 = sld [smem:[#allocation56_spill]] }
 0x2bb   : > { %s25572_s17 = smov (!%p1148_p0, %s25531_s17), 1  ;;  %v24308_v1 = vshrl.u32 %v25485_v0, 7  ;;  %v24311_v2 = vand.u32 127, %v25485_v0  ;;  %s25568_s5 = sld [smem:[#allocation72_spill]] }
 0x2bc   : > { %s19003_s29 = sshll.u32 %s25572_s17, 6  ;;  %s17331_s7 = sshll.u32 %s25572_s17, 2 }
 0x2bd   : > { %v1345_v3 = vadd.s32 4294967295, %v24308_v1  ;;  %v24329_v14 = vadd.s32 8, %v24308_v1  ;;  %v24334_v15 = vadd.s32 16, %v24308_v1  ;;  %v24339_v16 = vadd.s32 24, %v24308_v1 }
 0x2be   : > { %v24346_v19 = vadd.s32 32, %v24308_v1  ;;  %v1179_v20 = vadd.s32 4294967294, %v24308_v1  ;;  %v24350_v22 = vadd.s32 40, %v24308_v1  ;;  %v24353_v23 = vadd.s32 48, %v24308_v1 }
 0x2bf   : > { %s1152_s8 = scalar_lea.vmem %s25558_s12, %s19003_s29  ;;  %vm1353_vm1 = vcmp.eq.s32.totalorder %v24311_v2, %v1345_v3  ;;  %v1346_v24 = vadd.s32 4294967295, %v24329_v14  ;;  %v1347_v25 = vadd.s32 4294967295, %v24334_v15  ;;  %v1180_v27 = vadd.s32 4294967294, %v24329_v14  ;;  %s25562_s12 = sld [smem:[#allocation62_spill]] }
 0x2c0   : > { %v1158_v4 = vld [vmem:[%s1152_s8] sm:$0xff]  ;;  %v1159_v5 = vld [vmem:[%s1152_s8 + $0x8] sm:$0xff]  ;;  %v1160_v6 = vld [vmem:[%s1152_s8 + $0x10] sm:$0xff]  ;;  %v24320_v8 = vsel %vm1353_vm1, 1.0, %v25486_v7  ;;  %vm1187_vm2 = vcmp.eq.s32.totalorder %v24311_v2, %v1179_v20  ;;  %v1348_v29 = vadd.s32 4294967295, %v24339_v16  ;;  %v1349_v30 = vadd.s32 4294967295, %v24346_v19 }
 0x2c1   : > { %v24322_v9 = vpack.c.bf16 %v1159_v5, %v1158_v4  ;;  %v1161_v10 = vld [vmem:[%s1152_s8 + $0x18] sm:$0xff]  ;;  %19348 = vmatprep.mubr.msk.f32.mxu1 %vm1211_vm0, %v24320_v8  ;;  %v1162_v12 = vld [vmem:[%s1152_s8 + $0x20] sm:$0xff]  ;;  %v1163_v13 = vld [vmem:[%s1152_s8 + $0x28] sm:$0xff]  ;;  %v24361_v26 = vsel %vm1187_vm2, 1.0, %v25486_v7  ;;  %v1350_v31 = vadd.s32 4294967295, %v24350_v22  ;;  %v1181_v32 = vadd.s32 4294967294, %v24334_v15  ;;  %s1156_s4 = scalar_lea.vmem %s25568_s5, %s17331_s7 }
 0x2c2   : > { %v24326_v11 = vpack.c.bf16 %v1161_v10, %v1160_v6  ;;  %v24342_v17 = vpack.c.bf16 %v1163_v13, %v1162_v12  ;;  %v1164_v18 = vld [vmem:[%s1152_s8 + $0x30] sm:$0xff]  ;;  %v1165_v21 = vld [vmem:[%s1152_s8 + $0x38] sm:$0xff]  ;;  %19320 = vmatprep.mubr.msk.f32.mxu0 %vm1211_vm0, %v24361_v26  ;;  %vm1354_vm3 = vcmp.eq.s32.totalorder %v24311_v2, %v1346_v24  ;;  %vm1355_vm4 = vcmp.eq.s32.totalorder %v24311_v2, %v1347_v25  ;;  %s25560_s8 = sld [smem:[#allocation59_spill]] }
 0x2c3   : > { %19869 = vmatprep.subr.bf16.mxu1 %v24322_v9  ;;  %19853 = vmatprep.subr.bf16.mxu0 %v24322_v9  ;;  %v24365_v28 = vpack.c.bf16 %v1165_v21, %v1164_v18  ;;  %v1351_v33 = vadd.s32 4294967295, %v24353_v23  ;;  %v1182_v34 = vadd.s32 4294967294, %v24339_v16  ;;  %vm1188_vm5 = vcmp.eq.s32.totalorder %v24311_v2, %v1180_v27 }
 0x2c4   : > { %19871 = vmatpush3.bf16.msra.mxu1 %v24322_v9  ;;  %19855 = vmatpush3.bf16.msra.mxu0 %v24322_v9  ;;  %v1183_v35 = vadd.s32 4294967294, %v24346_v19  ;;  %v24384_v36 = vadd.s32 1, %v24329_v14  ;;  %v24388_v37 = vadd.s32 56, %v24308_v1  ;;  %v24391_v38 = vsel %vm1354_vm3, 1.0, %v25486_v7 }
 0x2c5   : > { %19873 = vmatprep.subr.bf16.mxu1 %v24326_v11  ;;  %19857 = vmatprep.subr.bf16.mxu0 %v24326_v11  ;;  %v24394_v39 = vsel %vm1355_vm4, 1.0, %v25486_v7  ;;  %vm1356_vm6 = vcmp.eq.s32.totalorder %v24311_v2, %v1348_v29  ;;  %vm1189_vm7 = vcmp.eq.s32.totalorder %v24311_v2, %v1181_v32  ;;  %vm1357_vm8 = vcmp.eq.s32.totalorder %v24311_v2, %v1349_v30 }
 0x2c6   : > { %vm1358_vm9 = vcmp.eq.s32.totalorder %v24311_v2, %v1350_v31  ;;  %vm1359_vm10 = vcmp.eq.s32.totalorder %v24311_v2, %v1351_v33  ;;  %v24402_v40 = vsel %vm1188_vm5, 1.0, %v25486_v7  ;;  %vm1190_vm11 = vcmp.eq.s32.totalorder %v24311_v2, %v1182_v34 }
 0x2c7   : > { %vm1191_vm12 = vcmp.eq.s32.totalorder %v24311_v2, %v1183_v35  ;;  %v1184_v41 = vadd.s32 4294967294, %v24350_v22  ;;  %v1185_v42 = vadd.s32 4294967294, %v24353_v23  ;;  %v24411_v43 = vsel %vm1356_vm6, 1.0, %v25486_v7 }
 0x2c8   : > { %19875 = vmatpush3.bf16.msra.mxu1 %v24326_v11  ;;  %19859 = vmatpush3.bf16.msra.mxu0 %v24326_v11  ;;  %v24414_v44 = vsel %vm1189_vm7, 1.0, %v25486_v7  ;;  %v24419_v45 = vsel %vm1357_vm8, 1.0, %v25486_v7  ;;  %v1352_v46 = vadd.s32 4294967295, %v24388_v37  ;;  %v24427_v47 = vsel %vm1358_vm9, 1.0, %v25486_v7  ;;  %s25561_s15 = smov %s25560_s8 }
 0x2c9   : > { %19877 = vmatprep.subr.bf16.mxu1 %v24342_v17  ;;  %19861 = vmatprep.subr.bf16.mxu0 %v24342_v17  ;;  %v24432_v48 = vsel %vm1359_vm10, 1.0, %v25486_v7  ;;  %v24437_v49 = vsel %vm1190_vm11, 1.0, %v25486_v7  ;;  %v24440_v50 = vsel %vm1191_vm12, 1.0, %v25486_v7  ;;  %vm1192_vm13 = vcmp.eq.s32.totalorder %v24311_v2, %v1184_v41  ;;  %v1844_v41 = vld [vmem:[%s25559_s13] sm:$0xf] }
 0x2ca   : > { %vm1193_vm14 = vcmp.eq.s32.totalorder %v24311_v2, %v1185_v42  ;;  %v1186_v51 = vadd.s32 4294967294, %v24388_v37  ;;  %v1514_v52 = vadd.s32 1, %v24308_v1  ;;  %v1516_v53 = vadd.s32 1, %v24334_v15 }
 0x2cb   : > { %v1679_v54 = vadd.s32 2, %v24308_v1  ;;  %v24461_v55 = vsel %vm1192_vm13, 1.0, %v25486_v7  ;;  %v24464_v56 = vsel %vm1193_vm14, 1.0, %v25486_v7  ;;  %v1680_v57 = vadd.s32 2, %v24329_v14 }
 0x2cc   : > { %19879 = vmatpush3.bf16.msra.mxu1 %v24342_v17  ;;  %19863 = vmatpush3.bf16.msra.mxu0 %v24342_v17  ;;  %v1681_v58 = vadd.s32 2, %v24334_v15  ;;  %vm1360_vm15 = vcmp.eq.s32.totalorder %v24311_v2, %v1352_v46  ;;  %vm1194_vm1 = vcmp.eq.s32.totalorder %v24311_v2, %v1186_v51  ;;  %vm1522_vm2 = vcmp.eq.s32.totalorder %v24311_v2, %v1514_v52 }
 0x2cd   : > { %19881 = vmatprep.subr.bf16.mxu1 %v24365_v28  ;;  %19865 = vmatprep.subr.bf16.mxu0 %v24365_v28  ;;  %vm1687_vm3 = vcmp.eq.s32.totalorder %v24311_v2, %v1679_v54  ;;  %v24487_v59 = vsel %vm1360_vm15, 1.0, %v25486_v7  ;;  %v24492_v60 = vsel %vm1194_vm1, 1.0, %v25486_v7  ;;  %v24496_v61 = vsel %vm1522_vm2, 1.0, %v25486_v7 }
 0x2ce   : > { %v1517_v62 = vadd.s32 1, %v24339_v16  ;;  %v24501_v63 = vsel %vm1687_vm3, 1.0, %v25486_v7  ;;  %vm1523_vm4 = vcmp.eq.s32.totalorder %v24311_v2, %v24384_v36  ;;  %vm1688_vm5 = vcmp.eq.s32.totalorder %v24311_v2, %v1680_v57  ;;  %v1845_v36 = vld [vmem:[%s25559_s13 + $0x4] sm:$0xf] }
 0x2cf   : > { %v1682_v3 = vadd.s32 2, %v24339_v16  ;;  %vm1524_vm6 = vcmp.eq.s32.totalorder %v24311_v2, %v1516_v53  ;;  %v1518_v4 = vadd.s32 1, %v24346_v19  ;;  %vm1689_vm7 = vcmp.eq.s32.totalorder %v24311_v2, %v1681_v58 }
 0x2d0   : > { %19883 = vmatpush3.bf16.msra.mxu1 %v24365_v28  ;;  %19867 = vmatpush3.bf16.msra.mxu0 %v24365_v28  ;;  %v1683_v5 = vadd.s32 2, %v24346_v19  ;;  %v24523_v6 = vsel %vm1523_vm4, 1.0, %v25486_v7  ;;  %vm1525_vm8 = vcmp.eq.s32.totalorder %v24311_v2, %v1517_v62  ;;  %v1519_v10 = vadd.s32 1, %v24350_v22 }
 0x2d1   : > { %19885 = vmatprep.subr.bf16.mxu0 %v24322_v9  ;;  %19901 = vmatprep.subr.bf16.mxu1 %v24322_v9  ;;  %v24529_v12 = vsel %vm1688_vm5, 1.0, %v25486_v7  ;;  %v24532_v13 = vsel %vm1524_vm6, 1.0, %v25486_v7  ;;  %v24535_v18 = vsel %vm1689_vm7, 1.0, %v25486_v7  ;;  %vm1690_vm9 = vcmp.eq.s32.totalorder %v24311_v2, %v1682_v3  ;;  %v2008_v3 = vld [vmem:[%s25559_s13 + $0x8] sm:$0xf] }
 0x2d2   : > { %v1684_v19 = vadd.s32 2, %v24350_v22  ;;  %vm1526_vm10 = vcmp.eq.s32.totalorder %v24311_v2, %v1518_v4  ;;  %v1520_v20 = vadd.s32 1, %v24353_v23  ;;  %vm1691_vm11 = vcmp.eq.s32.totalorder %v24311_v2, %v1683_v5 }
 0x2d3   : > { %19349 = vmatmul.mubr.msk.f32.vlgmr.msra.gmra.mrb[0].mxu1 %vm1211_vm0, %v24391_v38  ;;  %19321 = vmatmul.mubr.msk.f32.vlgmr.msra.gmra.mrb[0].mxu0 %vm1211_vm0, %v24402_v40  ;;  %v1685_v21 = vadd.s32 2, %v24353_v23  ;;  %v24550_v24 = vsel %vm1525_vm8, 1.0, %v25486_v7  ;;  %vm1527_vm12 = vcmp.eq.s32.totalorder %v24311_v2, %v1519_v10  ;;  %v1521_v22 = vadd.s32 1, %v24388_v37 }
 0x2d4   : > { %19351 = vmatprep.mubr.msk.f32.mxu1 %vm1211_vm0, %v24394_v39  ;;  %19323 = vmatprep.mubr.msk.f32.mxu0 %vm1211_vm0, %v24414_v44  ;;  %v24557_v23 = vsel %vm1690_vm9, 1.0, %v25486_v7  ;;  %v24560_v25 = vsel %vm1526_vm10, 1.0, %v25486_v7  ;;  %v24563_v27 = vsel %vm1691_vm11, 1.0, %v25486_v7  ;;  %vm1692_vm13 = vcmp.eq.s32.totalorder %v24311_v2, %v1684_v19 }
 0x2d5   : > { %19887 = vmatpush3.bf16.msra.mxu0 %v24322_v9  ;;  %19903 = vmatpush3.bf16.msra.mxu1 %v24322_v9  ;;  %v1686_v29 = vadd.s32 2, %v24388_v37  ;;  %vm1528_vm14 = vcmp.eq.s32.totalorder %v24311_v2, %v1520_v20  ;;  %vm1693_vm15 = vcmp.eq.s32.totalorder %v24311_v2, %v1685_v21  ;;  %v24576_v30 = vsel %vm1527_vm12, 1.0, %v25486_v7 }
 0x2d6   : > { %19889 = vmatprep.subr.bf16.mxu0 %v24326_v11  ;;  %19905 = vmatprep.subr.bf16.mxu1 %v24326_v11  ;;  %v24581_v31 = vsel %vm1692_vm13, 1.0, %v25486_v7  ;;  %v24584_v32 = vsel %vm1528_vm14, 1.0, %v25486_v7  ;;  %vm1529_vm1 = vcmp.eq.s32.totalorder %v24311_v2, %v1521_v22  ;;  %v24588_v33 = vsel %vm1693_vm15, 1.0, %v25486_v7 }
 0x2d7   : > { %19352 = vmatmul.mubr.msk.f32.gmra.mrb[2].mxu1 %vm1211_vm0, %v24411_v43  ;;  %19324 = vmatmul.mubr.msk.f32.gmra.mrb[2].mxu0 %vm1211_vm0, %v24437_v49  ;;  %vm1694_vm2 = vcmp.eq.s32.totalorder %v24311_v2, %v1686_v29  ;;  %v24598_v34 = vsel %vm1529_vm1, 1.0, %v25486_v7  ;;  %vm1859_vm3 = vcmask 1043456   ;;  %vm1846_vm4 = vcmask 64512  }
 0x2d8   : > { %19354 = vmatprep.mubr.msk.f32.mxu1 %vm1211_vm0, %v24419_v45  ;;  %19326 = vmatprep.mubr.msk.f32.mxu0 %vm1211_vm0, %v24440_v50  ;;  %v24603_v35 = vsel %vm1694_vm2, 1.0, %v25486_v7  ;;  %v1861_v37 = vsel %vm1859_vm3, %v1845_v36, 0  ;;  %v1941_v10 = vsel %vm1859_vm3, %v1844_v41, 0  ;;  %vm2763_vm5 = vcmask 130048  }
 0x2d9   : > { %19891 = vmatpush3.bf16.msra.mxu0 %v24326_v11  ;;  %19907 = vmatpush3.bf16.msra.mxu1 %v24326_v11  ;;  %vm3483_vm6 = vcmask 261120  }
 0x2da   : > { %19893 = vmatprep.subr.bf16.mxu0 %v24342_v17  ;;  %19909 = vmatprep.subr.bf16.mxu1 %v24342_v17 }
 0x2db   : > { %19355 = vmatmul.mubr.msk.f32.gmra.mrb[4].mxu1 %vm1211_vm0, %v24427_v47  ;;  %19327 = vmatmul.mubr.msk.f32.gmra.mrb[4].mxu0 %vm1211_vm0, %v24461_v55 }
 0x2dc   : > { %19357 = vmatprep.mubr.msk.f32.mxu1 %vm1211_vm0, %v24432_v48  ;;  %19329 = vmatprep.mubr.msk.f32.mxu0 %vm1211_vm0, %v24464_v56 }
 0x2dd   : > { %19895 = vmatpush3.bf16.msra.mxu0 %v24342_v17  ;;  %19911 = vmatpush3.bf16.msra.mxu1 %v24342_v17 }
 0x2de   : > { %19897 = vmatprep.subr.bf16.mxu0 %v24365_v28  ;;  %19913 = vmatprep.subr.bf16.mxu1 %v24365_v28 }
 0x2df   : > { %19358 = vmatmul.mubr.msk.f32.gmra.mrb[6].mxu1 %vm1211_vm0, %v24487_v59  ;;  %19330 = vmatmul.mubr.msk.f32.gmra.mrb[6].mxu0 %vm1211_vm0, %v24492_v60 }
 0x2e0   : > { %19376 = vmatprep.mubr.msk.f32.mxu0 %vm1211_vm0, %v24496_v61  ;;  %19404 = vmatprep.mubr.msk.f32.mxu1 %vm1211_vm0, %v24501_v63 }
 0x2e1   : > { %19899 = vmatpush3.bf16.msra.mxu0 %v24365_v28  ;;  %19915 = vmatpush3.bf16.msra.mxu1 %v24365_v28 }
 0x2e2   : > { %20396 = vmatprep.subr.msk.bf16.mxu0 %vm1859_vm3, %v1845_v36 }
 0x2e4   : > { %19377 = vmatmul.mubr.msk.f32.vlgmr.msra.gmra.mrb[8].mxu0 %vm1211_vm0, %v24523_v6  ;;  %19405 = vmatmul.mubr.msk.f32.vlgmr.msra.gmra.mrb[8].mxu1 %vm1211_vm0, %v24529_v12 }
 0x2e5   : > { %19379 = vmatprep.mubr.msk.f32.mxu0 %vm1211_vm0, %v24532_v13  ;;  %19407 = vmatprep.mubr.msk.f32.mxu1 %vm1211_vm0, %v24535_v18 }
 0x2e6   : > { %19417 = vmatpush3.bf16.msra.mxu0 %v1861_v37 }
 0x2e7   : > { %20397 = vmatprep.subr.msk.bf16.mxu0 %vm1859_vm3, %v1844_v41 }
 0x2e8   : > { %19380 = vmatmul.mubr.msk.f32.gmra.mrb[10].mxu0 %vm1211_vm0, %v24550_v24  ;;  %19408 = vmatmul.mubr.msk.f32.gmra.mrb[10].mxu1 %vm1211_vm0, %v24557_v23 }
 0x2e9   : > { %19382 = vmatprep.mubr.msk.f32.mxu0 %vm1211_vm0, %v24560_v25  ;;  %19410 = vmatprep.mubr.msk.f32.mxu1 %vm1211_vm0, %v24563_v27 }
 0x2ec   : > { %19383 = vmatmul.mubr.msk.f32.gmra.mrb[12].mxu0 %vm1211_vm0, %v24576_v30  ;;  %19411 = vmatmul.mubr.msk.f32.gmra.mrb[12].mxu1 %vm1211_vm0, %v24581_v31 }
 0x2ed   : > { %19385 = vmatprep.mubr.msk.f32.mxu0 %vm1211_vm0, %v24584_v32  ;;  %19413 = vmatprep.mubr.msk.f32.mxu1 %vm1211_vm0, %v24588_v33 }
 0x2f0   : > { %19386 = vmatmul.mubr.msk.f32.gmra.mrb[14].mxu0 %vm1211_vm0, %v24598_v34  ;;  %19414 = vmatmul.mubr.msk.f32.gmra.mrb[14].mxu1 %vm1211_vm0, %v24603_v35 }
 0x2f1   : > { %19482 = vmatprep.mubr.msk.f32.mxu1 %vm1211_vm0, %v24361_v26 }
 0x3a6   : > { %v19350_v42 = vpop.f32.mrb[0].mxu1  ;;  %v19322_v46 = vpop.f32.mrb[0].mxu0 }
 0x3a7   : > { %v1467_v51 = vpop.f32.mrb[1].mxu1  ;;  %v1302_v26 = vpop.f32.mrb[1].mxu0 }
 0x3a8   : > { %v1506_v52 = vpack.c.bf16 %v19350_v42, %v1467_v51  ;;  %v1341_v53 = vpack.c.bf16 %v19322_v46, %v1302_v26 }
 0x3aa   : > { %v19353_v54 = vpop.f32.mrb[2].mxu1  ;;  %19418 = vmatprep.mubr.msk.bf16.mxu0 %vm1846_vm4, %v1506_v52  ;;  %v19325_v57 = vpop.f32.mrb[2].mxu0 }
 0x3ab   : > { %v1477_v58 = vpop.f32.mrb[3].mxu1  ;;  %v1312_v62 = vpop.f32.mrb[3].mxu0 }
 0x3ac   : > { %v1507_v4 = vpack.c.bf16 %v19353_v54, %v1477_v58  ;;  %v1342_v5 = vpack.c.bf16 %v19325_v57, %v1312_v62 }
 0x3ae   : > { %v19356_v19 = vpop.f32.mrb[4].mxu1  ;;  %19419 = vmatmul.mubr.msk.bf16.vlgmr.msra.gmra.mrb[16].mxu0 %vm1846_vm4, %v1507_v4  ;;  %v19328_v20 = vpop.f32.mrb[4].mxu0 }
 0x3af   : > { %v1487_v21 = vpop.f32.mrb[5].mxu1  ;;  %19427 = vmatpush3.bf16.msra.mxu0 %v1941_v10  ;;  %v1322_v22 = vpop.f32.mrb[5].mxu0 }
 0x3b0   : > { %v1508_v29 = vpack.c.bf16 %v19356_v19, %v1487_v21  ;;  %v1343_v36 = vpack.c.bf16 %v19328_v20, %v1322_v22  ;;  %20398 = vmatprep.subr.msk.bf16.mxu0 %vm1859_vm3, %v2008_v3  ;;  %v2097_v19 = vld [vmem:[%s25559_s13 + $0xc] sm:$0xf]  ;;  %v2022_v21 = vsel %vm1859_vm3, %v2008_v3, 0 }
 0x3b2   : > { %v19359_v37 = vpop.f32.mrb[6].mxu1  ;;  %19422 = vmatprep.mubr.msk.bf16.mxu0 %vm1846_vm4, %v1508_v29  ;;  %v19331_v42 = vpop.f32.mrb[6].mxu0 }
 0x3b3   : > { %v1497_v46 = vpop.f32.mrb[7].mxu1  ;;  %v1332_v51 = vpop.f32.mrb[7].mxu0 }
 0x3b4   : > { %v1509_v26 = vpack.c.bf16 %v19359_v37, %v1497_v46  ;;  %v1344_v52 = vpack.c.bf16 %v19331_v42, %v1332_v51 }
 0x3b6   : > { %19423 = vmatmul.mubr.msk.bf16.gmra.mrb[20].mxu0 %vm1846_vm4, %v1509_v26 }
 0x3b7   : > { %19428 = vmatprep.mubr.msk.bf16.mxu0 %vm1846_vm4, %v1341_v53  ;;  %v19378_v41 = vpop.f32.mrb[8].mxu0  ;;  %v19406_v54 = vpop.f32.mrb[8].mxu1 }
 0x3b8   : > { %v1636_v57 = vpop.f32.mrb[9].mxu0  ;;  %v1801_v58 = vpop.f32.mrb[9].mxu1 }
 0x3b9   : > { %v1675_v62 = vpack.c.bf16 %v19378_v41, %v1636_v57  ;;  %v1840_v4 = vpack.c.bf16 %v19406_v54, %v1801_v58 }
 0x3bb   : > { %v19381_v10 = vpop.f32.mrb[10].mxu0  ;;  %v19409_v20 = vpop.f32.mrb[10].mxu1 }
 0x3bc   : > { %v1646_v22 = vpop.f32.mrb[11].mxu0  ;;  %v1811_v29 = vpop.f32.mrb[11].mxu1 }
 0x3bd   : > { %v1676_v37 = vpack.c.bf16 %v19381_v10, %v1646_v22  ;;  %v1841_v42 = vpack.c.bf16 %v19409_v20, %v1811_v29 }
 0x3be   : > { %19429 = vmatmul.mubr.msk.bf16.vlgmr.msra.gmra.mrb[16].mxu0 %vm1846_vm4, %v1342_v5  ;;  %v2186_v5 = vld [vmem:[%s25559_s13 + $0x10] sm:$0xf] }
 0x3bf   : > { %19432 = vmatprep.mubr.msk.bf16.mxu0 %vm1846_vm4, %v1343_v36  ;;  %19437 = vmatpush3.bf16.msra.mxu0 %v2022_v21  ;;  %v19384_v53 = vpop.f32.mrb[12].mxu0  ;;  %v19412_v46 = vpop.f32.mrb[12].mxu1  ;;  %v2111_v36 = vsel %vm1859_vm3, %v2097_v19, 0 }
 0x3c0   : > { %20399 = vmatprep.subr.msk.bf16.mxu0 %vm1859_vm3, %v2097_v19  ;;  %v1656_v51 = vpop.f32.mrb[13].mxu0  ;;  %v1821_v26 = vpop.f32.mrb[13].mxu1 }
 0x3c1   : > { %v1677_v41 = vpack.c.bf16 %v19384_v53, %v1656_v51  ;;  %v1842_v54 = vpack.c.bf16 %v19412_v46, %v1821_v26 }
 0x3c3   : > { %v19387_v57 = vpop.f32.mrb[14].mxu0  ;;  %v19415_v58 = vpop.f32.mrb[14].mxu1 }
 0x3c4   : > { %v1666_v3 = vpop.f32.mrb[15].mxu0  ;;  %v1831_v0 = vpop.f32.mrb[15].mxu1 }
 0x3c5   : > { %v1678_v7 = vpack.c.bf16 %v19387_v57, %v1666_v3  ;;  %v1843_v10 = vpack.c.bf16 %v19415_v58, %v1831_v0  ;;  %v2200_v0 = vsel %vm1859_vm3, %v2186_v5, 0 }
 0x3c6   : > { %19433 = vmatmul.mubr.msk.bf16.gmra.mrb[20].mxu0 %vm1846_vm4, %v1344_v52 }
 0x3c7   : > { %19438 = vmatprep.mubr.msk.bf16.mxu0 %vm1846_vm4, %v24322_v9  ;;  %v17416_v9 = vld [vmem:[#allocation2] ss:$0 sm:$0xff] }
 0x3ce   : > { %19439 = vmatmul.mubr.msk.bf16.vlgmr.msra.gmra.mrb[16].mxu0 %vm1846_vm4, %v24326_v11  ;;  %v17417_v11 = vld [vmem:[#allocation4] ss:$0 sm:$0xff] }
 0x3cf   : > { %19442 = vmatprep.mubr.msk.bf16.mxu0 %vm1846_vm4, %v24342_v17  ;;  %19447 = vmatpush3.bf16.msra.mxu0 %v2111_v36 }
 0x3d0   : > { %20400 = vmatprep.subr.msk.bf16.mxu0 %vm1859_vm3, %v2186_v5 }
 0x3d6   : > { %19443 = vmatmul.mubr.msk.bf16.gmra.mrb[20].mxu0 %vm1846_vm4, %v24365_v28 }
 0x3d7   : > { %19448 = vmatprep.mubr.msk.bf16.mxu0 %vm1846_vm4, %v1675_v62 }
 0x3de   : > { %19449 = vmatmul.mubr.msk.bf16.vlgmr.msra.gmra.mrb[16].mxu0 %vm1846_vm4, %v1676_v37 }
 0x3df   : > { %19452 = vmatprep.mubr.msk.bf16.mxu0 %vm1846_vm4, %v1677_v41  ;;  %19457 = vmatpush3.bf16.msra.mxu0 %v2200_v0 }
 0x3e6   : > { %19453 = vmatmul.mubr.msk.bf16.gmra.mrb[20].mxu0 %vm1846_vm4, %v1678_v7 }
 0x3e7   : > { %19458 = vmatprep.mubr.msk.bf16.mxu0 %vm1846_vm4, %v1840_v4 }
 0x3ee   : > { %19459 = vmatmul.mubr.msk.bf16.vlgmr.msra.gmra.mrb[16].mxu0 %vm1846_vm4, %v1841_v42 }
 0x3ef   : > { %19462 = vmatprep.mubr.msk.bf16.mxu0 %vm1846_vm4, %v1842_v54 }
 0x3f6   : > { %19463 = vmatmul.mubr.msk.bf16.gmra.mrb[20].mxu0 %vm1846_vm4, %v1843_v10 }
 0x3f7   : > { %19644 = vmatprep.mubr.msk.f32.mxu0 %vm1211_vm0, %v24320_v8 }
 0x4c1   : > { %v19460_v17 = vpop.f32.mrb[16].mxu0 }
 0x4c2   : > { %v2283_v28 = vmul.f32 %v19460_v17, %v17416_v9  ;;  %v2236_v52 = vpop.f32.mrb[17].mxu0 }
 0x4c3   : > { %v2281_v62 = vmul.f32 %v17416_v9, %v2236_v52  ;;  %v19461_v19 = vpop.f32.mrb[18].mxu0 }
 0x4c4   : > { %v2297_v20 = vadd.f32 %v17417_v11, %v2283_v28  ;;  %v2284_v7 = vmul.f32 %v19461_v19, %v17416_v9  ;;  %v2239_v21 = vpop.f32.mrb[19].mxu0 }
 0x4c5   : > { %v2295_v4 = vadd.f32 %v17417_v11, %v2281_v62  ;;  %v2282_v22 = vmul.f32 %v17416_v9, %v2239_v21 }
 0x4c6   : > { %v2298_v29 = vadd.f32 %v17417_v11, %v2284_v7  ;;  %v2305_v42 = vmax.f32 %v2297_v20, 0.0 }
 0x4c7   : > { %v2296_v37 = vadd.f32 %v17417_v11, %v2282_v22  ;;  %v2303_v46 = vmax.f32 %v2295_v4, 0.0 }
 0x4c8   : > { %v2306_v53 = vmax.f32 %v2298_v29, 0.0 }
 0x4c9   : > { %v2304_v51 = vmax.f32 %v2296_v37, 0.0  ;;  %v19464_v26 = vpop.f32.mrb[20].mxu0 }
 0x4ca   : > { %v24662_v41 = vpack.c.bf16 %v2306_v53, %v2305_v42  ;;  %v2287_v54 = vmul.f32 %v19464_v26, %v17416_v9  ;;  %v2252_v57 = vpop.f32.mrb[21].mxu0  ;;  %v20661_v53 = vld [vmem:[%s25561_s15 + $0x10] sm:$0xff]  }
 0x4cb   : > { %v24664_v58 = vpack.c.bf16 %v2304_v51, %v2303_v46  ;;  %v2285_v3 = vmul.f32 %v17416_v9, %v2252_v57  ;;  %v19465_v10 = vpop.f32.mrb[22].mxu0 }
 0x4cc   : > { %v2301_v5 = vadd.f32 %v17417_v11, %v2287_v54  ;;  %v2288_v36 = vmul.f32 %v19465_v10, %v17416_v9  ;;  %v2255_v0 = vpop.f32.mrb[23].mxu0 }
 0x4cd   : > { %v2299_v17 = vadd.f32 %v17417_v11, %v2285_v3  ;;  %v2286_v28 = vmul.f32 %v17416_v9, %v2255_v0  ;;  %19917 = vmatprep.subr.bf16.mxu1 %v24664_v58 }
 0x4ce   : > { %v2302_v52 = vadd.f32 %v17417_v11, %v2288_v36  ;;  %19919 = vmatpush3.bf16.msra.mxu1 %v24664_v58  ;;  %v2309_v19 = vmax.f32 %v2301_v5, 0.0 }
 0x4cf   : > { %v2300_v62 = vadd.f32 %v17417_v11, %v2286_v28  ;;  %19921 = vmatprep.subr.bf16.mxu1 %v24662_v41  ;;  %v2307_v7 = vmax.f32 %v2299_v17, 0.0 }
 0x4d0   : > { %v2310_v20 = vmax.f32 %v2302_v52, 0.0  ;;  %v20662_v52 = vld [vmem:[%s25561_s15 + $0x18] sm:$0xff]  }
 0x4d1   : > { %v2308_v21 = vmax.f32 %v2300_v62, 0.0 }
 0x4d2   : > { %v24669_v4 = vpack.c.bf16 %v2310_v20, %v2309_v19  ;;  %19923 = vmatpush3.bf16.msra.mxu1 %v24662_v41 }
 0x4d3   : > { %v24672_v22 = vpack.c.bf16 %v2308_v21, %v2307_v7 }
 0x4d5   : > { %19925 = vmatprep.subr.bf16.mxu1 %v24672_v22 }
 0x4d6   : > { %19927 = vmatpush3.bf16.msra.mxu1 %v24672_v22 }
 0x4d7   : > { %19929 = vmatprep.subr.bf16.mxu1 %v24669_v4 }
 0x4da   : > { %19931 = vmatpush3.bf16.msra.mxu1 %v24669_v4 }
 0x4db   : > { %19933 = vmatprep.subr.bf16.mxu1 %v24664_v58 }
 0x4dd   : > { %19483 = vmatmul.mubr.msk.f32.vlgmr.msra.gmra.mrb[16].mxu1 %vm1211_vm0, %v24402_v40  ;;  %v20659_v40 = vld [vmem:[%s25560_s8 + $0x8] sm:$0xff]  }
 0x4de   : > { %19935 = vmatpush3.bf16.msra.mxu1 %v24664_v58  ;;  %19485 = vmatprep.mubr.msk.f32.mxu1 %vm1211_vm0, %v24414_v44  ;;  %v20660_v44 = vld [vmem:[%s25561_s15] sm:$0xff]  }
 0x4df   : > { %19937 = vmatprep.subr.bf16.mxu1 %v24662_v41 }
 0x4e1   : > { %19486 = vmatmul.mubr.msk.f32.gmra.mrb[18].mxu1 %vm1211_vm0, %v24437_v49 }
 0x4e2   : > { %19939 = vmatpush3.bf16.msra.mxu1 %v24662_v41  ;;  %19488 = vmatprep.mubr.msk.f32.mxu1 %vm1211_vm0, %v24440_v50 }
 0x4e3   : > { %19941 = vmatprep.subr.bf16.mxu1 %v24672_v22 }
 0x4e5   : > { %19489 = vmatmul.mubr.msk.f32.gmra.mrb[20].mxu1 %vm1211_vm0, %v24461_v55 }
 0x4e6   : > { %19943 = vmatpush3.bf16.msra.mxu1 %v24672_v22  ;;  %19491 = vmatprep.mubr.msk.f32.mxu1 %vm1211_vm0, %v24464_v56 }
 0x4e7   : > { %19945 = vmatprep.subr.bf16.mxu1 %v24669_v4 }
 0x4e9   : > { %19492 = vmatmul.mubr.msk.f32.gmra.mrb[22].mxu1 %vm1211_vm0, %v24492_v60 }
 0x4ea   : > { %19947 = vmatpush3.bf16.msra.mxu1 %v24669_v4  ;;  %19510 = vmatprep.mubr.msk.f32.mxu1 %vm1211_vm0, %v24320_v8 }
 0x4eb   : > { %19949 = vmatprep.subr.bf16.mxu1 %v24664_v58 }
 0x4ed   : > { %19511 = vmatmul.mubr.msk.f32.vlgmr.msra.gmra.mrb[24].mxu1 %vm1211_vm0, %v24391_v38 }
 0x4ee   : > { %19951 = vmatpush3.bf16.msra.mxu1 %v24664_v58  ;;  %19513 = vmatprep.mubr.msk.f32.mxu1 %vm1211_vm0, %v24394_v39 }
 0x4ef   : > { %19953 = vmatprep.subr.bf16.mxu1 %v24662_v41 }
 0x4f1   : > { %19514 = vmatmul.mubr.msk.f32.gmra.mrb[26].mxu1 %vm1211_vm0, %v24411_v43 }
 0x4f2   : > { %19955 = vmatpush3.bf16.msra.mxu1 %v24662_v41  ;;  %19516 = vmatprep.mubr.msk.f32.mxu1 %vm1211_vm0, %v24419_v45 }
 0x4f3   : > { %19957 = vmatprep.subr.bf16.mxu1 %v24672_v22 }
 0x4f5   : > { %19517 = vmatmul.mubr.msk.f32.gmra.mrb[28].mxu1 %vm1211_vm0, %v24427_v47 }
 0x4f6   : > { %19959 = vmatpush3.bf16.msra.mxu1 %v24672_v22  ;;  %19519 = vmatprep.mubr.msk.f32.mxu1 %vm1211_vm0, %v24432_v48 }
 0x4f7   : > { %19961 = vmatprep.subr.bf16.mxu1 %v24669_v4 }
 0x4f9   : > { %19520 = vmatmul.mubr.msk.f32.gmra.mrb[30].mxu1 %vm1211_vm0, %v24487_v59 }
 0x4fa   : > { %19963 = vmatpush3.bf16.msra.mxu1 %v24669_v4  ;;  %19538 = vmatprep.mubr.msk.f32.mxu1 %vm1211_vm0, %v24496_v61 }
 0x4fb   : > { %19965 = vmatprep.subr.bf16.mxu1 %v24664_v58 }
 0x4fd   : > { %19539 = vmatmul.mubr.msk.f32.vlgmr.msra.gmra.mrb[32].mxu1 %vm1211_vm0, %v24523_v6 }
 0x4fe   : > { %19967 = vmatpush3.bf16.msra.mxu1 %v24664_v58  ;;  %19541 = vmatprep.mubr.msk.f32.mxu1 %vm1211_vm0, %v24532_v13 }
 0x4ff   : > { %19969 = vmatprep.subr.bf16.mxu1 %v24662_v41 }
 0x501   : > { %19542 = vmatmul.mubr.msk.f32.gmra.mrb[34].mxu1 %vm1211_vm0, %v24550_v24 }
 0x502   : > { %19971 = vmatpush3.bf16.msra.mxu1 %v24662_v41  ;;  %19544 = vmatprep.mubr.msk.f32.mxu1 %vm1211_vm0, %v24560_v25 }
 0x503   : > { %19973 = vmatprep.subr.bf16.mxu1 %v24672_v22 }
 0x505   : > { %19545 = vmatmul.mubr.msk.f32.gmra.mrb[36].mxu1 %vm1211_vm0, %v24576_v30 }
 0x506   : > { %19975 = vmatpush3.bf16.msra.mxu1 %v24672_v22  ;;  %19547 = vmatprep.mubr.msk.f32.mxu1 %vm1211_vm0, %v24584_v32 }
 0x507   : > { %19977 = vmatprep.subr.bf16.mxu1 %v24669_v4 }
 0x509   : > { %19548 = vmatmul.mubr.msk.f32.gmra.mrb[38].mxu1 %vm1211_vm0, %v24598_v34 }
 0x50a   : > { %19979 = vmatpush3.bf16.msra.mxu1 %v24669_v4  ;;  %19566 = vmatprep.mubr.msk.f32.mxu1 %vm1211_vm0, %v24501_v63 }
 0x50b   : > { %19578 = vmatprep.subr.bf16.mxu1 %v20659_v40 }
 0x50d   : > { %19567 = vmatmul.mubr.msk.f32.vlgmr.msra.gmra.mrb[40].mxu1 %vm1211_vm0, %v24529_v12 }
 0x50e   : > { %19569 = vmatprep.mubr.msk.f32.mxu1 %vm1211_vm0, %v24535_v18  ;;  %19579 = vmatpush3.bf16.msra.mxu1 %v20659_v40 }
 0x50f   : > { %19588 = vmatprep.subr.bf16.mxu1 %v20660_v44 }
 0x511   : > { %19570 = vmatmul.mubr.msk.f32.gmra.mrb[42].mxu1 %vm1211_vm0, %v24557_v23 }
 0x512   : > { %19572 = vmatprep.mubr.msk.f32.mxu1 %vm1211_vm0, %v24563_v27 }
 0x515   : > { %19573 = vmatmul.mubr.msk.f32.gmra.mrb[44].mxu1 %vm1211_vm0, %v24581_v31 }
 0x516   : > { %19575 = vmatprep.mubr.msk.f32.mxu1 %vm1211_vm0, %v24588_v33 }
 0x519   : > { %19576 = vmatmul.mubr.msk.f32.gmra.mrb[46].mxu1 %vm1211_vm0, %v24603_v35 }
 0x5b0   : > { %v19484_v49 = vpop.f32.mrb[16].mxu1 }
 0x5b1   : > { %v2379_v50 = vpop.f32.mrb[17].mxu1 }
 0x5b2   : > { %v2418_v55 = vpack.c.bf16 %v19484_v49, %v2379_v50 }
 0x5b4   : > { %v19487_v56 = vpop.f32.mrb[18].mxu1 }
 0x5b5   : > { %v2389_v60 = vpop.f32.mrb[19].mxu1 }
 0x5b6   : > { %v2419_v63 = vpack.c.bf16 %v19487_v56, %v2389_v60 }
 0x5b8   : > { %v19490_v12 = vpop.f32.mrb[20].mxu1 }
 0x5b9   : > { %v2399_v18 = vpop.f32.mrb[21].mxu1 }
 0x5ba   : > { %v2420_v23 = vpack.c.bf16 %v19490_v12, %v2399_v18 }
 0x5bc   : > { %v19493_v27 = vpop.f32.mrb[22].mxu1 }
 0x5bd   : > { %v2409_v31 = vpop.f32.mrb[23].mxu1 }
 0x5be   : > { %v2421_v33 = vpack.c.bf16 %v19493_v27, %v2409_v31 }
 0x5c0   : > { %v19512_v35 = vpop.f32.mrb[24].mxu1 }
 0x5c1   : > { %v2488_v9 = vpop.f32.mrb[25].mxu1 }
 0x5c2   : > { %v2527_v11 = vpack.c.bf16 %v19512_v35, %v2488_v9 }
 0x5c4   : > { %v19515_v29 = vpop.f32.mrb[26].mxu1  ;;  %19580 = vmatprep.mubr.msk.bf16.mxu1 %vm2763_vm5, %v2527_v11 }
 0x5c5   : > { %v2498_v37 = vpop.f32.mrb[27].mxu1 }
 0x5c6   : > { %v2528_v42 = vpack.c.bf16 %v19515_v29, %v2498_v37 }
 0x5c8   : > { %v19518_v46 = vpop.f32.mrb[28].mxu1  ;;  %19581 = vmatmul.mubr.msk.bf16.vlgmr.msra.gmra.mrb[48].mxu1 %vm2763_vm5, %v2528_v42 }
 0x5c9   : > { %v2508_v51 = vpop.f32.mrb[29].mxu1  ;;  %19589 = vmatpush3.bf16.msra.mxu1 %v20660_v44 }
 0x5ca   : > { %v2529_v26 = vpack.c.bf16 %v19518_v46, %v2508_v51  ;;  %19598 = vmatprep.subr.bf16.mxu1 %v20661_v53 }
 0x5cc   : > { %v19521_v54 = vpop.f32.mrb[30].mxu1  ;;  %19584 = vmatprep.mubr.msk.bf16.mxu1 %vm2763_vm5, %v2529_v26 }
 0x5cd   : > { %v2518_v57 = vpop.f32.mrb[31].mxu1 }
 0x5ce   : > { %v2530_v3 = vpack.c.bf16 %v19521_v54, %v2518_v57 }
 0x5d0   : > { %19585 = vmatmul.mubr.msk.bf16.gmra.mrb[52].mxu1 %vm2763_vm5, %v2530_v3  ;;  %v19540_v10 = vpop.f32.mrb[32].mxu1 }
 0x5d1   : > { %19590 = vmatprep.mubr.msk.bf16.mxu1 %vm2763_vm5, %v2418_v55  ;;  %v2601_v5 = vpop.f32.mrb[33].mxu1 }
 0x5d2   : > { %v2640_v36 = vpack.c.bf16 %v19540_v10, %v2601_v5 }
 0x5d4   : > { %v19543_v0 = vpop.f32.mrb[34].mxu1 }
 0x5d5   : > { %v2611_v17 = vpop.f32.mrb[35].mxu1 }
 0x5d6   : > { %v2641_v28 = vpack.c.bf16 %v19543_v0, %v2611_v17 }
 0x5d8   : > { %19591 = vmatmul.mubr.msk.bf16.vlgmr.msra.gmra.mrb[48].mxu1 %vm2763_vm5, %v2419_v63  ;;  %v19546_v62 = vpop.f32.mrb[36].mxu1  ;;  %v20663_v63 = vld [vmem:[%s25561_s15 + $0x20] sm:$0xff]  }
 0x5d9   : > { %19594 = vmatprep.mubr.msk.bf16.mxu1 %vm2763_vm5, %v2420_v23  ;;  %19599 = vmatpush3.bf16.msra.mxu1 %v20661_v53  ;;  %v2621_v19 = vpop.f32.mrb[37].mxu1 }
 0x5da   : > { %19608 = vmatprep.subr.bf16.mxu1 %v20662_v52  ;;  %v2642_v20 = vpack.c.bf16 %v19546_v62, %v2621_v19 }
 0x5dc   : > { %v19549_v7 = vpop.f32.mrb[38].mxu1 }
 0x5dd   : > { %v2631_v21 = vpop.f32.mrb[39].mxu1 }
 0x5de   : > { %v2643_v40 = vpack.c.bf16 %v19549_v7, %v2631_v21 }
 0x5e0   : > { %19595 = vmatmul.mubr.msk.bf16.gmra.mrb[52].mxu1 %vm2763_vm5, %v2421_v33  ;;  %v19568_v44 = vpop.f32.mrb[40].mxu1 }
 0x5e1   : > { %19600 = vmatprep.mubr.msk.bf16.mxu1 %vm2763_vm5, %v24664_v58  ;;  %v2710_v49 = vpop.f32.mrb[41].mxu1 }
 0x5e2   : > { %v2749_v50 = vpack.c.bf16 %v19568_v44, %v2710_v49 }
 0x5e4   : > { %v19571_v55 = vpop.f32.mrb[42].mxu1 }
 0x5e5   : > { %v2720_v56 = vpop.f32.mrb[43].mxu1 }
 0x5e6   : > { %v2750_v60 = vpack.c.bf16 %v19571_v55, %v2720_v56 }
 0x5e8   : > { %19601 = vmatmul.mubr.msk.bf16.vlgmr.msra.gmra.mrb[48].mxu1 %vm2763_vm5, %v24662_v41  ;;  %v19574_v12 = vpop.f32.mrb[44].mxu1  ;;  %v17475_v41 = vld [vmem:[#allocation6] ss:$0 sm:$0xff] }
 0x5e9   : > { %19604 = vmatprep.mubr.msk.bf16.mxu1 %vm2763_vm5, %v24672_v22  ;;  %19609 = vmatpush3.bf16.msra.mxu1 %v20662_v52  ;;  %v2730_v18 = vpop.f32.mrb[45].mxu1 }
 0x5ea   : > { %19618 = vmatprep.subr.bf16.mxu1 %v20663_v63  ;;  %v2751_v58 = vpack.c.bf16 %v19574_v12, %v2730_v18  ;;  %v20664_v18 = vld [vmem:[%s25562_s12 + $0x10] sm:$0xff]  }
 0x5ec   : > { %v19577_v23 = vpop.f32.mrb[46].mxu1 }
 0x5ed   : > { %v2740_v27 = vpop.f32.mrb[47].mxu1 }
 0x5ee   : > { %v2752_v31 = vpack.c.bf16 %v19577_v23, %v2740_v27 }
 0x5f0   : > { %19605 = vmatmul.mubr.msk.bf16.gmra.mrb[52].mxu1 %vm2763_vm5, %v24669_v4  ;;  %v17476_v4 = vld [vmem:[#allocation7] ss:$0 sm:$0xff] }
 0x5f1   : > { %19610 = vmatprep.mubr.msk.bf16.mxu1 %vm2763_vm5, %v2640_v36 }
 0x5f8   : > { %19611 = vmatmul.mubr.msk.bf16.vlgmr.msra.gmra.mrb[48].mxu1 %vm2763_vm5, %v2641_v28 }
 0x5f9   : > { %19614 = vmatprep.mubr.msk.bf16.mxu1 %vm2763_vm5, %v2642_v20  ;;  %19619 = vmatpush3.bf16.msra.mxu1 %v20663_v63 }
 0x600   : > { %19615 = vmatmul.mubr.msk.bf16.gmra.mrb[52].mxu1 %vm2763_vm5, %v2643_v40 }
 0x601   : > { %19620 = vmatprep.mubr.msk.bf16.mxu1 %vm2763_vm5, %v2749_v50 }
 0x608   : > { %19621 = vmatmul.mubr.msk.bf16.vlgmr.msra.gmra.mrb[48].mxu1 %vm2763_vm5, %v2750_v60 }
 0x609   : > { %19624 = vmatprep.mubr.msk.bf16.mxu1 %vm2763_vm5, %v2751_v58 }
 0x610   : > { %19625 = vmatmul.mubr.msk.bf16.gmra.mrb[52].mxu1 %vm2763_vm5, %v2752_v31 }
 0x611   : > { %19736 = vmatprep.mubr.msk.f32.mxu1 %vm1211_vm0, %v24496_v61 }
 0x6db   : > { %v19622_v22 = vpop.f32.mrb[48].mxu1 }
 0x6dc   : > { %v3211_v33 = vmul.f32 %v19622_v22, %v17475_v41  ;;  %v3164_v35 = vpop.f32.mrb[49].mxu1  ;;  %v20669_v22 = vld [vmem:[%s25562_s12 + $0x28] sm:$0xff]  }
 0x6dd   : > { %v3209_v9 = vmul.f32 %v17475_v41, %v3164_v35  ;;  %v19623_v11 = vpop.f32.mrb[50].mxu1 }
 0x6de   : > { %v3225_v29 = vadd.f32 %v17476_v4, %v3211_v33  ;;  %v3212_v37 = vmul.f32 %v19623_v11, %v17475_v41  ;;  %v3167_v42 = vpop.f32.mrb[51].mxu1 }
 0x6df   : > { %v3223_v53 = vadd.f32 %v17476_v4, %v3209_v9  ;;  %v3210_v46 = vmul.f32 %v17475_v41, %v3167_v42 }
 0x6e0   : > { %v3226_v51 = vadd.f32 %v17476_v4, %v3212_v37  ;;  %v3233_v54 = vmax.f32 %v3225_v29, 0.0 }
 0x6e1   : > { %v3224_v26 = vadd.f32 %v17476_v4, %v3210_v46  ;;  %v3231_v3 = vmax.f32 %v3223_v53, 0.0 }
 0x6e2   : > { %v3234_v57 = vmax.f32 %v3226_v51, 0.0 }
 0x6e3   : > { %v3232_v10 = vmax.f32 %v3224_v26, 0.0  ;;  %v19626_v5 = vpop.f32.mrb[52].mxu1 }
 0x6e4   : > { %v19984_v36 = vpack.c.bf16 %v3234_v57, %v3233_v54  ;;  %v3215_v0 = vmul.f32 %v19626_v5, %v17475_v41  ;;  %v3180_v17 = vpop.f32.mrb[53].mxu1 }
 0x6e5   : > { %v19980_v28 = vpack.c.bf16 %v3232_v10, %v3231_v3  ;;  %v3213_v52 = vmul.f32 %v17475_v41, %v3180_v17  ;;  %v19627_v62 = vpop.f32.mrb[54].mxu1  ;;  %v17511_v17 = vld [vmem:[#allocation9] ss:$0 sm:$0xff] }
 0x6e6   : > { %v3229_v19 = vadd.f32 %v17476_v4, %v3215_v0  ;;  %v3216_v20 = vmul.f32 %v19627_v62, %v17475_v41  ;;  %v3183_v7 = vpop.f32.mrb[55].mxu1 }
 0x6e7   : > { %v3227_v21 = vadd.f32 %v17476_v4, %v3213_v52  ;;  %v3214_v40 = vmul.f32 %v17475_v41, %v3183_v7  ;;  %19981 = vmatprep.subr.bf16.mxu0 %v19980_v28  ;;  %v17512_v52 = vld [vmem:[#allocation10] ss:$0 sm:$0xff] }
 0x6e8   : > { %v3230_v44 = vadd.f32 %v17476_v4, %v3216_v20  ;;  %19983 = vmatpush3.bf16.msra.mxu0 %v19980_v28  ;;  %v3237_v50 = vmax.f32 %v3229_v19, 0.0 }
 0x6e9   : > { %v3228_v49 = vadd.f32 %v17476_v4, %v3214_v40  ;;  %19985 = vmatprep.subr.bf16.mxu0 %v19984_v36  ;;  %v3235_v56 = vmax.f32 %v3227_v21, 0.0 }
 0x6ea   : > { %v3238_v55 = vmax.f32 %v3230_v44, 0.0 }
 0x6eb   : > { %v3236_v60 = vmax.f32 %v3228_v49, 0.0 }
 0x6ec   : > { %v19992_v63 = vpack.c.bf16 %v3238_v55, %v3237_v50  ;;  %19987 = vmatpush3.bf16.msra.mxu0 %v19984_v36 }
 0x6ed   : > { %v19988_v12 = vpack.c.bf16 %v3236_v60, %v3235_v56 }
 0x6ef   : > { %19989 = vmatprep.subr.bf16.mxu0 %v19988_v12 }
 0x6f0   : > { %19991 = vmatpush3.bf16.msra.mxu0 %v19988_v12 }
 0x6f1   : > { %19993 = vmatprep.subr.bf16.mxu0 %v19992_v63 }
 0x6f4   : > { %19995 = vmatpush3.bf16.msra.mxu0 %v19992_v63 }
 0x6f5   : > { %19997 = vmatprep.subr.bf16.mxu0 %v19980_v28 }
 0x6f7   : > { %19645 = vmatmul.mubr.msk.f32.vlgmr.msra.gmra.mrb[24].mxu0 %vm1211_vm0, %v24391_v38 }
 0x6f8   : > { %19999 = vmatpush3.bf16.msra.mxu0 %v19980_v28  ;;  %19647 = vmatprep.mubr.msk.f32.mxu0 %vm1211_vm0, %v24394_v39 }
 0x6f9   : > { %20001 = vmatprep.subr.bf16.mxu0 %v19984_v36 }
 0x6fb   : > { %19648 = vmatmul.mubr.msk.f32.gmra.mrb[26].mxu0 %vm1211_vm0, %v24411_v43 }
 0x6fc   : > { %20003 = vmatpush3.bf16.msra.mxu0 %v19984_v36  ;;  %19650 = vmatprep.mubr.msk.f32.mxu0 %vm1211_vm0, %v24419_v45  ;;  %v20665_v45 = vld [vmem:[%s25562_s12 + $0x18] sm:$0xff]  }
 0x6fd   : > { %20005 = vmatprep.subr.bf16.mxu0 %v19988_v12 }
 0x6ff   : > { %19651 = vmatmul.mubr.msk.f32.gmra.mrb[28].mxu0 %vm1211_vm0, %v24427_v47  ;;  %v20666_v47 = vld [vmem:[%s25562_s12] sm:$0xff]  }
 0x700   : > { %20007 = vmatpush3.bf16.msra.mxu0 %v19988_v12  ;;  %19653 = vmatprep.mubr.msk.f32.mxu0 %vm1211_vm0, %v24432_v48  ;;  %v20667_v48 = vld [vmem:[%s25562_s12 + $0x8] sm:$0xff]  }
 0x701   : > { %20009 = vmatprep.subr.bf16.mxu0 %v19992_v63 }
 0x703   : > { %19654 = vmatmul.mubr.msk.f32.gmra.mrb[30].mxu0 %vm1211_vm0, %v24487_v59  ;;  %v20668_v59 = vld [vmem:[%s25562_s12 + $0x20] sm:$0xff]  }
 0x704   : > { %20011 = vmatpush3.bf16.msra.mxu0 %v19992_v63  ;;  %19672 = vmatprep.mubr.msk.f32.mxu0 %vm1211_vm0, %v24496_v61 }
 0x705   : > { %19684 = vmatprep.subr.bf16.mxu0 %v20664_v18 }
 0x707   : > { %19673 = vmatmul.mubr.msk.f32.vlgmr.msra.gmra.mrb[32].mxu0 %vm1211_vm0, %v24523_v6 }
 0x708   : > { %19675 = vmatprep.mubr.msk.f32.mxu0 %vm1211_vm0, %v24532_v13  ;;  %19685 = vmatpush3.bf16.msra.mxu0 %v20664_v18 }
 0x709   : > { %19686 = vmatprep.subr.bf16.mxu0 %v20665_v45 }
 0x70b   : > { %19676 = vmatmul.mubr.msk.f32.gmra.mrb[34].mxu0 %vm1211_vm0, %v24550_v24 }
 0x70c   : > { %19678 = vmatprep.mubr.msk.f32.mxu0 %vm1211_vm0, %v24560_v25  ;;  %19687 = vmatpush3.bf16.msra.mxu0 %v20665_v45 }
 0x70d   : > { %19696 = vmatprep.subr.bf16.mxu0 %v20666_v47 }
 0x70f   : > { %19679 = vmatmul.mubr.msk.f32.gmra.mrb[36].mxu0 %vm1211_vm0, %v24576_v30 }
 0x710   : > { %19681 = vmatprep.mubr.msk.f32.mxu0 %vm1211_vm0, %v24584_v32 }
 0x713   : > { %19682 = vmatmul.mubr.msk.f32.gmra.mrb[38].mxu0 %vm1211_vm0, %v24598_v34 }
 0x714   : > { %19688 = vmatprep.mubr.msk.bf16.mxu0 %vm3483_vm6, %v19980_v28 }
 0x717   : > { %19689 = vmatmul.mubr.msk.bf16.vlgmr.msra.gmra.mrb[40].mxu0 %vm3483_vm6, %v19984_v36 }
 0x718   : > { %19692 = vmatprep.mubr.msk.bf16.mxu0 %vm3483_vm6, %v19988_v12  ;;  %19697 = vmatpush3.bf16.msra.mxu0 %v20666_v47 }
 0x719   : > { %19698 = vmatprep.subr.bf16.mxu0 %v20667_v48 }
 0x71c   : > { %19699 = vmatpush3.bf16.msra.mxu0 %v20667_v48 }
 0x71d   : > { %19708 = vmatprep.subr.bf16.mxu0 %v20668_v59 }
 0x71f   : > { %19693 = vmatmul.mubr.msk.bf16.gmra.mrb[44].mxu0 %vm3483_vm6, %v19992_v63 }
 0x7ca   : > { %v19646_v58 = vpop.f32.mrb[24].mxu0 }
 0x7cb   : > { %v3307_v23 = vpop.f32.mrb[25].mxu0 }
 0x7cc   : > { %v3346_v27 = vpack.c.bf16 %v19646_v58, %v3307_v23 }
 0x7ce   : > { %v19649_v31 = vpop.f32.mrb[26].mxu0  ;;  %19700 = vmatprep.mubr.msk.bf16.mxu0 %vm3483_vm6, %v3346_v27 }
 0x7cf   : > { %v3317_v41 = vpop.f32.mrb[27].mxu0 }
 0x7d0   : > { %v3347_v4 = vpack.c.bf16 %v19649_v31, %v3317_v41 }
 0x7d2   : > { %v19652_v33 = vpop.f32.mrb[28].mxu0  ;;  %19701 = vmatmul.mubr.msk.bf16.vlgmr.msra.gmra.mrb[40].mxu0 %vm3483_vm6, %v3347_v4 }
 0x7d3   : > { %v3327_v35 = vpop.f32.mrb[29].mxu0  ;;  %19709 = vmatpush3.bf16.msra.mxu0 %v20668_v59 }
 0x7d4   : > { %v3348_v9 = vpack.c.bf16 %v19652_v33, %v3327_v35  ;;  %19710 = vmatprep.subr.bf16.mxu0 %v20669_v22 }
 0x7d6   : > { %v19655_v11 = vpop.f32.mrb[30].mxu0  ;;  %19704 = vmatprep.mubr.msk.bf16.mxu0 %vm3483_vm6, %v3348_v9 }
 0x7d7   : > { %v3337_v29 = vpop.f32.mrb[31].mxu0  ;;  %19711 = vmatpush3.bf16.msra.mxu0 %v20669_v22 }
 0x7d8   : > { %v3349_v37 = vpack.c.bf16 %v19655_v11, %v3337_v29 }
 0x7da   : > { %v19674_v42 = vpop.f32.mrb[32].mxu0  ;;  %19705 = vmatmul.mubr.msk.bf16.gmra.mrb[44].mxu0 %vm3483_vm6, %v3349_v37 }
 0x7db   : > { %v3420_v53 = vpop.f32.mrb[33].mxu0 }
 0x7dc   : > { %v3459_v46 = vpack.c.bf16 %v19674_v42, %v3420_v53 }
 0x7de   : > { %v19677_v51 = vpop.f32.mrb[34].mxu0  ;;  %19712 = vmatprep.mubr.msk.bf16.mxu0 %vm3483_vm6, %v3459_v46 }
 0x7df   : > { %v3430_v26 = vpop.f32.mrb[35].mxu0 }
 0x7e0   : > { %v3460_v54 = vpack.c.bf16 %v19677_v51, %v3430_v26  ;;  %v3904_v51 = vmul.u32 2, %v24308_v1  ;;  %v3905_v26 = vmul.u32 2, %v24329_v14 }
 0x7e2   : > { %v19680_v57 = vpop.f32.mrb[36].mxu0  ;;  %19713 = vmatmul.mubr.msk.bf16.vlgmr.msra.gmra.mrb[40].mxu0 %vm3483_vm6, %v3460_v54  ;;  %vm3908_vm7 = vcmp.eq.s32.totalorder %v24311_v2, %v3904_v51  ;;  %vm3909_vm8 = vcmp.eq.s32.totalorder %v24311_v2, %v3905_v26 }
 0x7e3   : > { %v3440_v3 = vpop.f32.mrb[37].mxu0 }
 0x7e4   : > { %v3461_v10 = vpack.c.bf16 %v19680_v57, %v3440_v3 }
 0x7e6   : > { %v19683_v5 = vpop.f32.mrb[38].mxu0  ;;  %19716 = vmatprep.mubr.msk.bf16.mxu0 %vm3483_vm6, %v3461_v10 }
 0x7e7   : > { %v3450_v36 = vpop.f32.mrb[39].mxu0 }
 0x7e8   : > { %v3462_v0 = vpack.c.bf16 %v19683_v5, %v3450_v36 }
 0x7ea   : > { %19717 = vmatmul.mubr.msk.bf16.gmra.mrb[44].mxu0 %vm3483_vm6, %v3462_v0 }
 0x8b5   : > { %v19714_v28 = vpop.f32.mrb[40].mxu0 }
 0x8b6   : > { %v3712_v62 = vpop.f32.mrb[41].mxu0  ;;  %v3759_v19 = vmul.f32 %v19714_v28, %v17511_v17 }
 0x8b7   : > { %v3757_v20 = vmul.f32 %v17511_v17, %v3712_v62  ;;  %v19715_v7 = vpop.f32.mrb[42].mxu0 }
 0x8b8   : > { %v3760_v21 = vmul.f32 %v19715_v7, %v17511_v17  ;;  %v3715_v40 = vpop.f32.mrb[43].mxu0  ;;  %v3773_v55 = vadd.f32 %v17512_v52, %v3759_v19  ;;  %v3906_v19 = vmul.u32 2, %v24334_v15 }
 0x8b9   : > { %v3771_v44 = vadd.f32 %v17512_v52, %v3757_v20  ;;  %v3758_v49 = vmul.f32 %v17511_v17, %v3715_v40  ;;  %v3907_v20 = vmul.u32 2, %v24339_v16 }
 0x8ba   : > { %v3774_v50 = vadd.f32 %v17512_v52, %v3760_v21  ;;  %v3781_v47 = vmax.f32 %v3773_v55, 0.0  ;;  %vm3910_vm9 = vcmp.eq.s32.totalorder %v24311_v2, %v3906_v19 }
 0x8bb   : > { %v3772_v56 = vadd.f32 %v17512_v52, %v3758_v49  ;;  %v3779_v60 = vmax.f32 %v3771_v44, 0.0  ;;  %vm3911_vm10 = vcmp.eq.s32.totalorder %v24311_v2, %v3907_v20 }
 0x8bc   : > { %v3782_v63 = vmax.f32 %v3774_v50, 0.0 }
 0x8bd   : > { %v3780_v12 = vmax.f32 %v3772_v56, 0.0  ;;  %v19718_v18 = vpop.f32.mrb[44].mxu0 }
 0x8be   : > { %v3728_v45 = vpop.f32.mrb[45].mxu0  ;;  %v3763_v48 = vmul.f32 %v19718_v18, %v17511_v17  ;;  %v20016_v22 = vpack.c.bf16 %v3782_v63, %v3781_v47 }
 0x8bf   : > { %v3761_v59 = vmul.f32 %v17511_v17, %v3728_v45  ;;  %v19719_v58 = vpop.f32.mrb[46].mxu0  ;;  %v20012_v23 = vpack.c.bf16 %v3780_v12, %v3779_v60 }
 0x8c0   : > { %v3764_v27 = vmul.f32 %v19719_v58, %v17511_v17  ;;  %v3731_v31 = vpop.f32.mrb[47].mxu0  ;;  %v3777_v35 = vadd.f32 %v17512_v52, %v3763_v48  ;;  %v20671_v58 = vld [vmem:[#allocation12 + $0x28] sm:$0xff]  }
 0x8c1   : > { %v3775_v41 = vadd.f32 %v17512_v52, %v3761_v59  ;;  %v3762_v4 = vmul.f32 %v17511_v17, %v3731_v31  ;;  %20013 = vmatprep.subr.bf16.mxu1 %v20012_v23  ;;  %v20670_v59 = vld [vmem:[#allocation12 + $0x20] sm:$0xff]  }
 0x8c2   : > { %v3778_v33 = vadd.f32 %v17512_v52, %v3764_v27  ;;  %20015 = vmatpush3.bf16.msra.mxu1 %v20012_v23  ;;  %v3785_v42 = vmax.f32 %v3777_v35, 0.0  ;;  %v20672_v23 = vld [vmem:[#allocation12 + $0x30] sm:$0xff]   ;;  %v20673_v27 = vld [vmem:[#allocation12 + $0x38] sm:$0xff]   ;;  %v20674_v31 = vld [vmem:[#allocation12] sm:$0xff]  }
 0x8c3   : > { %v3776_v9 = vadd.f32 %v17512_v52, %v3762_v4  ;;  %20017 = vmatprep.subr.bf16.mxu1 %v20016_v22  ;;  %v3783_v11 = vmax.f32 %v3775_v41, 0.0  ;;  %v20675_v41 = vld [vmem:[#allocation12 + $0x8] sm:$0xff]   ;;  %v20676_v4 = vld [vmem:[#allocation12 + $0x10] sm:$0xff]  }
 0x8c4   : > { %v3786_v29 = vmax.f32 %v3778_v33, 0.0  ;;  %v20678_v33 = vld [vmem:[#allocation12 + $0x40] sm:$0xff]  }
 0x8c5   : > { %v3784_v37 = vmax.f32 %v3776_v9, 0.0 }
 0x8c6   : > { %20019 = vmatpush3.bf16.msra.mxu1 %v20016_v22  ;;  %v20024_v46 = vpack.c.bf16 %v3786_v29, %v3785_v42  ;;  %v20677_v22 = vld [vmem:[#allocation12 + $0x18] sm:$0xff]  }
 0x8c7   : > { %v20020_v53 = vpack.c.bf16 %v3784_v37, %v3783_v11 }
 0x8c9   : > { %20021 = vmatprep.subr.bf16.mxu1 %v20020_v53 }
 0x8ca   : > { %20023 = vmatpush3.bf16.msra.mxu1 %v20020_v53 }
 0x8cb   : > { %20025 = vmatprep.subr.bf16.mxu1 %v20024_v46 }
 0x8ce   : > { %20027 = vmatpush3.bf16.msra.mxu1 %v20024_v46 }
 0x8d1   : > { %19737 = vmatmul.mubr.msk.f32.vlgmr.msra.gmra.mrb[56].mxu1 %vm1211_vm0, %v24523_v6 }
 0x8d2   : > { %19739 = vmatprep.mubr.msk.f32.mxu1 %vm1211_vm0, %v24532_v13 }
 0x8d5   : > { %19740 = vmatmul.mubr.msk.f32.gmra.mrb[58].mxu1 %vm1211_vm0, %v24550_v24 }
 0x8d6   : > { %19742 = vmatprep.mubr.msk.f32.mxu1 %vm1211_vm0, %v24560_v25  ;;  %v25563_v25 = vmov 0.0  }
 0x8d7   : > { %v17521_v54 = vsel %vm3908_vm7, 1.0, %v25563_v25  ;;  %v17523_v15 = vsel %vm3910_vm9, 1.0, %v25563_v25  ;;  %v17524_v16 = vsel %vm3911_vm10, 1.0, %v25563_v25 }
 0x8d9   : > { %19743 = vmatmul.mubr.msk.f32.gmra.mrb[60].mxu1 %vm1211_vm0, %v24576_v30  ;;  %v17522_v30 = vsel %vm3909_vm8, 1.0, %v25563_v25 }
 0x8da   : > { %19745 = vmatprep.mubr.msk.f32.mxu1 %vm1211_vm0, %v24584_v32  ;;  %v24887_v57 = vpack.c.bf16 %v17522_v30, %v17521_v54  ;;  %v20679_v30 = vld [vmem:[#allocation12 + $0x48] sm:$0xff]  }
 0x8dc   : > { %19756 = vmatprep.mubr.msk.bf16.mxu0 %vm1211_vm0, %v24887_v57 }
 0x8dd   : > { %19746 = vmatmul.mubr.msk.f32.gmra.mrb[62].mxu1 %vm1211_vm0, %v24598_v34 }
 0x8de   : > { %19768 = vmatprep.mubr.msk.f32.mxu1 %vm3483_vm6, %v24320_v8 }
 0x9a4   : > { %v19738_v32 = vpop.f32.mrb[56].mxu1 }
 0x9a5   : > { %v3893_v34 = vmax.f32 %v3780_v12, %v19738_v32  ;;  %v3853_v3 = vpop.f32.mrb[57].mxu1 }
 0x9a6   : > { %v3892_v10 = vmax.f32 %v3779_v60, %v3853_v3  ;;  %v20681_v3 = vld [vmem:[#allocation12 + $0x58] sm:$0xff]  }
 0x9a8   : > { %v3900_v5 = vpack.c.bf16 %v3893_v34, %v3892_v10  ;;  %v19741_v36 = vpop.f32.mrb[58].mxu1  ;;  %v20680_v34 = vld [vmem:[#allocation12 + $0x50] sm:$0xff]   ;;  %v17553_v10 = vld [vmem:[#allocation13] ss:$0 sm:$0xff] }
 0x9a9   : > { %v3895_v0 = vmax.f32 %v3782_v63, %v19741_v36  ;;  %v3863_v17 = vpop.f32.mrb[59].mxu1  ;;  %v3921_v63 = vpack.c.bf16 %v17524_v16, %v17523_v15 }
 0x9aa   : > { %v3894_v28 = vmax.f32 %v3781_v47, %v3863_v17  ;;  %19748 = vmatprep.subr.bf16.mxu0 %v3900_v5 }
 0x9ab   : > { %19749 = vmatpush3.bf16.msra.mxu0 %v3900_v5  ;;  %v17554_v5 = vld [vmem:[#allocation15] ss:$0 sm:$0xff] }
 0x9ac   : > { %v3901_v52 = vpack.c.bf16 %v3895_v0, %v3894_v28  ;;  %v19744_v62 = vpop.f32.mrb[60].mxu1 }
 0x9ad   : > { %v3897_v7 = vmax.f32 %v3784_v37, %v19744_v62  ;;  %v3873_v21 = vpop.f32.mrb[61].mxu1 }
 0x9ae   : > { %v3896_v40 = vmax.f32 %v3783_v11, %v3873_v21  ;;  %19750 = vmatprep.subr.bf16.mxu0 %v3901_v52 }
 0x9af   : > { %19751 = vmatpush3.bf16.msra.mxu0 %v3901_v52 }
 0x9b0   : > { %v3902_v44 = vpack.c.bf16 %v3897_v7, %v3896_v40  ;;  %v19747_v49 = vpop.f32.mrb[62].mxu1 }
 0x9b1   : > { %v3899_v50 = vmax.f32 %v3786_v29, %v19747_v49  ;;  %v3883_v55 = vpop.f32.mrb[63].mxu1 }
 0x9b2   : > { %v3898_v56 = vmax.f32 %v3785_v42, %v3883_v55  ;;  %19752 = vmatprep.subr.bf16.mxu0 %v3902_v44 }
 0x9b3   : > { %19753 = vmatpush3.bf16.msra.mxu0 %v3902_v44 }
 0x9b4   : > { %v3903_v60 = vpack.c.bf16 %v3899_v50, %v3898_v56 }
 0x9b6   : > { %19754 = vmatprep.subr.bf16.mxu0 %v3903_v60 }
 0x9b7   : > { %19755 = vmatpush3.bf16.msra.mxu0 %v3903_v60  ;;  %v20684_v60 = vld [vmem:[#allocation16 + $0x4] ss:$8 sps:$4 sm:$0xff]  }
 0x9ba   : > { %19757 = vmatmul.mubr.msk.bf16.vlgmr.msra.gmra.mrb[48].mxu0 %vm1211_vm0, %v3921_v63  ;;  %v20682_v63 = vld [vmem:[#allocation16] ss:$8 sps:$4 sm:$0xff]  }
 0x9bb   : > { %19782 = vmatprep.mubr.msk.f32.mxu0 %vm3483_vm6, %v24496_v61 }
 0xa8d   : > { %v19758_v12 = vpop.f32.mrb[48].mxu0 }
 0xa8e   : > { %v3962_v2 = vpop.f32.mrb[49].mxu0 }
 0xa8f   : > { %v19759_v18 = vpop.f32.mrb[50].mxu0 }
 0xa90   : > { %v20032_v45 = vpack.c.bf16 %v19759_v18, %v19758_v12  ;;  %v3965_v47 = vpop.f32.mrb[51].mxu0  ;;  %v20687_v12 = vld [vmem:[#allocation16 + $0x14] ss:$8 sps:$4 sm:$0xff]   ;;  %v20690_v18 = vld [vmem:[#allocation16 + $0x24] ss:$8 sps:$4 sm:$0xff]  }
 0xa91   : > { %v20028_v48 = vpack.c.bf16 %v3965_v47, %v3962_v2  ;;  %v20685_v2 = vld [vmem:[#allocation16 + $0x10] ss:$8 sps:$4 sm:$0xff]   ;;  %v20693_v47 = vld [vmem:[#allocation16 + $0x34] ss:$8 sps:$4 sm:$0xff]  }
 0xa93   : > { %20029 = vmatprep.subr.bf16.mxu1 %v20028_v48  ;;  %20037 = vmatprep.subr.bf16.mxu0 %v20028_v48 }
 0xa94   : > { %20031 = vmatpush3.bf16.msra.mxu1 %v20028_v48  ;;  %20039 = vmatpush3.bf16.msra.mxu0 %v20028_v48 }
 0xa95   : > { %20033 = vmatprep.subr.bf16.mxu1 %v20032_v45  ;;  %20041 = vmatprep.subr.bf16.mxu0 %v20032_v45 }
 0xa98   : > { %20035 = vmatpush3.bf16.msra.mxu1 %v20032_v45  ;;  %20043 = vmatpush3.bf16.msra.mxu0 %v20032_v45 }
 0xa99   : > { %19788 = vmatprep.subr.bf16.mxu1 %v20670_v59 }
 0xa9b   : > { %19769 = vmatmul.mubr.msk.f32.vlgmr.msra.gmra.mrb[64].mxu1 %vm3483_vm6, %v24391_v38  ;;  %19783 = vmatmul.mubr.msk.f32.vlgmr.msra.gmra.mrb[52].mxu0 %vm3483_vm6, %v24523_v6 }
 0xa9c   : > { %19789 = vmatpush3.bf16.msra.mxu1 %v20670_v59  ;;  %19771 = vmatprep.mubr.msk.f32.mxu1 %vm3483_vm6, %v24394_v39  ;;  %v20696_v59 = vld [vmem:[#allocation16 + $0x44] ss:$8 sps:$4 sm:$0xff]  }
 0xa9d   : > { %19790 = vmatprep.subr.bf16.mxu1 %v20671_v58  ;;  %19785 = vmatprep.mubr.msk.f32.mxu0 %vm3483_vm6, %v24532_v13 }
 0xa9f   : > { %19772 = vmatmul.mubr.msk.f32.gmra.mrb[66].mxu1 %vm3483_vm6, %v24411_v43  ;;  %19786 = vmatmul.mubr.msk.f32.gmra.mrb[54].mxu0 %vm3483_vm6, %v24550_v24 }
 0xaa0   : > { %19791 = vmatpush3.bf16.msra.mxu1 %v20671_v58  ;;  %19796 = vmatprep.mubr.msk.bf16.mxu1 %vm1211_vm0, %v20028_v48  ;;  %v20691_v48 = vld [vmem:[#allocation16 + $0x30] ss:$8 sps:$4 sm:$0xff]   ;;  %v20694_v58 = vld [vmem:[#allocation16 + $0x40] ss:$8 sps:$4 sm:$0xff]  }
 0xaa1   : > { %19792 = vmatprep.subr.bf16.mxu1 %v20672_v23  ;;  %19832 = vmatprep.mubr.msk.f32.mxu0 %vm3483_vm6, %v24320_v8 }
 0xaa4   : > { %19793 = vmatpush3.bf16.msra.mxu1 %v20672_v23  ;;  %v20699_v23 = vld [vmem:[#allocation16 + $0x54] ss:$8 sps:$4 sm:$0xff]  }
 0xaa5   : > { %19794 = vmatprep.subr.bf16.mxu1 %v20673_v27 }
 0xaa8   : > { %19795 = vmatpush3.bf16.msra.mxu1 %v20673_v27  ;;  %v20697_v27 = vld [vmem:[#allocation16 + $0x50] ss:$8 sps:$4 sm:$0xff]  }
 0xaa9   : > { %19800 = vmatprep.subr.bf16.mxu1 %v20674_v31 }
 0xaab   : > { %19797 = vmatmul.mubr.msk.bf16.vlgmr.msra.gmra.mrb[68].mxu1 %vm1211_vm0, %v20032_v45  ;;  %v20688_v45 = vld [vmem:[#allocation16 + $0x20] ss:$8 sps:$4 sm:$0xff]  }
 0xaac   : > { %19801 = vmatpush3.bf16.msra.mxu1 %v20674_v31  ;;  %v20702_v31 = vld [vmem:[#allocation16 + $0x64] ss:$8 sps:$4 sm:$0xff]  }
 0xaad   : > { %19802 = vmatprep.subr.bf16.mxu1 %v20675_v41 }
 0xab0   : > { %19803 = vmatpush3.bf16.msra.mxu1 %v20675_v41  ;;  %v20700_v41 = vld [vmem:[#allocation16 + $0x60] ss:$8 sps:$4 sm:$0xff]  }
 0xab1   : > { %19804 = vmatprep.subr.bf16.mxu1 %v20676_v4 }
 0xab4   : > { %19805 = vmatpush3.bf16.msra.mxu1 %v20676_v4  ;;  %v20705_v4 = vld [vmem:[#allocation16 + $0x74] ss:$8 sps:$4 sm:$0xff]  }
 0xab5   : > { %19806 = vmatprep.subr.bf16.mxu1 %v20677_v22 }
 0xab8   : > { %19807 = vmatpush3.bf16.msra.mxu1 %v20677_v22  ;;  %v20703_v22 = vld [vmem:[#allocation16 + $0x70] ss:$8 sps:$4 sm:$0xff]  }
 0xab9   : > { %19812 = vmatprep.subr.bf16.mxu1 %v20678_v33 }
 0xb6e   : > { %v19770_v35 = vpop.f32.mrb[64].mxu1  ;;  %v19784_v9 = vpop.f32.mrb[52].mxu0 }
 0xb6f   : > { %v4053_v11 = vpop.f32.mrb[65].mxu1  ;;  %v4150_v29 = vpop.f32.mrb[53].mxu0 }
 0xb70   : > { %v4072_v37 = vpack.c.bf16 %v19770_v35, %v4053_v11  ;;  %v4169_v42 = vpack.c.bf16 %v19784_v9, %v4150_v29  ;;  %v20706_v35 = vld [vmem:[#allocation16 + $0x80] ss:$8 sps:$4 sm:$0xff]   ;;  %v20711_v9 = vld [vmem:[#allocation16 + $0x94] ss:$8 sps:$4 sm:$0xff]   ;;  %v20709_v11 = vld [vmem:[#allocation16 + $0x90] ss:$8 sps:$4 sm:$0xff]  }
 0xb71   : > { %v20714_v29 = vld [vmem:[#allocation16 + $0xa4] ss:$8 sps:$4 sm:$0xff]  }
 0xb72   : > { %v19773_v53 = vpop.f32.mrb[66].mxu1  ;;  %19808 = vmatprep.mubr.msk.bf16.mxu1 %vm1211_vm0, %v4072_v37  ;;  %v19787_v46 = vpop.f32.mrb[54].mxu0  ;;  %v20712_v37 = vld [vmem:[#allocation16 + $0xa0] ss:$8 sps:$4 sm:$0xff]  }
 0xb73   : > { %v4063_v51 = vpop.f32.mrb[67].mxu1  ;;  %v4160_v26 = vpop.f32.mrb[55].mxu0 }
 0xb74   : > { %v4073_v54 = vpack.c.bf16 %v19773_v53, %v4063_v51  ;;  %v4170_v32 = vpack.c.bf16 %v19787_v46, %v4160_v26  ;;  %v20715_v53 = vld [vmem:[#allocation16 + $0xb0] ss:$8 sps:$4 sm:$0xff]   ;;  %v20720_v46 = vld [vmem:[#allocation16 + $0xc4] ss:$8 sps:$4 sm:$0xff]   ;;  %v20718_v51 = vld [vmem:[#allocation16 + $0xc0] ss:$8 sps:$4 sm:$0xff]  }
 0xb75   : > { %v20723_v26 = vld [vmem:[#allocation16 + $0xd4] ss:$8 sps:$4 sm:$0xff]  }
 0xb76   : > { %19809 = vmatmul.mubr.msk.bf16.vlgmr.msra.gmra.mrb[68].mxu1 %vm1211_vm0, %v4073_v54  ;;  %v20721_v54 = vld [vmem:[#allocation16 + $0xd0] ss:$8 sps:$4 sm:$0xff]  }
 0xb77   : > { %19813 = vmatpush3.bf16.msra.mxu1 %v20678_v33  ;;  %19820 = vmatprep.mubr.msk.bf16.mxu1 %vm1211_vm0, %v4169_v42  ;;  %v20708_v33 = vld [vmem:[#allocation16 + $0x84] ss:$8 sps:$4 sm:$0xff]   ;;  %v20717_v42 = vld [vmem:[#allocation16 + $0xb4] ss:$8 sps:$4 sm:$0xff]  }
 0xb78   : > { %19814 = vmatprep.subr.bf16.mxu1 %v20679_v30 }
 0xb7b   : > { %19815 = vmatpush3.bf16.msra.mxu1 %v20679_v30  ;;  %v20726_v30 = vld [vmem:[#allocation16 + $0xe4] ss:$8 sps:$4 sm:$0xff]  }
 0xb7c   : > { %19816 = vmatprep.subr.bf16.mxu1 %v20680_v34 }
 0xb7f   : > { %19817 = vmatpush3.bf16.msra.mxu1 %v20680_v34  ;;  %v20729_v34 = vld [vmem:[#allocation16 + $0xf4] ss:$8 sps:$4 sm:$0xff]  }
 0xb80   : > { %19818 = vmatprep.subr.bf16.mxu1 %v20681_v3 }
 0xb83   : > { %19819 = vmatpush3.bf16.msra.mxu1 %v20681_v3  ;;  %v20727_v3 = vld [vmem:[#allocation16 + $0xf0] ss:$8 sps:$4 sm:$0xff]  }
 0xb86   : > { %19821 = vmatmul.mubr.msk.bf16.vlgmr.msra.gmra.mrb[68].mxu1 %vm1211_vm0, %v4170_v32  ;;  %v20724_v32 = vld [vmem:[#allocation16 + $0xe0] ss:$8 sps:$4 sm:$0xff]  }
 0xb87   : > { %5144 = vmatprep.mubr.f32.mxu1 %v25563_v25 }
 0xc59   : > { %v19822_v36 = vpop.f32.mrb[68].mxu1 }
 0xc5a   : > { %v4444_v0 = vmul.f32 %v19822_v36, %v17553_v10  ;;  %v4417_v17 = vpop.f32.mrb[69].mxu1 }
 0xc5b   : > { %v4442_v28 = vmul.f32 %v17553_v10, %v4417_v17  ;;  %v19823_v52 = vpop.f32.mrb[70].mxu1 }
 0xc5c   : > { %v4454_v62 = vadd.f32 %v17554_v5, %v4444_v0  ;;  %v4445_v19 = vmul.f32 %v19823_v52, %v17553_v10  ;;  %v4420_v20 = vpop.f32.mrb[71].mxu1  ;;  %v20730_v0 = vld [vmem:[#allocation16 + $0x100] ss:$8 sps:$4 sm:$0xff]  }
 0xc5d   : > { %v4452_v7 = vadd.f32 %v17554_v5, %v4442_v28  ;;  %v4443_v21 = vmul.f32 %v17553_v10, %v4420_v20  ;;  %v20732_v10 = vld [vmem:[#allocation16 + $0x104] ss:$8 sps:$4 sm:$0xff]   ;;  %v20735_v28 = vld [vmem:[#allocation16 + $0x114] ss:$8 sps:$4 sm:$0xff]  }
 0xc5e   : > { %v4455_v40 = vadd.f32 %v17554_v5, %v4445_v19  ;;  %v4458_v49 = vmax.f32 %v4454_v62, 0.0  ;;  %v20733_v62 = vld [vmem:[#allocation16 + $0x110] ss:$8 sps:$4 sm:$0xff]   ;;  %v20738_v20 = vld [vmem:[#allocation16 + $0x124] ss:$8 sps:$4 sm:$0xff]  }
 0xc5f   : > { %v4453_v44 = vadd.f32 %v17554_v5, %v4443_v21  ;;  %v4456_v55 = vmax.f32 %v4452_v7, 0.0 }
 0xc60   : > { %v4459_v50 = vmax.f32 %v4455_v40, 0.0  ;;  %v20736_v40 = vld [vmem:[#allocation16 + $0x120] ss:$8 sps:$4 sm:$0xff]  }
 0xc61   : > { %v4457_v56 = vmax.f32 %v4453_v44, 0.0 }
 0xc62   : > { %v24921_v15 = vpack.c.bf16 %v4459_v50, %v4458_v49  ;;  %v20741_v49 = vld [vmem:[#allocation16 + $0x134] ss:$8 sps:$4 sm:$0xff]  }
 0xc63   : > { %v20044_v16 = vpack.c.bf16 %v4457_v56, %v4456_v55  ;;  %v20739_v56 = vld [vmem:[#allocation16 + $0x130] ss:$8 sps:$4 sm:$0xff]  }
 0xc65   : > { %20045 = vmatprep.subr.bf16.mxu0 %v20044_v16 }
 0xc66   : > { %20047 = vmatpush3.bf16.msra.mxu0 %v20044_v16 }
 0xc67   : > { %20049 = vmatprep.subr.bf16.mxu0 %v24921_v15 }
 0xc6a   : > { %20051 = vmatpush3.bf16.msra.mxu0 %v24921_v15 }
 0xc6b   : > { %20053 = vmatprep.subr.bf16.mxu0 %v20044_v16 }
 0xc6d   : > { %19833 = vmatmul.mubr.msk.f32.vlgmr.msra.gmra.mrb[56].mxu0 %vm3483_vm6, %v24391_v38 }
 0xc6e   : > { %20055 = vmatpush3.bf16.msra.mxu0 %v20044_v16  ;;  %19835 = vmatprep.mubr.msk.f32.mxu0 %vm3483_vm6, %v24394_v39 }
 0xc6f   : > { %20057 = vmatprep.subr.bf16.mxu0 %v24921_v15 }
 0xc71   : > { %19836 = vmatmul.mubr.msk.f32.gmra.mrb[58].mxu0 %vm3483_vm6, %v24411_v43 }
 0xc72   : > { %20059 = vmatpush3.bf16.msra.mxu0 %v24921_v15  ;;  %19846 = vmatprep.mubr.msk.f32.mxu0 %vm3483_vm6, %v24496_v61 }
 0xc73   : > { %4926 = vmatprep.subr.bf16.mxu0 %v20684_v60  ;;  %v20744_v60 = vld [vmem:[#allocation16 + $0x144] ss:$8 sps:$4 sm:$0xff]  }
 0xc75   : > { %19847 = vmatmul.mubr.msk.f32.vlgmr.msra.gmra.mrb[60].mxu0 %vm3483_vm6, %v24523_v6 }
 0xc76   : > { %19849 = vmatprep.mubr.msk.f32.mxu0 %vm3483_vm6, %v24532_v13  ;;  %4927 = vmatpush1.bf16.msra.mxu0 %v20682_v63 }
 0xc77   : > { %4928 = vmatprep.subr.bf16.mxu0 %v20687_v12  ;;  %v20742_v12 = vld [vmem:[#allocation16 + $0x140] ss:$8 sps:$4 sm:$0xff]  }
 0xc79   : > { %19850 = vmatmul.mubr.msk.f32.gmra.mrb[62].mxu0 %vm3483_vm6, %v24550_v24 }
 0xc7a   : > { %4958 = vmatprep.mubr.bf16.mxu0 %v20044_v16  ;;  %4929 = vmatpush1.bf16.msra.mxu0 %v20685_v2  ;;  %v23533_v16 = vmov 0   ;;  %v20747_v2 = vld [vmem:[#allocation16 + $0x154] ss:$8 sps:$4 sm:$0xff]  }
 0xc7b   : > { %4930 = vmatprep.subr.bf16.mxu0 %v20690_v18  ;;  %v20745_v18 = vld [vmem:[#allocation16 + $0x150] ss:$8 sps:$4 sm:$0xff]  }
 0xc7e   : > { %4931 = vmatpush1.bf16.msra.mxu0 %v20688_v45  ;;  %v20750_v45 = vld [vmem:[#allocation16 + $0x164] ss:$8 sps:$4 sm:$0xff]  }
 0xc7f   : > { %4932 = vmatprep.subr.bf16.mxu0 %v20693_v47  ;;  %v20748_v47 = vld [vmem:[#allocation16 + $0x160] ss:$8 sps:$4 sm:$0xff]  }
 0xc82   : > { %4933 = vmatpush1.bf16.msra.mxu0 %v20691_v48  ;;  %v20753_v48 = vld [vmem:[#allocation16 + $0x174] ss:$8 sps:$4 sm:$0xff]  }
 0xc83   : > { %4934 = vmatprep.subr.bf16.mxu0 %v20696_v59  ;;  %v20751_v59 = vld [vmem:[#allocation16 + $0x170] ss:$8 sps:$4 sm:$0xff]  }
 0xc86   : > { %4935 = vmatpush1.bf16.msra.mxu0 %v20694_v58  ;;  %v20757_v58 = vld [vmem:[#allocation21 + $0x8] ss:$16 sps:$4 sm:$0xff]  }
 0xc87   : > { %4936 = vmatprep.subr.bf16.mxu0 %v20699_v23  ;;  %v20759_v23 = vld [vmem:[#allocation21 + $0xc] ss:$16 sps:$4 sm:$0xff]  }
 0xc8a   : > { %4937 = vmatpush1.bf16.msra.mxu0 %v20697_v27  ;;  %v20765_v27 = vld [vmem:[#allocation21 + $0x2c] ss:$16 sps:$4 sm:$0xff]  }
 0xc8b   : > { %4938 = vmatprep.subr.bf16.mxu0 %v20702_v31  ;;  %v20763_v31 = vld [vmem:[#allocation21 + $0x28] ss:$16 sps:$4 sm:$0xff]  }
 0xc8e   : > { %4939 = vmatpush1.bf16.msra.mxu0 %v20700_v41  ;;  %v20771_v41 = vld [vmem:[#allocation21 + $0x4c] ss:$16 sps:$4 sm:$0xff]  }
 0xc8f   : > { %4940 = vmatprep.subr.bf16.mxu0 %v20705_v4  ;;  %v20769_v4 = vld [vmem:[#allocation21 + $0x48] ss:$16 sps:$4 sm:$0xff]  }
 0xc92   : > { %4941 = vmatpush1.bf16.msra.mxu0 %v20703_v22  ;;  %v20777_v22 = vld [vmem:[#allocation21 + $0x6c] ss:$16 sps:$4 sm:$0xff]  }
 0xc93   : > { %4942 = vmatprep.subr.bf16.mxu0 %v20708_v33  ;;  %v20775_v33 = vld [vmem:[#allocation21 + $0x68] ss:$16 sps:$4 sm:$0xff]  }
 0xc96   : > { %4943 = vmatpush1.bf16.msra.mxu0 %v20706_v35  ;;  %v20783_v35 = vld [vmem:[#allocation21 + $0x8c] ss:$16 sps:$4 sm:$0xff]  }
 0xc97   : > { %4944 = vmatprep.subr.bf16.mxu0 %v20711_v9  ;;  %v20781_v9 = vld [vmem:[#allocation21 + $0x88] ss:$16 sps:$4 sm:$0xff]  }
 0xc9a   : > { %4945 = vmatpush1.bf16.msra.mxu0 %v20709_v11  ;;  %v20789_v11 = vld [vmem:[#allocation21 + $0xac] ss:$16 sps:$4 sm:$0xff]  }
 0xc9b   : > { %4946 = vmatprep.subr.bf16.mxu0 %v20714_v29  ;;  %v20787_v29 = vld [vmem:[#allocation21 + $0xa8] ss:$16 sps:$4 sm:$0xff]  }
 0xc9e   : > { %4947 = vmatpush1.bf16.msra.mxu0 %v20712_v37  ;;  %v20795_v37 = vld [vmem:[#allocation21 + $0xcc] ss:$16 sps:$4 sm:$0xff]  }
 0xc9f   : > { %4948 = vmatprep.subr.bf16.mxu0 %v20717_v42  ;;  %v20793_v42 = vld [vmem:[#allocation21 + $0xc8] ss:$16 sps:$4 sm:$0xff]  }
 0xca2   : > { %4949 = vmatpush1.bf16.msra.mxu0 %v20715_v53  ;;  %v20801_v53 = vld [vmem:[#allocation21 + $0xec] ss:$16 sps:$4 sm:$0xff]  }
 0xca3   : > { %4950 = vmatprep.subr.bf16.mxu0 %v20720_v46  ;;  %v20799_v46 = vld [vmem:[#allocation21 + $0xe8] ss:$16 sps:$4 sm:$0xff]  }
 0xca6   : > { %4951 = vmatpush1.bf16.msra.mxu0 %v20718_v51  ;;  %v20807_v51 = vld [vmem:[#allocation21 + $0x10c] ss:$16 sps:$4 sm:$0xff]  }
 0xca7   : > { %4952 = vmatprep.subr.bf16.mxu0 %v20723_v26  ;;  %v20805_v26 = vld [vmem:[#allocation21 + $0x108] ss:$16 sps:$4 sm:$0xff]  }
 0xcaa   : > { %4953 = vmatpush1.bf16.msra.mxu0 %v20721_v54  ;;  %v20813_v54 = vld [vmem:[#allocation21 + $0x12c] ss:$16 sps:$4 sm:$0xff]  }
 0xcab   : > { %4954 = vmatprep.subr.bf16.mxu0 %v20726_v30  ;;  %v20811_v30 = vld [vmem:[#allocation21 + $0x128] ss:$16 sps:$4 sm:$0xff]  }
 0xcae   : > { %4955 = vmatpush1.bf16.msra.mxu0 %v20724_v32  ;;  %v20819_v32 = vld [vmem:[#allocation21 + $0x14c] ss:$16 sps:$4 sm:$0xff]  }
 0xcaf   : > { %4956 = vmatprep.subr.bf16.mxu0 %v20729_v34  ;;  %v20817_v34 = vld [vmem:[#allocation21 + $0x148] ss:$16 sps:$4 sm:$0xff]  }
 0xcb2   : > { %4957 = vmatpush1.bf16.msra.mxu0 %v20727_v3  ;;  %v20825_v3 = vld [vmem:[#allocation21 + $0x16c] ss:$16 sps:$4 sm:$0xff]  }
 0xcb3   : > { %4979 = vmatprep.subr.bf16.mxu0 %v20732_v10  ;;  %v20823_v10 = vld [vmem:[#allocation21 + $0x168] ss:$16 sps:$4 sm:$0xff]  }
 0xd40   : > { %v19834_v5 = vpop.f32.mrb[56].mxu0 }
 0xd41   : > { %v4528_v36 = vpop.f32.mrb[57].mxu0 }
 0xd42   : > { %v4547_v17 = vpack.c.bf16 %v19834_v5, %v4528_v36  ;;  %v20831_v5 = vld [vmem:[#allocation21 + $0x18c] ss:$16 sps:$4 sm:$0xff]   ;;  %v20829_v36 = vld [vmem:[#allocation21 + $0x188] ss:$16 sps:$4 sm:$0xff]  }
 0xd44   : > { %4959 = vmatmul.mubr.bf16.vlgmr.msra.gmra.mrb[64].mxu0 %v4547_v17  ;;  %v19837_v52 = vpop.f32.mrb[58].mxu0  ;;  %v20835_v17 = vld [vmem:[#allocation21 + $0x1a8] ss:$16 sps:$4 sm:$0xff]  }
 0xd45   : > { %4980 = vmatpush1.bf16.msra.mxu0 %v20730_v0  ;;  %4968 = vmatprep.mubr.bf16.mxu0 %v24921_v15  ;;  %v4538_v19 = vpop.f32.mrb[59].mxu0  ;;  %v20837_v0 = vld [vmem:[#allocation21 + $0x1ac] ss:$16 sps:$4 sm:$0xff]  }
 0xd46   : > { %4981 = vmatprep.subr.bf16.mxu0 %v20735_v28  ;;  %v4548_v7 = vpack.c.bf16 %v19837_v52, %v4538_v19  ;;  %v24945_v28 = vsub.s32 0, %v24308_v1  ;;  %v4460_v52 = vld [vmem:[#allocation18] sm:$0x3]  ;;  %v4461_v19 = vld [vmem:[#allocation19] sm:$0x3] }
 0xd48   : > { %v19848_v21 = vpop.f32.mrb[60].mxu0 }
 0xd49   : > { %4982 = vmatpush1.bf16.msra.mxu0 %v20733_v62  ;;  %v4617_v44 = vpop.f32.mrb[61].mxu0  ;;  %v24948_v62 = vsub.s32 1, %v24308_v1 }
 0xd4a   : > { %4983 = vmatprep.subr.bf16.mxu0 %v20738_v20  ;;  %v4636_v50 = vpack.c.bf16 %v19848_v21, %v4617_v44  ;;  %v5036_v20 = vrot.slane %v4460_v52, %v24945_v28  ;;  %v5055_v21 = vrot.slane %v4461_v19, %v24945_v28 }
 0xd4b   : > { %v5059_v44 = vrot.slane %v4461_v19, %v24948_v62  ;;  %v20786_v19 = vld [vmem:[#allocation21 + $0xa4] ss:$16 sps:$4 sm:$0xff]  }
 0xd4c   : > { %4969 = vmatmul.mubr.bf16.gmra.mrb[68].mxu0 %v4548_v7  ;;  %v19851_v55 = vpop.f32.mrb[62].mxu0  ;;  %v5040_v7 = vrot.slane %v4460_v52, %v24948_v62  ;;  %v20778_v52 = vld [vmem:[#allocation21 + $0x80] ss:$16 sps:$4 sm:$0xff]  }
 0xd4d   : > { %4984 = vmatpush1.bf16.msra.mxu0 %v20736_v40  ;;  %5011 = vmatprep.mubr.bf16.mxu0 %v23533_v16  ;;  %v4627_v15 = vpop.f32.mrb[63].mxu0 }
 0xd4e   : > { %4985 = vmatprep.subr.bf16.mxu0 %v20741_v49  ;;  %v4637_v63 = vpack.c.bf16 %v19851_v55, %v4627_v15 }
 0xd51   : > { %4986 = vmatpush1.bf16.msra.mxu0 %v20739_v56 }
 0xd52   : > { %4987 = vmatprep.subr.bf16.mxu0 %v20744_v60 }
 0xd55   : > { %4988 = vmatpush1.bf16.msra.mxu0 %v20742_v12 }
 0xd56   : > { %4989 = vmatprep.subr.bf16.mxu0 %v20747_v2 }
 0xd59   : > { %4990 = vmatpush1.bf16.msra.mxu0 %v20745_v18 }
 0xd5a   : > { %4991 = vmatprep.subr.bf16.mxu0 %v20750_v45 }
 0xd5d   : > { %4992 = vmatpush1.bf16.msra.mxu0 %v20748_v47 }
 0xd5e   : > { %4993 = vmatprep.subr.bf16.mxu0 %v20753_v48 }
 0xd61   : > { %4994 = vmatpush1.bf16.msra.mxu0 %v20751_v59 }
 0xd62   : > { %6581 = vmatprep.subr.bf16.mxu0 %v20759_v23 }
 0xd64   : > { %5012 = vmatmul.mubr.bf16.vlgmr.msra.gmra.mrb[64].mxu0 %v4636_v50 }
 0xd65   : > { %5021 = vmatprep.mubr.bf16.mxu0 %v23533_v16  ;;  %6582 = vmatpush1.bf16.msra.mxu0 %v20757_v58 }
 0xd66   : > { %6583 = vmatprep.subr.bf16.mxu0 %v20765_v27 }
 0xd69   : > { %6584 = vmatpush1.bf16.msra.mxu0 %v20763_v31 }
 0xd6a   : > { %6585 = vmatprep.subr.bf16.mxu0 %v20771_v41 }
 0xd6c   : > { %5022 = vmatmul.mubr.bf16.gmra.mrb[68].mxu0 %v4637_v63 }
 0xd6d   : > { %6586 = vmatpush1.bf16.msra.mxu0 %v20769_v4 }
 0xd6e   : > { %6587 = vmatprep.subr.bf16.mxu0 %v20777_v22 }
 0xd71   : > { %6588 = vmatpush1.bf16.msra.mxu0 %v20775_v33 }
 0xd72   : > { %6589 = vmatprep.subr.bf16.mxu0 %v20783_v35 }
 0xd75   : > { %6590 = vmatpush1.bf16.msra.mxu0 %v20781_v9 }
 0xd76   : > { %6591 = vmatprep.subr.bf16.mxu0 %v20789_v11 }
 0xd79   : > { %6592 = vmatpush1.bf16.msra.mxu0 %v20787_v29 }
 0xd7a   : > { %6593 = vmatprep.subr.bf16.mxu0 %v20795_v37 }
 0xd7d   : > { %6594 = vmatpush1.bf16.msra.mxu0 %v20793_v42 }
 0xd7e   : > { %6595 = vmatprep.subr.bf16.mxu0 %v20801_v53 }
 0xd81   : > { %6596 = vmatpush1.bf16.msra.mxu0 %v20799_v46 }
 0xd82   : > { %6597 = vmatprep.subr.bf16.mxu0 %v20807_v51 }
 0xd85   : > { %6598 = vmatpush1.bf16.msra.mxu0 %v20805_v26 }
 0xd86   : > { %6599 = vmatprep.subr.bf16.mxu0 %v20813_v54 }
 0xd89   : > { %6600 = vmatpush1.bf16.msra.mxu0 %v20811_v30 }
 0xd8a   : > { %6601 = vmatprep.subr.bf16.mxu0 %v20819_v32 }
 0xd8d   : > { %6602 = vmatpush1.bf16.msra.mxu0 %v20817_v34  ;;  %v20756_v34 = vld [vmem:[#allocation21 + $0x4] ss:$16 sps:$4 sm:$0xff]  }
 0xd8e   : > { %6603 = vmatprep.subr.bf16.mxu0 %v20825_v3  ;;  %v20754_v3 = vld [vmem:[#allocation21] ss:$16 sps:$4 sm:$0xff]  }
 0xd91   : > { %6604 = vmatpush1.bf16.msra.mxu0 %v20823_v10  ;;  %v20762_v10 = vld [vmem:[#allocation21 + $0x24] ss:$16 sps:$4 sm:$0xff]  }
 0xd92   : > { %6605 = vmatprep.subr.bf16.mxu0 %v20831_v5  ;;  %v20760_v5 = vld [vmem:[#allocation21 + $0x20] ss:$16 sps:$4 sm:$0xff]  }
 0xd95   : > { %6606 = vmatpush1.bf16.msra.mxu0 %v20829_v36  ;;  %v20768_v36 = vld [vmem:[#allocation21 + $0x44] ss:$16 sps:$4 sm:$0xff]  }
 0xd96   : > { %6607 = vmatprep.subr.bf16.mxu0 %v20837_v0  ;;  %v20772_v0 = vld [vmem:[#allocation21 + $0x60] ss:$16 sps:$4 sm:$0xff]  }
 0xd99   : > { %6608 = vmatpush1.bf16.msra.mxu0 %v20835_v17  ;;  %v20780_v17 = vld [vmem:[#allocation21 + $0x84] ss:$16 sps:$4 sm:$0xff]  }
 0xe37   : > { %v5013_v40 = vpop.f32.mrb[64].mxu0 }
 0xe38   : > { %v5043_v49 = vmul.f32 %v5036_v20, %v5013_v40  ;;  %v5015_v50 = vpop.f32.mrb[65].mxu0  ;;  %v20798_v40 = vld [vmem:[#allocation21 + $0xe4] ss:$16 sps:$4 sm:$0xff]  }
 0xe39   : > { %v5044_v55 = vmul.f32 %v5040_v7, %v5015_v50  ;;  %v5017_v56 = vpop.f32.mrb[66].mxu0  ;;  %v20802_v50 = vld [vmem:[#allocation21 + $0x100] ss:$16 sps:$4 sm:$0xff]  }
 0xe3a   : > { %v5062_v15 = vadd.f32 %v5055_v21, %v5043_v49  ;;  %v5045_v60 = vmul.f32 %v5036_v20, %v5017_v56  ;;  %v5019_v63 = vpop.f32.mrb[67].mxu0  ;;  %v20804_v49 = vld [vmem:[#allocation21 + $0x104] ss:$16 sps:$4 sm:$0xff]   ;;  %v20808_v56 = vld [vmem:[#allocation21 + $0x120] ss:$16 sps:$4 sm:$0xff]  }
 0xe3b   : > { %v5063_v12 = vadd.f32 %v5059_v44, %v5044_v55  ;;  %v5046_v2 = vmul.f32 %v5040_v7, %v5019_v63  ;;  %v20810_v55 = vld [vmem:[#allocation21 + $0x124] ss:$16 sps:$4 sm:$0xff]  }
 0xe3c   : > { %v5064_v18 = vadd.f32 %v5055_v21, %v5045_v60  ;;  %v5070_v47 = vmax.f32 %v5062_v15, 0.0  ;;  %v20816_v15 = vld [vmem:[#allocation21 + $0x144] ss:$16 sps:$4 sm:$0xff]   ;;  %v20814_v60 = vld [vmem:[#allocation21 + $0x140] ss:$16 sps:$4 sm:$0xff]  }
 0xe3d   : > { %v5065_v45 = vadd.f32 %v5059_v44, %v5046_v2  ;;  %v5071_v59 = vmax.f32 %v5063_v12, 0.0  ;;  %v20822_v63 = vld [vmem:[#allocation21 + $0x164] ss:$16 sps:$4 sm:$0xff]   ;;  %v20820_v12 = vld [vmem:[#allocation21 + $0x160] ss:$16 sps:$4 sm:$0xff]  }
 0xe3e   : > { %v5072_v48 = vmax.f32 %v5064_v18, 0.0  ;;  %v20828_v2 = vld [vmem:[#allocation21 + $0x184] ss:$16 sps:$4 sm:$0xff]   ;;  %v20826_v18 = vld [vmem:[#allocation21 + $0x180] ss:$16 sps:$4 sm:$0xff]  }
 0xe3f   : > { %v5073_v58 = vmax.f32 %v5065_v45, 0.0  ;;  %v5023_v23 = vpop.f32.mrb[68].mxu0  ;;  %v20834_v45 = vld [vmem:[#allocation21 + $0x1a4] ss:$16 sps:$4 sm:$0xff]  }
 0xe40   : > { %v24954_v27 = vpack.c.bf16 %v5072_v48, %v5070_v47  ;;  %v5047_v31 = vmul.f32 %v5036_v20, %v5023_v23  ;;  %v5025_v41 = vpop.f32.mrb[69].mxu0  ;;  %v20832_v47 = vld [vmem:[#allocation21 + $0x1a0] ss:$16 sps:$4 sm:$0xff]   ;;  %v20840_v48 = vld [vmem:[#allocation21 + $0x1c4] ss:$16 sps:$4 sm:$0xff]  }
 0xe41   : > { %v24956_v4 = vpack.c.bf16 %v5073_v58, %v5071_v59  ;;  %v5048_v22 = vmul.f32 %v5040_v7, %v5025_v41  ;;  %v5027_v33 = vpop.f32.mrb[70].mxu0  ;;  %v20843_v59 = vld [vmem:[#allocation21 + $0x1cc] ss:$16 sps:$4 sm:$0xff]   ;;  %v20838_v58 = vld [vmem:[#allocation21 + $0x1c0] ss:$16 sps:$4 sm:$0xff]  }
 0xe42   : > { %v5066_v35 = vadd.f32 %v5055_v21, %v5047_v31  ;;  %v5049_v9 = vmul.f32 %v5036_v20, %v5027_v33  ;;  %v5029_v11 = vpop.f32.mrb[71].mxu0  ;;  %v20784_v20 = vld [vmem:[#allocation21 + $0xa0] ss:$16 sps:$4 sm:$0xff]   ;;  %v20841_v23 = vld [vmem:[#allocation21 + $0x1c8] ss:$16 sps:$4 sm:$0xff]   ;;  %6609 = vmatprep.subr.bf16.mxu0 %v20843_v59 }
 0xe43   : > { %v5067_v29 = vadd.f32 %v5059_v44, %v5048_v22  ;;  %v5050_v37 = vmul.f32 %v5040_v7, %v5029_v11  ;;  %20061 = vmatprep.subr.bf16.mxu1 %v24956_v4  ;;  %v20792_v7 = vld [vmem:[#allocation21 + $0xc4] ss:$16 sps:$4 sm:$0xff]   ;;  %6610 = vmatpush1.bf16.msra.mxu0 %v20841_v23  ;;  %v20849_v41 = vld [vmem:[#allocation21 + $0x1ec] ss:$16 sps:$4 sm:$0xff]   ;;  %v20844_v22 = vld [vmem:[#allocation21 + $0x1e0] ss:$16 sps:$4 sm:$0xff]  }
 0xe44   : > { %v5068_v42 = vadd.f32 %v5055_v21, %v5049_v9  ;;  %20063 = vmatpush1.bf16.msra.mxu1 %v24954_v27  ;;  %v5074_v46 = vmax.f32 %v5066_v35, 0.0  ;;  %v20790_v21 = vld [vmem:[#allocation21 + $0xc0] ss:$16 sps:$4 sm:$0xff]   ;;  %v20846_v31 = vld [vmem:[#allocation21 + $0x1e4] ss:$16 sps:$4 sm:$0xff]   ;;  %6611 = vmatprep.subr.bf16.mxu0 %v20849_v41 }
 0xe45   : > { %v5069_v53 = vadd.f32 %v5059_v44, %v5050_v37  ;;  %v5075_v26 = vmax.f32 %v5067_v29, 0.0  ;;  %v20796_v44 = vld [vmem:[#allocation21 + $0xe0] ss:$16 sps:$4 sm:$0xff]   ;;  %v20847_v33 = vld [vmem:[#allocation21 + $0x1e8] ss:$16 sps:$4 sm:$0xff]  }
 0xe46   : > { %v5076_v51 = vmax.f32 %v5068_v42, 0.0  ;;  %v20852_v35 = vld [vmem:[#allocation21 + $0x204] ss:$16 sps:$4 sm:$0xff]   ;;  %v20855_v9 = vld [vmem:[#allocation21 + $0x20c] ss:$16 sps:$4 sm:$0xff]  }
 0xe47   : > { %v5077_v54 = vmax.f32 %v5069_v53, 0.0  ;;  %6612 = vmatpush1.bf16.msra.mxu0 %v20847_v33  ;;  %v20883_v23 = vld [vmem:[#allocation21 + $0x2a8] ss:$16 sps:$4 sm:$0xff]   ;;  %v20891_v41 = vld [vmem:[#allocation21 + $0x2cc] ss:$16 sps:$4 sm:$0xff]  }
 0xe48   : > { %v24960_v30 = vpack.c.bf16 %v5076_v51, %v5074_v46  ;;  %6634 = vmatprep.subr.bf16.mxu0 %v20855_v9  ;;  %v20850_v51 = vld [vmem:[#allocation21 + $0x200] ss:$16 sps:$4 sm:$0xff]  }
 0xe49   : > { %v24962_v32 = vpack.c.bf16 %v5077_v54, %v5075_v26  ;;  %v20853_v26 = vld [vmem:[#allocation21 + $0x208] ss:$16 sps:$4 sm:$0xff]   ;;  %v20858_v54 = vld [vmem:[#allocation21 + $0x224] ss:$16 sps:$4 sm:$0xff]   ;;  %v20886_v9 = vld [vmem:[#allocation21 + $0x2c0] ss:$16 sps:$4 sm:$0xff]  }
 0xe4b   : > { %20065 = vmatprep.subr.bf16.mxu1 %v24962_v32 }
 0xe4c   : > { %20067 = vmatpush1.bf16.msra.mxu1 %v24960_v30 }
 0xe4d   : > { %20069 = vmatprep.subr.bf16.mxu1 %v24956_v4 }
 0xe4f   : > { %17611 = vmatmul.mubr.msk.f32.vlgmr.msra.gmra.mrb[72].mxu1 %vm3483_vm6, %v24320_v8 }
 0xe50   : > { %20071 = vmatpush1.bf16.msra.mxu1 %v24954_v27  ;;  %5150 = vmatprep.mubr.f32.mxu1 %v25563_v25 }
 0xe51   : > { %20073 = vmatprep.subr.bf16.mxu1 %v24962_v32 }
 0xe53   : > { %17612 = vmatmul.mubr.msk.f32.gmra.mrb[74].mxu1 %vm3483_vm6, %v24391_v38 }
 0xe54   : > { %20075 = vmatpush1.bf16.msra.mxu1 %v24960_v30  ;;  %5156 = vmatprep.mubr.f32.mxu1 %v25563_v25 }
 0xe55   : > { %6422 = vmatprep.subr.bf16.mxu1 %v20756_v34  ;;  %v20861_v34 = vld [vmem:[#allocation21 + $0x22c] ss:$16 sps:$4 sm:$0xff]  }
 0xe57   : > { %17613 = vmatmul.mubr.msk.f32.gmra.mrb[76].mxu1 %vm3483_vm6, %v24394_v39  ;;  %v20766_v39 = vld [vmem:[#allocation21 + $0x40] ss:$16 sps:$4 sm:$0xff]  }
 0xe58   : > { %5162 = vmatprep.mubr.f32.mxu1 %v25563_v25 }
 0xe5b   : > { %17614 = vmatmul.mubr.msk.f32.gmra.mrb[78].mxu1 %vm3483_vm6, %v24411_v43  ;;  %v20774_v43 = vld [vmem:[#allocation21 + $0x64] ss:$16 sps:$4 sm:$0xff]  }
 0xe5c   : > { %5241 = vmatprep.mubr.f32.mxu1 %v25563_v25 }
 0xe5f   : > { %17615 = vmatmul.mubr.msk.f32.vlgmr.msra.gmra.mrb[80].mxu1 %vm3483_vm6, %v24496_v61 }
 0xe60   : > { %5247 = vmatprep.mubr.f32.mxu1 %v25563_v25  ;;  %6423 = vmatpush1.bf16.msra.mxu1 %v20754_v3 }
 0xe61   : > { %6424 = vmatprep.subr.bf16.mxu1 %v20762_v10 }
 0xe63   : > { %17616 = vmatmul.mubr.msk.f32.gmra.mrb[82].mxu1 %vm3483_vm6, %v24523_v6 }
 0xe64   : > { %5253 = vmatprep.mubr.f32.mxu1 %v25563_v25  ;;  %6425 = vmatpush1.bf16.msra.mxu1 %v20760_v5  ;;  %v20856_v5 = vld [vmem:[#allocation21 + $0x220] ss:$16 sps:$4 sm:$0xff]  }
 0xe65   : > { %6426 = vmatprep.subr.bf16.mxu1 %v20768_v36  ;;  %v20859_v36 = vld [vmem:[#allocation21 + $0x228] ss:$16 sps:$4 sm:$0xff]  }
 0xe67   : > { %17617 = vmatmul.mubr.msk.f32.gmra.mrb[84].mxu1 %vm3483_vm6, %v24532_v13 }
 0xe68   : > { %5259 = vmatprep.mubr.f32.mxu1 %v25563_v25  ;;  %6427 = vmatpush1.bf16.msra.mxu1 %v20766_v39  ;;  %v20864_v39 = vld [vmem:[#allocation21 + $0x244] ss:$16 sps:$4 sm:$0xff]  }
 0xe69   : > { %6428 = vmatprep.subr.bf16.mxu1 %v20774_v43  ;;  %v20867_v43 = vld [vmem:[#allocation21 + $0x24c] ss:$16 sps:$4 sm:$0xff]  }
 0xe6b   : > { %17618 = vmatmul.mubr.msk.f32.gmra.mrb[86].mxu1 %vm3483_vm6, %v24550_v24 }
 0xe6c   : > { %6429 = vmatpush1.bf16.msra.mxu1 %v20772_v0 }
 0xe6d   : > { %6430 = vmatprep.subr.bf16.mxu1 %v20780_v17 }
 0xe70   : > { %6431 = vmatpush1.bf16.msra.mxu1 %v20778_v52 }
 0xe71   : > { %6432 = vmatprep.subr.bf16.mxu1 %v20786_v19 }
 0xe74   : > { %6433 = vmatpush1.bf16.msra.mxu1 %v20784_v20  ;;  %v20862_v20 = vld [vmem:[#allocation21 + $0x240] ss:$16 sps:$4 sm:$0xff]  }
 0xe75   : > { %6434 = vmatprep.subr.bf16.mxu1 %v20792_v7  ;;  %v20865_v7 = vld [vmem:[#allocation21 + $0x248] ss:$16 sps:$4 sm:$0xff]  }
 0xe78   : > { %6435 = vmatpush1.bf16.msra.mxu1 %v20790_v21  ;;  %v20870_v21 = vld [vmem:[#allocation21 + $0x264] ss:$16 sps:$4 sm:$0xff]  }
 0xe79   : > { %6436 = vmatprep.subr.bf16.mxu1 %v20798_v40  ;;  %v20873_v40 = vld [vmem:[#allocation21 + $0x26c] ss:$16 sps:$4 sm:$0xff]  }
 0xe7c   : > { %6437 = vmatpush1.bf16.msra.mxu1 %v20796_v44 }
 0xe7d   : > { %6438 = vmatprep.subr.bf16.mxu1 %v20804_v49 }
 0xe80   : > { %6439 = vmatpush1.bf16.msra.mxu1 %v20802_v50  ;;  %v20868_v50 = vld [vmem:[#allocation21 + $0x260] ss:$16 sps:$4 sm:$0xff]  }
 0xe81   : > { %6440 = vmatprep.subr.bf16.mxu1 %v20810_v55  ;;  %v20871_v55 = vld [vmem:[#allocation21 + $0x268] ss:$16 sps:$4 sm:$0xff]  }
 0xe84   : > { %6441 = vmatpush1.bf16.msra.mxu1 %v20808_v56  ;;  %v20876_v56 = vld [vmem:[#allocation21 + $0x284] ss:$16 sps:$4 sm:$0xff]  }
 0xe85   : > { %6442 = vmatprep.subr.bf16.mxu1 %v20816_v15  ;;  %v20879_v15 = vld [vmem:[#allocation21 + $0x28c] ss:$16 sps:$4 sm:$0xff]  }
 0xe88   : > { %6443 = vmatpush1.bf16.msra.mxu1 %v20814_v60 }
 0xe89   : > { %6444 = vmatprep.subr.bf16.mxu1 %v20822_v63 }
 0xe8c   : > { %6445 = vmatpush1.bf16.msra.mxu1 %v20820_v12 }
 0xe8d   : > { %6446 = vmatprep.subr.bf16.mxu1 %v20828_v2  ;;  %v20874_v2 = vld [vmem:[#allocation21 + $0x280] ss:$16 sps:$4 sm:$0xff]  }
 0xe90   : > { %6447 = vmatpush1.bf16.msra.mxu1 %v20826_v18  ;;  %v20877_v18 = vld [vmem:[#allocation21 + $0x288] ss:$16 sps:$4 sm:$0xff]  }
 0xe91   : > { %6448 = vmatprep.subr.bf16.mxu1 %v20834_v45 }
 0xe94   : > { %6449 = vmatpush1.bf16.msra.mxu1 %v20832_v47  ;;  %v20882_v47 = vld [vmem:[#allocation21 + $0x2a4] ss:$16 sps:$4 sm:$0xff]  }
 0xe95   : > { %6450 = vmatprep.subr.bf16.mxu1 %v20840_v48  ;;  %v20885_v48 = vld [vmem:[#allocation21 + $0x2ac] ss:$16 sps:$4 sm:$0xff]  }
 0xe98   : > { %6451 = vmatpush1.bf16.msra.mxu1 %v20838_v58  ;;  %v20880_v58 = vld [vmem:[#allocation21 + $0x2a0] ss:$16 sps:$4 sm:$0xff]  }
 0xe99   : > { %6452 = vmatprep.subr.bf16.mxu1 %v20846_v31  ;;  %v20888_v31 = vld [vmem:[#allocation21 + $0x2c4] ss:$16 sps:$4 sm:$0xff]  }
 0xe9c   : > { %6453 = vmatpush1.bf16.msra.mxu1 %v20844_v22 }
 0xe9d   : > { %6475 = vmatprep.subr.bf16.mxu1 %v20852_v35 }
 0xf22   : > { %v5146_v11 = vpop.f32.mrb[72].mxu1 }
 0xf23   : > { %v5148_v29 = vpop.f32.mrb[73].mxu1 }
 0xf26   : > { %v5152_v37 = vpop.f32.mrb[74].mxu1 }
 0xf27   : > { %v5169_v42 = vpack.c.bf16 %v5152_v37, %v5146_v11  ;;  %v5154_v53 = vpop.f32.mrb[75].mxu1  ;;  %v20889_v11 = vld [vmem:[#allocation21 + $0x2c8] ss:$16 sps:$4 sm:$0xff]   ;;  %v20894_v37 = vld [vmem:[#allocation21 + $0x2e4] ss:$16 sps:$4 sm:$0xff]  }
 0xf28   : > { %v5170_v46 = vpack.c.bf16 %v5154_v53, %v5148_v29  ;;  %v20892_v53 = vld [vmem:[#allocation21 + $0x2e0] ss:$16 sps:$4 sm:$0xff]  }
 0xf2a   : > { %6454 = vmatprep.mubr.bf16.mxu1 %v5170_v46  ;;  %6613 = vmatprep.mubr.bf16.mxu0 %v5170_v46  ;;  %v5158_v3 = vpop.f32.mrb[76].mxu1  ;;  %v20895_v46 = vld [vmem:[#allocation21 + $0x2e8] ss:$16 sps:$4 sm:$0xff]  }
 0xf2b   : > { %6455 = vmatmul.mubr.bf16.vlgmr.msra.gmra.mrb[88].mxu1 %v5169_v42  ;;  %6614 = vmatmul.mubr.bf16.vlgmr.msra.gmra.mrb[72].mxu0 %v5169_v42  ;;  %v5160_v10 = vpop.f32.mrb[77].mxu1  ;;  %v20897_v42 = vld [vmem:[#allocation21 + $0x2ec] ss:$16 sps:$4 sm:$0xff]  }
 0xf2c   : > { %6476 = vmatpush1.bf16.msra.mxu1 %v20850_v51  ;;  %6635 = vmatpush1.bf16.msra.mxu0 %v20853_v26  ;;  %v20900_v51 = vld [vmem:[#allocation21 + $0x304] ss:$16 sps:$4 sm:$0xff]   ;;  %v20903_v26 = vld [vmem:[#allocation21 + $0x30c] ss:$16 sps:$4 sm:$0xff]  }
 0xf2d   : > { %6477 = vmatprep.subr.bf16.mxu1 %v20858_v54  ;;  %6636 = vmatprep.subr.bf16.mxu0 %v20861_v34  ;;  %v20898_v54 = vld [vmem:[#allocation21 + $0x300] ss:$16 sps:$4 sm:$0xff]   ;;  %v20901_v34 = vld [vmem:[#allocation21 + $0x308] ss:$16 sps:$4 sm:$0xff]  }
 0xf2e   : > { %v5164_v0 = vpop.f32.mrb[78].mxu1 }
 0xf2f   : > { %v5171_v17 = vpack.c.bf16 %v5164_v0, %v5158_v3  ;;  %v5166_v52 = vpop.f32.mrb[79].mxu1  ;;  %v20906_v3 = vld [vmem:[#allocation21 + $0x324] ss:$16 sps:$4 sm:$0xff]   ;;  %v20910_v0 = vld [vmem:[#allocation21 + $0x340] ss:$16 sps:$4 sm:$0xff]  }
 0xf30   : > { %v5172_v19 = vpack.c.bf16 %v5166_v52, %v5160_v10  ;;  %6478 = vmatpush1.bf16.msra.mxu1 %v20856_v5  ;;  %6637 = vmatpush1.bf16.msra.mxu0 %v20859_v36  ;;  %v20909_v10 = vld [vmem:[#allocation21 + $0x32c] ss:$16 sps:$4 sm:$0xff]   ;;  %v20904_v5 = vld [vmem:[#allocation21 + $0x320] ss:$16 sps:$4 sm:$0xff]   ;;  %v20907_v36 = vld [vmem:[#allocation21 + $0x328] ss:$16 sps:$4 sm:$0xff]  }
 0xf31   : > { %6479 = vmatprep.subr.bf16.mxu1 %v20864_v39  ;;  %6638 = vmatprep.subr.bf16.mxu0 %v20867_v43  ;;  %v20912_v39 = vld [vmem:[#allocation21 + $0x344] ss:$16 sps:$4 sm:$0xff]   ;;  %v20915_v43 = vld [vmem:[#allocation21 + $0x34c] ss:$16 sps:$4 sm:$0xff]  }
 0xf32   : > { %6464 = vmatprep.mubr.bf16.mxu1 %v5172_v19  ;;  %6623 = vmatprep.mubr.bf16.mxu0 %v5172_v19  ;;  %v5243_v44 = vpop.f32.mrb[80].mxu1  ;;  %v20918_v52 = vld [vmem:[#allocation21 + $0x364] ss:$16 sps:$4 sm:$0xff]   ;;  %v20921_v19 = vld [vmem:[#allocation21 + $0x36c] ss:$16 sps:$4 sm:$0xff]  }
 0xf33   : > { %6465 = vmatmul.mubr.bf16.gmra.mrb[92].mxu1 %v5171_v17  ;;  %6624 = vmatmul.mubr.bf16.gmra.mrb[76].mxu0 %v5171_v17  ;;  %v5245_v49 = vpop.f32.mrb[81].mxu1  ;;  %v20913_v17 = vld [vmem:[#allocation21 + $0x348] ss:$16 sps:$4 sm:$0xff]  }
 0xf34   : > { %6480 = vmatpush1.bf16.msra.mxu1 %v20862_v20  ;;  %6639 = vmatpush1.bf16.msra.mxu0 %v20865_v7  ;;  %v20916_v20 = vld [vmem:[#allocation21 + $0x360] ss:$16 sps:$4 sm:$0xff]   ;;  %v20919_v7 = vld [vmem:[#allocation21 + $0x368] ss:$16 sps:$4 sm:$0xff]  }
 0xf35   : > { %6507 = vmatprep.mubr.bf16.mxu1 %v24956_v4  ;;  %6666 = vmatprep.mubr.bf16.mxu0 %v24956_v4 }
 0xf36   : > { %6481 = vmatprep.subr.bf16.mxu1 %v20870_v21  ;;  %6640 = vmatprep.subr.bf16.mxu0 %v20873_v40  ;;  %v5249_v60 = vpop.f32.mrb[82].mxu1  ;;  %v20924_v21 = vld [vmem:[#allocation21 + $0x384] ss:$16 sps:$4 sm:$0xff]   ;;  %v20927_v40 = vld [vmem:[#allocation21 + $0x38c] ss:$16 sps:$4 sm:$0xff]  }
 0xf37   : > { %v24995_v63 = vpack.c.bf16 %v5249_v60, %v5243_v44  ;;  %v5251_v12 = vpop.f32.mrb[83].mxu1  ;;  %v20922_v44 = vld [vmem:[#allocation21 + $0x380] ss:$16 sps:$4 sm:$0xff]   ;;  %v20936_v60 = vld [vmem:[#allocation21 + $0x3c4] ss:$16 sps:$4 sm:$0xff]  }
 0xf38   : > { %6482 = vmatpush1.bf16.msra.mxu1 %v20868_v50  ;;  %6641 = vmatpush1.bf16.msra.mxu0 %v20871_v55  ;;  %v24997_v45 = vpack.c.bf16 %v5251_v12, %v5245_v49  ;;  %v20925_v49 = vld [vmem:[#allocation21 + $0x388] ss:$16 sps:$4 sm:$0xff]   ;;  %v20930_v50 = vld [vmem:[#allocation21 + $0x3a4] ss:$16 sps:$4 sm:$0xff]   ;;  %v20933_v55 = vld [vmem:[#allocation21 + $0x3ac] ss:$16 sps:$4 sm:$0xff]  }
 0xf39   : > { %6483 = vmatprep.subr.bf16.mxu1 %v20876_v56  ;;  %6642 = vmatprep.subr.bf16.mxu0 %v20879_v15  ;;  %v20928_v56 = vld [vmem:[#allocation21 + $0x3a0] ss:$16 sps:$4 sm:$0xff]   ;;  %v20931_v15 = vld [vmem:[#allocation21 + $0x3a8] ss:$16 sps:$4 sm:$0xff]   ;;  %v20939_v12 = vld [vmem:[#allocation21 + $0x3cc] ss:$16 sps:$4 sm:$0xff]  }
 0xf3a   : > { %v5255_v59 = vpop.f32.mrb[84].mxu1 }
 0xf3b   : > { %v5257_v4 = vpop.f32.mrb[85].mxu1 }
 0xf3c   : > { %6484 = vmatpush1.bf16.msra.mxu1 %v20874_v2  ;;  %6643 = vmatpush1.bf16.msra.mxu0 %v20877_v18  ;;  %v20934_v2 = vld [vmem:[#allocation21 + $0x3c0] ss:$16 sps:$4 sm:$0xff]   ;;  %v20937_v18 = vld [vmem:[#allocation21 + $0x3c8] ss:$16 sps:$4 sm:$0xff]  }
 0xf3d   : > { %6485 = vmatprep.subr.bf16.mxu1 %v20882_v47  ;;  %6644 = vmatprep.subr.bf16.mxu0 %v20885_v48  ;;  %v20942_v47 = vld [vmem:[#allocation21 + $0x3e4] ss:$16 sps:$4 sm:$0xff]   ;;  %v20945_v48 = vld [vmem:[#allocation21 + $0x3ec] ss:$16 sps:$4 sm:$0xff]  }
 0xf3e   : > { %v5261_v22 = vpop.f32.mrb[86].mxu1 }
 0xf3f   : > { %v24999_v33 = vpack.c.bf16 %v5261_v22, %v5255_v59  ;;  %v5263_v35 = vpop.f32.mrb[87].mxu1  ;;  %v20940_v59 = vld [vmem:[#allocation21 + $0x3e0] ss:$16 sps:$4 sm:$0xff]   ;;  %v20954_v22 = vld [vmem:[#allocation21 + $0x424] ss:$16 sps:$4 sm:$0xff]  }
 0xf40   : > { %6486 = vmatpush1.bf16.msra.mxu1 %v20880_v58  ;;  %6645 = vmatpush1.bf16.msra.mxu0 %v20883_v23  ;;  %v25001_v29 = vpack.c.bf16 %v5263_v35, %v5257_v4  ;;  %v20943_v4 = vld [vmem:[#allocation21 + $0x3e8] ss:$16 sps:$4 sm:$0xff]   ;;  %v20948_v58 = vld [vmem:[#allocation21 + $0x404] ss:$16 sps:$4 sm:$0xff]   ;;  %v20951_v23 = vld [vmem:[#allocation21 + $0x40c] ss:$16 sps:$4 sm:$0xff]  }
 0xf41   : > { %6487 = vmatprep.subr.bf16.mxu1 %v20888_v31  ;;  %6646 = vmatprep.subr.bf16.mxu0 %v20891_v41  ;;  %v20946_v31 = vld [vmem:[#allocation21 + $0x400] ss:$16 sps:$4 sm:$0xff]   ;;  %v20949_v41 = vld [vmem:[#allocation21 + $0x408] ss:$16 sps:$4 sm:$0xff]   ;;  %v20957_v35 = vld [vmem:[#allocation21 + $0x42c] ss:$16 sps:$4 sm:$0xff]  }
 0xf44   : > { %6488 = vmatpush1.bf16.msra.mxu1 %v20886_v9  ;;  %6647 = vmatpush1.bf16.msra.mxu0 %v20889_v11  ;;  %v20952_v9 = vld [vmem:[#allocation21 + $0x420] ss:$16 sps:$4 sm:$0xff]   ;;  %v20955_v11 = vld [vmem:[#allocation21 + $0x428] ss:$16 sps:$4 sm:$0xff]  }
 0xf45   : > { %6489 = vmatprep.subr.bf16.mxu1 %v20894_v37  ;;  %6648 = vmatprep.subr.bf16.mxu0 %v20897_v42  ;;  %v20960_v37 = vld [vmem:[#allocation21 + $0x444] ss:$16 sps:$4 sm:$0xff]   ;;  %v20963_v42 = vld [vmem:[#allocation21 + $0x44c] ss:$16 sps:$4 sm:$0xff]  }
 0xf48   : > { %6490 = vmatpush1.bf16.msra.mxu1 %v20892_v53  ;;  %6649 = vmatpush1.bf16.msra.mxu0 %v20895_v46  ;;  %v20958_v53 = vld [vmem:[#allocation21 + $0x440] ss:$16 sps:$4 sm:$0xff]   ;;  %v20961_v46 = vld [vmem:[#allocation21 + $0x448] ss:$16 sps:$4 sm:$0xff]  }
 0xf49   : > { %6491 = vmatprep.subr.bf16.mxu1 %v20900_v51  ;;  %6650 = vmatprep.subr.bf16.mxu0 %v20903_v26  ;;  %v20966_v51 = vld [vmem:[#allocation21 + $0x464] ss:$16 sps:$4 sm:$0xff]   ;;  %v20967_v26 = vld [vmem:[#allocation21 + $0x468] ss:$16 sps:$4 sm:$0xff]  }
 0xf4c   : > { %6492 = vmatpush1.bf16.msra.mxu1 %v20898_v54  ;;  %6651 = vmatpush1.bf16.msra.mxu0 %v20901_v34  ;;  %v20972_v54 = vld [vmem:[#allocation21 + $0x484] ss:$16 sps:$4 sm:$0xff]   ;;  %v20975_v34 = vld [vmem:[#allocation21 + $0x48c] ss:$16 sps:$4 sm:$0xff]  }
 0xf4d   : > { %6493 = vmatprep.subr.bf16.mxu1 %v20906_v3  ;;  %6652 = vmatprep.subr.bf16.mxu0 %v20909_v10  ;;  %v20970_v3 = vld [vmem:[#allocation21 + $0x480] ss:$16 sps:$4 sm:$0xff]   ;;  %v20973_v10 = vld [vmem:[#allocation21 + $0x488] ss:$16 sps:$4 sm:$0xff]  }
 0xf50   : > { %6494 = vmatpush1.bf16.msra.mxu1 %v20904_v5  ;;  %6653 = vmatpush1.bf16.msra.mxu0 %v20907_v36  ;;  %v20978_v5 = vld [vmem:[#allocation21 + $0x4a4] ss:$16 sps:$4 sm:$0xff]   ;;  %v20976_v36 = vld [vmem:[#allocation21 + $0x4a0] ss:$16 sps:$4 sm:$0xff]  }
 0xf51   : > { %6495 = vmatprep.subr.bf16.mxu1 %v20912_v39  ;;  %6654 = vmatprep.subr.bf16.mxu0 %v20915_v43  ;;  %v20979_v39 = vld [vmem:[#allocation21 + $0x4a8] ss:$16 sps:$4 sm:$0xff]   ;;  %v20984_v43 = vld [vmem:[#allocation21 + $0x4c4] ss:$16 sps:$4 sm:$0xff]  }
 0xf54   : > { %6496 = vmatpush1.bf16.msra.mxu1 %v20910_v0  ;;  %6655 = vmatpush1.bf16.msra.mxu0 %v20913_v17  ;;  %v20987_v0 = vld [vmem:[#allocation21 + $0x4cc] ss:$16 sps:$4 sm:$0xff]   ;;  %v20982_v17 = vld [vmem:[#allocation21 + $0x4c0] ss:$16 sps:$4 sm:$0xff]  }
 0xf55   : > { %6497 = vmatprep.subr.bf16.mxu1 %v20918_v52  ;;  %6656 = vmatprep.subr.bf16.mxu0 %v20921_v19  ;;  %v20990_v52 = vld [vmem:[#allocation21 + $0x4e4] ss:$16 sps:$4 sm:$0xff]   ;;  %v20993_v19 = vld [vmem:[#allocation21 + $0x4ec] ss:$16 sps:$4 sm:$0xff]  }
 0xf58   : > { %6498 = vmatpush1.bf16.msra.mxu1 %v20916_v20  ;;  %6657 = vmatpush1.bf16.msra.mxu0 %v20919_v7  ;;  %v20988_v20 = vld [vmem:[#allocation21 + $0x4e0] ss:$16 sps:$4 sm:$0xff]   ;;  %v20991_v7 = vld [vmem:[#allocation21 + $0x4e8] ss:$16 sps:$4 sm:$0xff]  }
 0xf59   : > { %6499 = vmatprep.subr.bf16.mxu1 %v20924_v21  ;;  %6658 = vmatprep.subr.bf16.mxu0 %v20927_v40  ;;  %v20996_v21 = vld [vmem:[#allocation21 + $0x504] ss:$16 sps:$4 sm:$0xff]   ;;  %v20999_v40 = vld [vmem:[#allocation21 + $0x50c] ss:$16 sps:$4 sm:$0xff]  }
 0xf5c   : > { %6500 = vmatpush1.bf16.msra.mxu1 %v20922_v44  ;;  %6659 = vmatpush1.bf16.msra.mxu0 %v20925_v49  ;;  %v20994_v44 = vld [vmem:[#allocation21 + $0x500] ss:$16 sps:$4 sm:$0xff]   ;;  %v20997_v49 = vld [vmem:[#allocation21 + $0x508] ss:$16 sps:$4 sm:$0xff]  }
 0xf5d   : > { %6501 = vmatprep.subr.bf16.mxu1 %v20930_v50  ;;  %6660 = vmatprep.subr.bf16.mxu0 %v20933_v55  ;;  %v21002_v50 = vld [vmem:[#allocation21 + $0x524] ss:$16 sps:$4 sm:$0xff]   ;;  %v21005_v55 = vld [vmem:[#allocation21 + $0x52c] ss:$16 sps:$4 sm:$0xff]  }
 0xf60   : > { %6502 = vmatpush1.bf16.msra.mxu1 %v20928_v56  ;;  %6661 = vmatpush1.bf16.msra.mxu0 %v20931_v15  ;;  %v21000_v56 = vld [vmem:[#allocation21 + $0x520] ss:$16 sps:$4 sm:$0xff]   ;;  %v21003_v15 = vld [vmem:[#allocation21 + $0x528] ss:$16 sps:$4 sm:$0xff]  }
 0xf61   : > { %6503 = vmatprep.subr.bf16.mxu1 %v20936_v60  ;;  %6662 = vmatprep.subr.bf16.mxu0 %v20939_v12  ;;  %v21008_v60 = vld [vmem:[#allocation21 + $0x544] ss:$16 sps:$4 sm:$0xff]   ;;  %v21011_v12 = vld [vmem:[#allocation21 + $0x54c] ss:$16 sps:$4 sm:$0xff]  }
 0xf64   : > { %6504 = vmatpush1.bf16.msra.mxu1 %v20934_v2  ;;  %6663 = vmatpush1.bf16.msra.mxu0 %v20937_v18  ;;  %v21006_v2 = vld [vmem:[#allocation21 + $0x540] ss:$16 sps:$4 sm:$0xff]   ;;  %v21009_v18 = vld [vmem:[#allocation21 + $0x548] ss:$16 sps:$4 sm:$0xff]  }
 0xf65   : > { %6505 = vmatprep.subr.bf16.mxu1 %v20942_v47  ;;  %6664 = vmatprep.subr.bf16.mxu0 %v20945_v48  ;;  %v21014_v47 = vld [vmem:[#allocation21 + $0x564] ss:$16 sps:$4 sm:$0xff]   ;;  %v21017_v48 = vld [vmem:[#allocation21 + $0x56c] ss:$16 sps:$4 sm:$0xff]  }
 0xf68   : > { %6506 = vmatpush1.bf16.msra.mxu1 %v20940_v59  ;;  %6665 = vmatpush1.bf16.msra.mxu0 %v20943_v4  ;;  %v21012_v59 = vld [vmem:[#allocation21 + $0x560] ss:$16 sps:$4 sm:$0xff]   ;;  %v21015_v4 = vld [vmem:[#allocation21 + $0x568] ss:$16 sps:$4 sm:$0xff]  }
 0xf69   : > { %6528 = vmatprep.subr.bf16.mxu1 %v20948_v58  ;;  %6687 = vmatprep.subr.bf16.mxu0 %v20951_v23  ;;  %v21020_v58 = vld [vmem:[#allocation21 + $0x584] ss:$16 sps:$4 sm:$0xff]   ;;  %v21023_v23 = vld [vmem:[#allocation21 + $0x58c] ss:$16 sps:$4 sm:$0xff]  }
 0xf6b   : > { %6508 = vmatmul.mubr.bf16.vlgmr.msra.gmra.mrb[88].mxu1 %v24954_v27  ;;  %6667 = vmatmul.mubr.bf16.vlgmr.msra.gmra.mrb[72].mxu0 %v24954_v27  ;;  %v20969_v27 = vld [vmem:[#allocation21 + $0x46c] ss:$16 sps:$4 sm:$0xff]  }
 0xf6c   : > { %6517 = vmatprep.mubr.bf16.mxu1 %v24962_v32  ;;  %6529 = vmatpush1.bf16.msra.mxu1 %v20946_v31  ;;  %v21018_v31 = vld [vmem:[#allocation21 + $0x580] ss:$16 sps:$4 sm:$0xff]  }
 0xf6d   : > { %6676 = vmatprep.mubr.bf16.mxu0 %v24962_v32  ;;  %6688 = vmatpush1.bf16.msra.mxu0 %v20949_v41  ;;  %v20964_v32 = vld [vmem:[#allocation21 + $0x460] ss:$16 sps:$4 sm:$0xff]   ;;  %v21021_v41 = vld [vmem:[#allocation21 + $0x588] ss:$16 sps:$4 sm:$0xff]  }
 0xf6e   : > { %6530 = vmatprep.subr.bf16.mxu1 %v20954_v22  ;;  %6689 = vmatprep.subr.bf16.mxu0 %v20957_v35  ;;  %v21026_v22 = vld [vmem:[#allocation21 + $0x5a4] ss:$16 sps:$4 sm:$0xff]   ;;  %v21029_v35 = vld [vmem:[#allocation21 + $0x5ac] ss:$16 sps:$4 sm:$0xff]  }
 0xf70   : > { %6531 = vmatpush1.bf16.msra.mxu1 %v20952_v9  ;;  %v21024_v9 = vld [vmem:[#allocation21 + $0x5a0] ss:$16 sps:$4 sm:$0xff]  }
 0xf71   : > { %6690 = vmatpush1.bf16.msra.mxu0 %v20955_v11  ;;  %6532 = vmatprep.subr.bf16.mxu1 %v20960_v37  ;;  %v21027_v11 = vld [vmem:[#allocation21 + $0x5a8] ss:$16 sps:$4 sm:$0xff]   ;;  %v21032_v37 = vld [vmem:[#allocation21 + $0x5c4] ss:$16 sps:$4 sm:$0xff]  }
 0xf72   : > { %6691 = vmatprep.subr.bf16.mxu0 %v20963_v42  ;;  %v21035_v42 = vld [vmem:[#allocation21 + $0x5cc] ss:$16 sps:$4 sm:$0xff]  }
 0xf73   : > { %6518 = vmatmul.mubr.bf16.gmra.mrb[92].mxu1 %v24960_v30  ;;  %6677 = vmatmul.mubr.bf16.gmra.mrb[76].mxu0 %v24960_v30  ;;  %v20981_v30 = vld [vmem:[#allocation21 + $0x4ac] ss:$16 sps:$4 sm:$0xff]  }
 0xf74   : > { %6533 = vmatpush1.bf16.msra.mxu1 %v20958_v53  ;;  %6560 = vmatprep.mubr.bf16.mxu1 %v24997_v45  ;;  %v21030_v53 = vld [vmem:[#allocation21 + $0x5c0] ss:$16 sps:$4 sm:$0xff]  }
 0xf75   : > { %6692 = vmatpush1.bf16.msra.mxu0 %v20961_v46  ;;  %6534 = vmatprep.subr.bf16.mxu1 %v20966_v51  ;;  %v21033_v46 = vld [vmem:[#allocation21 + $0x5c8] ss:$16 sps:$4 sm:$0xff]   ;;  %v21038_v51 = vld [vmem:[#allocation21 + $0x5e4] ss:$16 sps:$4 sm:$0xff]  }
 0xf76   : > { %6693 = vmatprep.subr.bf16.mxu0 %v20969_v27  ;;  %6719 = vmatprep.mubr.bf16.mxu0 %v24997_v45  ;;  %v20985_v45 = vld [vmem:[#allocation21 + $0x4c8] ss:$16 sps:$4 sm:$0xff]   ;;  %v21041_v27 = vld [vmem:[#allocation21 + $0x5ec] ss:$16 sps:$4 sm:$0xff]  }
 0xf78   : > { %6535 = vmatpush1.bf16.msra.mxu1 %v20964_v32  ;;  %v21036_v32 = vld [vmem:[#allocation21 + $0x5e0] ss:$16 sps:$4 sm:$0xff]  }
 0xf79   : > { %6694 = vmatpush1.bf16.msra.mxu0 %v20967_v26  ;;  %6536 = vmatprep.subr.bf16.mxu1 %v20972_v54  ;;  %v21039_v26 = vld [vmem:[#allocation21 + $0x5e8] ss:$16 sps:$4 sm:$0xff]   ;;  %v5078_v54 = vld [vmem:[#allocation22] sm:$0xf] }
 0xf7a   : > { %6695 = vmatprep.subr.bf16.mxu0 %v20975_v34  ;;  %v5079_v34 = vld [vmem:[#allocation24] sm:$0xf] }
 0xf7c   : > { %6537 = vmatpush1.bf16.msra.mxu1 %v20970_v3  ;;  %v6744_v3 = vrot.slane %v5078_v54, %v24945_v28 }
 0xf7d   : > { %6696 = vmatpush1.bf16.msra.mxu0 %v20973_v10  ;;  %6538 = vmatprep.subr.bf16.mxu1 %v20978_v5  ;;  %v6748_v10 = vrot.slane %v5078_v54, %v24948_v62 }
 0xf7e   : > { %6697 = vmatprep.subr.bf16.mxu0 %v20981_v30 }
 0xf80   : > { %6539 = vmatpush1.bf16.msra.mxu1 %v20976_v36 }
 0xf81   : > { %6698 = vmatpush1.bf16.msra.mxu0 %v20979_v39  ;;  %6540 = vmatprep.subr.bf16.mxu1 %v20984_v43 }
 0xf82   : > { %6699 = vmatprep.subr.bf16.mxu0 %v20987_v0  ;;  %v25024_v0 = vsub.s32 3, %v24308_v1 }
 0xf84   : > { %6541 = vmatpush1.bf16.msra.mxu1 %v20982_v17 }
 0xf85   : > { %6700 = vmatpush1.bf16.msra.mxu0 %v20985_v45  ;;  %6542 = vmatprep.subr.bf16.mxu1 %v20990_v52 }
 0xf86   : > { %6701 = vmatprep.subr.bf16.mxu0 %v20993_v19 }
 0xf88   : > { %6543 = vmatpush1.bf16.msra.mxu1 %v20988_v20 }
 0xf89   : > { %6702 = vmatpush1.bf16.msra.mxu0 %v20991_v7  ;;  %6544 = vmatprep.subr.bf16.mxu1 %v20996_v21 }
 0xf8a   : > { %6703 = vmatprep.subr.bf16.mxu0 %v20999_v40 }
 0xf8c   : > { %6545 = vmatpush1.bf16.msra.mxu1 %v20994_v44  ;;  %v25031_v44 = vsub.s32 2, %v24308_v1 }
 0xf8d   : > { %6704 = vmatpush1.bf16.msra.mxu0 %v20997_v49  ;;  %6546 = vmatprep.subr.bf16.mxu1 %v21002_v50  ;;  %v6756_v50 = vrot.slane %v5078_v54, %v25024_v0 }
 0xf8e   : > { %6705 = vmatprep.subr.bf16.mxu0 %v21005_v55 }
 0xf90   : > { %6547 = vmatpush1.bf16.msra.mxu1 %v21000_v56 }
 0xf91   : > { %6706 = vmatpush1.bf16.msra.mxu0 %v21003_v15  ;;  %6548 = vmatprep.subr.bf16.mxu1 %v21008_v60 }
 0xf92   : > { %6707 = vmatprep.subr.bf16.mxu0 %v21011_v12 }
 0xf94   : > { %6549 = vmatpush1.bf16.msra.mxu1 %v21006_v2 }
 0xf95   : > { %6708 = vmatpush1.bf16.msra.mxu0 %v21009_v18  ;;  %6550 = vmatprep.subr.bf16.mxu1 %v21014_v47  ;;  %v6752_v47 = vrot.slane %v5078_v54, %v25031_v44 }
 0xf96   : > { %6709 = vmatprep.subr.bf16.mxu0 %v21017_v48 }
 0xf98   : > { %6551 = vmatpush1.bf16.msra.mxu1 %v21012_v59 }
 0xf99   : > { %6710 = vmatpush1.bf16.msra.mxu0 %v21015_v4  ;;  %6552 = vmatprep.subr.bf16.mxu1 %v21020_v58 }
 0xf9a   : > { %6711 = vmatprep.subr.bf16.mxu0 %v21023_v23  ;;  %v6793_v23 = vrot.slane %v5079_v34, %v25024_v0 }
 0xf9c   : > { %6553 = vmatpush1.bf16.msra.mxu1 %v21018_v31 }
 0xf9d   : > { %6712 = vmatpush1.bf16.msra.mxu0 %v21021_v41  ;;  %6554 = vmatprep.subr.bf16.mxu1 %v21026_v22 }
 0xf9e   : > { %6713 = vmatprep.subr.bf16.mxu0 %v21029_v35 }
 0xfa0   : > { %6555 = vmatpush1.bf16.msra.mxu1 %v21024_v9 }
 0xfa1   : > { %6714 = vmatpush1.bf16.msra.mxu0 %v21027_v11  ;;  %6556 = vmatprep.subr.bf16.mxu1 %v21032_v37 }
 0xfa2   : > { %6715 = vmatprep.subr.bf16.mxu0 %v21035_v42 }
 0xfa4   : > { %6557 = vmatpush1.bf16.msra.mxu1 %v21030_v53 }
 0xfa5   : > { %6716 = vmatpush1.bf16.msra.mxu0 %v21033_v46  ;;  %6558 = vmatprep.subr.bf16.mxu1 %v21038_v51  ;;  %v6789_v46 = vrot.slane %v5079_v34, %v25031_v44 }
 0xfa6   : > { %6717 = vmatprep.subr.bf16.mxu0 %v21041_v27 }
 0xfa8   : > { %6559 = vmatpush1.bf16.msra.mxu1 %v21036_v32 }
 0xfa9   : > { %6718 = vmatpush1.bf16.msra.mxu0 %v21039_v26 }
 0xfab   : > { %6561 = vmatmul.mubr.bf16.vlgmr.msra.gmra.mrb[88].mxu1 %v24995_v63 }
 0xfac   : > { %6720 = vmatmul.mubr.bf16.vlgmr.msra.gmra.mrb[72].mxu0 %v24995_v63  ;;  %6570 = vmatprep.mubr.bf16.mxu1 %v25001_v29  ;;  %v6785_v63 = vrot.slane %v5079_v34, %v24948_v62 }
 0xfad   : > { %6729 = vmatprep.mubr.bf16.mxu0 %v25001_v29  ;;  %v6781_v29 = vrot.slane %v5079_v34, %v24945_v28 }
 0xfb3   : > { %6571 = vmatmul.mubr.bf16.gmra.mrb[92].mxu1 %v24999_v33 }
 0xfb4   : > { %6730 = vmatmul.mubr.bf16.gmra.mrb[76].mxu0 %v24999_v33  ;;  %6894 = vmatprep.mubr.f32.mxu1 %v25563_v25 }
 0xfb5   : > { %7190 = vmatprep.mubr.f32.mxu0 %v25563_v25 }
0x107e   : > { %v6562_v5 = vpop.f32.mrb[88].mxu1 }
0x107f   : > { %v6761_v30 = vmul.f32 %v6744_v3, %v6562_v5  ;;  %v6721_v36 = vpop.f32.mrb[72].mxu0  ;;  %v6564_v39 = vpop.f32.mrb[89].mxu1 }
0x1080   : > { %v6762_v43 = vmul.f32 %v6748_v10, %v6564_v39  ;;  %v6723_v33 = vpop.f32.mrb[73].mxu0  ;;  %v6566_v17 = vpop.f32.mrb[90].mxu1  ;;  %v6763_v54 = vmul.f32 %v6752_v47, %v6721_v36 }
0x1081   : > { %v6765_v45 = vmul.f32 %v6744_v3, %v6566_v17  ;;  %v6725_v52 = vpop.f32.mrb[74].mxu0  ;;  %v6568_v19 = vpop.f32.mrb[91].mxu1  ;;  %v25028_v40 = vadd.f32 %v6781_v29, %v6761_v30  ;;  %v6764_v58 = vmul.f32 %v6756_v50, %v6723_v33 }
0x1082   : > { %v25026_v20 = vadd.f32 %v6785_v63, %v6762_v43  ;;  %v6766_v7 = vmul.f32 %v6748_v10, %v6568_v19  ;;  %v6727_v21 = vpop.f32.mrb[75].mxu0  ;;  %v6767_v11 = vmul.f32 %v6752_v47, %v6725_v52  ;;  %v25073_v19 = vadd.f32 %v6789_v46, %v6763_v54 }
0x1083   : > { %v25033_v49 = vadd.f32 %v6781_v29, %v6765_v45  ;;  %v6768_v12 = vmul.f32 %v6756_v50, %v6727_v21  ;;  %v6814_v18 = vmax.f32 %v25028_v40, 0.0  ;;  %v25061_v43 = vadd.f32 %v6793_v23, %v6764_v58 }
0x1084   : > { %v25036_v55 = vadd.f32 %v6785_v63, %v6766_v7  ;;  %v6815_v15 = vmax.f32 %v25026_v20, 0.0  ;;  %v25065_v34 = vadd.f32 %v6789_v46, %v6767_v11 }
0x1085   : > { %v6818_v56 = vmax.f32 %v25033_v49, 0.0  ;;  %v25053_v51 = vadd.f32 %v6793_v23, %v6768_v12 }
0x1086   : > { %v6819_v60 = vmax.f32 %v25036_v55, 0.0  ;;  %v6572_v2 = vpop.f32.mrb[92].mxu1 }
0x1087   : > { %v6769_v48 = vmul.f32 %v6744_v3, %v6572_v2  ;;  %v6731_v59 = vpop.f32.mrb[76].mxu0  ;;  %v6574_v4 = vpop.f32.mrb[93].mxu1  ;;  %v20078_v9 = vpack.c.bf16 %v6818_v56, %v6814_v18  ;;  %v6820_v2 = vmax.f32 %v25065_v34, 0.0 }
0x1088   : > { %v6770_v31 = vmul.f32 %v6748_v10, %v6574_v4  ;;  %v6733_v41 = vpop.f32.mrb[77].mxu0  ;;  %v6576_v22 = vpop.f32.mrb[94].mxu1  ;;  %v20076_v35 = vpack.c.bf16 %v6819_v60, %v6815_v15  ;;  %v6771_v21 = vmul.f32 %v6752_v47, %v6731_v59  ;;  %v6816_v59 = vmax.f32 %v25073_v19, 0.0 }
0x1089   : > { %v6773_v37 = vmul.f32 %v6744_v3, %v6576_v22  ;;  %v6735_v42 = vpop.f32.mrb[78].mxu0  ;;  %v6578_v53 = vpop.f32.mrb[95].mxu1  ;;  %v25057_v5 = vadd.f32 %v6781_v29, %v6769_v48  ;;  %v6772_v3 = vmul.f32 %v6756_v50, %v6733_v41 }
0x108a   : > { %v25055_v27 = vadd.f32 %v6785_v63, %v6770_v31  ;;  %v6774_v32 = vmul.f32 %v6748_v10, %v6578_v53  ;;  %v6737_v26 = vpop.f32.mrb[79].mxu0  ;;  %20077 = vmatprep.subr.bf16.mxu1 %v20076_v35  ;;  %v6775_v45 = vmul.f32 %v6752_v47, %v6735_v42  ;;  %v6821_v10 = vmax.f32 %v25053_v51, 0.0 }
0x108b   : > { %v25059_v30 = vadd.f32 %v6781_v29, %v6773_v37  ;;  %v6776_v39 = vmul.f32 %v6756_v50, %v6737_v26  ;;  %20079 = vmatpush1.bf16.msra.mxu1 %v20078_v9  ;;  %v6822_v7 = vmax.f32 %v25057_v5, 0.0  ;;  %v25077_v50 = vadd.f32 %v6793_v23, %v6772_v3 }
0x108c   : > { %v25063_v33 = vadd.f32 %v6785_v63, %v6774_v32  ;;  %v6823_v36 = vmax.f32 %v25055_v27, 0.0  ;;  %v6817_v63 = vmax.f32 %v25061_v43, 0.0  ;;  %v25082_v4 = vadd.f32 %v6789_v46, %v6775_v45 }
0x108d   : > { %v6826_v17 = vmax.f32 %v25059_v30, 0.0  ;;  %v25071_v29 = vadd.f32 %v6793_v23, %v6776_v39  ;;  %v25090_v23 = vadd.f32 %v6789_v46, %v6771_v21  ;;  %v6825_v31 = vmax.f32 %v25077_v50, 0.0 }
0x108e   : > { %v6827_v52 = vmax.f32 %v25063_v33, 0.0  ;;  %v20084_v47 = vpack.c.bf16 %v6821_v10, %v6817_v63  ;;  %v20086_v41 = vpack.c.bf16 %v6820_v2, %v6816_v59  ;;  %v6828_v22 = vmax.f32 %v25082_v4, 0.0 }
0x108f   : > { %v20082_v48 = vpack.c.bf16 %v6826_v17, %v6822_v7  ;;  %v6829_v58 = vmax.f32 %v25071_v29, 0.0  ;;  %v6824_v9 = vmax.f32 %v25090_v23, 0.0  ;;  %v21044_v29 = vld [vmem:[#allocation25 + $0x4] ss:$16 sps:$4 sm:$0xff]  }
0x1090   : > { %v20080_v12 = vpack.c.bf16 %v6827_v52, %v6823_v36 }
0x1091   : > { %v20088_v35 = vpack.c.bf16 %v6829_v58, %v6825_v31  ;;  %v20090_v11 = vpack.c.bf16 %v6828_v22, %v6824_v9 }
0x1092   : > { %20081 = vmatprep.subr.bf16.mxu1 %v20080_v12 }
0x1093   : > { %20083 = vmatpush1.bf16.msra.mxu1 %v20082_v48 }
0x1094   : > { %20085 = vmatprep.subr.bf16.mxu1 %v20084_v47 }
0x1096   : > { %17811 = vmatmul.mubr.msk.f32.vlgmr.msra.gmra.mrb[96].mxu1 %vm3483_vm6, %v24496_v61 }
0x1097   : > { %20087 = vmatpush1.bf16.msra.mxu1 %v20086_v41  ;;  %6900 = vmatprep.mubr.f32.mxu1 %v25563_v25 }
0x1098   : > { %20089 = vmatprep.subr.bf16.mxu1 %v20088_v35 }
0x109a   : > { %17812 = vmatmul.mubr.msk.f32.gmra.mrb[98].mxu1 %vm3483_vm6, %v24523_v6 }
0x109b   : > { %20091 = vmatpush1.bf16.msra.mxu1 %v20090_v11  ;;  %6906 = vmatprep.mubr.f32.mxu1 %v25563_v25 }
0x109e   : > { %17813 = vmatmul.mubr.msk.f32.gmra.mrb[100].mxu1 %vm3483_vm6, %v24532_v13 }
0x109f   : > { %6912 = vmatprep.mubr.f32.mxu1 %v25563_v25 }
0x10a2   : > { %17814 = vmatmul.mubr.msk.f32.gmra.mrb[102].mxu1 %vm3483_vm6, %v24550_v24 }
0x10a3   : > { %6983 = vmatprep.mubr.f32.mxu1 %v25563_v25 }
0x10a6   : > { %17815 = vmatmul.mubr.msk.f32.vlgmr.msra.gmra.mrb[104].mxu1 %vm3483_vm6, %v24496_v61 }
0x10a7   : > { %6989 = vmatprep.mubr.f32.mxu1 %v25563_v25 }
0x10aa   : > { %17816 = vmatmul.mubr.msk.f32.gmra.mrb[106].mxu1 %vm3483_vm6, %v24523_v6 }
0x10ab   : > { %6995 = vmatprep.mubr.f32.mxu1 %v25563_v25 }
0x10ae   : > { %17817 = vmatmul.mubr.msk.f32.gmra.mrb[108].mxu1 %vm3483_vm6, %v24532_v13 }
0x10af   : > { %7001 = vmatprep.mubr.f32.mxu1 %v25563_v25 }
0x10b2   : > { %17818 = vmatmul.mubr.msk.f32.gmra.mrb[110].mxu1 %vm3483_vm6, %v24550_v24 }
0x10b3   : > { %7066 = vmatprep.mubr.bf16.mxu1 %v23533_v16 }
0x1169   : > { %v6896_v37 = vpop.f32.mrb[96].mxu1 }
0x116a   : > { %v6898_v42 = vpop.f32.mrb[97].mxu1  ;;  %v7008_v46 = vmax.f32 %v6814_v18, %v6896_v37 }
0x116b   : > { %v7009_v13 = vmax.f32 %v6815_v15, %v6898_v42  ;;  %v21048_v42 = vld [vmem:[#allocation25 + $0x20] ss:$16 sps:$4 sm:$0xff]  }
0x116d   : > { %v6902_v53 = vpop.f32.mrb[98].mxu1 }
0x116e   : > { %v7012_v27 = vmax.f32 %v6818_v56, %v6902_v53  ;;  %v6904_v32 = vpop.f32.mrb[99].mxu1 }
0x116f   : > { %v7013_v26 = vmax.f32 %v6819_v60, %v6904_v32  ;;  %v21054_v32 = vld [vmem:[#allocation25 + $0x40] ss:$16 sps:$4 sm:$0xff]  }
0x1170   : > { %v7024_v54 = vpack.c.bf16 %v7012_v27, %v7008_v46  ;;  %v21056_v46 = vld [vmem:[#allocation25 + $0x44] ss:$16 sps:$4 sm:$0xff]   ;;  %v21047_v27 = vld [vmem:[#allocation25 + $0xc] ss:$16 sps:$4 sm:$0xff]  }
0x1171   : > { %v7025_v24 = vpack.c.bf16 %v7013_v26, %v7009_v13  ;;  %v6908_v5 = vpop.f32.mrb[100].mxu1  ;;  %v21062_v13 = vld [vmem:[#allocation25 + $0x64] ss:$16 sps:$4 sm:$0xff]   ;;  %v21060_v26 = vld [vmem:[#allocation25 + $0x60] ss:$16 sps:$4 sm:$0xff]  }
0x1172   : > { %v6910_v39 = vpop.f32.mrb[101].mxu1  ;;  %v7016_v33 = vmax.f32 %v6822_v7, %v6908_v5  ;;  %v21053_v5 = vld [vmem:[#allocation25 + $0x2c] ss:$16 sps:$4 sm:$0xff]  }
0x1173   : > { %7034 = vmatprep.subr.bf16.mxu1 %v7025_v24  ;;  %v7017_v56 = vmax.f32 %v6823_v36, %v6910_v39  ;;  %v21045_v24 = vld [vmem:[#allocation25 + $0x8] ss:$16 sps:$4 sm:$0xff]   ;;  %v21066_v39 = vld [vmem:[#allocation25 + $0x80] ss:$16 sps:$4 sm:$0xff]  }
0x1174   : > { %7035 = vmatpush1.bf16.msra.mxu1 %v7024_v54  ;;  %v21068_v54 = vld [vmem:[#allocation25 + $0x84] ss:$16 sps:$4 sm:$0xff]  }
0x1175   : > { %v6914_v3 = vpop.f32.mrb[102].mxu1 }
0x1176   : > { %v7020_v40 = vmax.f32 %v6826_v17, %v6914_v3  ;;  %v6916_v49 = vpop.f32.mrb[103].mxu1  ;;  %v21074_v3 = vld [vmem:[#allocation25 + $0xa4] ss:$16 sps:$4 sm:$0xff]  }
0x1177   : > { %v7021_v18 = vmax.f32 %v6827_v52, %v6916_v49  ;;  %v21072_v49 = vld [vmem:[#allocation25 + $0xa0] ss:$16 sps:$4 sm:$0xff]  }
0x1178   : > { %v7028_v45 = vpack.c.bf16 %v7020_v40, %v7016_v33  ;;  %v21051_v33 = vld [vmem:[#allocation25 + $0x28] ss:$16 sps:$4 sm:$0xff]   ;;  %v21059_v40 = vld [vmem:[#allocation25 + $0x4c] ss:$16 sps:$4 sm:$0xff]  }
0x1179   : > { %v7029_v20 = vpack.c.bf16 %v7021_v18, %v7017_v56  ;;  %v6985_v15 = vpop.f32.mrb[104].mxu1  ;;  %v21080_v56 = vld [vmem:[#allocation25 + $0xc4] ss:$16 sps:$4 sm:$0xff]   ;;  %v21057_v18 = vld [vmem:[#allocation25 + $0x48] ss:$16 sps:$4 sm:$0xff]  }
0x117a   : > { %v6987_v19 = vpop.f32.mrb[105].mxu1  ;;  %v7010_v60 = vmax.f32 %v6816_v59, %v6985_v15  ;;  %v21086_v15 = vld [vmem:[#allocation25 + $0xe4] ss:$16 sps:$4 sm:$0xff]  }
0x117b   : > { %7036 = vmatprep.subr.bf16.mxu1 %v7029_v20  ;;  %v7011_v7 = vmax.f32 %v6817_v63, %v6987_v19  ;;  %v21078_v20 = vld [vmem:[#allocation25 + $0xc0] ss:$16 sps:$4 sm:$0xff]   ;;  %v21063_v19 = vld [vmem:[#allocation25 + $0x68] ss:$16 sps:$4 sm:$0xff]  }
0x117c   : > { %7037 = vmatpush1.bf16.msra.mxu1 %v7028_v45  ;;  %v21065_v45 = vld [vmem:[#allocation25 + $0x6c] ss:$16 sps:$4 sm:$0xff]  }
0x117d   : > { %v6991_v55 = vpop.f32.mrb[106].mxu1 }
0x117e   : > { %v7014_v21 = vmax.f32 %v6820_v2, %v6991_v55  ;;  %v6993_v12 = vpop.f32.mrb[107].mxu1  ;;  %v21071_v55 = vld [vmem:[#allocation25 + $0x8c] ss:$16 sps:$4 sm:$0xff]  }
0x117f   : > { %v7015_v30 = vmax.f32 %v6821_v10, %v6993_v12  ;;  %17819 = vmatmul.mubr.msk.bf16.vlgmr.msra.gmra.mrb[112].mxu1 %vm3483_vm6, %v24887_v57  ;;  %v21069_v12 = vld [vmem:[#allocation25 + $0x88] ss:$16 sps:$4 sm:$0xff]  }
0x1180   : > { %v7026_v17 = vpack.c.bf16 %v7014_v21, %v7010_v60  ;;  %7109 = vmatprep.mubr.bf16.mxu1 %v23533_v16  ;;  %v21084_v60 = vld [vmem:[#allocation25 + $0xe0] ss:$16 sps:$4 sm:$0xff]   ;;  %v21092_v21 = vld [vmem:[#allocation25 + $0x104] ss:$16 sps:$4 sm:$0xff]  }
0x1181   : > { %v7027_v36 = vpack.c.bf16 %v7015_v30, %v7011_v7  ;;  %v6997_v52 = vpop.f32.mrb[108].mxu1  ;;  %v21077_v7 = vld [vmem:[#allocation25 + $0xac] ss:$16 sps:$4 sm:$0xff]   ;;  %v21090_v30 = vld [vmem:[#allocation25 + $0x100] ss:$16 sps:$4 sm:$0xff]  }
0x1182   : > { %v6999_v48 = vpop.f32.mrb[109].mxu1  ;;  %v7018_v2 = vmax.f32 %v6824_v9, %v6997_v52  ;;  %v21083_v52 = vld [vmem:[#allocation25 + $0xcc] ss:$16 sps:$4 sm:$0xff]  }
0x1183   : > { %7077 = vmatprep.subr.bf16.mxu1 %v7027_v36  ;;  %v7019_v51 = vmax.f32 %v6825_v31, %v6999_v48  ;;  %v21050_v31 = vld [vmem:[#allocation25 + $0x24] ss:$16 sps:$4 sm:$0xff]   ;;  %v21075_v36 = vld [vmem:[#allocation25 + $0xa8] ss:$16 sps:$4 sm:$0xff]   ;;  %v21096_v48 = vld [vmem:[#allocation25 + $0x120] ss:$16 sps:$4 sm:$0xff]  }
0x1184   : > { %7078 = vmatpush1.bf16.msra.mxu1 %v7026_v17  ;;  %v21098_v17 = vld [vmem:[#allocation25 + $0x124] ss:$16 sps:$4 sm:$0xff]  }
0x1185   : > { %v7003_v34 = vpop.f32.mrb[110].mxu1 }
0x1186   : > { %v7022_v43 = vmax.f32 %v6828_v22, %v7003_v34  ;;  %v7005_v63 = vpop.f32.mrb[111].mxu1  ;;  %v21104_v34 = vld [vmem:[#allocation25 + $0x144] ss:$16 sps:$4 sm:$0xff]  }
0x1187   : > { %v7023_v10 = vmax.f32 %v6829_v58, %v7005_v63  ;;  %v21102_v63 = vld [vmem:[#allocation25 + $0x140] ss:$16 sps:$4 sm:$0xff]  }
0x1188   : > { %v7030_v47 = vpack.c.bf16 %v7022_v43, %v7018_v2  ;;  %v21081_v2 = vld [vmem:[#allocation25 + $0xc8] ss:$16 sps:$4 sm:$0xff]   ;;  %v21089_v43 = vld [vmem:[#allocation25 + $0xec] ss:$16 sps:$4 sm:$0xff]  }
0x1189   : > { %v7031_v59 = vpack.c.bf16 %v7023_v10, %v7019_v51  ;;  %v21110_v51 = vld [vmem:[#allocation25 + $0x164] ss:$16 sps:$4 sm:$0xff]   ;;  %v21087_v10 = vld [vmem:[#allocation25 + $0xe8] ss:$16 sps:$4 sm:$0xff]  }
0x118b   : > { %7079 = vmatprep.subr.bf16.mxu1 %v7031_v59  ;;  %v21108_v59 = vld [vmem:[#allocation25 + $0x160] ss:$16 sps:$4 sm:$0xff]  }
0x118c   : > { %7080 = vmatpush1.bf16.msra.mxu1 %v7030_v47  ;;  %v21095_v47 = vld [vmem:[#allocation25 + $0x10c] ss:$16 sps:$4 sm:$0xff]  }
0x118f   : > { %17820 = vmatmul.mubr.msk.bf16.vlgmr.msra.gmra.mrb[116].mxu1 %vm3483_vm6, %v24887_v57  ;;  %v21042_v57 = vld [vmem:[#allocation25] ss:$16 sps:$4 sm:$0xff]  }
0x1190   : > { %7267 = vmatprep.mubr.f32.mxu1 %v25563_v25 }
0x1252   : > { %v7068_v16 = vpop.f32.mrb[112].mxu1 }
0x1253   : > { %v7070_v23 = vpop.f32.mrb[113].mxu1 }
0x1254   : > { %v7072_v4 = vpop.f32.mrb[114].mxu1 }
0x1255   : > { %v25155_v41 = vpack.c.bf16 %v7072_v4, %v7068_v16  ;;  %v7074_v22 = vpop.f32.mrb[115].mxu1  ;;  %v21116_v16 = vld [vmem:[#allocation25 + $0x184] ss:$16 sps:$4 sm:$0xff]   ;;  %v21101_v4 = vld [vmem:[#allocation25 + $0x12c] ss:$16 sps:$4 sm:$0xff]  }
0x1256   : > { %v25157_v50 = vpack.c.bf16 %v7074_v22, %v7070_v23  ;;  %v21093_v23 = vld [vmem:[#allocation25 + $0x108] ss:$16 sps:$4 sm:$0xff]   ;;  %v21114_v22 = vld [vmem:[#allocation25 + $0x180] ss:$16 sps:$4 sm:$0xff]  }
0x1258   : > { %20093 = vmatprep.subr.bf16.mxu0 %v25157_v50 }
0x1259   : > { %20095 = vmatpush1.bf16.msra.mxu0 %v25155_v41 }
0x125a   : > { %20101 = vmatprep.subr.bf16.mxu0 %v25157_v50 }
0x125c   : > { %17821 = vmatmul.mubr.msk.f32.vlgmr.msra.gmra.mrb[80].mxu0 %vm2763_vm5, %v24320_v8 }
0x125d   : > { %20103 = vmatpush1.bf16.msra.mxu0 %v25155_v41  ;;  %7196 = vmatprep.mubr.f32.mxu0 %v25563_v25 }
0x125e   : > { %9754 = vmatprep.subr.bf16.mxu0 %v21044_v29  ;;  %v21122_v29 = vld [vmem:[#allocation25 + $0x1a4] ss:$16 sps:$4 sm:$0xff]  }
0x1260   : > { %17822 = vmatmul.mubr.msk.f32.gmra.mrb[82].mxu0 %vm2763_vm5, %v24391_v38 }
0x1261   : > { %7356 = vmatprep.mubr.f32.mxu0 %v25563_v25 }
0x1262   : > { %v7111_v58 = vpop.f32.mrb[116].mxu1 }
0x1263   : > { %v7113_v35 = vpop.f32.mrb[117].mxu1 }
0x1264   : > { %v7115_v9 = vpop.f32.mrb[118].mxu1  ;;  %17825 = vmatmul.mubr.msk.f32.vlgmr.msra.gmra.mrb[84].mxu0 %vm2763_vm5, %v24496_v61 }
0x1265   : > { %v25171_v11 = vpack.c.bf16 %v7115_v9, %v7111_v58  ;;  %v7117_v37 = vpop.f32.mrb[119].mxu1  ;;  %9755 = vmatpush1.bf16.msra.mxu0 %v21042_v57  ;;  %7362 = vmatprep.mubr.f32.mxu0 %v25563_v25  ;;  %v21099_v57 = vld [vmem:[#allocation25 + $0x128] ss:$16 sps:$4 sm:$0xff]   ;;  %v21107_v58 = vld [vmem:[#allocation25 + $0x14c] ss:$16 sps:$4 sm:$0xff]  }
0x1266   : > { %v25174_v53 = vpack.c.bf16 %v7117_v37, %v7113_v35  ;;  %9756 = vmatprep.subr.bf16.mxu0 %v21050_v31  ;;  %v21120_v31 = vld [vmem:[#allocation25 + $0x1a0] ss:$16 sps:$4 sm:$0xff]   ;;  %v21128_v35 = vld [vmem:[#allocation25 + $0x1c4] ss:$16 sps:$4 sm:$0xff]   ;;  %v21105_v9 = vld [vmem:[#allocation25 + $0x148] ss:$16 sps:$4 sm:$0xff]  }
0x1267   : > { %v21113_v37 = vld [vmem:[#allocation25 + $0x16c] ss:$16 sps:$4 sm:$0xff]  }
0x1268   : > { %20097 = vmatprep.subr.bf16.mxu1 %v25174_v53  ;;  %17826 = vmatmul.mubr.msk.f32.gmra.mrb[86].mxu0 %vm2763_vm5, %v24523_v6 }
0x1269   : > { %20099 = vmatpush1.bf16.msra.mxu1 %v25171_v11  ;;  %9757 = vmatpush1.bf16.msra.mxu0 %v21048_v42  ;;  %v21126_v42 = vld [vmem:[#allocation25 + $0x1c0] ss:$16 sps:$4 sm:$0xff]  }
0x126a   : > { %20105 = vmatprep.subr.bf16.mxu1 %v25174_v53  ;;  %9758 = vmatprep.subr.bf16.mxu0 %v21056_v46  ;;  %v21111_v46 = vld [vmem:[#allocation25 + $0x168] ss:$16 sps:$4 sm:$0xff]  }
0x126c   : > { %17823 = vmatmul.mubr.msk.f32.vlgmr.msra.gmra.mrb[120].mxu1 %vm2763_vm5, %v24320_v8 }
0x126d   : > { %20107 = vmatpush1.bf16.msra.mxu1 %v25171_v11  ;;  %7273 = vmatprep.mubr.f32.mxu1 %v25563_v25 }
0x126e   : > { %10012 = vmatprep.subr.bf16.mxu1 %v21047_v27  ;;  %9759 = vmatpush1.bf16.msra.mxu0 %v21054_v32  ;;  %v21119_v27 = vld [vmem:[#allocation25 + $0x18c] ss:$16 sps:$4 sm:$0xff]   ;;  %v21117_v32 = vld [vmem:[#allocation25 + $0x188] ss:$16 sps:$4 sm:$0xff]  }
0x126f   : > { %9760 = vmatprep.subr.bf16.mxu0 %v21062_v13  ;;  %v21125_v13 = vld [vmem:[#allocation25 + $0x1ac] ss:$16 sps:$4 sm:$0xff]  }
0x1270   : > { %17824 = vmatmul.mubr.msk.f32.gmra.mrb[122].mxu1 %vm2763_vm5, %v24391_v38 }
0x1271   : > { %7433 = vmatprep.mubr.f32.mxu1 %v25563_v25 }
0x1272   : > { %9761 = vmatpush1.bf16.msra.mxu0 %v21060_v26  ;;  %v21123_v26 = vld [vmem:[#allocation25 + $0x1a8] ss:$16 sps:$4 sm:$0xff]  }
0x1273   : > { %9762 = vmatprep.subr.bf16.mxu0 %v21068_v54  ;;  %v21131_v54 = vld [vmem:[#allocation25 + $0x1cc] ss:$16 sps:$4 sm:$0xff]  }
0x1274   : > { %17827 = vmatmul.mubr.msk.f32.vlgmr.msra.gmra.mrb[124].mxu1 %vm2763_vm5, %v24496_v61 }
0x1275   : > { %10013 = vmatpush1.bf16.msra.mxu1 %v21045_v24  ;;  %7439 = vmatprep.mubr.f32.mxu1 %v25563_v25  ;;  %v21129_v24 = vld [vmem:[#allocation25 + $0x1c8] ss:$16 sps:$4 sm:$0xff]  }
0x1276   : > { %10014 = vmatprep.subr.bf16.mxu1 %v21053_v5  ;;  %9763 = vmatpush1.bf16.msra.mxu0 %v21066_v39  ;;  %v21134_v5 = vld [vmem:[#allocation25 + $0x1e4] ss:$16 sps:$4 sm:$0xff]   ;;  %v21137_v39 = vld [vmem:[#allocation25 + $0x1ec] ss:$16 sps:$4 sm:$0xff]  }
0x1277   : > { %9764 = vmatprep.subr.bf16.mxu0 %v21074_v3  ;;  %v21132_v3 = vld [vmem:[#allocation25 + $0x1e0] ss:$16 sps:$4 sm:$0xff]  }
0x1278   : > { %17828 = vmatmul.mubr.msk.f32.gmra.mrb[126].mxu1 %vm2763_vm5, %v24523_v6 }
0x1279   : > { %10015 = vmatpush1.bf16.msra.mxu1 %v21051_v33  ;;  %v21135_v33 = vld [vmem:[#allocation25 + $0x1e8] ss:$16 sps:$4 sm:$0xff]  }
0x127a   : > { %10016 = vmatprep.subr.bf16.mxu1 %v21059_v40  ;;  %9765 = vmatpush1.bf16.msra.mxu0 %v21072_v49  ;;  %v21140_v40 = vld [vmem:[#allocation25 + $0x204] ss:$16 sps:$4 sm:$0xff]   ;;  %v21143_v49 = vld [vmem:[#allocation25 + $0x20c] ss:$16 sps:$4 sm:$0xff]  }
0x127b   : > { %9766 = vmatprep.subr.bf16.mxu0 %v21080_v56 }
0x127d   : > { %10017 = vmatpush1.bf16.msra.mxu1 %v21057_v18 }
0x127e   : > { %10018 = vmatprep.subr.bf16.mxu1 %v21065_v45  ;;  %9767 = vmatpush1.bf16.msra.mxu0 %v21078_v20 }
0x127f   : > { %9768 = vmatprep.subr.bf16.mxu0 %v21086_v15 }
0x1281   : > { %10019 = vmatpush1.bf16.msra.mxu1 %v21063_v19 }
0x1282   : > { %10020 = vmatprep.subr.bf16.mxu1 %v21071_v55  ;;  %9769 = vmatpush1.bf16.msra.mxu0 %v21084_v60  ;;  %v21138_v55 = vld [vmem:[#allocation25 + $0x200] ss:$16 sps:$4 sm:$0xff]   ;;  %v21141_v60 = vld [vmem:[#allocation25 + $0x208] ss:$16 sps:$4 sm:$0xff]  }
0x1283   : > { %9770 = vmatprep.subr.bf16.mxu0 %v21092_v21  ;;  %v21146_v21 = vld [vmem:[#allocation25 + $0x224] ss:$16 sps:$4 sm:$0xff]  }
0x1285   : > { %10021 = vmatpush1.bf16.msra.mxu1 %v21069_v12  ;;  %v21149_v12 = vld [vmem:[#allocation25 + $0x22c] ss:$16 sps:$4 sm:$0xff]  }
0x1286   : > { %10022 = vmatprep.subr.bf16.mxu1 %v21077_v7  ;;  %9771 = vmatpush1.bf16.msra.mxu0 %v21090_v30  ;;  %v21144_v7 = vld [vmem:[#allocation25 + $0x220] ss:$16 sps:$4 sm:$0xff]   ;;  %v21147_v30 = vld [vmem:[#allocation25 + $0x228] ss:$16 sps:$4 sm:$0xff]  }
0x1287   : > { %9772 = vmatprep.subr.bf16.mxu0 %v21098_v17  ;;  %v21152_v17 = vld [vmem:[#allocation25 + $0x244] ss:$16 sps:$4 sm:$0xff]  }
0x1289   : > { %10023 = vmatpush1.bf16.msra.mxu1 %v21075_v36  ;;  %v21155_v36 = vld [vmem:[#allocation25 + $0x24c] ss:$16 sps:$4 sm:$0xff]  }
0x128a   : > { %10024 = vmatprep.subr.bf16.mxu1 %v21083_v52  ;;  %9773 = vmatpush1.bf16.msra.mxu0 %v21096_v48  ;;  %v21150_v52 = vld [vmem:[#allocation25 + $0x240] ss:$16 sps:$4 sm:$0xff]   ;;  %v21153_v48 = vld [vmem:[#allocation25 + $0x248] ss:$16 sps:$4 sm:$0xff]  }
0x128b   : > { %9774 = vmatprep.subr.bf16.mxu0 %v21104_v34  ;;  %v21158_v34 = vld [vmem:[#allocation25 + $0x264] ss:$16 sps:$4 sm:$0xff]  }
0x128d   : > { %10025 = vmatpush1.bf16.msra.mxu1 %v21081_v2  ;;  %v21161_v2 = vld [vmem:[#allocation25 + $0x26c] ss:$16 sps:$4 sm:$0xff]  }
0x128e   : > { %10026 = vmatprep.subr.bf16.mxu1 %v21089_v43  ;;  %9775 = vmatpush1.bf16.msra.mxu0 %v21102_v63 }
0x128f   : > { %9776 = vmatprep.subr.bf16.mxu0 %v21110_v51  ;;  %v21156_v51 = vld [vmem:[#allocation25 + $0x260] ss:$16 sps:$4 sm:$0xff]  }
0x1291   : > { %10027 = vmatpush1.bf16.msra.mxu1 %v21087_v10  ;;  %v21159_v10 = vld [vmem:[#allocation25 + $0x268] ss:$16 sps:$4 sm:$0xff]  }
0x1292   : > { %10028 = vmatprep.subr.bf16.mxu1 %v21095_v47  ;;  %9777 = vmatpush1.bf16.msra.mxu0 %v21108_v59  ;;  %v21164_v47 = vld [vmem:[#allocation25 + $0x284] ss:$16 sps:$4 sm:$0xff]   ;;  %v21167_v59 = vld [vmem:[#allocation25 + $0x28c] ss:$16 sps:$4 sm:$0xff]  }
0x1293   : > { %9778 = vmatprep.subr.bf16.mxu0 %v21116_v16 }
0x1295   : > { %10029 = vmatpush1.bf16.msra.mxu1 %v21093_v23 }
0x1296   : > { %10030 = vmatprep.subr.bf16.mxu1 %v21101_v4  ;;  %9779 = vmatpush1.bf16.msra.mxu0 %v21114_v22  ;;  %v21162_v22 = vld [vmem:[#allocation25 + $0x280] ss:$16 sps:$4 sm:$0xff]  }
0x1297   : > { %9780 = vmatprep.subr.bf16.mxu0 %v21122_v29  ;;  %v21165_v29 = vld [vmem:[#allocation25 + $0x288] ss:$16 sps:$4 sm:$0xff]  }
0x1299   : > { %10031 = vmatpush1.bf16.msra.mxu1 %v21099_v57 }
0x129a   : > { %10032 = vmatprep.subr.bf16.mxu1 %v21107_v58  ;;  %9781 = vmatpush1.bf16.msra.mxu0 %v21120_v31  ;;  %v21170_v58 = vld [vmem:[#allocation25 + $0x2a4] ss:$16 sps:$4 sm:$0xff]   ;;  %v21173_v31 = vld [vmem:[#allocation25 + $0x2ac] ss:$16 sps:$4 sm:$0xff]  }
0x129b   : > { %9782 = vmatprep.subr.bf16.mxu0 %v21128_v35  ;;  %v21168_v35 = vld [vmem:[#allocation25 + $0x2a0] ss:$16 sps:$4 sm:$0xff]  }
0x129d   : > { %10033 = vmatpush1.bf16.msra.mxu1 %v21105_v9  ;;  %v21171_v9 = vld [vmem:[#allocation25 + $0x2a8] ss:$16 sps:$4 sm:$0xff]  }
0x129e   : > { %10034 = vmatprep.subr.bf16.mxu1 %v21113_v37  ;;  %9783 = vmatpush1.bf16.msra.mxu0 %v21126_v42  ;;  %v21176_v37 = vld [vmem:[#allocation25 + $0x2c4] ss:$16 sps:$4 sm:$0xff]   ;;  %v21179_v42 = vld [vmem:[#allocation25 + $0x2cc] ss:$16 sps:$4 sm:$0xff]  }
0x129f   : > { %9784 = vmatprep.subr.bf16.mxu0 %v21134_v5 }
0x12a1   : > { %10035 = vmatpush1.bf16.msra.mxu1 %v21111_v46 }
0x12a2   : > { %10036 = vmatprep.subr.bf16.mxu1 %v21119_v27  ;;  %9785 = vmatpush1.bf16.msra.mxu0 %v21132_v3 }
0x12a3   : > { %9797 = vmatprep.subr.bf16.mxu0 %v21140_v40  ;;  %v21183_v40 = vld [vmem:[#allocation25 + $0x2e8] ss:$16 sps:$4 sm:$0xff]  }
0x12a5   : > { %10037 = vmatpush1.bf16.msra.mxu1 %v21117_v32  ;;  %v21174_v32 = vld [vmem:[#allocation25 + $0x2c0] ss:$16 sps:$4 sm:$0xff]  }
0x12a6   : > { %10038 = vmatprep.subr.bf16.mxu1 %v21125_v13  ;;  %v21177_v13 = vld [vmem:[#allocation25 + $0x2c8] ss:$16 sps:$4 sm:$0xff]  }
0x12a9   : > { %10039 = vmatpush1.bf16.msra.mxu1 %v21123_v26 }
0x12aa   : > { %10040 = vmatprep.subr.bf16.mxu1 %v21131_v54  ;;  %v21182_v54 = vld [vmem:[#allocation25 + $0x2e4] ss:$16 sps:$4 sm:$0xff]  }
0x12ad   : > { %10041 = vmatpush1.bf16.msra.mxu1 %v21129_v24  ;;  %v21185_v24 = vld [vmem:[#allocation25 + $0x2ec] ss:$16 sps:$4 sm:$0xff]  }
0x12ae   : > { %10042 = vmatprep.subr.bf16.mxu1 %v21137_v39 }
0x12b1   : > { %10043 = vmatpush1.bf16.msra.mxu1 %v21135_v33  ;;  %v21180_v33 = vld [vmem:[#allocation25 + $0x2e0] ss:$16 sps:$4 sm:$0xff]  }
0x12b2   : > { %10055 = vmatprep.subr.bf16.mxu1 %v21143_v49  ;;  %v21188_v49 = vld [vmem:[#allocation25 + $0x304] ss:$16 sps:$4 sm:$0xff]  }
0x132f   : > { %v7192_v56 = vpop.f32.mrb[80].mxu0 }
0x1330   : > { %v7194_v18 = vpop.f32.mrb[81].mxu0 }
0x1333   : > { %v7198_v45 = vpop.f32.mrb[82].mxu0 }
0x1334   : > { %v7280_v20 = vpack.c.bf16 %v7198_v45, %v7192_v56  ;;  %v7200_v15 = vpop.f32.mrb[83].mxu0  ;;  %v21191_v56 = vld [vmem:[#allocation25 + $0x30c] ss:$16 sps:$4 sm:$0xff]   ;;  %v21189_v45 = vld [vmem:[#allocation25 + $0x308] ss:$16 sps:$4 sm:$0xff]  }
0x1335   : > { %v7281_v19 = vpack.c.bf16 %v7200_v15, %v7194_v18  ;;  %v21186_v18 = vld [vmem:[#allocation25 + $0x300] ss:$16 sps:$4 sm:$0xff]   ;;  %v21197_v15 = vld [vmem:[#allocation25 + $0x32c] ss:$16 sps:$4 sm:$0xff]  }
0x1337   : > { %9786 = vmatprep.mubr.bf16.mxu0 %v7281_v19  ;;  %10044 = vmatprep.mubr.bf16.mxu1 %v7281_v19  ;;  %v7358_v46 = vpop.f32.mrb[84].mxu0  ;;  %v21192_v19 = vld [vmem:[#allocation25 + $0x320] ss:$16 sps:$4 sm:$0xff]  }
0x1338   : > { %9787 = vmatmul.mubr.bf16.vlgmr.msra.gmra.mrb[88].mxu0 %v7280_v20  ;;  %10045 = vmatmul.mubr.bf16.vlgmr.msra.gmra.mrb[128].mxu1 %v7280_v20  ;;  %v7360_v27 = vpop.f32.mrb[85].mxu0  ;;  %v21194_v20 = vld [vmem:[#allocation25 + $0x324] ss:$16 sps:$4 sm:$0xff]  }
0x1339   : > { %9798 = vmatpush1.bf16.msra.mxu0 %v21138_v55  ;;  %10056 = vmatpush1.bf16.msra.mxu1 %v21141_v60  ;;  %v21195_v55 = vld [vmem:[#allocation25 + $0x328] ss:$16 sps:$4 sm:$0xff]   ;;  %v21200_v60 = vld [vmem:[#allocation25 + $0x344] ss:$16 sps:$4 sm:$0xff]  }
0x133a   : > { %9799 = vmatprep.subr.bf16.mxu0 %v21146_v21  ;;  %10057 = vmatprep.subr.bf16.mxu1 %v21149_v12  ;;  %v21203_v21 = vld [vmem:[#allocation25 + $0x34c] ss:$16 sps:$4 sm:$0xff]   ;;  %v21198_v12 = vld [vmem:[#allocation25 + $0x340] ss:$16 sps:$4 sm:$0xff]  }
0x133b   : > { %v7364_v26 = vpop.f32.mrb[86].mxu0 }
0x133c   : > { %v25195_v5 = vpack.c.bf16 %v7364_v26, %v7358_v46  ;;  %v7366_v39 = vpop.f32.mrb[87].mxu0  ;;  %v21242_v46 = vld [vmem:[#allocation25 + $0x424] ss:$16 sps:$4 sm:$0xff]  }
0x133d   : > { %9800 = vmatpush1.bf16.msra.mxu0 %v21144_v7  ;;  %10058 = vmatpush1.bf16.msra.mxu1 %v21147_v30  ;;  %v25197_v3 = vpack.c.bf16 %v7366_v39, %v7360_v27  ;;  %v21201_v7 = vld [vmem:[#allocation25 + $0x348] ss:$16 sps:$4 sm:$0xff]   ;;  %v21206_v30 = vld [vmem:[#allocation25 + $0x364] ss:$16 sps:$4 sm:$0xff]   ;;  %v21245_v27 = vld [vmem:[#allocation25 + $0x42c] ss:$16 sps:$4 sm:$0xff]  }
0x133e   : > { %9801 = vmatprep.subr.bf16.mxu0 %v21152_v17  ;;  %10059 = vmatprep.subr.bf16.mxu1 %v21155_v36  ;;  %v21209_v17 = vld [vmem:[#allocation25 + $0x36c] ss:$16 sps:$4 sm:$0xff]   ;;  %v21204_v36 = vld [vmem:[#allocation25 + $0x360] ss:$16 sps:$4 sm:$0xff]   ;;  %v21248_v26 = vld [vmem:[#allocation25 + $0x444] ss:$16 sps:$4 sm:$0xff]  }
0x133f   : > { %v7269_v43 = vpop.f32.mrb[120].mxu1  ;;  %v21249_v39 = vld [vmem:[#allocation25 + $0x448] ss:$16 sps:$4 sm:$0xff]  }
0x1340   : > { %v7271_v63 = vpop.f32.mrb[121].mxu1 }
0x1341   : > { %9802 = vmatpush1.bf16.msra.mxu0 %v21150_v52  ;;  %10060 = vmatpush1.bf16.msra.mxu1 %v21153_v48  ;;  %v21207_v52 = vld [vmem:[#allocation25 + $0x368] ss:$16 sps:$4 sm:$0xff]   ;;  %v21212_v48 = vld [vmem:[#allocation25 + $0x384] ss:$16 sps:$4 sm:$0xff]  }
0x1342   : > { %9803 = vmatprep.subr.bf16.mxu0 %v21158_v34  ;;  %10061 = vmatprep.subr.bf16.mxu1 %v21161_v2  ;;  %v21215_v34 = vld [vmem:[#allocation25 + $0x38c] ss:$16 sps:$4 sm:$0xff]   ;;  %v21210_v2 = vld [vmem:[#allocation25 + $0x380] ss:$16 sps:$4 sm:$0xff]  }
0x1343   : > { %v7275_v16 = vpop.f32.mrb[122].mxu1 }
0x1344   : > { %v25193_v23 = vpack.c.bf16 %v7275_v16, %v7269_v43  ;;  %v7277_v4 = vpop.f32.mrb[123].mxu1  ;;  %v21213_v43 = vld [vmem:[#allocation25 + $0x388] ss:$16 sps:$4 sm:$0xff]   ;;  %v21227_v16 = vld [vmem:[#allocation25 + $0x3cc] ss:$16 sps:$4 sm:$0xff]  }
0x1345   : > { %9804 = vmatpush1.bf16.msra.mxu0 %v21156_v51  ;;  %10062 = vmatpush1.bf16.msra.mxu1 %v21159_v10  ;;  %v7283_v57 = vpack.c.bf16 %v7277_v4, %v7271_v63  ;;  %v21218_v63 = vld [vmem:[#allocation25 + $0x3a4] ss:$16 sps:$4 sm:$0xff]   ;;  %v21221_v51 = vld [vmem:[#allocation25 + $0x3ac] ss:$16 sps:$4 sm:$0xff]   ;;  %v21216_v10 = vld [vmem:[#allocation25 + $0x3a0] ss:$16 sps:$4 sm:$0xff]  }
0x1346   : > { %9805 = vmatprep.subr.bf16.mxu0 %v21164_v47  ;;  %10063 = vmatprep.subr.bf16.mxu1 %v21167_v59  ;;  %v21219_v47 = vld [vmem:[#allocation25 + $0x3a8] ss:$16 sps:$4 sm:$0xff]   ;;  %v21224_v59 = vld [vmem:[#allocation25 + $0x3c4] ss:$16 sps:$4 sm:$0xff]   ;;  %v21222_v4 = vld [vmem:[#allocation25 + $0x3c0] ss:$16 sps:$4 sm:$0xff]  }
0x1347   : > { %9829 = vmatprep.mubr.bf16.mxu0 %v7283_v57  ;;  %10087 = vmatprep.mubr.bf16.mxu1 %v7283_v57  ;;  %v21233_v57 = vld [vmem:[#allocation25 + $0x3ec] ss:$16 sps:$4 sm:$0xff]  }
0x1349   : > { %9806 = vmatpush1.bf16.msra.mxu0 %v21162_v22  ;;  %10064 = vmatpush1.bf16.msra.mxu1 %v21165_v29  ;;  %v21225_v22 = vld [vmem:[#allocation25 + $0x3c8] ss:$16 sps:$4 sm:$0xff]   ;;  %v21230_v29 = vld [vmem:[#allocation25 + $0x3e4] ss:$16 sps:$4 sm:$0xff]  }
0x134a   : > { %9807 = vmatprep.subr.bf16.mxu0 %v21170_v58  ;;  %10065 = vmatprep.subr.bf16.mxu1 %v21173_v31  ;;  %v21228_v58 = vld [vmem:[#allocation25 + $0x3e0] ss:$16 sps:$4 sm:$0xff]   ;;  %v21231_v31 = vld [vmem:[#allocation25 + $0x3e8] ss:$16 sps:$4 sm:$0xff]  }
0x134d   : > { %9808 = vmatpush1.bf16.msra.mxu0 %v21168_v35  ;;  %10066 = vmatpush1.bf16.msra.mxu1 %v21171_v9  ;;  %v21236_v35 = vld [vmem:[#allocation25 + $0x404] ss:$16 sps:$4 sm:$0xff]   ;;  %v21239_v9 = vld [vmem:[#allocation25 + $0x40c] ss:$16 sps:$4 sm:$0xff]  }
0x134e   : > { %9809 = vmatprep.subr.bf16.mxu0 %v21176_v37  ;;  %10067 = vmatprep.subr.bf16.mxu1 %v21179_v42  ;;  %v21234_v37 = vld [vmem:[#allocation25 + $0x400] ss:$16 sps:$4 sm:$0xff]   ;;  %v21237_v42 = vld [vmem:[#allocation25 + $0x408] ss:$16 sps:$4 sm:$0xff]  }
0x1351   : > { %9810 = vmatpush1.bf16.msra.mxu0 %v21174_v32  ;;  %10068 = vmatpush1.bf16.msra.mxu1 %v21177_v13  ;;  %v21240_v32 = vld [vmem:[#allocation25 + $0x420] ss:$16 sps:$4 sm:$0xff]   ;;  %v21243_v13 = vld [vmem:[#allocation25 + $0x428] ss:$16 sps:$4 sm:$0xff]  }
0x1352   : > { %9811 = vmatprep.subr.bf16.mxu0 %v21182_v54  ;;  %10069 = vmatprep.subr.bf16.mxu1 %v21185_v24  ;;  %v21251_v54 = vld [vmem:[#allocation25 + $0x44c] ss:$16 sps:$4 sm:$0xff]   ;;  %v21246_v24 = vld [vmem:[#allocation25 + $0x440] ss:$16 sps:$4 sm:$0xff]  }
0x1355   : > { %9812 = vmatpush1.bf16.msra.mxu0 %v21180_v33  ;;  %10070 = vmatpush1.bf16.msra.mxu1 %v21183_v40  ;;  %v21254_v33 = vld [vmem:[#allocation25 + $0x464] ss:$16 sps:$4 sm:$0xff]   ;;  %v21252_v40 = vld [vmem:[#allocation25 + $0x460] ss:$16 sps:$4 sm:$0xff]  }
0x1356   : > { %9813 = vmatprep.subr.bf16.mxu0 %v21188_v49  ;;  %10071 = vmatprep.subr.bf16.mxu1 %v21191_v56  ;;  %v21255_v49 = vld [vmem:[#allocation25 + $0x468] ss:$16 sps:$4 sm:$0xff]   ;;  %v21260_v56 = vld [vmem:[#allocation25 + $0x484] ss:$16 sps:$4 sm:$0xff]  }
0x1359   : > { %9814 = vmatpush1.bf16.msra.mxu0 %v21186_v18  ;;  %10072 = vmatpush1.bf16.msra.mxu1 %v21189_v45  ;;  %v21258_v18 = vld [vmem:[#allocation25 + $0x480] ss:$16 sps:$4 sm:$0xff]   ;;  %v21261_v45 = vld [vmem:[#allocation25 + $0x488] ss:$16 sps:$4 sm:$0xff]  }
0x135a   : > { %9815 = vmatprep.subr.bf16.mxu0 %v21194_v20  ;;  %10073 = vmatprep.subr.bf16.mxu1 %v21197_v15  ;;  %v21266_v20 = vld [vmem:[#allocation25 + $0x4a4] ss:$16 sps:$4 sm:$0xff]   ;;  %v21269_v15 = vld [vmem:[#allocation25 + $0x4ac] ss:$16 sps:$4 sm:$0xff]  }
0x135d   : > { %9816 = vmatpush1.bf16.msra.mxu0 %v21192_v19  ;;  %10074 = vmatpush1.bf16.msra.mxu1 %v21195_v55  ;;  %v21264_v19 = vld [vmem:[#allocation25 + $0x4a0] ss:$16 sps:$4 sm:$0xff]   ;;  %v21267_v55 = vld [vmem:[#allocation25 + $0x4a8] ss:$16 sps:$4 sm:$0xff]  }
0x135e   : > { %9817 = vmatprep.subr.bf16.mxu0 %v21200_v60  ;;  %10075 = vmatprep.subr.bf16.mxu1 %v21203_v21  ;;  %v21272_v60 = vld [vmem:[#allocation25 + $0x4c4] ss:$16 sps:$4 sm:$0xff]   ;;  %v21275_v21 = vld [vmem:[#allocation25 + $0x4cc] ss:$16 sps:$4 sm:$0xff]  }
0x1361   : > { %9818 = vmatpush1.bf16.msra.mxu0 %v21198_v12  ;;  %10076 = vmatpush1.bf16.msra.mxu1 %v21201_v7  ;;  %v7435_v12 = vpop.f32.mrb[124].mxu1 }
0x1362   : > { %9819 = vmatprep.subr.bf16.mxu0 %v21206_v30  ;;  %10077 = vmatprep.subr.bf16.mxu1 %v21209_v17  ;;  %v7437_v7 = vpop.f32.mrb[125].mxu1  ;;  %v21270_v30 = vld [vmem:[#allocation25 + $0x4c0] ss:$16 sps:$4 sm:$0xff]  }
0x1363   : > { %v7441_v17 = vpop.f32.mrb[126].mxu1 }
0x1365   : > { %9820 = vmatpush1.bf16.msra.mxu0 %v21204_v36  ;;  %10078 = vmatpush1.bf16.msra.mxu1 %v21207_v52  ;;  %v21273_v36 = vld [vmem:[#allocation25 + $0x4c8] ss:$16 sps:$4 sm:$0xff]   ;;  %v21278_v52 = vld [vmem:[#allocation25 + $0x4e4] ss:$16 sps:$4 sm:$0xff]  }
0x1366   : > { %9821 = vmatprep.subr.bf16.mxu0 %v21212_v48  ;;  %10079 = vmatprep.subr.bf16.mxu1 %v21215_v34  ;;  %v21281_v48 = vld [vmem:[#allocation25 + $0x4ec] ss:$16 sps:$4 sm:$0xff]   ;;  %v25203_v34 = vpack.c.bf16 %v7441_v17, %v7435_v12  ;;  %v21338_v12 = vld [vmem:[#allocation25 + $0x624] ss:$16 sps:$4 sm:$0xff]   ;;  %v21339_v17 = vld [vmem:[#allocation25 + $0x628] ss:$16 sps:$4 sm:$0xff]  }
0x1369   : > { %9822 = vmatpush1.bf16.msra.mxu0 %v21210_v2  ;;  %10080 = vmatpush1.bf16.msra.mxu1 %v21213_v43  ;;  %v7443_v2 = vpop.f32.mrb[127].mxu1 }
0x136a   : > { %9823 = vmatprep.subr.bf16.mxu0 %v21218_v63  ;;  %10081 = vmatprep.subr.bf16.mxu1 %v21221_v51  ;;  %v25205_v43 = vpack.c.bf16 %v7443_v2, %v7437_v7  ;;  %v21276_v63 = vld [vmem:[#allocation25 + $0x4e0] ss:$16 sps:$4 sm:$0xff]   ;;  %v21279_v51 = vld [vmem:[#allocation25 + $0x4e8] ss:$16 sps:$4 sm:$0xff]   ;;  %v21341_v7 = vld [vmem:[#allocation25 + $0x62c] ss:$16 sps:$4 sm:$0xff]  }
0x136b   : > { %v21345_v2 = vld [vmem:[#allocation25 + $0x648] ss:$16 sps:$4 sm:$0xff]  }
0x136d   : > { %9824 = vmatpush1.bf16.msra.mxu0 %v21216_v10  ;;  %10082 = vmatpush1.bf16.msra.mxu1 %v21219_v47  ;;  %v21284_v10 = vld [vmem:[#allocation25 + $0x504] ss:$16 sps:$4 sm:$0xff]   ;;  %v21287_v47 = vld [vmem:[#allocation25 + $0x50c] ss:$16 sps:$4 sm:$0xff]  }
0x136e   : > { %9825 = vmatprep.subr.bf16.mxu0 %v21224_v59  ;;  %10083 = vmatprep.subr.bf16.mxu1 %v21227_v16  ;;  %v21282_v59 = vld [vmem:[#allocation25 + $0x500] ss:$16 sps:$4 sm:$0xff]   ;;  %v21285_v16 = vld [vmem:[#allocation25 + $0x508] ss:$16 sps:$4 sm:$0xff]  }
0x1371   : > { %9826 = vmatpush1.bf16.msra.mxu0 %v21222_v4  ;;  %10084 = vmatpush1.bf16.msra.mxu1 %v21225_v22  ;;  %v21290_v4 = vld [vmem:[#allocation25 + $0x524] ss:$16 sps:$4 sm:$0xff]   ;;  %v21293_v22 = vld [vmem:[#allocation25 + $0x52c] ss:$16 sps:$4 sm:$0xff]  }
0x1372   : > { %9827 = vmatprep.subr.bf16.mxu0 %v21230_v29  ;;  %10085 = vmatprep.subr.bf16.mxu1 %v21233_v57  ;;  %v21288_v29 = vld [vmem:[#allocation25 + $0x520] ss:$16 sps:$4 sm:$0xff]   ;;  %v21291_v57 = vld [vmem:[#allocation25 + $0x528] ss:$16 sps:$4 sm:$0xff]  }
0x1375   : > { %9828 = vmatpush1.bf16.msra.mxu0 %v21228_v58  ;;  %10086 = vmatpush1.bf16.msra.mxu1 %v21231_v31  ;;  %v21296_v58 = vld [vmem:[#allocation25 + $0x544] ss:$16 sps:$4 sm:$0xff]   ;;  %v21299_v31 = vld [vmem:[#allocation25 + $0x54c] ss:$16 sps:$4 sm:$0xff]  }
0x1376   : > { %9840 = vmatprep.subr.bf16.mxu0 %v21236_v35  ;;  %10098 = vmatprep.subr.bf16.mxu1 %v21239_v9  ;;  %v21294_v35 = vld [vmem:[#allocation25 + $0x540] ss:$16 sps:$4 sm:$0xff]   ;;  %v21297_v9 = vld [vmem:[#allocation25 + $0x548] ss:$16 sps:$4 sm:$0xff]  }
0x1378   : > { %9830 = vmatmul.mubr.bf16.vlgmr.msra.gmra.mrb[88].mxu0 %v25193_v23  ;;  %10088 = vmatmul.mubr.bf16.vlgmr.msra.gmra.mrb[128].mxu1 %v25193_v23  ;;  %v21257_v23 = vld [vmem:[#allocation25 + $0x46c] ss:$16 sps:$4 sm:$0xff]  }
0x1379   : > { %9841 = vmatpush1.bf16.msra.mxu0 %v21234_v37  ;;  %9872 = vmatprep.mubr.bf16.mxu0 %v25157_v50  ;;  %v21302_v37 = vld [vmem:[#allocation25 + $0x564] ss:$16 sps:$4 sm:$0xff]  }
0x137a   : > { %10099 = vmatpush1.bf16.msra.mxu1 %v21237_v42  ;;  %10130 = vmatprep.mubr.bf16.mxu1 %v25157_v50  ;;  %v21263_v50 = vld [vmem:[#allocation25 + $0x48c] ss:$16 sps:$4 sm:$0xff]  }
0x137b   : > { %9842 = vmatprep.subr.bf16.mxu0 %v21242_v46  ;;  %10100 = vmatprep.subr.bf16.mxu1 %v21245_v27  ;;  %v21305_v42 = vld [vmem:[#allocation25 + $0x56c] ss:$16 sps:$4 sm:$0xff]   ;;  %v21300_v46 = vld [vmem:[#allocation25 + $0x560] ss:$16 sps:$4 sm:$0xff]   ;;  %v21303_v27 = vld [vmem:[#allocation25 + $0x568] ss:$16 sps:$4 sm:$0xff]  }
0x137d   : > { %9843 = vmatpush1.bf16.msra.mxu0 %v21240_v32  ;;  %v21308_v32 = vld [vmem:[#allocation25 + $0x584] ss:$16 sps:$4 sm:$0xff]  }
0x137e   : > { %10101 = vmatpush1.bf16.msra.mxu1 %v21243_v13  ;;  %9844 = vmatprep.subr.bf16.mxu0 %v21248_v26  ;;  %v21311_v13 = vld [vmem:[#allocation25 + $0x58c] ss:$16 sps:$4 sm:$0xff]   ;;  %v21306_v26 = vld [vmem:[#allocation25 + $0x580] ss:$16 sps:$4 sm:$0xff]  }
0x137f   : > { %10102 = vmatprep.subr.bf16.mxu1 %v21251_v54  ;;  %v21309_v54 = vld [vmem:[#allocation25 + $0x588] ss:$16 sps:$4 sm:$0xff]  }
0x1381   : > { %9845 = vmatpush1.bf16.msra.mxu0 %v21246_v24  ;;  %v21314_v24 = vld [vmem:[#allocation25 + $0x5a4] ss:$16 sps:$4 sm:$0xff]  }
0x1382   : > { %10103 = vmatpush1.bf16.msra.mxu1 %v21249_v39  ;;  %9846 = vmatprep.subr.bf16.mxu0 %v21254_v33  ;;  %v21317_v39 = vld [vmem:[#allocation25 + $0x5ac] ss:$16 sps:$4 sm:$0xff]   ;;  %v21312_v33 = vld [vmem:[#allocation25 + $0x5a0] ss:$16 sps:$4 sm:$0xff]  }
0x1383   : > { %10104 = vmatprep.subr.bf16.mxu1 %v21257_v23  ;;  %v21315_v23 = vld [vmem:[#allocation25 + $0x5a8] ss:$16 sps:$4 sm:$0xff]  }
0x1385   : > { %9847 = vmatpush1.bf16.msra.mxu0 %v21252_v40  ;;  %v21320_v40 = vld [vmem:[#allocation25 + $0x5c4] ss:$16 sps:$4 sm:$0xff]  }
0x1386   : > { %10105 = vmatpush1.bf16.msra.mxu1 %v21255_v49  ;;  %9848 = vmatprep.subr.bf16.mxu0 %v21260_v56  ;;  %v21323_v49 = vld [vmem:[#allocation25 + $0x5cc] ss:$16 sps:$4 sm:$0xff]   ;;  %v21318_v56 = vld [vmem:[#allocation25 + $0x5c0] ss:$16 sps:$4 sm:$0xff]  }
0x1387   : > { %10106 = vmatprep.subr.bf16.mxu1 %v21263_v50  ;;  %v21321_v50 = vld [vmem:[#allocation25 + $0x5c8] ss:$16 sps:$4 sm:$0xff]  }
0x1389   : > { %9849 = vmatpush1.bf16.msra.mxu0 %v21258_v18  ;;  %v21326_v18 = vld [vmem:[#allocation25 + $0x5e4] ss:$16 sps:$4 sm:$0xff]  }
0x138a   : > { %10107 = vmatpush1.bf16.msra.mxu1 %v21261_v45  ;;  %9850 = vmatprep.subr.bf16.mxu0 %v21266_v20  ;;  %v21329_v45 = vld [vmem:[#allocation25 + $0x5ec] ss:$16 sps:$4 sm:$0xff]   ;;  %v21324_v20 = vld [vmem:[#allocation25 + $0x5e0] ss:$16 sps:$4 sm:$0xff]  }
0x138b   : > { %10108 = vmatprep.subr.bf16.mxu1 %v21269_v15  ;;  %v21327_v15 = vld [vmem:[#allocation25 + $0x5e8] ss:$16 sps:$4 sm:$0xff]  }
0x138d   : > { %9851 = vmatpush1.bf16.msra.mxu0 %v21264_v19  ;;  %v21332_v19 = vld [vmem:[#allocation25 + $0x604] ss:$16 sps:$4 sm:$0xff]  }
0x138e   : > { %10109 = vmatpush1.bf16.msra.mxu1 %v21267_v55  ;;  %9852 = vmatprep.subr.bf16.mxu0 %v21272_v60  ;;  %v21335_v55 = vld [vmem:[#allocation25 + $0x60c] ss:$16 sps:$4 sm:$0xff]   ;;  %v21330_v60 = vld [vmem:[#allocation25 + $0x600] ss:$16 sps:$4 sm:$0xff]  }
0x138f   : > { %10110 = vmatprep.subr.bf16.mxu1 %v21275_v21  ;;  %v21333_v21 = vld [vmem:[#allocation25 + $0x608] ss:$16 sps:$4 sm:$0xff]  }
0x1391   : > { %9853 = vmatpush1.bf16.msra.mxu0 %v21270_v30  ;;  %v21336_v30 = vld [vmem:[#allocation25 + $0x620] ss:$16 sps:$4 sm:$0xff]  }
0x1392   : > { %10111 = vmatpush1.bf16.msra.mxu1 %v21273_v36  ;;  %9854 = vmatprep.subr.bf16.mxu0 %v21278_v52  ;;  %v21344_v36 = vld [vmem:[#allocation25 + $0x644] ss:$16 sps:$4 sm:$0xff]   ;;  %v21347_v52 = vld [vmem:[#allocation25 + $0x64c] ss:$16 sps:$4 sm:$0xff]  }
0x1393   : > { %10112 = vmatprep.subr.bf16.mxu1 %v21281_v48  ;;  %v21342_v48 = vld [vmem:[#allocation25 + $0x640] ss:$16 sps:$4 sm:$0xff]  }
0x1395   : > { %9855 = vmatpush1.bf16.msra.mxu0 %v21276_v63  ;;  %v21350_v63 = vld [vmem:[#allocation25 + $0x664] ss:$16 sps:$4 sm:$0xff]  }
0x1396   : > { %10113 = vmatpush1.bf16.msra.mxu1 %v21279_v51  ;;  %9856 = vmatprep.subr.bf16.mxu0 %v21284_v10  ;;  %v21348_v51 = vld [vmem:[#allocation25 + $0x660] ss:$16 sps:$4 sm:$0xff]   ;;  %v21351_v10 = vld [vmem:[#allocation25 + $0x668] ss:$16 sps:$4 sm:$0xff]  }
0x1397   : > { %10114 = vmatprep.subr.bf16.mxu1 %v21287_v47  ;;  %v21356_v47 = vld [vmem:[#allocation25 + $0x684] ss:$16 sps:$4 sm:$0xff]  }
0x1399   : > { %9857 = vmatpush1.bf16.msra.mxu0 %v21282_v59  ;;  %v21359_v59 = vld [vmem:[#allocation25 + $0x68c] ss:$16 sps:$4 sm:$0xff]  }
0x139a   : > { %10115 = vmatpush1.bf16.msra.mxu1 %v21285_v16  ;;  %9858 = vmatprep.subr.bf16.mxu0 %v21290_v4  ;;  %v21357_v16 = vld [vmem:[#allocation25 + $0x688] ss:$16 sps:$4 sm:$0xff]   ;;  %v21362_v4 = vld [vmem:[#allocation25 + $0x6a4] ss:$16 sps:$4 sm:$0xff]  }
0x139b   : > { %10116 = vmatprep.subr.bf16.mxu1 %v21293_v22  ;;  %v21365_v22 = vld [vmem:[#allocation25 + $0x6ac] ss:$16 sps:$4 sm:$0xff]  }
0x139d   : > { %9859 = vmatpush1.bf16.msra.mxu0 %v21288_v29  ;;  %v21360_v29 = vld [vmem:[#allocation25 + $0x6a0] ss:$16 sps:$4 sm:$0xff]  }
0x139e   : > { %10117 = vmatpush1.bf16.msra.mxu1 %v21291_v57  ;;  %9860 = vmatprep.subr.bf16.mxu0 %v21296_v58  ;;  %v21363_v57 = vld [vmem:[#allocation25 + $0x6a8] ss:$16 sps:$4 sm:$0xff]   ;;  %v21368_v58 = vld [vmem:[#allocation25 + $0x6c4] ss:$16 sps:$4 sm:$0xff]  }
0x139f   : > { %10118 = vmatprep.subr.bf16.mxu1 %v21299_v31  ;;  %v21371_v31 = vld [vmem:[#allocation25 + $0x6cc] ss:$16 sps:$4 sm:$0xff]  }
0x13a1   : > { %9861 = vmatpush1.bf16.msra.mxu0 %v21294_v35  ;;  %v21366_v35 = vld [vmem:[#allocation25 + $0x6c0] ss:$16 sps:$4 sm:$0xff]  }
0x13a2   : > { %10119 = vmatpush1.bf16.msra.mxu1 %v21297_v9  ;;  %9862 = vmatprep.subr.bf16.mxu0 %v21302_v37  ;;  %v21369_v9 = vld [vmem:[#allocation25 + $0x6c8] ss:$16 sps:$4 sm:$0xff]   ;;  %v21374_v37 = vld [vmem:[#allocation25 + $0x6e4] ss:$16 sps:$4 sm:$0xff]  }
0x13a3   : > { %10120 = vmatprep.subr.bf16.mxu1 %v21305_v42  ;;  %v21377_v42 = vld [vmem:[#allocation25 + $0x6ec] ss:$16 sps:$4 sm:$0xff]  }
0x13a5   : > { %9863 = vmatpush1.bf16.msra.mxu0 %v21300_v46  ;;  %v21372_v46 = vld [vmem:[#allocation25 + $0x6e0] ss:$16 sps:$4 sm:$0xff]  }
0x13a6   : > { %10121 = vmatpush1.bf16.msra.mxu1 %v21303_v27  ;;  %9864 = vmatprep.subr.bf16.mxu0 %v21308_v32  ;;  %v21375_v27 = vld [vmem:[#allocation25 + $0x6e8] ss:$16 sps:$4 sm:$0xff]   ;;  %v21380_v32 = vld [vmem:[#allocation25 + $0x704] ss:$16 sps:$4 sm:$0xff]  }
0x13a7   : > { %10122 = vmatprep.subr.bf16.mxu1 %v21311_v13  ;;  %v21383_v13 = vld [vmem:[#allocation25 + $0x70c] ss:$16 sps:$4 sm:$0xff]  }
0x13a9   : > { %9865 = vmatpush1.bf16.msra.mxu0 %v21306_v26  ;;  %v21378_v26 = vld [vmem:[#allocation25 + $0x700] ss:$16 sps:$4 sm:$0xff]  }
0x13aa   : > { %10123 = vmatpush1.bf16.msra.mxu1 %v21309_v54  ;;  %9866 = vmatprep.subr.bf16.mxu0 %v21314_v24  ;;  %v21381_v54 = vld [vmem:[#allocation25 + $0x708] ss:$16 sps:$4 sm:$0xff]   ;;  %v21386_v24 = vld [vmem:[#allocation25 + $0x724] ss:$16 sps:$4 sm:$0xff]  }
0x13ab   : > { %10124 = vmatprep.subr.bf16.mxu1 %v21317_v39  ;;  %v21389_v39 = vld [vmem:[#allocation25 + $0x72c] ss:$16 sps:$4 sm:$0xff]  }
0x13ad   : > { %9867 = vmatpush1.bf16.msra.mxu0 %v21312_v33  ;;  %v21384_v33 = vld [vmem:[#allocation25 + $0x720] ss:$16 sps:$4 sm:$0xff]  }
0x13ae   : > { %10125 = vmatpush1.bf16.msra.mxu1 %v21315_v23  ;;  %9868 = vmatprep.subr.bf16.mxu0 %v21320_v40  ;;  %v21387_v23 = vld [vmem:[#allocation25 + $0x728] ss:$16 sps:$4 sm:$0xff]   ;;  %v21392_v40 = vld [vmem:[#allocation25 + $0x744] ss:$16 sps:$4 sm:$0xff]  }
0x13af   : > { %10126 = vmatprep.subr.bf16.mxu1 %v21323_v49  ;;  %v21395_v49 = vld [vmem:[#allocation25 + $0x74c] ss:$16 sps:$4 sm:$0xff]  }
0x13b1   : > { %9869 = vmatpush1.bf16.msra.mxu0 %v21318_v56  ;;  %v21390_v56 = vld [vmem:[#allocation25 + $0x740] ss:$16 sps:$4 sm:$0xff]  }
0x13b2   : > { %10127 = vmatpush1.bf16.msra.mxu1 %v21321_v50  ;;  %9870 = vmatprep.subr.bf16.mxu0 %v21326_v18  ;;  %v21393_v50 = vld [vmem:[#allocation25 + $0x748] ss:$16 sps:$4 sm:$0xff]   ;;  %v21398_v18 = vld [vmem:[#allocation25 + $0x764] ss:$16 sps:$4 sm:$0xff]  }
0x13b3   : > { %10128 = vmatprep.subr.bf16.mxu1 %v21329_v45  ;;  %v21401_v45 = vld [vmem:[#allocation25 + $0x76c] ss:$16 sps:$4 sm:$0xff]  }
0x13b5   : > { %9871 = vmatpush1.bf16.msra.mxu0 %v21324_v20  ;;  %v21396_v20 = vld [vmem:[#allocation25 + $0x760] ss:$16 sps:$4 sm:$0xff]  }
0x13b6   : > { %10129 = vmatpush1.bf16.msra.mxu1 %v21327_v15  ;;  %9883 = vmatprep.subr.bf16.mxu0 %v21332_v19  ;;  %v21399_v15 = vld [vmem:[#allocation25 + $0x768] ss:$16 sps:$4 sm:$0xff]   ;;  %v21404_v19 = vld [vmem:[#allocation25 + $0x784] ss:$16 sps:$4 sm:$0xff]  }
0x13b7   : > { %10141 = vmatprep.subr.bf16.mxu1 %v21335_v55  ;;  %v21407_v55 = vld [vmem:[#allocation25 + $0x78c] ss:$16 sps:$4 sm:$0xff]  }
0x13b8   : > { %9873 = vmatmul.mubr.bf16.vlgmr.msra.gmra.mrb[88].mxu0 %v25155_v41 }
0x13b9   : > { %10131 = vmatmul.mubr.bf16.vlgmr.msra.gmra.mrb[128].mxu1 %v25155_v41  ;;  %9884 = vmatpush1.bf16.msra.mxu0 %v21330_v60  ;;  %v21353_v41 = vld [vmem:[#allocation25 + $0x66c] ss:$16 sps:$4 sm:$0xff]   ;;  %v21402_v60 = vld [vmem:[#allocation25 + $0x780] ss:$16 sps:$4 sm:$0xff]  }
0x13ba   : > { %9915 = vmatprep.mubr.bf16.mxu0 %v25174_v53  ;;  %10142 = vmatpush1.bf16.msra.mxu1 %v21333_v21  ;;  %v21405_v21 = vld [vmem:[#allocation25 + $0x788] ss:$16 sps:$4 sm:$0xff]  }
0x13bb   : > { %10173 = vmatprep.mubr.bf16.mxu1 %v25174_v53  ;;  %9885 = vmatprep.subr.bf16.mxu0 %v21338_v12  ;;  %v21354_v53 = vld [vmem:[#allocation25 + $0x680] ss:$16 sps:$4 sm:$0xff]   ;;  %v21410_v12 = vld [vmem:[#allocation25 + $0x7a4] ss:$16 sps:$4 sm:$0xff]  }
0x13bc   : > { %10143 = vmatprep.subr.bf16.mxu1 %v21341_v7  ;;  %v21413_v7 = vld [vmem:[#allocation25 + $0x7ac] ss:$16 sps:$4 sm:$0xff]  }
0x13bd   : > { %9886 = vmatpush1.bf16.msra.mxu0 %v21336_v30  ;;  %v21408_v30 = vld [vmem:[#allocation25 + $0x7a0] ss:$16 sps:$4 sm:$0xff]  }
0x13be   : > { %10144 = vmatpush1.bf16.msra.mxu1 %v21339_v17  ;;  %9887 = vmatprep.subr.bf16.mxu0 %v21344_v36  ;;  %v21411_v17 = vld [vmem:[#allocation25 + $0x7a8] ss:$16 sps:$4 sm:$0xff]   ;;  %v21416_v36 = vld [vmem:[#allocation25 + $0x7c4] ss:$16 sps:$4 sm:$0xff]  }
0x13bf   : > { %10145 = vmatprep.subr.bf16.mxu1 %v21347_v52  ;;  %v21419_v52 = vld [vmem:[#allocation25 + $0x7cc] ss:$16 sps:$4 sm:$0xff]  }
0x13c1   : > { %9888 = vmatpush1.bf16.msra.mxu0 %v21342_v48  ;;  %v21414_v48 = vld [vmem:[#allocation25 + $0x7c0] ss:$16 sps:$4 sm:$0xff]  }
0x13c2   : > { %10146 = vmatpush1.bf16.msra.mxu1 %v21345_v2  ;;  %9889 = vmatprep.subr.bf16.mxu0 %v21350_v63  ;;  %v21417_v2 = vld [vmem:[#allocation25 + $0x7c8] ss:$16 sps:$4 sm:$0xff]   ;;  %v21422_v63 = vld [vmem:[#allocation25 + $0x7e4] ss:$16 sps:$4 sm:$0xff]  }
0x13c3   : > { %10147 = vmatprep.subr.bf16.mxu1 %v21353_v41  ;;  %v21425_v41 = vld [vmem:[#allocation25 + $0x7ec] ss:$16 sps:$4 sm:$0xff]  }
0x13c5   : > { %9890 = vmatpush1.bf16.msra.mxu0 %v21348_v51  ;;  %v21420_v51 = vld [vmem:[#allocation25 + $0x7e0] ss:$16 sps:$4 sm:$0xff]  }
0x13c6   : > { %10148 = vmatpush1.bf16.msra.mxu1 %v21351_v10  ;;  %9891 = vmatprep.subr.bf16.mxu0 %v21356_v47  ;;  %v21423_v10 = vld [vmem:[#allocation25 + $0x7e8] ss:$16 sps:$4 sm:$0xff]   ;;  %v21428_v47 = vld [vmem:[#allocation25 + $0x804] ss:$16 sps:$4 sm:$0xff]  }
0x13c7   : > { %10149 = vmatprep.subr.bf16.mxu1 %v21359_v59  ;;  %v21431_v59 = vld [vmem:[#allocation25 + $0x80c] ss:$16 sps:$4 sm:$0xff]  }
0x13c9   : > { %9892 = vmatpush1.bf16.msra.mxu0 %v21354_v53  ;;  %v21426_v53 = vld [vmem:[#allocation25 + $0x800] ss:$16 sps:$4 sm:$0xff]  }
0x13ca   : > { %10150 = vmatpush1.bf16.msra.mxu1 %v21357_v16  ;;  %9893 = vmatprep.subr.bf16.mxu0 %v21362_v4  ;;  %v21429_v16 = vld [vmem:[#allocation25 + $0x808] ss:$16 sps:$4 sm:$0xff]   ;;  %v21434_v4 = vld [vmem:[#allocation25 + $0x824] ss:$16 sps:$4 sm:$0xff]  }
0x13cb   : > { %10151 = vmatprep.subr.bf16.mxu1 %v21365_v22  ;;  %v21437_v22 = vld [vmem:[#allocation25 + $0x82c] ss:$16 sps:$4 sm:$0xff]  }
0x13cd   : > { %9894 = vmatpush1.bf16.msra.mxu0 %v21360_v29  ;;  %v21432_v29 = vld [vmem:[#allocation25 + $0x820] ss:$16 sps:$4 sm:$0xff]  }
0x13ce   : > { %10152 = vmatpush1.bf16.msra.mxu1 %v21363_v57  ;;  %9895 = vmatprep.subr.bf16.mxu0 %v21368_v58  ;;  %v21435_v57 = vld [vmem:[#allocation25 + $0x828] ss:$16 sps:$4 sm:$0xff]   ;;  %v21440_v58 = vld [vmem:[#allocation25 + $0x844] ss:$16 sps:$4 sm:$0xff]  }
0x13cf   : > { %10153 = vmatprep.subr.bf16.mxu1 %v21371_v31  ;;  %v21443_v31 = vld [vmem:[#allocation25 + $0x84c] ss:$16 sps:$4 sm:$0xff]  }
0x13d1   : > { %9896 = vmatpush1.bf16.msra.mxu0 %v21366_v35  ;;  %v21438_v35 = vld [vmem:[#allocation25 + $0x840] ss:$16 sps:$4 sm:$0xff]  }
0x13d2   : > { %10154 = vmatpush1.bf16.msra.mxu1 %v21369_v9  ;;  %9897 = vmatprep.subr.bf16.mxu0 %v21374_v37  ;;  %v21441_v9 = vld [vmem:[#allocation25 + $0x848] ss:$16 sps:$4 sm:$0xff]   ;;  %v21446_v37 = vld [vmem:[#allocation25 + $0x864] ss:$16 sps:$4 sm:$0xff]  }
0x13d3   : > { %10155 = vmatprep.subr.bf16.mxu1 %v21377_v42  ;;  %v21444_v42 = vld [vmem:[#allocation25 + $0x860] ss:$16 sps:$4 sm:$0xff]  }
0x13d5   : > { %9898 = vmatpush1.bf16.msra.mxu0 %v21372_v46  ;;  %v21447_v46 = vld [vmem:[#allocation25 + $0x868] ss:$16 sps:$4 sm:$0xff]  }
0x13d6   : > { %10156 = vmatpush1.bf16.msra.mxu1 %v21375_v27  ;;  %9899 = vmatprep.subr.bf16.mxu0 %v21380_v32  ;;  %v21452_v27 = vld [vmem:[#allocation25 + $0x884] ss:$16 sps:$4 sm:$0xff]   ;;  %v21455_v32 = vld [vmem:[#allocation25 + $0x88c] ss:$16 sps:$4 sm:$0xff]  }
0x13d7   : > { %10157 = vmatprep.subr.bf16.mxu1 %v21383_v13  ;;  %v21453_v13 = vld [vmem:[#allocation25 + $0x888] ss:$16 sps:$4 sm:$0xff]  }
0x13d9   : > { %9900 = vmatpush1.bf16.msra.mxu0 %v21378_v26  ;;  %v21458_v26 = vld [vmem:[#allocation25 + $0x8a4] ss:$16 sps:$4 sm:$0xff]  }
0x13da   : > { %10158 = vmatpush1.bf16.msra.mxu1 %v21381_v54  ;;  %9901 = vmatprep.subr.bf16.mxu0 %v21386_v24  ;;  %v21461_v54 = vld [vmem:[#allocation25 + $0x8ac] ss:$16 sps:$4 sm:$0xff]   ;;  %v21456_v24 = vld [vmem:[#allocation25 + $0x8a0] ss:$16 sps:$4 sm:$0xff]  }
0x13db   : > { %10159 = vmatprep.subr.bf16.mxu1 %v21389_v39  ;;  %v21459_v39 = vld [vmem:[#allocation25 + $0x8a8] ss:$16 sps:$4 sm:$0xff]  }
0x13dd   : > { %9902 = vmatpush1.bf16.msra.mxu0 %v21384_v33  ;;  %v21464_v33 = vld [vmem:[#allocation25 + $0x8c4] ss:$16 sps:$4 sm:$0xff]  }
0x13de   : > { %10160 = vmatpush1.bf16.msra.mxu1 %v21387_v23  ;;  %9903 = vmatprep.subr.bf16.mxu0 %v21392_v40  ;;  %v21467_v23 = vld [vmem:[#allocation25 + $0x8cc] ss:$16 sps:$4 sm:$0xff]   ;;  %v21462_v40 = vld [vmem:[#allocation25 + $0x8c0] ss:$16 sps:$4 sm:$0xff]  }
0x13df   : > { %10161 = vmatprep.subr.bf16.mxu1 %v21395_v49  ;;  %v21465_v49 = vld [vmem:[#allocation25 + $0x8c8] ss:$16 sps:$4 sm:$0xff]  }
0x13e1   : > { %9904 = vmatpush1.bf16.msra.mxu0 %v21390_v56  ;;  %v21470_v56 = vld [vmem:[#allocation25 + $0x8e4] ss:$16 sps:$4 sm:$0xff]  }
0x13e2   : > { %10162 = vmatpush1.bf16.msra.mxu1 %v21393_v50  ;;  %9905 = vmatprep.subr.bf16.mxu0 %v21398_v18  ;;  %v21473_v50 = vld [vmem:[#allocation25 + $0x8ec] ss:$16 sps:$4 sm:$0xff]   ;;  %v21468_v18 = vld [vmem:[#allocation25 + $0x8e0] ss:$16 sps:$4 sm:$0xff]  }
0x13e3   : > { %10163 = vmatprep.subr.bf16.mxu1 %v21401_v45  ;;  %v21471_v45 = vld [vmem:[#allocation25 + $0x8e8] ss:$16 sps:$4 sm:$0xff]  }
0x13e5   : > { %9906 = vmatpush1.bf16.msra.mxu0 %v21396_v20  ;;  %v21476_v20 = vld [vmem:[#allocation25 + $0x904] ss:$16 sps:$4 sm:$0xff]  }
0x13e6   : > { %10164 = vmatpush1.bf16.msra.mxu1 %v21399_v15  ;;  %9907 = vmatprep.subr.bf16.mxu0 %v21404_v19  ;;  %v21479_v15 = vld [vmem:[#allocation25 + $0x90c] ss:$16 sps:$4 sm:$0xff]   ;;  %v21474_v19 = vld [vmem:[#allocation25 + $0x900] ss:$16 sps:$4 sm:$0xff]  }
0x13e7   : > { %10165 = vmatprep.subr.bf16.mxu1 %v21407_v55  ;;  %v21477_v55 = vld [vmem:[#allocation25 + $0x908] ss:$16 sps:$4 sm:$0xff]  }
0x13e9   : > { %9908 = vmatpush1.bf16.msra.mxu0 %v21402_v60  ;;  %v21482_v60 = vld [vmem:[#allocation25 + $0x924] ss:$16 sps:$4 sm:$0xff]  }
0x13ea   : > { %10166 = vmatpush1.bf16.msra.mxu1 %v21405_v21  ;;  %9909 = vmatprep.subr.bf16.mxu0 %v21410_v12  ;;  %v21485_v21 = vld [vmem:[#allocation25 + $0x92c] ss:$16 sps:$4 sm:$0xff]   ;;  %v21480_v12 = vld [vmem:[#allocation25 + $0x920] ss:$16 sps:$4 sm:$0xff]  }
0x13eb   : > { %10167 = vmatprep.subr.bf16.mxu1 %v21413_v7  ;;  %v21483_v7 = vld [vmem:[#allocation25 + $0x928] ss:$16 sps:$4 sm:$0xff]  }
0x13ed   : > { %9910 = vmatpush1.bf16.msra.mxu0 %v21408_v30  ;;  %v21488_v30 = vld [vmem:[#allocation25 + $0x944] ss:$16 sps:$4 sm:$0xff]  }
0x13ee   : > { %10168 = vmatpush1.bf16.msra.mxu1 %v21411_v17  ;;  %9911 = vmatprep.subr.bf16.mxu0 %v21416_v36  ;;  %v21491_v17 = vld [vmem:[#allocation25 + $0x94c] ss:$16 sps:$4 sm:$0xff]   ;;  %v21486_v36 = vld [vmem:[#allocation25 + $0x940] ss:$16 sps:$4 sm:$0xff]  }
0x13ef   : > { %10169 = vmatprep.subr.bf16.mxu1 %v21419_v52  ;;  %v21489_v52 = vld [vmem:[#allocation25 + $0x948] ss:$16 sps:$4 sm:$0xff]  }
0x13f1   : > { %9912 = vmatpush1.bf16.msra.mxu0 %v21414_v48  ;;  %v21494_v48 = vld [vmem:[#allocation25 + $0x964] ss:$16 sps:$4 sm:$0xff]  }
0x13f2   : > { %10170 = vmatpush1.bf16.msra.mxu1 %v21417_v2  ;;  %9913 = vmatprep.subr.bf16.mxu0 %v21422_v63  ;;  %v21497_v2 = vld [vmem:[#allocation25 + $0x96c] ss:$16 sps:$4 sm:$0xff]   ;;  %v21492_v63 = vld [vmem:[#allocation25 + $0x960] ss:$16 sps:$4 sm:$0xff]  }
0x13f3   : > { %10171 = vmatprep.subr.bf16.mxu1 %v21425_v41  ;;  %v21495_v41 = vld [vmem:[#allocation25 + $0x968] ss:$16 sps:$4 sm:$0xff]  }
0x13f5   : > { %9914 = vmatpush1.bf16.msra.mxu0 %v21420_v51  ;;  %v21500_v51 = vld [vmem:[#allocation25 + $0x984] ss:$16 sps:$4 sm:$0xff]  }
0x13f6   : > { %10172 = vmatpush1.bf16.msra.mxu1 %v21423_v10  ;;  %9926 = vmatprep.subr.bf16.mxu0 %v21428_v47  ;;  %v21503_v10 = vld [vmem:[#allocation25 + $0x98c] ss:$16 sps:$4 sm:$0xff]   ;;  %v21498_v47 = vld [vmem:[#allocation25 + $0x980] ss:$16 sps:$4 sm:$0xff]  }
0x13f7   : > { %10184 = vmatprep.subr.bf16.mxu1 %v21431_v59  ;;  %v21501_v59 = vld [vmem:[#allocation25 + $0x988] ss:$16 sps:$4 sm:$0xff]  }
0x13f8   : > { %9916 = vmatmul.mubr.bf16.vlgmr.msra.gmra.mrb[88].mxu0 %v25171_v11 }
0x13f9   : > { %10174 = vmatmul.mubr.bf16.vlgmr.msra.gmra.mrb[128].mxu1 %v25171_v11  ;;  %9927 = vmatpush1.bf16.msra.mxu0 %v21426_v53  ;;  %v21449_v11 = vld [vmem:[#allocation25 + $0x86c] ss:$16 sps:$4 sm:$0xff]   ;;  %v21506_v53 = vld [vmem:[#allocation25 + $0x9a4] ss:$16 sps:$4 sm:$0xff]  }
0x13fa   : > { %9958 = vmatprep.mubr.bf16.mxu0 %v25197_v3  ;;  %10185 = vmatpush1.bf16.msra.mxu1 %v21429_v16  ;;  %v21509_v16 = vld [vmem:[#allocation25 + $0x9ac] ss:$16 sps:$4 sm:$0xff]  }
0x13fb   : > { %10216 = vmatprep.mubr.bf16.mxu1 %v25197_v3  ;;  %9928 = vmatprep.subr.bf16.mxu0 %v21434_v4  ;;  %v21450_v3 = vld [vmem:[#allocation25 + $0x880] ss:$16 sps:$4 sm:$0xff]  }
0x13fc   : > { %10186 = vmatprep.subr.bf16.mxu1 %v21437_v22  ;;  %v21504_v4 = vld [vmem:[#allocation25 + $0x9a0] ss:$16 sps:$4 sm:$0xff]   ;;  %v21507_v22 = vld [vmem:[#allocation25 + $0x9a8] ss:$16 sps:$4 sm:$0xff]  }
0x13fd   : > { %9929 = vmatpush1.bf16.msra.mxu0 %v21432_v29  ;;  %v21512_v29 = vld [vmem:[#allocation25 + $0x9c4] ss:$16 sps:$4 sm:$0xff]  }
0x13fe   : > { %10187 = vmatpush1.bf16.msra.mxu1 %v21435_v57  ;;  %9930 = vmatprep.subr.bf16.mxu0 %v21440_v58  ;;  %v21515_v57 = vld [vmem:[#allocation25 + $0x9cc] ss:$16 sps:$4 sm:$0xff]   ;;  %v21510_v58 = vld [vmem:[#allocation25 + $0x9c0] ss:$16 sps:$4 sm:$0xff]  }
0x13ff   : > { %10188 = vmatprep.subr.bf16.mxu1 %v21443_v31  ;;  %v21513_v31 = vld [vmem:[#allocation25 + $0x9c8] ss:$16 sps:$4 sm:$0xff]  }
0x1401   : > { %9931 = vmatpush1.bf16.msra.mxu0 %v21438_v35  ;;  %v21518_v35 = vld [vmem:[#allocation25 + $0x9e4] ss:$16 sps:$4 sm:$0xff]  }
0x1402   : > { %10189 = vmatpush1.bf16.msra.mxu1 %v21441_v9  ;;  %9932 = vmatprep.subr.bf16.mxu0 %v21446_v37  ;;  %v21521_v9 = vld [vmem:[#allocation25 + $0x9ec] ss:$16 sps:$4 sm:$0xff]   ;;  %v21516_v37 = vld [vmem:[#allocation25 + $0x9e0] ss:$16 sps:$4 sm:$0xff]  }
0x1403   : > { %10190 = vmatprep.subr.bf16.mxu1 %v21449_v11  ;;  %v21519_v11 = vld [vmem:[#allocation25 + $0x9e8] ss:$16 sps:$4 sm:$0xff]  }
0x1405   : > { %9933 = vmatpush1.bf16.msra.mxu0 %v21444_v42  ;;  %v21524_v42 = vld [vmem:[#allocation25 + $0xa04] ss:$16 sps:$4 sm:$0xff]  }
0x1406   : > { %10191 = vmatpush1.bf16.msra.mxu1 %v21447_v46  ;;  %9934 = vmatprep.subr.bf16.mxu0 %v21452_v27  ;;  %v21527_v46 = vld [vmem:[#allocation25 + $0xa0c] ss:$16 sps:$4 sm:$0xff]   ;;  %v21522_v27 = vld [vmem:[#allocation25 + $0xa00] ss:$16 sps:$4 sm:$0xff]  }
0x1407   : > { %10192 = vmatprep.subr.bf16.mxu1 %v21455_v32  ;;  %v21525_v32 = vld [vmem:[#allocation25 + $0xa08] ss:$16 sps:$4 sm:$0xff]  }
0x1409   : > { %9935 = vmatpush1.bf16.msra.mxu0 %v21450_v3  ;;  %v21530_v3 = vld [vmem:[#allocation25 + $0xa24] ss:$16 sps:$4 sm:$0xff]  }
0x140a   : > { %10193 = vmatpush1.bf16.msra.mxu1 %v21453_v13  ;;  %9936 = vmatprep.subr.bf16.mxu0 %v21458_v26  ;;  %v21533_v13 = vld [vmem:[#allocation25 + $0xa2c] ss:$16 sps:$4 sm:$0xff]   ;;  %v21528_v26 = vld [vmem:[#allocation25 + $0xa20] ss:$16 sps:$4 sm:$0xff]  }
0x140b   : > { %10194 = vmatprep.subr.bf16.mxu1 %v21461_v54  ;;  %v21531_v54 = vld [vmem:[#allocation25 + $0xa28] ss:$16 sps:$4 sm:$0xff]  }
0x140d   : > { %9937 = vmatpush1.bf16.msra.mxu0 %v21456_v24  ;;  %v21536_v24 = vld [vmem:[#allocation25 + $0xa44] ss:$16 sps:$4 sm:$0xff]  }
0x140e   : > { %10195 = vmatpush1.bf16.msra.mxu1 %v21459_v39  ;;  %9938 = vmatprep.subr.bf16.mxu0 %v21464_v33  ;;  %v21539_v39 = vld [vmem:[#allocation25 + $0xa4c] ss:$16 sps:$4 sm:$0xff]   ;;  %v21534_v33 = vld [vmem:[#allocation25 + $0xa40] ss:$16 sps:$4 sm:$0xff]  }
0x140f   : > { %10196 = vmatprep.subr.bf16.mxu1 %v21467_v23  ;;  %v21537_v23 = vld [vmem:[#allocation25 + $0xa48] ss:$16 sps:$4 sm:$0xff]  }
0x1411   : > { %9939 = vmatpush1.bf16.msra.mxu0 %v21462_v40  ;;  %v21542_v40 = vld [vmem:[#allocation25 + $0xa64] ss:$16 sps:$4 sm:$0xff]  }
0x1412   : > { %10197 = vmatpush1.bf16.msra.mxu1 %v21465_v49  ;;  %9940 = vmatprep.subr.bf16.mxu0 %v21470_v56  ;;  %v21540_v49 = vld [vmem:[#allocation25 + $0xa60] ss:$16 sps:$4 sm:$0xff]   ;;  %v21543_v56 = vld [vmem:[#allocation25 + $0xa68] ss:$16 sps:$4 sm:$0xff]  }
0x1413   : > { %10198 = vmatprep.subr.bf16.mxu1 %v21473_v50  ;;  %v21548_v50 = vld [vmem:[#allocation25 + $0xa84] ss:$16 sps:$4 sm:$0xff]  }
0x1415   : > { %9941 = vmatpush1.bf16.msra.mxu0 %v21468_v18  ;;  %v21551_v18 = vld [vmem:[#allocation25 + $0xa8c] ss:$16 sps:$4 sm:$0xff]  }
0x1416   : > { %10199 = vmatpush1.bf16.msra.mxu1 %v21471_v45  ;;  %9942 = vmatprep.subr.bf16.mxu0 %v21476_v20  ;;  %v21549_v45 = vld [vmem:[#allocation25 + $0xa88] ss:$16 sps:$4 sm:$0xff]   ;;  %v21554_v20 = vld [vmem:[#allocation25 + $0xaa4] ss:$16 sps:$4 sm:$0xff]  }
0x1417   : > { %10200 = vmatprep.subr.bf16.mxu1 %v21479_v15  ;;  %v21557_v15 = vld [vmem:[#allocation25 + $0xaac] ss:$16 sps:$4 sm:$0xff]  }
0x1419   : > { %9943 = vmatpush1.bf16.msra.mxu0 %v21474_v19  ;;  %v21552_v19 = vld [vmem:[#allocation25 + $0xaa0] ss:$16 sps:$4 sm:$0xff]  }
0x141a   : > { %10201 = vmatpush1.bf16.msra.mxu1 %v21477_v55  ;;  %9944 = vmatprep.subr.bf16.mxu0 %v21482_v60  ;;  %v21555_v55 = vld [vmem:[#allocation25 + $0xaa8] ss:$16 sps:$4 sm:$0xff]   ;;  %v21560_v60 = vld [vmem:[#allocation25 + $0xac4] ss:$16 sps:$4 sm:$0xff]  }
0x141b   : > { %10202 = vmatprep.subr.bf16.mxu1 %v21485_v21  ;;  %v21563_v21 = vld [vmem:[#allocation25 + $0xacc] ss:$16 sps:$4 sm:$0xff]  }
0x141d   : > { %9945 = vmatpush1.bf16.msra.mxu0 %v21480_v12  ;;  %v21558_v12 = vld [vmem:[#allocation25 + $0xac0] ss:$16 sps:$4 sm:$0xff]  }
0x141e   : > { %10203 = vmatpush1.bf16.msra.mxu1 %v21483_v7  ;;  %9946 = vmatprep.subr.bf16.mxu0 %v21488_v30  ;;  %v21561_v7 = vld [vmem:[#allocation25 + $0xac8] ss:$16 sps:$4 sm:$0xff]   ;;  %v21566_v30 = vld [vmem:[#allocation25 + $0xae4] ss:$16 sps:$4 sm:$0xff]  }
0x141f   : > { %10204 = vmatprep.subr.bf16.mxu1 %v21491_v17  ;;  %v21569_v17 = vld [vmem:[#allocation25 + $0xaec] ss:$16 sps:$4 sm:$0xff]  }
0x1421   : > { %9947 = vmatpush1.bf16.msra.mxu0 %v21486_v36  ;;  %v21564_v36 = vld [vmem:[#allocation25 + $0xae0] ss:$16 sps:$4 sm:$0xff]  }
0x1422   : > { %10205 = vmatpush1.bf16.msra.mxu1 %v21489_v52  ;;  %9948 = vmatprep.subr.bf16.mxu0 %v21494_v48  ;;  %v21567_v52 = vld [vmem:[#allocation25 + $0xae8] ss:$16 sps:$4 sm:$0xff]   ;;  %v21572_v48 = vld [vmem:[#allocation25 + $0xb04] ss:$16 sps:$4 sm:$0xff]  }
0x1423   : > { %10206 = vmatprep.subr.bf16.mxu1 %v21497_v2  ;;  %v21575_v2 = vld [vmem:[#allocation25 + $0xb0c] ss:$16 sps:$4 sm:$0xff]  }
0x1425   : > { %9949 = vmatpush1.bf16.msra.mxu0 %v21492_v63  ;;  %v21570_v63 = vld [vmem:[#allocation25 + $0xb00] ss:$16 sps:$4 sm:$0xff]  }
0x1426   : > { %10207 = vmatpush1.bf16.msra.mxu1 %v21495_v41  ;;  %9950 = vmatprep.subr.bf16.mxu0 %v21500_v51  ;;  %v21573_v41 = vld [vmem:[#allocation25 + $0xb08] ss:$16 sps:$4 sm:$0xff]   ;;  %v21578_v51 = vld [vmem:[#allocation25 + $0xb24] ss:$16 sps:$4 sm:$0xff]  }
0x1427   : > { %10208 = vmatprep.subr.bf16.mxu1 %v21503_v10  ;;  %v21581_v10 = vld [vmem:[#allocation25 + $0xb2c] ss:$16 sps:$4 sm:$0xff]  }
0x1429   : > { %9951 = vmatpush1.bf16.msra.mxu0 %v21498_v47  ;;  %v21576_v47 = vld [vmem:[#allocation25 + $0xb20] ss:$16 sps:$4 sm:$0xff]  }
0x142a   : > { %10209 = vmatpush1.bf16.msra.mxu1 %v21501_v59  ;;  %9952 = vmatprep.subr.bf16.mxu0 %v21506_v53  ;;  %v21579_v59 = vld [vmem:[#allocation25 + $0xb28] ss:$16 sps:$4 sm:$0xff]   ;;  %v21584_v53 = vld [vmem:[#allocation25 + $0xb44] ss:$16 sps:$4 sm:$0xff]  }
0x142b   : > { %10210 = vmatprep.subr.bf16.mxu1 %v21509_v16  ;;  %v21587_v16 = vld [vmem:[#allocation25 + $0xb4c] ss:$16 sps:$4 sm:$0xff]  }
0x142d   : > { %9953 = vmatpush1.bf16.msra.mxu0 %v21504_v4  ;;  %v21582_v4 = vld [vmem:[#allocation25 + $0xb40] ss:$16 sps:$4 sm:$0xff]  }
0x142e   : > { %10211 = vmatpush1.bf16.msra.mxu1 %v21507_v22  ;;  %9954 = vmatprep.subr.bf16.mxu0 %v21512_v29  ;;  %v21585_v22 = vld [vmem:[#allocation25 + $0xb48] ss:$16 sps:$4 sm:$0xff]   ;;  %v21590_v29 = vld [vmem:[#allocation25 + $0xb64] ss:$16 sps:$4 sm:$0xff]  }
0x142f   : > { %10212 = vmatprep.subr.bf16.mxu1 %v21515_v57  ;;  %v21593_v57 = vld [vmem:[#allocation25 + $0xb6c] ss:$16 sps:$4 sm:$0xff]  }
0x1431   : > { %9955 = vmatpush1.bf16.msra.mxu0 %v21510_v58  ;;  %v21588_v58 = vld [vmem:[#allocation25 + $0xb60] ss:$16 sps:$4 sm:$0xff]  }
0x1432   : > { %10213 = vmatpush1.bf16.msra.mxu1 %v21513_v31  ;;  %9956 = vmatprep.subr.bf16.mxu0 %v21518_v35  ;;  %v21591_v31 = vld [vmem:[#allocation25 + $0xb68] ss:$16 sps:$4 sm:$0xff]   ;;  %v21596_v35 = vld [vmem:[#allocation25 + $0xb84] ss:$16 sps:$4 sm:$0xff]  }
0x1433   : > { %10214 = vmatprep.subr.bf16.mxu1 %v21521_v9  ;;  %v21599_v9 = vld [vmem:[#allocation25 + $0xb8c] ss:$16 sps:$4 sm:$0xff]  }
0x1435   : > { %9957 = vmatpush1.bf16.msra.mxu0 %v21516_v37  ;;  %v21594_v37 = vld [vmem:[#allocation25 + $0xb80] ss:$16 sps:$4 sm:$0xff]  }
0x1436   : > { %10215 = vmatpush1.bf16.msra.mxu1 %v21519_v11  ;;  %9969 = vmatprep.subr.bf16.mxu0 %v21524_v42  ;;  %v21597_v11 = vld [vmem:[#allocation25 + $0xb88] ss:$16 sps:$4 sm:$0xff]   ;;  %v21602_v42 = vld [vmem:[#allocation25 + $0xba4] ss:$16 sps:$4 sm:$0xff]  }
0x1437   : > { %10227 = vmatprep.subr.bf16.mxu1 %v21527_v46  ;;  %v21605_v46 = vld [vmem:[#allocation25 + $0xbac] ss:$16 sps:$4 sm:$0xff]  }
0x1438   : > { %9959 = vmatmul.mubr.bf16.vlgmr.msra.gmra.mrb[88].mxu0 %v25195_v5 }
0x1439   : > { %10217 = vmatmul.mubr.bf16.vlgmr.msra.gmra.mrb[128].mxu1 %v25195_v5  ;;  %9970 = vmatpush1.bf16.msra.mxu0 %v21522_v27  ;;  %v21545_v5 = vld [vmem:[#allocation25 + $0xa6c] ss:$16 sps:$4 sm:$0xff]   ;;  %v21600_v27 = vld [vmem:[#allocation25 + $0xba0] ss:$16 sps:$4 sm:$0xff]  }
0x143a   : > { %10001 = vmatprep.mubr.bf16.mxu0 %v25205_v43  ;;  %10228 = vmatpush1.bf16.msra.mxu1 %v21525_v32  ;;  %v21603_v32 = vld [vmem:[#allocation25 + $0xba8] ss:$16 sps:$4 sm:$0xff]  }
0x143b   : > { %10259 = vmatprep.mubr.bf16.mxu1 %v25205_v43  ;;  %9971 = vmatprep.subr.bf16.mxu0 %v21530_v3  ;;  %v21546_v43 = vld [vmem:[#allocation25 + $0xa80] ss:$16 sps:$4 sm:$0xff]   ;;  %v21608_v3 = vld [vmem:[#allocation25 + $0xbc4] ss:$16 sps:$4 sm:$0xff]  }
0x143c   : > { %10229 = vmatprep.subr.bf16.mxu1 %v21533_v13  ;;  %v21611_v13 = vld [vmem:[#allocation25 + $0xbcc] ss:$16 sps:$4 sm:$0xff]  }
0x143d   : > { %9972 = vmatpush1.bf16.msra.mxu0 %v21528_v26  ;;  %v21606_v26 = vld [vmem:[#allocation25 + $0xbc0] ss:$16 sps:$4 sm:$0xff]  }
0x143e   : > { %10230 = vmatpush1.bf16.msra.mxu1 %v21531_v54  ;;  %9973 = vmatprep.subr.bf16.mxu0 %v21536_v24  ;;  %v21609_v54 = vld [vmem:[#allocation25 + $0xbc8] ss:$16 sps:$4 sm:$0xff]   ;;  %v21614_v24 = vld [vmem:[#allocation25 + $0xbe4] ss:$16 sps:$4 sm:$0xff]  }
0x143f   : > { %10231 = vmatprep.subr.bf16.mxu1 %v21539_v39  ;;  %v21617_v39 = vld [vmem:[#allocation25 + $0xbec] ss:$16 sps:$4 sm:$0xff]  }
0x1441   : > { %9974 = vmatpush1.bf16.msra.mxu0 %v21534_v33  ;;  %v21612_v33 = vld [vmem:[#allocation25 + $0xbe0] ss:$16 sps:$4 sm:$0xff]  }
0x1442   : > { %10232 = vmatpush1.bf16.msra.mxu1 %v21537_v23  ;;  %9975 = vmatprep.subr.bf16.mxu0 %v21542_v40  ;;  %v21615_v23 = vld [vmem:[#allocation25 + $0xbe8] ss:$16 sps:$4 sm:$0xff]   ;;  %v7120_v40 = vld [vmem:[#allocation27] sm:$0xf] }
0x1443   : > { %10233 = vmatprep.subr.bf16.mxu1 %v21545_v5  ;;  %v7121_v5 = vld [vmem:[#allocation28] sm:$0xf] }
0x1445   : > { %9976 = vmatpush1.bf16.msra.mxu0 %v21540_v49  ;;  %v10274_v49 = vrot.slane %v7120_v40, %v24945_v28 }
0x1446   : > { %10234 = vmatpush1.bf16.msra.mxu1 %v21543_v56  ;;  %9977 = vmatprep.subr.bf16.mxu0 %v21548_v50  ;;  %v10282_v56 = vrot.slane %v7120_v40, %v25031_v44  ;;  %v10278_v50 = vrot.slane %v7120_v40, %v24948_v62 }
0x1447   : > { %10235 = vmatprep.subr.bf16.mxu1 %v21551_v18  ;;  %v10303_v18 = vrot.slane %v7121_v5, %v24945_v28 }
0x1449   : > { %9978 = vmatpush1.bf16.msra.mxu0 %v21546_v43  ;;  %v10286_v43 = vrot.slane %v7120_v40, %v25024_v0  ;;  %v21627_v40 = vld [vmem:[#allocation30 + $0x28] ss:$16 sps:$4 sm:$0xff]  }
0x144a   : > { %10236 = vmatpush1.bf16.msra.mxu1 %v21549_v45  ;;  %9979 = vmatprep.subr.bf16.mxu0 %v21554_v20  ;;  %v10311_v20 = vrot.slane %v7121_v5, %v25031_v44 }
0x144b   : > { %10237 = vmatprep.subr.bf16.mxu1 %v21557_v15 }
0x144d   : > { %9980 = vmatpush1.bf16.msra.mxu0 %v21552_v19 }
0x144e   : > { %10238 = vmatpush1.bf16.msra.mxu1 %v21555_v55  ;;  %9981 = vmatprep.subr.bf16.mxu0 %v21560_v60  ;;  %v10315_v60 = vrot.slane %v7121_v5, %v25024_v0 }
0x144f   : > { %10239 = vmatprep.subr.bf16.mxu1 %v21563_v21 }
0x1451   : > { %9982 = vmatpush1.bf16.msra.mxu0 %v21558_v12 }
0x1452   : > { %10240 = vmatpush1.bf16.msra.mxu1 %v21561_v7  ;;  %9983 = vmatprep.subr.bf16.mxu0 %v21566_v30 }
0x1453   : > { %10241 = vmatprep.subr.bf16.mxu1 %v21569_v17 }
0x1455   : > { %9984 = vmatpush1.bf16.msra.mxu0 %v21564_v36 }
0x1456   : > { %10242 = vmatpush1.bf16.msra.mxu1 %v21567_v52  ;;  %9985 = vmatprep.subr.bf16.mxu0 %v21572_v48 }
0x1457   : > { %10243 = vmatprep.subr.bf16.mxu1 %v21575_v2 }
0x1459   : > { %9986 = vmatpush1.bf16.msra.mxu0 %v21570_v63 }
0x145a   : > { %10244 = vmatpush1.bf16.msra.mxu1 %v21573_v41  ;;  %9987 = vmatprep.subr.bf16.mxu0 %v21578_v51 }
0x145b   : > { %10245 = vmatprep.subr.bf16.mxu1 %v21581_v10 }
0x145d   : > { %9988 = vmatpush1.bf16.msra.mxu0 %v21576_v47 }
0x145e   : > { %10246 = vmatpush1.bf16.msra.mxu1 %v21579_v59  ;;  %9989 = vmatprep.subr.bf16.mxu0 %v21584_v53 }
0x145f   : > { %10247 = vmatprep.subr.bf16.mxu1 %v21587_v16 }
0x1461   : > { %9990 = vmatpush1.bf16.msra.mxu0 %v21582_v4 }
0x1462   : > { %10248 = vmatpush1.bf16.msra.mxu1 %v21585_v22  ;;  %9991 = vmatprep.subr.bf16.mxu0 %v21590_v29 }
0x1463   : > { %10249 = vmatprep.subr.bf16.mxu1 %v21593_v57 }
0x1465   : > { %9992 = vmatpush1.bf16.msra.mxu0 %v21588_v58 }
0x1466   : > { %10250 = vmatpush1.bf16.msra.mxu1 %v21591_v31  ;;  %9993 = vmatprep.subr.bf16.mxu0 %v21596_v35 }
0x1467   : > { %10251 = vmatprep.subr.bf16.mxu1 %v21599_v9 }
0x1469   : > { %9994 = vmatpush1.bf16.msra.mxu0 %v21594_v37 }
0x146a   : > { %10252 = vmatpush1.bf16.msra.mxu1 %v21597_v11  ;;  %9995 = vmatprep.subr.bf16.mxu0 %v21602_v42 }
0x146b   : > { %10253 = vmatprep.subr.bf16.mxu1 %v21605_v46 }
0x146d   : > { %9996 = vmatpush1.bf16.msra.mxu0 %v21600_v27 }
0x146e   : > { %10254 = vmatpush1.bf16.msra.mxu1 %v21603_v32  ;;  %9997 = vmatprep.subr.bf16.mxu0 %v21608_v3 }
0x146f   : > { %10255 = vmatprep.subr.bf16.mxu1 %v21611_v13  ;;  %v21620_v13 = vld [vmem:[#allocation30 + $0x4] ss:$16 sps:$4 sm:$0xff]  }
0x1471   : > { %9998 = vmatpush1.bf16.msra.mxu0 %v21606_v26  ;;  %v21623_v26 = vld [vmem:[#allocation30 + $0xc] ss:$16 sps:$4 sm:$0xff]  }
0x1472   : > { %10256 = vmatpush1.bf16.msra.mxu1 %v21609_v54  ;;  %9999 = vmatprep.subr.bf16.mxu0 %v21614_v24  ;;  %v21618_v54 = vld [vmem:[#allocation30] ss:$16 sps:$4 sm:$0xff]   ;;  %v21621_v24 = vld [vmem:[#allocation30 + $0x8] ss:$16 sps:$4 sm:$0xff]  }
0x1473   : > { %10257 = vmatprep.subr.bf16.mxu1 %v21617_v39  ;;  %v21626_v39 = vld [vmem:[#allocation30 + $0x24] ss:$16 sps:$4 sm:$0xff]  }
0x1475   : > { %10000 = vmatpush1.bf16.msra.mxu0 %v21612_v33  ;;  %v21629_v33 = vld [vmem:[#allocation30 + $0x2c] ss:$16 sps:$4 sm:$0xff]  }
0x1476   : > { %10258 = vmatpush1.bf16.msra.mxu1 %v21615_v23  ;;  %v21624_v23 = vld [vmem:[#allocation30 + $0x20] ss:$16 sps:$4 sm:$0xff]  }
0x1478   : > { %10002 = vmatmul.mubr.bf16.vlgmr.msra.gmra.mrb[88].mxu0 %v25203_v34 }
0x1479   : > { %10260 = vmatmul.mubr.bf16.vlgmr.msra.gmra.mrb[128].mxu1 %v25203_v34  ;;  %10402 = vmatprep.mubr.f32.mxu0 %v25563_v25  ;;  %v10307_v34 = vrot.slane %v7121_v5, %v24948_v62  ;;  %v21632_v5 = vld [vmem:[#allocation30 + $0x44] ss:$16 sps:$4 sm:$0xff]  }
0x147a   : > { %10479 = vmatprep.mubr.f32.mxu1 %v25563_v25 }
0x154b   : > { %v10003_v45 = vpop.f32.mrb[88].mxu0 }
0x154c   : > { %v10291_v15 = vmul.f32 %v10274_v49, %v10003_v45  ;;  %v10261_v19 = vpop.f32.mrb[128].mxu1  ;;  %v10005_v55 = vpop.f32.mrb[89].mxu0  ;;  %v21636_v45 = vld [vmem:[#allocation30 + $0x60] ss:$16 sps:$4 sm:$0xff]  }
0x154d   : > { %v10293_v21 = vmul.f32 %v10282_v56, %v10261_v19  ;;  %v10292_v12 = vmul.f32 %v10278_v50, %v10005_v55  ;;  %v10263_v7 = vpop.f32.mrb[129].mxu1  ;;  %v10007_v30 = vpop.f32.mrb[90].mxu0  ;;  %v21642_v19 = vld [vmem:[#allocation30 + $0x80] ss:$16 sps:$4 sm:$0xff]   ;;  %v21645_v55 = vld [vmem:[#allocation30 + $0x88] ss:$16 sps:$4 sm:$0xff]  }
0x154e   : > { %v10320_v17 = vadd.f32 %v10303_v18, %v10291_v15  ;;  %v10294_v36 = vmul.f32 %v10286_v43, %v10263_v7  ;;  %v10295_v52 = vmul.f32 %v10274_v49, %v10007_v30  ;;  %v10265_v48 = vpop.f32.mrb[130].mxu1  ;;  %v10009_v2 = vpop.f32.mrb[91].mxu0  ;;  %v21635_v49 = vld [vmem:[#allocation30 + $0x4c] ss:$16 sps:$4 sm:$0xff]   ;;  %v21651_v7 = vld [vmem:[#allocation30 + $0xa8] ss:$16 sps:$4 sm:$0xff]  }
0x154f   : > { %v10322_v63 = vadd.f32 %v10311_v20, %v10293_v21  ;;  %v10321_v41 = vadd.f32 %v10307_v34, %v10292_v12  ;;  %v10297_v51 = vmul.f32 %v10282_v56, %v10265_v48  ;;  %v10296_v10 = vmul.f32 %v10278_v50, %v10009_v2  ;;  %v10267_v47 = vpop.f32.mrb[131].mxu1  ;;  %v21630_v56 = vld [vmem:[#allocation30 + $0x40] ss:$16 sps:$4 sm:$0xff]   ;;  %v21633_v50 = vld [vmem:[#allocation30 + $0x48] ss:$16 sps:$4 sm:$0xff]  }
0x1550   : > { %v10323_v59 = vadd.f32 %v10315_v60, %v10294_v36  ;;  %v10324_v53 = vadd.f32 %v10303_v18, %v10295_v52  ;;  %v10298_v16 = vmul.f32 %v10286_v43, %v10267_v47  ;;  %v10328_v29 = vmax.f32 %v10320_v17, 0.0  ;;  %v21638_v18 = vld [vmem:[#allocation30 + $0x64] ss:$16 sps:$4 sm:$0xff]   ;;  %v21641_v43 = vld [vmem:[#allocation30 + $0x6c] ss:$16 sps:$4 sm:$0xff]  }
0x1551   : > { %v10326_v4 = vadd.f32 %v10311_v20, %v10297_v51  ;;  %v10325_v22 = vadd.f32 %v10307_v34, %v10296_v10  ;;  %v10330_v31 = vmax.f32 %v10322_v63, 0.0  ;;  %v10329_v35 = vmax.f32 %v10321_v41, 0.0  ;;  %v21639_v20 = vld [vmem:[#allocation30 + $0x68] ss:$16 sps:$4 sm:$0xff]   ;;  %v21644_v34 = vld [vmem:[#allocation30 + $0x84] ss:$16 sps:$4 sm:$0xff]  }
0x1552   : > { %v10332_v57 = vmax.f32 %v10324_v53, 0.0  ;;  %v10327_v58 = vadd.f32 %v10315_v60, %v10298_v16  ;;  %v10331_v11 = vmax.f32 %v10323_v59, 0.0  ;;  %v21647_v15 = vld [vmem:[#allocation30 + $0x8c] ss:$16 sps:$4 sm:$0xff]   ;;  %v21650_v60 = vld [vmem:[#allocation30 + $0xa4] ss:$16 sps:$4 sm:$0xff]  }
0x1553   : > { %v10334_v9 = vmax.f32 %v10326_v4, 0.0  ;;  %v10333_v37 = vmax.f32 %v10325_v22, 0.0  ;;  %v21653_v21 = vld [vmem:[#allocation30 + $0xac] ss:$16 sps:$4 sm:$0xff]   ;;  %v21648_v12 = vld [vmem:[#allocation30 + $0xa0] ss:$16 sps:$4 sm:$0xff]  }
0x1554   : > { %v25231_v42 = vpack.c.bf16 %v10332_v57, %v10328_v29  ;;  %v10335_v46 = vmax.f32 %v10327_v58, 0.0  ;;  %v21656_v30 = vld [vmem:[#allocation30 + $0xc4] ss:$16 sps:$4 sm:$0xff]   ;;  %v21659_v17 = vld [vmem:[#allocation30 + $0xcc] ss:$16 sps:$4 sm:$0xff]  }
0x1555   : > { %v25233_v27 = vpack.c.bf16 %v10334_v9, %v10330_v31  ;;  %v25235_v32 = vpack.c.bf16 %v10333_v37, %v10329_v35  ;;  %v21654_v36 = vld [vmem:[#allocation30 + $0xc0] ss:$16 sps:$4 sm:$0xff]   ;;  %v21657_v52 = vld [vmem:[#allocation30 + $0xc8] ss:$16 sps:$4 sm:$0xff]   ;;  %v21662_v48 = vld [vmem:[#allocation30 + $0xe4] ss:$16 sps:$4 sm:$0xff]  }
0x1556   : > { %v25237_v3 = vpack.c.bf16 %v10335_v46, %v10331_v11  ;;  %v21665_v2 = vld [vmem:[#allocation30 + $0xec] ss:$16 sps:$4 sm:$0xff]   ;;  %v21660_v63 = vld [vmem:[#allocation30 + $0xe0] ss:$16 sps:$4 sm:$0xff]   ;;  %v21663_v41 = vld [vmem:[#allocation30 + $0xe8] ss:$16 sps:$4 sm:$0xff]  }
0x1557   : > { %20109 = vmatprep.subr.bf16.mxu0 %v25235_v32  ;;  %v21668_v51 = vld [vmem:[#allocation30 + $0x104] ss:$16 sps:$4 sm:$0xff]   ;;  %v21671_v10 = vld [vmem:[#allocation30 + $0x10c] ss:$16 sps:$4 sm:$0xff]   ;;  %v21666_v47 = vld [vmem:[#allocation30 + $0x100] ss:$16 sps:$4 sm:$0xff]  }
0x1558   : > { %20113 = vmatprep.subr.bf16.mxu1 %v25237_v3  ;;  %20111 = vmatpush1.bf16.msra.mxu0 %v25231_v42  ;;  %v21669_v59 = vld [vmem:[#allocation30 + $0x108] ss:$16 sps:$4 sm:$0xff]   ;;  %v21674_v53 = vld [vmem:[#allocation30 + $0x124] ss:$16 sps:$4 sm:$0xff]   ;;  %v21677_v16 = vld [vmem:[#allocation30 + $0x12c] ss:$16 sps:$4 sm:$0xff]  }
0x1559   : > { %20115 = vmatpush1.bf16.msra.mxu1 %v25233_v27  ;;  %20117 = vmatprep.subr.bf16.mxu0 %v25235_v32  ;;  %v21672_v4 = vld [vmem:[#allocation30 + $0x120] ss:$16 sps:$4 sm:$0xff]   ;;  %v21675_v22 = vld [vmem:[#allocation30 + $0x128] ss:$16 sps:$4 sm:$0xff]   ;;  %v21680_v29 = vld [vmem:[#allocation30 + $0x144] ss:$16 sps:$4 sm:$0xff]  }
0x155a   : > { %20121 = vmatprep.subr.bf16.mxu1 %v25237_v3  ;;  %v21683_v57 = vld [vmem:[#allocation30 + $0x14c] ss:$16 sps:$4 sm:$0xff]   ;;  %v21678_v58 = vld [vmem:[#allocation30 + $0x140] ss:$16 sps:$4 sm:$0xff]   ;;  %v21681_v31 = vld [vmem:[#allocation30 + $0x148] ss:$16 sps:$4 sm:$0xff]  }
0x155b   : > { %18213 = vmatmul.mubr.msk.f32.vlgmr.msra.gmra.mrb[92].mxu0 %vm2763_vm5, %v24320_v8  ;;  %v21686_v35 = vld [vmem:[#allocation30 + $0x164] ss:$16 sps:$4 sm:$0xff]   ;;  %v21689_v9 = vld [vmem:[#allocation30 + $0x16c] ss:$16 sps:$4 sm:$0xff]   ;;  %v21684_v37 = vld [vmem:[#allocation30 + $0x160] ss:$16 sps:$4 sm:$0xff]  }
0x155c   : > { %18215 = vmatmul.mubr.msk.f32.vlgmr.msra.gmra.mrb[132].mxu1 %vm2763_vm5, %v24320_v8  ;;  %20119 = vmatpush1.bf16.msra.mxu0 %v25231_v42  ;;  %v21687_v11 = vld [vmem:[#allocation30 + $0x168] ss:$16 sps:$4 sm:$0xff]   ;;  %v21692_v46 = vld [vmem:[#allocation30 + $0x184] ss:$16 sps:$4 sm:$0xff]  }
0x155d   : > { %20123 = vmatpush1.bf16.msra.mxu1 %v25233_v27  ;;  %10408 = vmatprep.mubr.f32.mxu0 %v25563_v25 }
0x155e   : > { %10485 = vmatprep.mubr.f32.mxu1 %v25563_v25  ;;  %12962 = vmatprep.subr.bf16.mxu0 %v21620_v13  ;;  %v21695_v13 = vld [vmem:[#allocation30 + $0x18c] ss:$16 sps:$4 sm:$0xff]  }
0x155f   : > { %18214 = vmatmul.mubr.msk.f32.gmra.mrb[94].mxu0 %vm2763_vm5, %v24391_v38  ;;  %13220 = vmatprep.subr.bf16.mxu1 %v21623_v26  ;;  %v21690_v26 = vld [vmem:[#allocation30 + $0x180] ss:$16 sps:$4 sm:$0xff]  }
0x1560   : > { %18216 = vmatmul.mubr.msk.f32.gmra.mrb[134].mxu1 %vm2763_vm5, %v24391_v38  ;;  %10564 = vmatprep.mubr.f32.mxu0 %v25563_v25 }
0x1561   : > { %10641 = vmatprep.mubr.f32.mxu1 %v25563_v25 }
0x1563   : > { %18217 = vmatmul.mubr.msk.f32.vlgmr.msra.gmra.mrb[96].mxu0 %vm2763_vm5, %v24496_v61 }
0x1564   : > { %18219 = vmatmul.mubr.msk.f32.vlgmr.msra.gmra.mrb[136].mxu1 %vm2763_vm5, %v24496_v61  ;;  %12963 = vmatpush1.bf16.msra.mxu0 %v21618_v54  ;;  %v21693_v54 = vld [vmem:[#allocation30 + $0x188] ss:$16 sps:$4 sm:$0xff]  }
0x1565   : > { %13221 = vmatpush1.bf16.msra.mxu1 %v21621_v24  ;;  %12964 = vmatprep.subr.bf16.mxu0 %v21626_v39  ;;  %v21698_v24 = vld [vmem:[#allocation30 + $0x1a4] ss:$16 sps:$4 sm:$0xff]   ;;  %v21701_v39 = vld [vmem:[#allocation30 + $0x1ac] ss:$16 sps:$4 sm:$0xff]  }
0x1566   : > { %13222 = vmatprep.subr.bf16.mxu1 %v21629_v33  ;;  %10570 = vmatprep.mubr.f32.mxu0 %v25563_v25  ;;  %v21696_v33 = vld [vmem:[#allocation30 + $0x1a0] ss:$16 sps:$4 sm:$0xff]  }
0x1567   : > { %18218 = vmatmul.mubr.msk.f32.gmra.mrb[98].mxu0 %vm2763_vm5, %v24523_v6  ;;  %10647 = vmatprep.mubr.f32.mxu1 %v25563_v25 }
0x1568   : > { %12965 = vmatpush1.bf16.msra.mxu0 %v21624_v23  ;;  %18220 = vmatmul.mubr.msk.f32.gmra.mrb[138].mxu1 %vm2763_vm5, %v24523_v6  ;;  %v21699_v23 = vld [vmem:[#allocation30 + $0x1a8] ss:$16 sps:$4 sm:$0xff]  }
0x1569   : > { %13223 = vmatpush1.bf16.msra.mxu1 %v21627_v40  ;;  %12966 = vmatprep.subr.bf16.mxu0 %v21632_v5  ;;  %v21704_v40 = vld [vmem:[#allocation30 + $0x1c4] ss:$16 sps:$4 sm:$0xff]   ;;  %v21707_v5 = vld [vmem:[#allocation30 + $0x1cc] ss:$16 sps:$4 sm:$0xff]  }
0x156a   : > { %13224 = vmatprep.subr.bf16.mxu1 %v21635_v49  ;;  %v21702_v49 = vld [vmem:[#allocation30 + $0x1c0] ss:$16 sps:$4 sm:$0xff]  }
0x156c   : > { %12967 = vmatpush1.bf16.msra.mxu0 %v21630_v56  ;;  %v21705_v56 = vld [vmem:[#allocation30 + $0x1c8] ss:$16 sps:$4 sm:$0xff]  }
0x156d   : > { %13225 = vmatpush1.bf16.msra.mxu1 %v21633_v50  ;;  %12968 = vmatprep.subr.bf16.mxu0 %v21638_v18  ;;  %v21710_v50 = vld [vmem:[#allocation30 + $0x1e4] ss:$16 sps:$4 sm:$0xff]   ;;  %v21713_v18 = vld [vmem:[#allocation30 + $0x1ec] ss:$16 sps:$4 sm:$0xff]  }
0x156e   : > { %13226 = vmatprep.subr.bf16.mxu1 %v21641_v43  ;;  %v21708_v43 = vld [vmem:[#allocation30 + $0x1e0] ss:$16 sps:$4 sm:$0xff]  }
0x1570   : > { %12969 = vmatpush1.bf16.msra.mxu0 %v21636_v45  ;;  %v21711_v45 = vld [vmem:[#allocation30 + $0x1e8] ss:$16 sps:$4 sm:$0xff]  }
0x1571   : > { %13227 = vmatpush1.bf16.msra.mxu1 %v21639_v20  ;;  %12970 = vmatprep.subr.bf16.mxu0 %v21644_v34  ;;  %v21716_v20 = vld [vmem:[#allocation30 + $0x204] ss:$16 sps:$4 sm:$0xff]   ;;  %v21719_v34 = vld [vmem:[#allocation30 + $0x20c] ss:$16 sps:$4 sm:$0xff]  }
0x1572   : > { %13228 = vmatprep.subr.bf16.mxu1 %v21647_v15 }
0x1574   : > { %12971 = vmatpush1.bf16.msra.mxu0 %v21642_v19 }
0x1575   : > { %13229 = vmatpush1.bf16.msra.mxu1 %v21645_v55  ;;  %12972 = vmatprep.subr.bf16.mxu0 %v21650_v60 }
0x1576   : > { %13230 = vmatprep.subr.bf16.mxu1 %v21653_v21 }
0x1578   : > { %12973 = vmatpush1.bf16.msra.mxu0 %v21648_v12 }
0x1579   : > { %13231 = vmatpush1.bf16.msra.mxu1 %v21651_v7  ;;  %12974 = vmatprep.subr.bf16.mxu0 %v21656_v30 }
0x157a   : > { %13232 = vmatprep.subr.bf16.mxu1 %v21659_v17 }
0x157c   : > { %12975 = vmatpush1.bf16.msra.mxu0 %v21654_v36  ;;  %v21714_v36 = vld [vmem:[#allocation30 + $0x200] ss:$16 sps:$4 sm:$0xff]  }
0x157d   : > { %13233 = vmatpush1.bf16.msra.mxu1 %v21657_v52  ;;  %12976 = vmatprep.subr.bf16.mxu0 %v21662_v48  ;;  %v21717_v52 = vld [vmem:[#allocation30 + $0x208] ss:$16 sps:$4 sm:$0xff]  }
0x157e   : > { %13234 = vmatprep.subr.bf16.mxu1 %v21665_v2 }
0x1580   : > { %12977 = vmatpush1.bf16.msra.mxu0 %v21660_v63  ;;  %v21722_v63 = vld [vmem:[#allocation30 + $0x224] ss:$16 sps:$4 sm:$0xff]  }
0x1581   : > { %13235 = vmatpush1.bf16.msra.mxu1 %v21663_v41  ;;  %12978 = vmatprep.subr.bf16.mxu0 %v21668_v51  ;;  %v21725_v41 = vld [vmem:[#allocation30 + $0x22c] ss:$16 sps:$4 sm:$0xff]  }
0x1582   : > { %13236 = vmatprep.subr.bf16.mxu1 %v21671_v10  ;;  %v21720_v10 = vld [vmem:[#allocation30 + $0x220] ss:$16 sps:$4 sm:$0xff]  }
0x1584   : > { %12979 = vmatpush1.bf16.msra.mxu0 %v21666_v47  ;;  %v21723_v47 = vld [vmem:[#allocation30 + $0x228] ss:$16 sps:$4 sm:$0xff]  }
0x1585   : > { %13237 = vmatpush1.bf16.msra.mxu1 %v21669_v59  ;;  %12980 = vmatprep.subr.bf16.mxu0 %v21674_v53  ;;  %v21728_v59 = vld [vmem:[#allocation30 + $0x244] ss:$16 sps:$4 sm:$0xff]   ;;  %v21731_v53 = vld [vmem:[#allocation30 + $0x24c] ss:$16 sps:$4 sm:$0xff]  }
0x1586   : > { %13238 = vmatprep.subr.bf16.mxu1 %v21677_v16  ;;  %v21726_v16 = vld [vmem:[#allocation30 + $0x240] ss:$16 sps:$4 sm:$0xff]  }
0x1588   : > { %12981 = vmatpush1.bf16.msra.mxu0 %v21672_v4  ;;  %v21729_v4 = vld [vmem:[#allocation30 + $0x248] ss:$16 sps:$4 sm:$0xff]  }
0x1589   : > { %13239 = vmatpush1.bf16.msra.mxu1 %v21675_v22  ;;  %12982 = vmatprep.subr.bf16.mxu0 %v21680_v29  ;;  %v21734_v22 = vld [vmem:[#allocation30 + $0x264] ss:$16 sps:$4 sm:$0xff]   ;;  %v21737_v29 = vld [vmem:[#allocation30 + $0x26c] ss:$16 sps:$4 sm:$0xff]  }
0x158a   : > { %13240 = vmatprep.subr.bf16.mxu1 %v21683_v57  ;;  %v21732_v57 = vld [vmem:[#allocation30 + $0x260] ss:$16 sps:$4 sm:$0xff]  }
0x158c   : > { %12983 = vmatpush1.bf16.msra.mxu0 %v21678_v58  ;;  %v21735_v58 = vld [vmem:[#allocation30 + $0x268] ss:$16 sps:$4 sm:$0xff]  }
0x158d   : > { %13241 = vmatpush1.bf16.msra.mxu1 %v21681_v31  ;;  %12984 = vmatprep.subr.bf16.mxu0 %v21686_v35  ;;  %v21740_v31 = vld [vmem:[#allocation30 + $0x284] ss:$16 sps:$4 sm:$0xff]   ;;  %v21743_v35 = vld [vmem:[#allocation30 + $0x28c] ss:$16 sps:$4 sm:$0xff]  }
0x158e   : > { %13242 = vmatprep.subr.bf16.mxu1 %v21689_v9  ;;  %v21738_v9 = vld [vmem:[#allocation30 + $0x280] ss:$16 sps:$4 sm:$0xff]  }
0x1590   : > { %12985 = vmatpush1.bf16.msra.mxu0 %v21684_v37  ;;  %v21741_v37 = vld [vmem:[#allocation30 + $0x288] ss:$16 sps:$4 sm:$0xff]  }
0x1591   : > { %13243 = vmatpush1.bf16.msra.mxu1 %v21687_v11  ;;  %12986 = vmatprep.subr.bf16.mxu0 %v21692_v46  ;;  %v21746_v11 = vld [vmem:[#allocation30 + $0x2a4] ss:$16 sps:$4 sm:$0xff]   ;;  %v21749_v46 = vld [vmem:[#allocation30 + $0x2ac] ss:$16 sps:$4 sm:$0xff]  }
0x1592   : > { %13244 = vmatprep.subr.bf16.mxu1 %v21695_v13  ;;  %v21744_v13 = vld [vmem:[#allocation30 + $0x2a0] ss:$16 sps:$4 sm:$0xff]  }
0x1594   : > { %12987 = vmatpush1.bf16.msra.mxu0 %v21690_v26  ;;  %v21747_v26 = vld [vmem:[#allocation30 + $0x2a8] ss:$16 sps:$4 sm:$0xff]  }
0x1595   : > { %13245 = vmatpush1.bf16.msra.mxu1 %v21693_v54  ;;  %12988 = vmatprep.subr.bf16.mxu0 %v21698_v24  ;;  %v21752_v54 = vld [vmem:[#allocation30 + $0x2c4] ss:$16 sps:$4 sm:$0xff]   ;;  %v21755_v24 = vld [vmem:[#allocation30 + $0x2cc] ss:$16 sps:$4 sm:$0xff]  }
0x1596   : > { %13246 = vmatprep.subr.bf16.mxu1 %v21701_v39 }
0x1598   : > { %12989 = vmatpush1.bf16.msra.mxu0 %v21696_v33 }
0x1599   : > { %13247 = vmatpush1.bf16.msra.mxu1 %v21699_v23  ;;  %12990 = vmatprep.subr.bf16.mxu0 %v21704_v40  ;;  %v21750_v23 = vld [vmem:[#allocation30 + $0x2c0] ss:$16 sps:$4 sm:$0xff]   ;;  %v21753_v40 = vld [vmem:[#allocation30 + $0x2c8] ss:$16 sps:$4 sm:$0xff]  }
0x159a   : > { %13248 = vmatprep.subr.bf16.mxu1 %v21707_v5 }
0x159c   : > { %12991 = vmatpush1.bf16.msra.mxu0 %v21702_v49  ;;  %v21758_v49 = vld [vmem:[#allocation30 + $0x2e4] ss:$16 sps:$4 sm:$0xff]  }
0x159d   : > { %13249 = vmatpush1.bf16.msra.mxu1 %v21705_v56  ;;  %12992 = vmatprep.subr.bf16.mxu0 %v21710_v50  ;;  %v21761_v56 = vld [vmem:[#allocation30 + $0x2ec] ss:$16 sps:$4 sm:$0xff]  }
0x159e   : > { %13250 = vmatprep.subr.bf16.mxu1 %v21713_v18 }
0x15a0   : > { %12993 = vmatpush1.bf16.msra.mxu0 %v21708_v43 }
0x15a1   : > { %13251 = vmatpush1.bf16.msra.mxu1 %v21711_v45  ;;  %13005 = vmatprep.subr.bf16.mxu0 %v21716_v20  ;;  %v21756_v45 = vld [vmem:[#allocation30 + $0x2e0] ss:$16 sps:$4 sm:$0xff]   ;;  %v21759_v20 = vld [vmem:[#allocation30 + $0x2e8] ss:$16 sps:$4 sm:$0xff]  }
0x15a2   : > { %13263 = vmatprep.subr.bf16.mxu1 %v21719_v34  ;;  %v21764_v34 = vld [vmem:[#allocation30 + $0x304] ss:$16 sps:$4 sm:$0xff]  }
0x162e   : > { %v10404_v15 = vpop.f32.mrb[92].mxu0 }
0x162f   : > { %v10406_v19 = vpop.f32.mrb[93].mxu0  ;;  %v10481_v55 = vpop.f32.mrb[132].mxu1 }
0x1630   : > { %v10483_v60 = vpop.f32.mrb[133].mxu1 }
0x1632   : > { %v10410_v21 = vpop.f32.mrb[94].mxu0 }
0x1633   : > { %v10492_v12 = vpack.c.bf16 %v10410_v21, %v10404_v15  ;;  %v10412_v7 = vpop.f32.mrb[95].mxu0  ;;  %v10487_v30 = vpop.f32.mrb[134].mxu1  ;;  %v21767_v15 = vld [vmem:[#allocation30 + $0x30c] ss:$16 sps:$4 sm:$0xff]  }
0x1634   : > { %v10493_v17 = vpack.c.bf16 %v10412_v7, %v10406_v19  ;;  %v25269_v48 = vpack.c.bf16 %v10487_v30, %v10481_v55  ;;  %v10489_v2 = vpop.f32.mrb[135].mxu1  ;;  %v21762_v19 = vld [vmem:[#allocation30 + $0x300] ss:$16 sps:$4 sm:$0xff]   ;;  %v21765_v55 = vld [vmem:[#allocation30 + $0x308] ss:$16 sps:$4 sm:$0xff]  }
0x1635   : > { %v10495_v51 = vpack.c.bf16 %v10489_v2, %v10483_v60  ;;  %v21770_v60 = vld [vmem:[#allocation30 + $0x324] ss:$16 sps:$4 sm:$0xff]   ;;  %v21773_v21 = vld [vmem:[#allocation30 + $0x32c] ss:$16 sps:$4 sm:$0xff]   ;;  %v21771_v7 = vld [vmem:[#allocation30 + $0x328] ss:$16 sps:$4 sm:$0xff]  }
0x1636   : > { %12994 = vmatprep.mubr.bf16.mxu0 %v10493_v17  ;;  %13252 = vmatprep.mubr.bf16.mxu1 %v10493_v17  ;;  %v10566_v39 = vpop.f32.mrb[96].mxu0  ;;  %v21776_v30 = vld [vmem:[#allocation30 + $0x344] ss:$16 sps:$4 sm:$0xff]   ;;  %v21779_v17 = vld [vmem:[#allocation30 + $0x34c] ss:$16 sps:$4 sm:$0xff]  }
0x1637   : > { %12995 = vmatmul.mubr.bf16.vlgmr.msra.gmra.mrb[100].mxu0 %v10492_v12  ;;  %13253 = vmatmul.mubr.bf16.vlgmr.msra.gmra.mrb[140].mxu1 %v10492_v12  ;;  %v10568_v33 = vpop.f32.mrb[97].mxu0  ;;  %v21768_v12 = vld [vmem:[#allocation30 + $0x320] ss:$16 sps:$4 sm:$0xff]   ;;  %v21782_v2 = vld [vmem:[#allocation30 + $0x364] ss:$16 sps:$4 sm:$0xff]  }
0x1638   : > { %13006 = vmatpush1.bf16.msra.mxu0 %v21714_v36  ;;  %13264 = vmatpush1.bf16.msra.mxu1 %v21717_v52  ;;  %v21774_v36 = vld [vmem:[#allocation30 + $0x340] ss:$16 sps:$4 sm:$0xff]   ;;  %v21777_v52 = vld [vmem:[#allocation30 + $0x348] ss:$16 sps:$4 sm:$0xff]  }
0x1639   : > { %13007 = vmatprep.subr.bf16.mxu0 %v21722_v63  ;;  %13265 = vmatprep.subr.bf16.mxu1 %v21725_v41  ;;  %v21785_v63 = vld [vmem:[#allocation30 + $0x36c] ss:$16 sps:$4 sm:$0xff]   ;;  %v21780_v41 = vld [vmem:[#allocation30 + $0x360] ss:$16 sps:$4 sm:$0xff]  }
0x163a   : > { %13037 = vmatprep.mubr.bf16.mxu0 %v10495_v51  ;;  %13295 = vmatprep.mubr.bf16.mxu1 %v10495_v51  ;;  %v10572_v5 = vpop.f32.mrb[98].mxu0  ;;  %v21783_v51 = vld [vmem:[#allocation30 + $0x368] ss:$16 sps:$4 sm:$0xff]  }
0x163b   : > { %v25271_v50 = vpack.c.bf16 %v10572_v5, %v10566_v39  ;;  %v10574_v18 = vpop.f32.mrb[99].mxu0  ;;  %v21818_v39 = vld [vmem:[#allocation30 + $0x424] ss:$16 sps:$4 sm:$0xff]  }
0x163c   : > { %13008 = vmatpush1.bf16.msra.mxu0 %v21720_v10  ;;  %13266 = vmatpush1.bf16.msra.mxu1 %v21723_v47  ;;  %v25273_v43 = vpack.c.bf16 %v10574_v18, %v10568_v33  ;;  %v21788_v10 = vld [vmem:[#allocation30 + $0x384] ss:$16 sps:$4 sm:$0xff]   ;;  %v21791_v47 = vld [vmem:[#allocation30 + $0x38c] ss:$16 sps:$4 sm:$0xff]   ;;  %v21825_v18 = vld [vmem:[#allocation30 + $0x448] ss:$16 sps:$4 sm:$0xff]  }
0x163d   : > { %13009 = vmatprep.subr.bf16.mxu0 %v21728_v59  ;;  %13267 = vmatprep.subr.bf16.mxu1 %v21731_v53  ;;  %v21786_v59 = vld [vmem:[#allocation30 + $0x380] ss:$16 sps:$4 sm:$0xff]   ;;  %v21789_v53 = vld [vmem:[#allocation30 + $0x388] ss:$16 sps:$4 sm:$0xff]   ;;  %v21821_v33 = vld [vmem:[#allocation30 + $0x42c] ss:$16 sps:$4 sm:$0xff]  }
0x163e   : > { %v21824_v5 = vld [vmem:[#allocation30 + $0x444] ss:$16 sps:$4 sm:$0xff]  }
0x1640   : > { %13010 = vmatpush1.bf16.msra.mxu0 %v21726_v16  ;;  %13268 = vmatpush1.bf16.msra.mxu1 %v21729_v4  ;;  %v21794_v16 = vld [vmem:[#allocation30 + $0x3a4] ss:$16 sps:$4 sm:$0xff]   ;;  %v21797_v4 = vld [vmem:[#allocation30 + $0x3ac] ss:$16 sps:$4 sm:$0xff]  }
0x1641   : > { %13011 = vmatprep.subr.bf16.mxu0 %v21734_v22  ;;  %13269 = vmatprep.subr.bf16.mxu1 %v21737_v29  ;;  %v21792_v22 = vld [vmem:[#allocation30 + $0x3a0] ss:$16 sps:$4 sm:$0xff]   ;;  %v21795_v29 = vld [vmem:[#allocation30 + $0x3a8] ss:$16 sps:$4 sm:$0xff]  }
0x1644   : > { %13012 = vmatpush1.bf16.msra.mxu0 %v21732_v57  ;;  %13270 = vmatpush1.bf16.msra.mxu1 %v21735_v58  ;;  %v21800_v57 = vld [vmem:[#allocation30 + $0x3c4] ss:$16 sps:$4 sm:$0xff]   ;;  %v21803_v58 = vld [vmem:[#allocation30 + $0x3cc] ss:$16 sps:$4 sm:$0xff]  }
0x1645   : > { %13013 = vmatprep.subr.bf16.mxu0 %v21740_v31  ;;  %13271 = vmatprep.subr.bf16.mxu1 %v21743_v35  ;;  %v21798_v31 = vld [vmem:[#allocation30 + $0x3c0] ss:$16 sps:$4 sm:$0xff]   ;;  %v21801_v35 = vld [vmem:[#allocation30 + $0x3c8] ss:$16 sps:$4 sm:$0xff]  }
0x1648   : > { %13014 = vmatpush1.bf16.msra.mxu0 %v21738_v9  ;;  %13272 = vmatpush1.bf16.msra.mxu1 %v21741_v37  ;;  %v21806_v9 = vld [vmem:[#allocation30 + $0x3e4] ss:$16 sps:$4 sm:$0xff]   ;;  %v21809_v37 = vld [vmem:[#allocation30 + $0x3ec] ss:$16 sps:$4 sm:$0xff]  }
0x1649   : > { %13015 = vmatprep.subr.bf16.mxu0 %v21746_v11  ;;  %13273 = vmatprep.subr.bf16.mxu1 %v21749_v46  ;;  %v21804_v11 = vld [vmem:[#allocation30 + $0x3e0] ss:$16 sps:$4 sm:$0xff]   ;;  %v21807_v46 = vld [vmem:[#allocation30 + $0x3e8] ss:$16 sps:$4 sm:$0xff]  }
0x164c   : > { %13016 = vmatpush1.bf16.msra.mxu0 %v21744_v13  ;;  %13274 = vmatpush1.bf16.msra.mxu1 %v21747_v26  ;;  %v21812_v13 = vld [vmem:[#allocation30 + $0x404] ss:$16 sps:$4 sm:$0xff]   ;;  %v21815_v26 = vld [vmem:[#allocation30 + $0x40c] ss:$16 sps:$4 sm:$0xff]  }
0x164d   : > { %13017 = vmatprep.subr.bf16.mxu0 %v21752_v54  ;;  %13275 = vmatprep.subr.bf16.mxu1 %v21755_v24  ;;  %v21810_v54 = vld [vmem:[#allocation30 + $0x400] ss:$16 sps:$4 sm:$0xff]   ;;  %v21813_v24 = vld [vmem:[#allocation30 + $0x408] ss:$16 sps:$4 sm:$0xff]  }
0x1650   : > { %13018 = vmatpush1.bf16.msra.mxu0 %v21750_v23  ;;  %13276 = vmatpush1.bf16.msra.mxu1 %v21753_v40  ;;  %v21816_v23 = vld [vmem:[#allocation30 + $0x420] ss:$16 sps:$4 sm:$0xff]   ;;  %v21819_v40 = vld [vmem:[#allocation30 + $0x428] ss:$16 sps:$4 sm:$0xff]  }
0x1651   : > { %13019 = vmatprep.subr.bf16.mxu0 %v21758_v49  ;;  %13277 = vmatprep.subr.bf16.mxu1 %v21761_v56  ;;  %v21827_v49 = vld [vmem:[#allocation30 + $0x44c] ss:$16 sps:$4 sm:$0xff]   ;;  %v21822_v56 = vld [vmem:[#allocation30 + $0x440] ss:$16 sps:$4 sm:$0xff]  }
0x1654   : > { %13020 = vmatpush1.bf16.msra.mxu0 %v21756_v45  ;;  %13278 = vmatpush1.bf16.msra.mxu1 %v21759_v20  ;;  %v21830_v45 = vld [vmem:[#allocation30 + $0x464] ss:$16 sps:$4 sm:$0xff]   ;;  %v21828_v20 = vld [vmem:[#allocation30 + $0x460] ss:$16 sps:$4 sm:$0xff]  }
0x1655   : > { %13021 = vmatprep.subr.bf16.mxu0 %v21764_v34  ;;  %13279 = vmatprep.subr.bf16.mxu1 %v21767_v15  ;;  %v21831_v34 = vld [vmem:[#allocation30 + $0x468] ss:$16 sps:$4 sm:$0xff]   ;;  %v21836_v15 = vld [vmem:[#allocation30 + $0x484] ss:$16 sps:$4 sm:$0xff]  }
0x1658   : > { %13022 = vmatpush1.bf16.msra.mxu0 %v21762_v19  ;;  %13280 = vmatpush1.bf16.msra.mxu1 %v21765_v55  ;;  %v21834_v19 = vld [vmem:[#allocation30 + $0x480] ss:$16 sps:$4 sm:$0xff]   ;;  %v21837_v55 = vld [vmem:[#allocation30 + $0x488] ss:$16 sps:$4 sm:$0xff]  }
0x1659   : > { %13023 = vmatprep.subr.bf16.mxu0 %v21770_v60  ;;  %13281 = vmatprep.subr.bf16.mxu1 %v21773_v21  ;;  %v21842_v60 = vld [vmem:[#allocation30 + $0x4a4] ss:$16 sps:$4 sm:$0xff]   ;;  %v21845_v21 = vld [vmem:[#allocation30 + $0x4ac] ss:$16 sps:$4 sm:$0xff]  }
0x165c   : > { %13024 = vmatpush1.bf16.msra.mxu0 %v21768_v12  ;;  %13282 = vmatpush1.bf16.msra.mxu1 %v21771_v7  ;;  %v21840_v12 = vld [vmem:[#allocation30 + $0x4a0] ss:$16 sps:$4 sm:$0xff]   ;;  %v21843_v7 = vld [vmem:[#allocation30 + $0x4a8] ss:$16 sps:$4 sm:$0xff]  }
0x165d   : > { %13025 = vmatprep.subr.bf16.mxu0 %v21776_v30  ;;  %13283 = vmatprep.subr.bf16.mxu1 %v21779_v17  ;;  %v21848_v30 = vld [vmem:[#allocation30 + $0x4c4] ss:$16 sps:$4 sm:$0xff]   ;;  %v21851_v17 = vld [vmem:[#allocation30 + $0x4cc] ss:$16 sps:$4 sm:$0xff]  }
0x1660   : > { %13026 = vmatpush1.bf16.msra.mxu0 %v21774_v36  ;;  %13284 = vmatpush1.bf16.msra.mxu1 %v21777_v52  ;;  %v10643_v36 = vpop.f32.mrb[136].mxu1 }
0x1661   : > { %13027 = vmatprep.subr.bf16.mxu0 %v21782_v2  ;;  %13285 = vmatprep.subr.bf16.mxu1 %v21785_v63  ;;  %v10645_v52 = vpop.f32.mrb[137].mxu1  ;;  %v21846_v2 = vld [vmem:[#allocation30 + $0x4c0] ss:$16 sps:$4 sm:$0xff]  }
0x1662   : > { %v10649_v63 = vpop.f32.mrb[138].mxu1 }
0x1664   : > { %13028 = vmatpush1.bf16.msra.mxu0 %v21780_v41  ;;  %13286 = vmatpush1.bf16.msra.mxu1 %v21783_v51  ;;  %v21849_v41 = vld [vmem:[#allocation30 + $0x4c8] ss:$16 sps:$4 sm:$0xff]   ;;  %v21854_v51 = vld [vmem:[#allocation30 + $0x4e4] ss:$16 sps:$4 sm:$0xff]  }
0x1665   : > { %13029 = vmatprep.subr.bf16.mxu0 %v21788_v10  ;;  %13287 = vmatprep.subr.bf16.mxu1 %v21791_v47  ;;  %v21857_v10 = vld [vmem:[#allocation30 + $0x4ec] ss:$16 sps:$4 sm:$0xff]   ;;  %v25279_v47 = vpack.c.bf16 %v10649_v63, %v10643_v36  ;;  %v21914_v36 = vld [vmem:[#allocation30 + $0x624] ss:$16 sps:$4 sm:$0xff]   ;;  %v21915_v63 = vld [vmem:[#allocation30 + $0x628] ss:$16 sps:$4 sm:$0xff]  }
0x1668   : > { %13030 = vmatpush1.bf16.msra.mxu0 %v21786_v59  ;;  %13288 = vmatpush1.bf16.msra.mxu1 %v21789_v53  ;;  %v10651_v59 = vpop.f32.mrb[139].mxu1 }
0x1669   : > { %13031 = vmatprep.subr.bf16.mxu0 %v21794_v16  ;;  %13289 = vmatprep.subr.bf16.mxu1 %v21797_v4  ;;  %v25281_v53 = vpack.c.bf16 %v10651_v59, %v10645_v52  ;;  %v21852_v16 = vld [vmem:[#allocation30 + $0x4e0] ss:$16 sps:$4 sm:$0xff]   ;;  %v21855_v4 = vld [vmem:[#allocation30 + $0x4e8] ss:$16 sps:$4 sm:$0xff]   ;;  %v21917_v52 = vld [vmem:[#allocation30 + $0x62c] ss:$16 sps:$4 sm:$0xff]  }
0x166a   : > { %v21921_v59 = vld [vmem:[#allocation30 + $0x648] ss:$16 sps:$4 sm:$0xff]  }
0x166c   : > { %13032 = vmatpush1.bf16.msra.mxu0 %v21792_v22  ;;  %13290 = vmatpush1.bf16.msra.mxu1 %v21795_v29  ;;  %v21860_v22 = vld [vmem:[#allocation30 + $0x504] ss:$16 sps:$4 sm:$0xff]   ;;  %v21863_v29 = vld [vmem:[#allocation30 + $0x50c] ss:$16 sps:$4 sm:$0xff]  }
0x166d   : > { %13033 = vmatprep.subr.bf16.mxu0 %v21800_v57  ;;  %13291 = vmatprep.subr.bf16.mxu1 %v21803_v58  ;;  %v21858_v57 = vld [vmem:[#allocation30 + $0x500] ss:$16 sps:$4 sm:$0xff]   ;;  %v21861_v58 = vld [vmem:[#allocation30 + $0x508] ss:$16 sps:$4 sm:$0xff]  }
0x1670   : > { %13034 = vmatpush1.bf16.msra.mxu0 %v21798_v31  ;;  %13292 = vmatpush1.bf16.msra.mxu1 %v21801_v35  ;;  %v21866_v31 = vld [vmem:[#allocation30 + $0x524] ss:$16 sps:$4 sm:$0xff]   ;;  %v21869_v35 = vld [vmem:[#allocation30 + $0x52c] ss:$16 sps:$4 sm:$0xff]  }
0x1671   : > { %13035 = vmatprep.subr.bf16.mxu0 %v21806_v9  ;;  %13293 = vmatprep.subr.bf16.mxu1 %v21809_v37  ;;  %v21864_v9 = vld [vmem:[#allocation30 + $0x520] ss:$16 sps:$4 sm:$0xff]   ;;  %v21867_v37 = vld [vmem:[#allocation30 + $0x528] ss:$16 sps:$4 sm:$0xff]  }
0x1674   : > { %13036 = vmatpush1.bf16.msra.mxu0 %v21804_v11  ;;  %13294 = vmatpush1.bf16.msra.mxu1 %v21807_v46  ;;  %v21872_v11 = vld [vmem:[#allocation30 + $0x544] ss:$16 sps:$4 sm:$0xff]   ;;  %v21875_v46 = vld [vmem:[#allocation30 + $0x54c] ss:$16 sps:$4 sm:$0xff]  }
0x1675   : > { %13048 = vmatprep.subr.bf16.mxu0 %v21812_v13  ;;  %13306 = vmatprep.subr.bf16.mxu1 %v21815_v26  ;;  %v21870_v13 = vld [vmem:[#allocation30 + $0x540] ss:$16 sps:$4 sm:$0xff]   ;;  %v21873_v26 = vld [vmem:[#allocation30 + $0x548] ss:$16 sps:$4 sm:$0xff]  }
0x1677   : > { %13038 = vmatmul.mubr.bf16.vlgmr.msra.gmra.mrb[100].mxu0 %v25269_v48  ;;  %13296 = vmatmul.mubr.bf16.vlgmr.msra.gmra.mrb[140].mxu1 %v25269_v48  ;;  %v21833_v48 = vld [vmem:[#allocation30 + $0x46c] ss:$16 sps:$4 sm:$0xff]  }
0x1678   : > { %13049 = vmatpush1.bf16.msra.mxu0 %v21810_v54  ;;  %13080 = vmatprep.mubr.bf16.mxu0 %v25235_v32  ;;  %v21878_v54 = vld [vmem:[#allocation30 + $0x564] ss:$16 sps:$4 sm:$0xff]  }
0x1679   : > { %13307 = vmatpush1.bf16.msra.mxu1 %v21813_v24  ;;  %13338 = vmatprep.mubr.bf16.mxu1 %v25235_v32  ;;  %v21839_v32 = vld [vmem:[#allocation30 + $0x48c] ss:$16 sps:$4 sm:$0xff]  }
0x167a   : > { %13050 = vmatprep.subr.bf16.mxu0 %v21818_v39  ;;  %13308 = vmatprep.subr.bf16.mxu1 %v21821_v33  ;;  %v21881_v24 = vld [vmem:[#allocation30 + $0x56c] ss:$16 sps:$4 sm:$0xff]   ;;  %v21876_v39 = vld [vmem:[#allocation30 + $0x560] ss:$16 sps:$4 sm:$0xff]   ;;  %v21879_v33 = vld [vmem:[#allocation30 + $0x568] ss:$16 sps:$4 sm:$0xff]  }
0x167c   : > { %13051 = vmatpush1.bf16.msra.mxu0 %v21816_v23  ;;  %v21884_v23 = vld [vmem:[#allocation30 + $0x584] ss:$16 sps:$4 sm:$0xff]  }
0x167d   : > { %13309 = vmatpush1.bf16.msra.mxu1 %v21819_v40  ;;  %13052 = vmatprep.subr.bf16.mxu0 %v21824_v5  ;;  %v21887_v40 = vld [vmem:[#allocation30 + $0x58c] ss:$16 sps:$4 sm:$0xff]   ;;  %v21882_v5 = vld [vmem:[#allocation30 + $0x580] ss:$16 sps:$4 sm:$0xff]  }
0x167e   : > { %13310 = vmatprep.subr.bf16.mxu1 %v21827_v49  ;;  %v21885_v49 = vld [vmem:[#allocation30 + $0x588] ss:$16 sps:$4 sm:$0xff]  }
0x1680   : > { %13053 = vmatpush1.bf16.msra.mxu0 %v21822_v56  ;;  %v21890_v56 = vld [vmem:[#allocation30 + $0x5a4] ss:$16 sps:$4 sm:$0xff]  }
0x1681   : > { %13311 = vmatpush1.bf16.msra.mxu1 %v21825_v18  ;;  %13054 = vmatprep.subr.bf16.mxu0 %v21830_v45  ;;  %v21893_v18 = vld [vmem:[#allocation30 + $0x5ac] ss:$16 sps:$4 sm:$0xff]   ;;  %v21888_v45 = vld [vmem:[#allocation30 + $0x5a0] ss:$16 sps:$4 sm:$0xff]  }
0x1682   : > { %13312 = vmatprep.subr.bf16.mxu1 %v21833_v48  ;;  %v21891_v48 = vld [vmem:[#allocation30 + $0x5a8] ss:$16 sps:$4 sm:$0xff]  }
0x1684   : > { %13055 = vmatpush1.bf16.msra.mxu0 %v21828_v20  ;;  %v21896_v20 = vld [vmem:[#allocation30 + $0x5c4] ss:$16 sps:$4 sm:$0xff]  }
0x1685   : > { %13313 = vmatpush1.bf16.msra.mxu1 %v21831_v34  ;;  %13056 = vmatprep.subr.bf16.mxu0 %v21836_v15  ;;  %v21899_v34 = vld [vmem:[#allocation30 + $0x5cc] ss:$16 sps:$4 sm:$0xff]   ;;  %v21894_v15 = vld [vmem:[#allocation30 + $0x5c0] ss:$16 sps:$4 sm:$0xff]  }
0x1686   : > { %13314 = vmatprep.subr.bf16.mxu1 %v21839_v32  ;;  %v21897_v32 = vld [vmem:[#allocation30 + $0x5c8] ss:$16 sps:$4 sm:$0xff]  }
0x1688   : > { %13057 = vmatpush1.bf16.msra.mxu0 %v21834_v19  ;;  %v21902_v19 = vld [vmem:[#allocation30 + $0x5e4] ss:$16 sps:$4 sm:$0xff]  }
0x1689   : > { %13315 = vmatpush1.bf16.msra.mxu1 %v21837_v55  ;;  %13058 = vmatprep.subr.bf16.mxu0 %v21842_v60  ;;  %v21905_v55 = vld [vmem:[#allocation30 + $0x5ec] ss:$16 sps:$4 sm:$0xff]   ;;  %v21900_v60 = vld [vmem:[#allocation30 + $0x5e0] ss:$16 sps:$4 sm:$0xff]  }
0x168a   : > { %13316 = vmatprep.subr.bf16.mxu1 %v21845_v21  ;;  %v21903_v21 = vld [vmem:[#allocation30 + $0x5e8] ss:$16 sps:$4 sm:$0xff]  }
0x168c   : > { %13059 = vmatpush1.bf16.msra.mxu0 %v21840_v12  ;;  %v21908_v12 = vld [vmem:[#allocation30 + $0x604] ss:$16 sps:$4 sm:$0xff]  }
0x168d   : > { %13317 = vmatpush1.bf16.msra.mxu1 %v21843_v7  ;;  %13060 = vmatprep.subr.bf16.mxu0 %v21848_v30  ;;  %v21911_v7 = vld [vmem:[#allocation30 + $0x60c] ss:$16 sps:$4 sm:$0xff]   ;;  %v21906_v30 = vld [vmem:[#allocation30 + $0x600] ss:$16 sps:$4 sm:$0xff]  }
0x168e   : > { %13318 = vmatprep.subr.bf16.mxu1 %v21851_v17  ;;  %v21909_v17 = vld [vmem:[#allocation30 + $0x608] ss:$16 sps:$4 sm:$0xff]  }
0x1690   : > { %13061 = vmatpush1.bf16.msra.mxu0 %v21846_v2  ;;  %v21912_v2 = vld [vmem:[#allocation30 + $0x620] ss:$16 sps:$4 sm:$0xff]  }
0x1691   : > { %13319 = vmatpush1.bf16.msra.mxu1 %v21849_v41  ;;  %13062 = vmatprep.subr.bf16.mxu0 %v21854_v51  ;;  %v21920_v41 = vld [vmem:[#allocation30 + $0x644] ss:$16 sps:$4 sm:$0xff]   ;;  %v21923_v51 = vld [vmem:[#allocation30 + $0x64c] ss:$16 sps:$4 sm:$0xff]  }
0x1692   : > { %13320 = vmatprep.subr.bf16.mxu1 %v21857_v10  ;;  %v21918_v10 = vld [vmem:[#allocation30 + $0x640] ss:$16 sps:$4 sm:$0xff]  }
0x1694   : > { %13063 = vmatpush1.bf16.msra.mxu0 %v21852_v16  ;;  %v21926_v16 = vld [vmem:[#allocation30 + $0x664] ss:$16 sps:$4 sm:$0xff]  }
0x1695   : > { %13321 = vmatpush1.bf16.msra.mxu1 %v21855_v4  ;;  %13064 = vmatprep.subr.bf16.mxu0 %v21860_v22  ;;  %v21924_v4 = vld [vmem:[#allocation30 + $0x660] ss:$16 sps:$4 sm:$0xff]   ;;  %v21927_v22 = vld [vmem:[#allocation30 + $0x668] ss:$16 sps:$4 sm:$0xff]  }
0x1696   : > { %13322 = vmatprep.subr.bf16.mxu1 %v21863_v29  ;;  %v21932_v29 = vld [vmem:[#allocation30 + $0x684] ss:$16 sps:$4 sm:$0xff]  }
0x1698   : > { %13065 = vmatpush1.bf16.msra.mxu0 %v21858_v57  ;;  %v21935_v57 = vld [vmem:[#allocation30 + $0x68c] ss:$16 sps:$4 sm:$0xff]  }
0x1699   : > { %13323 = vmatpush1.bf16.msra.mxu1 %v21861_v58  ;;  %13066 = vmatprep.subr.bf16.mxu0 %v21866_v31  ;;  %v21933_v58 = vld [vmem:[#allocation30 + $0x688] ss:$16 sps:$4 sm:$0xff]   ;;  %v21938_v31 = vld [vmem:[#allocation30 + $0x6a4] ss:$16 sps:$4 sm:$0xff]  }
0x169a   : > { %13324 = vmatprep.subr.bf16.mxu1 %v21869_v35  ;;  %v21941_v35 = vld [vmem:[#allocation30 + $0x6ac] ss:$16 sps:$4 sm:$0xff]  }
0x169c   : > { %13067 = vmatpush1.bf16.msra.mxu0 %v21864_v9  ;;  %v21936_v9 = vld [vmem:[#allocation30 + $0x6a0] ss:$16 sps:$4 sm:$0xff]  }
0x169d   : > { %13325 = vmatpush1.bf16.msra.mxu1 %v21867_v37  ;;  %13068 = vmatprep.subr.bf16.mxu0 %v21872_v11  ;;  %v21939_v37 = vld [vmem:[#allocation30 + $0x6a8] ss:$16 sps:$4 sm:$0xff]   ;;  %v21944_v11 = vld [vmem:[#allocation30 + $0x6c4] ss:$16 sps:$4 sm:$0xff]  }
0x169e   : > { %13326 = vmatprep.subr.bf16.mxu1 %v21875_v46  ;;  %v21947_v46 = vld [vmem:[#allocation30 + $0x6cc] ss:$16 sps:$4 sm:$0xff]  }
0x16a0   : > { %13069 = vmatpush1.bf16.msra.mxu0 %v21870_v13  ;;  %v21942_v13 = vld [vmem:[#allocation30 + $0x6c0] ss:$16 sps:$4 sm:$0xff]  }
0x16a1   : > { %13327 = vmatpush1.bf16.msra.mxu1 %v21873_v26  ;;  %13070 = vmatprep.subr.bf16.mxu0 %v21878_v54  ;;  %v21945_v26 = vld [vmem:[#allocation30 + $0x6c8] ss:$16 sps:$4 sm:$0xff]   ;;  %v21950_v54 = vld [vmem:[#allocation30 + $0x6e4] ss:$16 sps:$4 sm:$0xff]  }
0x16a2   : > { %13328 = vmatprep.subr.bf16.mxu1 %v21881_v24  ;;  %v21953_v24 = vld [vmem:[#allocation30 + $0x6ec] ss:$16 sps:$4 sm:$0xff]  }
0x16a4   : > { %13071 = vmatpush1.bf16.msra.mxu0 %v21876_v39  ;;  %v21948_v39 = vld [vmem:[#allocation30 + $0x6e0] ss:$16 sps:$4 sm:$0xff]  }
0x16a5   : > { %13329 = vmatpush1.bf16.msra.mxu1 %v21879_v33  ;;  %13072 = vmatprep.subr.bf16.mxu0 %v21884_v23  ;;  %v21951_v33 = vld [vmem:[#allocation30 + $0x6e8] ss:$16 sps:$4 sm:$0xff]   ;;  %v21956_v23 = vld [vmem:[#allocation30 + $0x704] ss:$16 sps:$4 sm:$0xff]  }
0x16a6   : > { %13330 = vmatprep.subr.bf16.mxu1 %v21887_v40  ;;  %v21959_v40 = vld [vmem:[#allocation30 + $0x70c] ss:$16 sps:$4 sm:$0xff]  }
0x16a8   : > { %13073 = vmatpush1.bf16.msra.mxu0 %v21882_v5  ;;  %v21954_v5 = vld [vmem:[#allocation30 + $0x700] ss:$16 sps:$4 sm:$0xff]  }
0x16a9   : > { %13331 = vmatpush1.bf16.msra.mxu1 %v21885_v49  ;;  %13074 = vmatprep.subr.bf16.mxu0 %v21890_v56  ;;  %v21957_v49 = vld [vmem:[#allocation30 + $0x708] ss:$16 sps:$4 sm:$0xff]   ;;  %v21962_v56 = vld [vmem:[#allocation30 + $0x724] ss:$16 sps:$4 sm:$0xff]  }
0x16aa   : > { %13332 = vmatprep.subr.bf16.mxu1 %v21893_v18  ;;  %v21965_v18 = vld [vmem:[#allocation30 + $0x72c] ss:$16 sps:$4 sm:$0xff]  }
0x16ac   : > { %13075 = vmatpush1.bf16.msra.mxu0 %v21888_v45  ;;  %v21960_v45 = vld [vmem:[#allocation30 + $0x720] ss:$16 sps:$4 sm:$0xff]  }
0x16ad   : > { %13333 = vmatpush1.bf16.msra.mxu1 %v21891_v48  ;;  %13076 = vmatprep.subr.bf16.mxu0 %v21896_v20  ;;  %v21963_v48 = vld [vmem:[#allocation30 + $0x728] ss:$16 sps:$4 sm:$0xff]   ;;  %v21968_v20 = vld [vmem:[#allocation30 + $0x744] ss:$16 sps:$4 sm:$0xff]  }
0x16ae   : > { %13334 = vmatprep.subr.bf16.mxu1 %v21899_v34  ;;  %v21971_v34 = vld [vmem:[#allocation30 + $0x74c] ss:$16 sps:$4 sm:$0xff]  }
0x16b0   : > { %13077 = vmatpush1.bf16.msra.mxu0 %v21894_v15  ;;  %v21966_v15 = vld [vmem:[#allocation30 + $0x740] ss:$16 sps:$4 sm:$0xff]  }
0x16b1   : > { %13335 = vmatpush1.bf16.msra.mxu1 %v21897_v32  ;;  %13078 = vmatprep.subr.bf16.mxu0 %v21902_v19  ;;  %v21969_v32 = vld [vmem:[#allocation30 + $0x748] ss:$16 sps:$4 sm:$0xff]   ;;  %v21974_v19 = vld [vmem:[#allocation30 + $0x764] ss:$16 sps:$4 sm:$0xff]  }
0x16b2   : > { %13336 = vmatprep.subr.bf16.mxu1 %v21905_v55  ;;  %v21977_v55 = vld [vmem:[#allocation30 + $0x76c] ss:$16 sps:$4 sm:$0xff]  }
0x16b4   : > { %13079 = vmatpush1.bf16.msra.mxu0 %v21900_v60  ;;  %v21972_v60 = vld [vmem:[#allocation30 + $0x760] ss:$16 sps:$4 sm:$0xff]  }
0x16b5   : > { %13337 = vmatpush1.bf16.msra.mxu1 %v21903_v21  ;;  %13091 = vmatprep.subr.bf16.mxu0 %v21908_v12  ;;  %v21975_v21 = vld [vmem:[#allocation30 + $0x768] ss:$16 sps:$4 sm:$0xff]   ;;  %v21980_v12 = vld [vmem:[#allocation30 + $0x784] ss:$16 sps:$4 sm:$0xff]  }
0x16b6   : > { %13349 = vmatprep.subr.bf16.mxu1 %v21911_v7  ;;  %v21983_v7 = vld [vmem:[#allocation30 + $0x78c] ss:$16 sps:$4 sm:$0xff]  }
0x16b7   : > { %13081 = vmatmul.mubr.bf16.vlgmr.msra.gmra.mrb[100].mxu0 %v25231_v42 }
0x16b8   : > { %13339 = vmatmul.mubr.bf16.vlgmr.msra.gmra.mrb[140].mxu1 %v25231_v42  ;;  %13092 = vmatpush1.bf16.msra.mxu0 %v21906_v30  ;;  %v21929_v42 = vld [vmem:[#allocation30 + $0x66c] ss:$16 sps:$4 sm:$0xff]   ;;  %v21978_v30 = vld [vmem:[#allocation30 + $0x780] ss:$16 sps:$4 sm:$0xff]  }
0x16b9   : > { %13123 = vmatprep.mubr.bf16.mxu0 %v25237_v3  ;;  %13350 = vmatpush1.bf16.msra.mxu1 %v21909_v17  ;;  %v21981_v17 = vld [vmem:[#allocation30 + $0x788] ss:$16 sps:$4 sm:$0xff]  }
0x16ba   : > { %13381 = vmatprep.mubr.bf16.mxu1 %v25237_v3  ;;  %13093 = vmatprep.subr.bf16.mxu0 %v21914_v36  ;;  %v21930_v3 = vld [vmem:[#allocation30 + $0x680] ss:$16 sps:$4 sm:$0xff]   ;;  %v21986_v36 = vld [vmem:[#allocation30 + $0x7a4] ss:$16 sps:$4 sm:$0xff]  }
0x16bb   : > { %13351 = vmatprep.subr.bf16.mxu1 %v21917_v52  ;;  %v21989_v52 = vld [vmem:[#allocation30 + $0x7ac] ss:$16 sps:$4 sm:$0xff]  }
0x16bc   : > { %13094 = vmatpush1.bf16.msra.mxu0 %v21912_v2  ;;  %v21984_v2 = vld [vmem:[#allocation30 + $0x7a0] ss:$16 sps:$4 sm:$0xff]  }
0x16bd   : > { %13352 = vmatpush1.bf16.msra.mxu1 %v21915_v63  ;;  %13095 = vmatprep.subr.bf16.mxu0 %v21920_v41  ;;  %v21987_v63 = vld [vmem:[#allocation30 + $0x7a8] ss:$16 sps:$4 sm:$0xff]   ;;  %v21992_v41 = vld [vmem:[#allocation30 + $0x7c4] ss:$16 sps:$4 sm:$0xff]  }
0x16be   : > { %13353 = vmatprep.subr.bf16.mxu1 %v21923_v51  ;;  %v21995_v51 = vld [vmem:[#allocation30 + $0x7cc] ss:$16 sps:$4 sm:$0xff]  }
0x16c0   : > { %13096 = vmatpush1.bf16.msra.mxu0 %v21918_v10  ;;  %v21990_v10 = vld [vmem:[#allocation30 + $0x7c0] ss:$16 sps:$4 sm:$0xff]  }
0x16c1   : > { %13354 = vmatpush1.bf16.msra.mxu1 %v21921_v59  ;;  %13097 = vmatprep.subr.bf16.mxu0 %v21926_v16  ;;  %v21993_v59 = vld [vmem:[#allocation30 + $0x7c8] ss:$16 sps:$4 sm:$0xff]   ;;  %v21998_v16 = vld [vmem:[#allocation30 + $0x7e4] ss:$16 sps:$4 sm:$0xff]  }
0x16c2   : > { %13355 = vmatprep.subr.bf16.mxu1 %v21929_v42  ;;  %v22001_v42 = vld [vmem:[#allocation30 + $0x7ec] ss:$16 sps:$4 sm:$0xff]  }
0x16c4   : > { %13098 = vmatpush1.bf16.msra.mxu0 %v21924_v4  ;;  %v21996_v4 = vld [vmem:[#allocation30 + $0x7e0] ss:$16 sps:$4 sm:$0xff]  }
0x16c5   : > { %13356 = vmatpush1.bf16.msra.mxu1 %v21927_v22  ;;  %13099 = vmatprep.subr.bf16.mxu0 %v21932_v29  ;;  %v21999_v22 = vld [vmem:[#allocation30 + $0x7e8] ss:$16 sps:$4 sm:$0xff]   ;;  %v22004_v29 = vld [vmem:[#allocation30 + $0x804] ss:$16 sps:$4 sm:$0xff]  }
0x16c6   : > { %13357 = vmatprep.subr.bf16.mxu1 %v21935_v57  ;;  %v22007_v57 = vld [vmem:[#allocation30 + $0x80c] ss:$16 sps:$4 sm:$0xff]  }
0x16c8   : > { %13100 = vmatpush1.bf16.msra.mxu0 %v21930_v3  ;;  %v22002_v3 = vld [vmem:[#allocation30 + $0x800] ss:$16 sps:$4 sm:$0xff]  }
0x16c9   : > { %13358 = vmatpush1.bf16.msra.mxu1 %v21933_v58  ;;  %13101 = vmatprep.subr.bf16.mxu0 %v21938_v31  ;;  %v22005_v58 = vld [vmem:[#allocation30 + $0x808] ss:$16 sps:$4 sm:$0xff]   ;;  %v22010_v31 = vld [vmem:[#allocation30 + $0x824] ss:$16 sps:$4 sm:$0xff]  }
0x16ca   : > { %13359 = vmatprep.subr.bf16.mxu1 %v21941_v35  ;;  %v22013_v35 = vld [vmem:[#allocation30 + $0x82c] ss:$16 sps:$4 sm:$0xff]  }
0x16cc   : > { %13102 = vmatpush1.bf16.msra.mxu0 %v21936_v9  ;;  %v22008_v9 = vld [vmem:[#allocation30 + $0x820] ss:$16 sps:$4 sm:$0xff]  }
0x16cd   : > { %13360 = vmatpush1.bf16.msra.mxu1 %v21939_v37  ;;  %13103 = vmatprep.subr.bf16.mxu0 %v21944_v11  ;;  %v22011_v37 = vld [vmem:[#allocation30 + $0x828] ss:$16 sps:$4 sm:$0xff]   ;;  %v22016_v11 = vld [vmem:[#allocation30 + $0x844] ss:$16 sps:$4 sm:$0xff]  }
0x16ce   : > { %13361 = vmatprep.subr.bf16.mxu1 %v21947_v46  ;;  %v22019_v46 = vld [vmem:[#allocation30 + $0x84c] ss:$16 sps:$4 sm:$0xff]  }
0x16d0   : > { %13104 = vmatpush1.bf16.msra.mxu0 %v21942_v13  ;;  %v22014_v13 = vld [vmem:[#allocation30 + $0x840] ss:$16 sps:$4 sm:$0xff]  }
0x16d1   : > { %13362 = vmatpush1.bf16.msra.mxu1 %v21945_v26  ;;  %13105 = vmatprep.subr.bf16.mxu0 %v21950_v54  ;;  %v22017_v26 = vld [vmem:[#allocation30 + $0x848] ss:$16 sps:$4 sm:$0xff]   ;;  %v22022_v54 = vld [vmem:[#allocation30 + $0x864] ss:$16 sps:$4 sm:$0xff]  }
0x16d2   : > { %13363 = vmatprep.subr.bf16.mxu1 %v21953_v24  ;;  %v22020_v24 = vld [vmem:[#allocation30 + $0x860] ss:$16 sps:$4 sm:$0xff]  }
0x16d4   : > { %13106 = vmatpush1.bf16.msra.mxu0 %v21948_v39  ;;  %v22023_v39 = vld [vmem:[#allocation30 + $0x868] ss:$16 sps:$4 sm:$0xff]  }
0x16d5   : > { %13364 = vmatpush1.bf16.msra.mxu1 %v21951_v33  ;;  %13107 = vmatprep.subr.bf16.mxu0 %v21956_v23  ;;  %v22028_v33 = vld [vmem:[#allocation30 + $0x884] ss:$16 sps:$4 sm:$0xff]   ;;  %v22031_v23 = vld [vmem:[#allocation30 + $0x88c] ss:$16 sps:$4 sm:$0xff]  }
0x16d6   : > { %13365 = vmatprep.subr.bf16.mxu1 %v21959_v40  ;;  %v22029_v40 = vld [vmem:[#allocation30 + $0x888] ss:$16 sps:$4 sm:$0xff]  }
0x16d8   : > { %13108 = vmatpush1.bf16.msra.mxu0 %v21954_v5  ;;  %v22034_v5 = vld [vmem:[#allocation30 + $0x8a4] ss:$16 sps:$4 sm:$0xff]  }
0x16d9   : > { %13366 = vmatpush1.bf16.msra.mxu1 %v21957_v49  ;;  %13109 = vmatprep.subr.bf16.mxu0 %v21962_v56  ;;  %v22037_v49 = vld [vmem:[#allocation30 + $0x8ac] ss:$16 sps:$4 sm:$0xff]   ;;  %v22032_v56 = vld [vmem:[#allocation30 + $0x8a0] ss:$16 sps:$4 sm:$0xff]  }
0x16da   : > { %13367 = vmatprep.subr.bf16.mxu1 %v21965_v18  ;;  %v22035_v18 = vld [vmem:[#allocation30 + $0x8a8] ss:$16 sps:$4 sm:$0xff]  }
0x16dc   : > { %13110 = vmatpush1.bf16.msra.mxu0 %v21960_v45  ;;  %v22040_v45 = vld [vmem:[#allocation30 + $0x8c4] ss:$16 sps:$4 sm:$0xff]  }
0x16dd   : > { %13368 = vmatpush1.bf16.msra.mxu1 %v21963_v48  ;;  %13111 = vmatprep.subr.bf16.mxu0 %v21968_v20  ;;  %v22043_v48 = vld [vmem:[#allocation30 + $0x8cc] ss:$16 sps:$4 sm:$0xff]   ;;  %v22038_v20 = vld [vmem:[#allocation30 + $0x8c0] ss:$16 sps:$4 sm:$0xff]  }
0x16de   : > { %13369 = vmatprep.subr.bf16.mxu1 %v21971_v34  ;;  %v22041_v34 = vld [vmem:[#allocation30 + $0x8c8] ss:$16 sps:$4 sm:$0xff]  }
0x16e0   : > { %13112 = vmatpush1.bf16.msra.mxu0 %v21966_v15  ;;  %v22046_v15 = vld [vmem:[#allocation30 + $0x8e4] ss:$16 sps:$4 sm:$0xff]  }
0x16e1   : > { %13370 = vmatpush1.bf16.msra.mxu1 %v21969_v32  ;;  %13113 = vmatprep.subr.bf16.mxu0 %v21974_v19  ;;  %v22049_v32 = vld [vmem:[#allocation30 + $0x8ec] ss:$16 sps:$4 sm:$0xff]   ;;  %v22044_v19 = vld [vmem:[#allocation30 + $0x8e0] ss:$16 sps:$4 sm:$0xff]  }
0x16e2   : > { %13371 = vmatprep.subr.bf16.mxu1 %v21977_v55  ;;  %v22047_v55 = vld [vmem:[#allocation30 + $0x8e8] ss:$16 sps:$4 sm:$0xff]  }
0x16e4   : > { %13114 = vmatpush1.bf16.msra.mxu0 %v21972_v60  ;;  %v22052_v60 = vld [vmem:[#allocation30 + $0x904] ss:$16 sps:$4 sm:$0xff]  }
0x16e5   : > { %13372 = vmatpush1.bf16.msra.mxu1 %v21975_v21  ;;  %13115 = vmatprep.subr.bf16.mxu0 %v21980_v12  ;;  %v22055_v21 = vld [vmem:[#allocation30 + $0x90c] ss:$16 sps:$4 sm:$0xff]   ;;  %v22050_v12 = vld [vmem:[#allocation30 + $0x900] ss:$16 sps:$4 sm:$0xff]  }
0x16e6   : > { %13373 = vmatprep.subr.bf16.mxu1 %v21983_v7  ;;  %v22053_v7 = vld [vmem:[#allocation30 + $0x908] ss:$16 sps:$4 sm:$0xff]  }
0x16e8   : > { %13116 = vmatpush1.bf16.msra.mxu0 %v21978_v30  ;;  %v22058_v30 = vld [vmem:[#allocation30 + $0x924] ss:$16 sps:$4 sm:$0xff]  }
0x16e9   : > { %13374 = vmatpush1.bf16.msra.mxu1 %v21981_v17  ;;  %13117 = vmatprep.subr.bf16.mxu0 %v21986_v36  ;;  %v22061_v17 = vld [vmem:[#allocation30 + $0x92c] ss:$16 sps:$4 sm:$0xff]   ;;  %v22056_v36 = vld [vmem:[#allocation30 + $0x920] ss:$16 sps:$4 sm:$0xff]  }
0x16ea   : > { %13375 = vmatprep.subr.bf16.mxu1 %v21989_v52  ;;  %v22059_v52 = vld [vmem:[#allocation30 + $0x928] ss:$16 sps:$4 sm:$0xff]  }
0x16ec   : > { %13118 = vmatpush1.bf16.msra.mxu0 %v21984_v2  ;;  %v22064_v2 = vld [vmem:[#allocation30 + $0x944] ss:$16 sps:$4 sm:$0xff]  }
0x16ed   : > { %13376 = vmatpush1.bf16.msra.mxu1 %v21987_v63  ;;  %13119 = vmatprep.subr.bf16.mxu0 %v21992_v41  ;;  %v22067_v63 = vld [vmem:[#allocation30 + $0x94c] ss:$16 sps:$4 sm:$0xff]   ;;  %v22062_v41 = vld [vmem:[#allocation30 + $0x940] ss:$16 sps:$4 sm:$0xff]  }
0x16ee   : > { %13377 = vmatprep.subr.bf16.mxu1 %v21995_v51  ;;  %v22065_v51 = vld [vmem:[#allocation30 + $0x948] ss:$16 sps:$4 sm:$0xff]  }
0x16f0   : > { %13120 = vmatpush1.bf16.msra.mxu0 %v21990_v10  ;;  %v22070_v10 = vld [vmem:[#allocation30 + $0x964] ss:$16 sps:$4 sm:$0xff]  }
0x16f1   : > { %13378 = vmatpush1.bf16.msra.mxu1 %v21993_v59  ;;  %13121 = vmatprep.subr.bf16.mxu0 %v21998_v16  ;;  %v22073_v59 = vld [vmem:[#allocation30 + $0x96c] ss:$16 sps:$4 sm:$0xff]   ;;  %v22068_v16 = vld [vmem:[#allocation30 + $0x960] ss:$16 sps:$4 sm:$0xff]  }
0x16f2   : > { %13379 = vmatprep.subr.bf16.mxu1 %v22001_v42  ;;  %v22071_v42 = vld [vmem:[#allocation30 + $0x968] ss:$16 sps:$4 sm:$0xff]  }
0x16f4   : > { %13122 = vmatpush1.bf16.msra.mxu0 %v21996_v4  ;;  %v22076_v4 = vld [vmem:[#allocation30 + $0x984] ss:$16 sps:$4 sm:$0xff]  }
0x16f5   : > { %13380 = vmatpush1.bf16.msra.mxu1 %v21999_v22  ;;  %13134 = vmatprep.subr.bf16.mxu0 %v22004_v29  ;;  %v22079_v22 = vld [vmem:[#allocation30 + $0x98c] ss:$16 sps:$4 sm:$0xff]   ;;  %v22074_v29 = vld [vmem:[#allocation30 + $0x980] ss:$16 sps:$4 sm:$0xff]  }
0x16f6   : > { %13392 = vmatprep.subr.bf16.mxu1 %v22007_v57  ;;  %v22077_v57 = vld [vmem:[#allocation30 + $0x988] ss:$16 sps:$4 sm:$0xff]  }
0x16f7   : > { %13124 = vmatmul.mubr.bf16.vlgmr.msra.gmra.mrb[100].mxu0 %v25233_v27 }
0x16f8   : > { %13382 = vmatmul.mubr.bf16.vlgmr.msra.gmra.mrb[140].mxu1 %v25233_v27  ;;  %13135 = vmatpush1.bf16.msra.mxu0 %v22002_v3  ;;  %v22025_v27 = vld [vmem:[#allocation30 + $0x86c] ss:$16 sps:$4 sm:$0xff]   ;;  %v22082_v3 = vld [vmem:[#allocation30 + $0x9a4] ss:$16 sps:$4 sm:$0xff]  }
0x16f9   : > { %13166 = vmatprep.mubr.bf16.mxu0 %v25273_v43  ;;  %13393 = vmatpush1.bf16.msra.mxu1 %v22005_v58  ;;  %v22085_v58 = vld [vmem:[#allocation30 + $0x9ac] ss:$16 sps:$4 sm:$0xff]  }
0x16fa   : > { %13424 = vmatprep.mubr.bf16.mxu1 %v25273_v43  ;;  %13136 = vmatprep.subr.bf16.mxu0 %v22010_v31  ;;  %v22026_v43 = vld [vmem:[#allocation30 + $0x880] ss:$16 sps:$4 sm:$0xff]  }
0x16fb   : > { %13394 = vmatprep.subr.bf16.mxu1 %v22013_v35  ;;  %v22080_v31 = vld [vmem:[#allocation30 + $0x9a0] ss:$16 sps:$4 sm:$0xff]   ;;  %v22083_v35 = vld [vmem:[#allocation30 + $0x9a8] ss:$16 sps:$4 sm:$0xff]  }
0x16fc   : > { %13137 = vmatpush1.bf16.msra.mxu0 %v22008_v9  ;;  %v22088_v9 = vld [vmem:[#allocation30 + $0x9c4] ss:$16 sps:$4 sm:$0xff]  }
0x16fd   : > { %13395 = vmatpush1.bf16.msra.mxu1 %v22011_v37  ;;  %13138 = vmatprep.subr.bf16.mxu0 %v22016_v11  ;;  %v22091_v37 = vld [vmem:[#allocation30 + $0x9cc] ss:$16 sps:$4 sm:$0xff]   ;;  %v22086_v11 = vld [vmem:[#allocation30 + $0x9c0] ss:$16 sps:$4 sm:$0xff]  }
0x16fe   : > { %13396 = vmatprep.subr.bf16.mxu1 %v22019_v46  ;;  %v22089_v46 = vld [vmem:[#allocation30 + $0x9c8] ss:$16 sps:$4 sm:$0xff]  }
0x1700   : > { %13139 = vmatpush1.bf16.msra.mxu0 %v22014_v13  ;;  %v22094_v13 = vld [vmem:[#allocation30 + $0x9e4] ss:$16 sps:$4 sm:$0xff]  }
0x1701   : > { %13397 = vmatpush1.bf16.msra.mxu1 %v22017_v26  ;;  %13140 = vmatprep.subr.bf16.mxu0 %v22022_v54  ;;  %v22097_v26 = vld [vmem:[#allocation30 + $0x9ec] ss:$16 sps:$4 sm:$0xff]   ;;  %v22092_v54 = vld [vmem:[#allocation30 + $0x9e0] ss:$16 sps:$4 sm:$0xff]  }
0x1702   : > { %13398 = vmatprep.subr.bf16.mxu1 %v22025_v27  ;;  %v22095_v27 = vld [vmem:[#allocation30 + $0x9e8] ss:$16 sps:$4 sm:$0xff]  }
0x1704   : > { %13141 = vmatpush1.bf16.msra.mxu0 %v22020_v24  ;;  %v22100_v24 = vld [vmem:[#allocation30 + $0xa04] ss:$16 sps:$4 sm:$0xff]  }
0x1705   : > { %13399 = vmatpush1.bf16.msra.mxu1 %v22023_v39  ;;  %13142 = vmatprep.subr.bf16.mxu0 %v22028_v33  ;;  %v22103_v39 = vld [vmem:[#allocation30 + $0xa0c] ss:$16 sps:$4 sm:$0xff]   ;;  %v22098_v33 = vld [vmem:[#allocation30 + $0xa00] ss:$16 sps:$4 sm:$0xff]  }
0x1706   : > { %13400 = vmatprep.subr.bf16.mxu1 %v22031_v23  ;;  %v22101_v23 = vld [vmem:[#allocation30 + $0xa08] ss:$16 sps:$4 sm:$0xff]  }
0x1708   : > { %13143 = vmatpush1.bf16.msra.mxu0 %v22026_v43  ;;  %v22106_v43 = vld [vmem:[#allocation30 + $0xa24] ss:$16 sps:$4 sm:$0xff]  }
0x1709   : > { %13401 = vmatpush1.bf16.msra.mxu1 %v22029_v40  ;;  %13144 = vmatprep.subr.bf16.mxu0 %v22034_v5  ;;  %v22109_v40 = vld [vmem:[#allocation30 + $0xa2c] ss:$16 sps:$4 sm:$0xff]   ;;  %v22104_v5 = vld [vmem:[#allocation30 + $0xa20] ss:$16 sps:$4 sm:$0xff]  }
0x170a   : > { %13402 = vmatprep.subr.bf16.mxu1 %v22037_v49  ;;  %v22107_v49 = vld [vmem:[#allocation30 + $0xa28] ss:$16 sps:$4 sm:$0xff]  }
0x170c   : > { %13145 = vmatpush1.bf16.msra.mxu0 %v22032_v56  ;;  %v22112_v56 = vld [vmem:[#allocation30 + $0xa44] ss:$16 sps:$4 sm:$0xff]  }
0x170d   : > { %13403 = vmatpush1.bf16.msra.mxu1 %v22035_v18  ;;  %13146 = vmatprep.subr.bf16.mxu0 %v22040_v45  ;;  %v22115_v18 = vld [vmem:[#allocation30 + $0xa4c] ss:$16 sps:$4 sm:$0xff]   ;;  %v22110_v45 = vld [vmem:[#allocation30 + $0xa40] ss:$16 sps:$4 sm:$0xff]  }
0x170e   : > { %13404 = vmatprep.subr.bf16.mxu1 %v22043_v48  ;;  %v22113_v48 = vld [vmem:[#allocation30 + $0xa48] ss:$16 sps:$4 sm:$0xff]  }
0x1710   : > { %13147 = vmatpush1.bf16.msra.mxu0 %v22038_v20  ;;  %v22118_v20 = vld [vmem:[#allocation30 + $0xa64] ss:$16 sps:$4 sm:$0xff]  }
0x1711   : > { %13405 = vmatpush1.bf16.msra.mxu1 %v22041_v34  ;;  %13148 = vmatprep.subr.bf16.mxu0 %v22046_v15  ;;  %v22116_v34 = vld [vmem:[#allocation30 + $0xa60] ss:$16 sps:$4 sm:$0xff]   ;;  %v22119_v15 = vld [vmem:[#allocation30 + $0xa68] ss:$16 sps:$4 sm:$0xff]  }
0x1712   : > { %13406 = vmatprep.subr.bf16.mxu1 %v22049_v32  ;;  %v22124_v32 = vld [vmem:[#allocation30 + $0xa84] ss:$16 sps:$4 sm:$0xff]  }
0x1714   : > { %13149 = vmatpush1.bf16.msra.mxu0 %v22044_v19  ;;  %v22127_v19 = vld [vmem:[#allocation30 + $0xa8c] ss:$16 sps:$4 sm:$0xff]  }
0x1715   : > { %13407 = vmatpush1.bf16.msra.mxu1 %v22047_v55  ;;  %13150 = vmatprep.subr.bf16.mxu0 %v22052_v60  ;;  %v22125_v55 = vld [vmem:[#allocation30 + $0xa88] ss:$16 sps:$4 sm:$0xff]   ;;  %v22130_v60 = vld [vmem:[#allocation30 + $0xaa4] ss:$16 sps:$4 sm:$0xff]  }
0x1716   : > { %13408 = vmatprep.subr.bf16.mxu1 %v22055_v21  ;;  %v22133_v21 = vld [vmem:[#allocation30 + $0xaac] ss:$16 sps:$4 sm:$0xff]  }
0x1718   : > { %13151 = vmatpush1.bf16.msra.mxu0 %v22050_v12  ;;  %v22128_v12 = vld [vmem:[#allocation30 + $0xaa0] ss:$16 sps:$4 sm:$0xff]  }
0x1719   : > { %13409 = vmatpush1.bf16.msra.mxu1 %v22053_v7  ;;  %13152 = vmatprep.subr.bf16.mxu0 %v22058_v30  ;;  %v22131_v7 = vld [vmem:[#allocation30 + $0xaa8] ss:$16 sps:$4 sm:$0xff]   ;;  %v22136_v30 = vld [vmem:[#allocation30 + $0xac4] ss:$16 sps:$4 sm:$0xff]  }
0x171a   : > { %13410 = vmatprep.subr.bf16.mxu1 %v22061_v17  ;;  %v22139_v17 = vld [vmem:[#allocation30 + $0xacc] ss:$16 sps:$4 sm:$0xff]  }
0x171c   : > { %13153 = vmatpush1.bf16.msra.mxu0 %v22056_v36  ;;  %v22134_v36 = vld [vmem:[#allocation30 + $0xac0] ss:$16 sps:$4 sm:$0xff]  }
0x171d   : > { %13411 = vmatpush1.bf16.msra.mxu1 %v22059_v52  ;;  %13154 = vmatprep.subr.bf16.mxu0 %v22064_v2  ;;  %v22137_v52 = vld [vmem:[#allocation30 + $0xac8] ss:$16 sps:$4 sm:$0xff]   ;;  %v22142_v2 = vld [vmem:[#allocation30 + $0xae4] ss:$16 sps:$4 sm:$0xff]  }
0x171e   : > { %13412 = vmatprep.subr.bf16.mxu1 %v22067_v63  ;;  %v22145_v63 = vld [vmem:[#allocation30 + $0xaec] ss:$16 sps:$4 sm:$0xff]  }
0x1720   : > { %13155 = vmatpush1.bf16.msra.mxu0 %v22062_v41  ;;  %v22140_v41 = vld [vmem:[#allocation30 + $0xae0] ss:$16 sps:$4 sm:$0xff]  }
0x1721   : > { %13413 = vmatpush1.bf16.msra.mxu1 %v22065_v51  ;;  %13156 = vmatprep.subr.bf16.mxu0 %v22070_v10  ;;  %v22143_v51 = vld [vmem:[#allocation30 + $0xae8] ss:$16 sps:$4 sm:$0xff]   ;;  %v22148_v10 = vld [vmem:[#allocation30 + $0xb04] ss:$16 sps:$4 sm:$0xff]  }
0x1722   : > { %13414 = vmatprep.subr.bf16.mxu1 %v22073_v59  ;;  %v22151_v59 = vld [vmem:[#allocation30 + $0xb0c] ss:$16 sps:$4 sm:$0xff]  }
0x1724   : > { %13157 = vmatpush1.bf16.msra.mxu0 %v22068_v16  ;;  %v22146_v16 = vld [vmem:[#allocation30 + $0xb00] ss:$16 sps:$4 sm:$0xff]  }
0x1725   : > { %13415 = vmatpush1.bf16.msra.mxu1 %v22071_v42  ;;  %13158 = vmatprep.subr.bf16.mxu0 %v22076_v4  ;;  %v22149_v42 = vld [vmem:[#allocation30 + $0xb08] ss:$16 sps:$4 sm:$0xff]   ;;  %v22154_v4 = vld [vmem:[#allocation30 + $0xb24] ss:$16 sps:$4 sm:$0xff]  }
0x1726   : > { %13416 = vmatprep.subr.bf16.mxu1 %v22079_v22  ;;  %v22157_v22 = vld [vmem:[#allocation30 + $0xb2c] ss:$16 sps:$4 sm:$0xff]  }
0x1728   : > { %13159 = vmatpush1.bf16.msra.mxu0 %v22074_v29  ;;  %v22152_v29 = vld [vmem:[#allocation30 + $0xb20] ss:$16 sps:$4 sm:$0xff]  }
0x1729   : > { %13417 = vmatpush1.bf16.msra.mxu1 %v22077_v57  ;;  %13160 = vmatprep.subr.bf16.mxu0 %v22082_v3  ;;  %v22155_v57 = vld [vmem:[#allocation30 + $0xb28] ss:$16 sps:$4 sm:$0xff]   ;;  %v22160_v3 = vld [vmem:[#allocation30 + $0xb44] ss:$16 sps:$4 sm:$0xff]  }
0x172a   : > { %13418 = vmatprep.subr.bf16.mxu1 %v22085_v58  ;;  %v22163_v58 = vld [vmem:[#allocation30 + $0xb4c] ss:$16 sps:$4 sm:$0xff]  }
0x172c   : > { %13161 = vmatpush1.bf16.msra.mxu0 %v22080_v31  ;;  %v22158_v31 = vld [vmem:[#allocation30 + $0xb40] ss:$16 sps:$4 sm:$0xff]  }
0x172d   : > { %13419 = vmatpush1.bf16.msra.mxu1 %v22083_v35  ;;  %13162 = vmatprep.subr.bf16.mxu0 %v22088_v9  ;;  %v22161_v35 = vld [vmem:[#allocation30 + $0xb48] ss:$16 sps:$4 sm:$0xff]   ;;  %v22166_v9 = vld [vmem:[#allocation30 + $0xb64] ss:$16 sps:$4 sm:$0xff]  }
0x172e   : > { %13420 = vmatprep.subr.bf16.mxu1 %v22091_v37  ;;  %v22169_v37 = vld [vmem:[#allocation30 + $0xb6c] ss:$16 sps:$4 sm:$0xff]  }
0x1730   : > { %13163 = vmatpush1.bf16.msra.mxu0 %v22086_v11  ;;  %v22164_v11 = vld [vmem:[#allocation30 + $0xb60] ss:$16 sps:$4 sm:$0xff]  }
0x1731   : > { %13421 = vmatpush1.bf16.msra.mxu1 %v22089_v46  ;;  %13164 = vmatprep.subr.bf16.mxu0 %v22094_v13  ;;  %v22167_v46 = vld [vmem:[#allocation30 + $0xb68] ss:$16 sps:$4 sm:$0xff]   ;;  %v22172_v13 = vld [vmem:[#allocation30 + $0xb84] ss:$16 sps:$4 sm:$0xff]  }
0x1732   : > { %13422 = vmatprep.subr.bf16.mxu1 %v22097_v26  ;;  %v22175_v26 = vld [vmem:[#allocation30 + $0xb8c] ss:$16 sps:$4 sm:$0xff]  }
0x1734   : > { %13165 = vmatpush1.bf16.msra.mxu0 %v22092_v54  ;;  %v22170_v54 = vld [vmem:[#allocation30 + $0xb80] ss:$16 sps:$4 sm:$0xff]  }
0x1735   : > { %13423 = vmatpush1.bf16.msra.mxu1 %v22095_v27  ;;  %13177 = vmatprep.subr.bf16.mxu0 %v22100_v24  ;;  %v22173_v27 = vld [vmem:[#allocation30 + $0xb88] ss:$16 sps:$4 sm:$0xff]   ;;  %v22178_v24 = vld [vmem:[#allocation30 + $0xba4] ss:$16 sps:$4 sm:$0xff]  }
0x1736   : > { %13435 = vmatprep.subr.bf16.mxu1 %v22103_v39  ;;  %v22181_v39 = vld [vmem:[#allocation30 + $0xbac] ss:$16 sps:$4 sm:$0xff]  }
0x1737   : > { %13167 = vmatmul.mubr.bf16.vlgmr.msra.gmra.mrb[100].mxu0 %v25271_v50 }
0x1738   : > { %13425 = vmatmul.mubr.bf16.vlgmr.msra.gmra.mrb[140].mxu1 %v25271_v50  ;;  %13178 = vmatpush1.bf16.msra.mxu0 %v22098_v33  ;;  %v22121_v50 = vld [vmem:[#allocation30 + $0xa6c] ss:$16 sps:$4 sm:$0xff]   ;;  %v22176_v33 = vld [vmem:[#allocation30 + $0xba0] ss:$16 sps:$4 sm:$0xff]  }
0x1739   : > { %13209 = vmatprep.mubr.bf16.mxu0 %v25281_v53  ;;  %13436 = vmatpush1.bf16.msra.mxu1 %v22101_v23  ;;  %v22179_v23 = vld [vmem:[#allocation30 + $0xba8] ss:$16 sps:$4 sm:$0xff]  }
0x173a   : > { %13467 = vmatprep.mubr.bf16.mxu1 %v25281_v53  ;;  %13179 = vmatprep.subr.bf16.mxu0 %v22106_v43  ;;  %v22122_v53 = vld [vmem:[#allocation30 + $0xa80] ss:$16 sps:$4 sm:$0xff]   ;;  %v22184_v43 = vld [vmem:[#allocation30 + $0xbc4] ss:$16 sps:$4 sm:$0xff]  }
0x173b   : > { %13437 = vmatprep.subr.bf16.mxu1 %v22109_v40  ;;  %v22187_v40 = vld [vmem:[#allocation30 + $0xbcc] ss:$16 sps:$4 sm:$0xff]  }
0x173c   : > { %13180 = vmatpush1.bf16.msra.mxu0 %v22104_v5  ;;  %v22182_v5 = vld [vmem:[#allocation30 + $0xbc0] ss:$16 sps:$4 sm:$0xff]  }
0x173d   : > { %13438 = vmatpush1.bf16.msra.mxu1 %v22107_v49  ;;  %13181 = vmatprep.subr.bf16.mxu0 %v22112_v56  ;;  %v22185_v49 = vld [vmem:[#allocation30 + $0xbc8] ss:$16 sps:$4 sm:$0xff]   ;;  %v22190_v56 = vld [vmem:[#allocation30 + $0xbe4] ss:$16 sps:$4 sm:$0xff]  }
0x173e   : > { %13439 = vmatprep.subr.bf16.mxu1 %v22115_v18  ;;  %v22193_v18 = vld [vmem:[#allocation30 + $0xbec] ss:$16 sps:$4 sm:$0xff]  }
0x1740   : > { %13182 = vmatpush1.bf16.msra.mxu0 %v22110_v45  ;;  %v22188_v45 = vld [vmem:[#allocation30 + $0xbe0] ss:$16 sps:$4 sm:$0xff]  }
0x1741   : > { %13440 = vmatpush1.bf16.msra.mxu1 %v22113_v48  ;;  %13183 = vmatprep.subr.bf16.mxu0 %v22118_v20  ;;  %v22191_v48 = vld [vmem:[#allocation30 + $0xbe8] ss:$16 sps:$4 sm:$0xff]   ;;  %v10336_v20 = vld [vmem:[#allocation31] sm:$0xf] }
0x1742   : > { %13441 = vmatprep.subr.bf16.mxu1 %v22121_v50  ;;  %v10337_v50 = vld [vmem:[#allocation33] sm:$0xf] }
0x1744   : > { %13184 = vmatpush1.bf16.msra.mxu0 %v22116_v34  ;;  %v13482_v34 = vrot.slane %v10336_v20, %v24945_v28 }
0x1745   : > { %13442 = vmatpush1.bf16.msra.mxu1 %v22119_v15  ;;  %13185 = vmatprep.subr.bf16.mxu0 %v22124_v32  ;;  %v13490_v15 = vrot.slane %v10336_v20, %v25031_v44  ;;  %v13486_v32 = vrot.slane %v10336_v20, %v24948_v62 }
0x1746   : > { %13443 = vmatprep.subr.bf16.mxu1 %v22127_v19  ;;  %v13511_v19 = vrot.slane %v10337_v50, %v24945_v28 }
0x1748   : > { %13186 = vmatpush1.bf16.msra.mxu0 %v22122_v53  ;;  %v13494_v53 = vrot.slane %v10336_v20, %v25024_v0  ;;  %v22211_v20 = vld [vmem:[#allocation34 + $0x4c] ss:$16 sps:$4 sm:$0xff]  }
0x1749   : > { %13444 = vmatpush1.bf16.msra.mxu1 %v22125_v55  ;;  %13187 = vmatprep.subr.bf16.mxu0 %v22130_v60  ;;  %v13519_v60 = vrot.slane %v10337_v50, %v25031_v44 }
0x174a   : > { %13445 = vmatprep.subr.bf16.mxu1 %v22133_v21 }
0x174c   : > { %13188 = vmatpush1.bf16.msra.mxu0 %v22128_v12 }
0x174d   : > { %13446 = vmatpush1.bf16.msra.mxu1 %v22131_v7  ;;  %13189 = vmatprep.subr.bf16.mxu0 %v22136_v30  ;;  %v13523_v30 = vrot.slane %v10337_v50, %v25024_v0 }
0x174e   : > { %13447 = vmatprep.subr.bf16.mxu1 %v22139_v17 }
0x1750   : > { %13190 = vmatpush1.bf16.msra.mxu0 %v22134_v36 }
0x1751   : > { %13448 = vmatpush1.bf16.msra.mxu1 %v22137_v52  ;;  %13191 = vmatprep.subr.bf16.mxu0 %v22142_v2 }
0x1752   : > { %13449 = vmatprep.subr.bf16.mxu1 %v22145_v63 }
0x1754   : > { %13192 = vmatpush1.bf16.msra.mxu0 %v22140_v41 }
0x1755   : > { %13450 = vmatpush1.bf16.msra.mxu1 %v22143_v51  ;;  %13193 = vmatprep.subr.bf16.mxu0 %v22148_v10 }
0x1756   : > { %13451 = vmatprep.subr.bf16.mxu1 %v22151_v59 }
0x1758   : > { %13194 = vmatpush1.bf16.msra.mxu0 %v22146_v16 }
0x1759   : > { %13452 = vmatpush1.bf16.msra.mxu1 %v22149_v42  ;;  %13195 = vmatprep.subr.bf16.mxu0 %v22154_v4 }
0x175a   : > { %13453 = vmatprep.subr.bf16.mxu1 %v22157_v22 }
0x175c   : > { %13196 = vmatpush1.bf16.msra.mxu0 %v22152_v29 }
0x175d   : > { %13454 = vmatpush1.bf16.msra.mxu1 %v22155_v57  ;;  %13197 = vmatprep.subr.bf16.mxu0 %v22160_v3 }
0x175e   : > { %13455 = vmatprep.subr.bf16.mxu1 %v22163_v58 }
0x1760   : > { %13198 = vmatpush1.bf16.msra.mxu0 %v22158_v31 }
0x1761   : > { %13456 = vmatpush1.bf16.msra.mxu1 %v22161_v35  ;;  %13199 = vmatprep.subr.bf16.mxu0 %v22166_v9 }
0x1762   : > { %13457 = vmatprep.subr.bf16.mxu1 %v22169_v37 }
0x1764   : > { %13200 = vmatpush1.bf16.msra.mxu0 %v22164_v11 }
0x1765   : > { %13458 = vmatpush1.bf16.msra.mxu1 %v22167_v46  ;;  %13201 = vmatprep.subr.bf16.mxu0 %v22172_v13 }
0x1766   : > { %13459 = vmatprep.subr.bf16.mxu1 %v22175_v26 }
0x1768   : > { %13202 = vmatpush1.bf16.msra.mxu0 %v22170_v54 }
0x1769   : > { %13460 = vmatpush1.bf16.msra.mxu1 %v22173_v27  ;;  %13203 = vmatprep.subr.bf16.mxu0 %v22178_v24 }
0x176a   : > { %13461 = vmatprep.subr.bf16.mxu1 %v22181_v39 }
0x176c   : > { %13204 = vmatpush1.bf16.msra.mxu0 %v22176_v33 }
0x176d   : > { %13462 = vmatpush1.bf16.msra.mxu1 %v22179_v23  ;;  %13205 = vmatprep.subr.bf16.mxu0 %v22184_v43 }
0x176e   : > { %13463 = vmatprep.subr.bf16.mxu1 %v22187_v40  ;;  %v22196_v40 = vld [vmem:[#allocation34 + $0x4] ss:$16 sps:$4 sm:$0xff]  }
0x1770   : > { %13206 = vmatpush1.bf16.msra.mxu0 %v22182_v5  ;;  %v22199_v5 = vld [vmem:[#allocation34 + $0xc] ss:$16 sps:$4 sm:$0xff]  }
0x1771   : > { %13464 = vmatpush1.bf16.msra.mxu1 %v22185_v49  ;;  %13207 = vmatprep.subr.bf16.mxu0 %v22190_v56  ;;  %v22194_v49 = vld [vmem:[#allocation34] ss:$16 sps:$4 sm:$0xff]   ;;  %v22202_v56 = vld [vmem:[#allocation34 + $0x24] ss:$16 sps:$4 sm:$0xff]  }
0x1772   : > { %13465 = vmatprep.subr.bf16.mxu1 %v22193_v18  ;;  %v22205_v18 = vld [vmem:[#allocation34 + $0x2c] ss:$16 sps:$4 sm:$0xff]  }
0x1774   : > { %13208 = vmatpush1.bf16.msra.mxu0 %v22188_v45  ;;  %v22200_v45 = vld [vmem:[#allocation34 + $0x20] ss:$16 sps:$4 sm:$0xff]  }
0x1775   : > { %13466 = vmatpush1.bf16.msra.mxu1 %v22191_v48  ;;  %v22203_v48 = vld [vmem:[#allocation34 + $0x28] ss:$16 sps:$4 sm:$0xff]  }
0x1777   : > { %13210 = vmatmul.mubr.bf16.vlgmr.msra.gmra.mrb[100].mxu0 %v25279_v47 }
0x1778   : > { %13468 = vmatmul.mubr.bf16.vlgmr.msra.gmra.mrb[140].mxu1 %v25279_v47  ;;  %13610 = vmatprep.mubr.f32.mxu0 %v25563_v25  ;;  %v13515_v47 = vrot.slane %v10337_v50, %v24948_v62  ;;  %v22206_v50 = vld [vmem:[#allocation34 + $0x40] ss:$16 sps:$4 sm:$0xff]  }
0x1779   : > { %13687 = vmatprep.mubr.f32.mxu1 %v25563_v25 }
0x184a   : > { %v13211_v55 = vpop.f32.mrb[100].mxu0 }
0x184b   : > { %v13499_v21 = vmul.f32 %v13482_v34, %v13211_v55  ;;  %v13469_v12 = vpop.f32.mrb[140].mxu1  ;;  %v13213_v7 = vpop.f32.mrb[101].mxu0  ;;  %v22220_v55 = vld [vmem:[#allocation34 + $0x84] ss:$16 sps:$4 sm:$0xff]  }
0x184c   : > { %v13501_v17 = vmul.f32 %v13490_v15, %v13469_v12  ;;  %v13500_v36 = vmul.f32 %v13486_v32, %v13213_v7  ;;  %v13471_v52 = vpop.f32.mrb[141].mxu1  ;;  %v13215_v2 = vpop.f32.mrb[102].mxu0  ;;  %v22226_v12 = vld [vmem:[#allocation34 + $0xa4] ss:$16 sps:$4 sm:$0xff]   ;;  %v22229_v7 = vld [vmem:[#allocation34 + $0xac] ss:$16 sps:$4 sm:$0xff]  }
0x184d   : > { %v13528_v63 = vadd.f32 %v13511_v19, %v13499_v21  ;;  %v13502_v41 = vmul.f32 %v13494_v53, %v13471_v52  ;;  %v13503_v51 = vmul.f32 %v13482_v34, %v13215_v2  ;;  %v13473_v10 = vpop.f32.mrb[142].mxu1  ;;  %v13217_v59 = vpop.f32.mrb[103].mxu0  ;;  %v22209_v34 = vld [vmem:[#allocation34 + $0x48] ss:$16 sps:$4 sm:$0xff]   ;;  %v22235_v52 = vld [vmem:[#allocation34 + $0xcc] ss:$16 sps:$4 sm:$0xff]  }
0x184e   : > { %v13530_v16 = vadd.f32 %v13519_v60, %v13501_v17  ;;  %v13529_v42 = vadd.f32 %v13515_v47, %v13500_v36  ;;  %v13505_v4 = vmul.f32 %v13490_v15, %v13473_v10  ;;  %v13504_v22 = vmul.f32 %v13486_v32, %v13217_v59  ;;  %v13475_v29 = vpop.f32.mrb[143].mxu1  ;;  %v22214_v15 = vld [vmem:[#allocation34 + $0x64] ss:$16 sps:$4 sm:$0xff]   ;;  %v22217_v32 = vld [vmem:[#allocation34 + $0x6c] ss:$16 sps:$4 sm:$0xff]  }
0x184f   : > { %v13531_v57 = vadd.f32 %v13523_v30, %v13502_v41  ;;  %v13532_v3 = vadd.f32 %v13511_v19, %v13503_v51  ;;  %v13506_v58 = vmul.f32 %v13494_v53, %v13475_v29  ;;  %v13536_v9 = vmax.f32 %v13528_v63, 0.0  ;;  %v22212_v19 = vld [vmem:[#allocation34 + $0x60] ss:$16 sps:$4 sm:$0xff]   ;;  %v22215_v53 = vld [vmem:[#allocation34 + $0x68] ss:$16 sps:$4 sm:$0xff]  }
0x1850   : > { %v13534_v31 = vadd.f32 %v13519_v60, %v13505_v4  ;;  %v13533_v35 = vadd.f32 %v13515_v47, %v13504_v22  ;;  %v13538_v46 = vmax.f32 %v13530_v16, 0.0  ;;  %v13537_v13 = vmax.f32 %v13529_v42, 0.0  ;;  %v22223_v60 = vld [vmem:[#allocation34 + $0x8c] ss:$16 sps:$4 sm:$0xff]   ;;  %v22218_v47 = vld [vmem:[#allocation34 + $0x80] ss:$16 sps:$4 sm:$0xff]  }
0x1851   : > { %v13540_v37 = vmax.f32 %v13532_v3, 0.0  ;;  %v13535_v11 = vadd.f32 %v13523_v30, %v13506_v58  ;;  %v13539_v27 = vmax.f32 %v13531_v57, 0.0  ;;  %v22221_v21 = vld [vmem:[#allocation34 + $0x88] ss:$16 sps:$4 sm:$0xff]   ;;  %v22224_v30 = vld [vmem:[#allocation34 + $0xa0] ss:$16 sps:$4 sm:$0xff]  }
0x1852   : > { %v13542_v26 = vmax.f32 %v13534_v31, 0.0  ;;  %v13541_v54 = vmax.f32 %v13533_v35, 0.0  ;;  %v22227_v17 = vld [vmem:[#allocation34 + $0xa8] ss:$16 sps:$4 sm:$0xff]   ;;  %v22232_v36 = vld [vmem:[#allocation34 + $0xc4] ss:$16 sps:$4 sm:$0xff]  }
0x1853   : > { %v25307_v24 = vpack.c.bf16 %v13540_v37, %v13536_v9  ;;  %v13543_v39 = vmax.f32 %v13535_v11, 0.0  ;;  %v22230_v2 = vld [vmem:[#allocation34 + $0xc0] ss:$16 sps:$4 sm:$0xff]   ;;  %v22233_v63 = vld [vmem:[#allocation34 + $0xc8] ss:$16 sps:$4 sm:$0xff]  }
0x1854   : > { %v25309_v33 = vpack.c.bf16 %v13542_v26, %v13538_v46  ;;  %v25311_v23 = vpack.c.bf16 %v13541_v54, %v13537_v13  ;;  %v22238_v41 = vld [vmem:[#allocation34 + $0xe4] ss:$16 sps:$4 sm:$0xff]   ;;  %v22241_v51 = vld [vmem:[#allocation34 + $0xec] ss:$16 sps:$4 sm:$0xff]   ;;  %v22236_v10 = vld [vmem:[#allocation34 + $0xe0] ss:$16 sps:$4 sm:$0xff]  }
0x1855   : > { %v25313_v43 = vpack.c.bf16 %v13543_v39, %v13539_v27  ;;  %v22239_v59 = vld [vmem:[#allocation34 + $0xe8] ss:$16 sps:$4 sm:$0xff]   ;;  %v22244_v16 = vld [vmem:[#allocation34 + $0x104] ss:$16 sps:$4 sm:$0xff]   ;;  %v22247_v42 = vld [vmem:[#allocation34 + $0x10c] ss:$16 sps:$4 sm:$0xff]  }
0x1856   : > { %20125 = vmatprep.subr.bf16.mxu0 %v25311_v23  ;;  %v22242_v4 = vld [vmem:[#allocation34 + $0x100] ss:$16 sps:$4 sm:$0xff]   ;;  %v22245_v22 = vld [vmem:[#allocation34 + $0x108] ss:$16 sps:$4 sm:$0xff]   ;;  %v22250_v29 = vld [vmem:[#allocation34 + $0x124] ss:$16 sps:$4 sm:$0xff]  }
0x1857   : > { %20129 = vmatprep.subr.bf16.mxu1 %v25313_v43  ;;  %20127 = vmatpush1.bf16.msra.mxu0 %v25307_v24  ;;  %v22253_v57 = vld [vmem:[#allocation34 + $0x12c] ss:$16 sps:$4 sm:$0xff]   ;;  %v22248_v3 = vld [vmem:[#allocation34 + $0x120] ss:$16 sps:$4 sm:$0xff]   ;;  %v22251_v58 = vld [vmem:[#allocation34 + $0x128] ss:$16 sps:$4 sm:$0xff]  }
0x1858   : > { %20131 = vmatpush1.bf16.msra.mxu1 %v25309_v33  ;;  %20133 = vmatprep.subr.bf16.mxu0 %v25311_v23  ;;  %v22256_v31 = vld [vmem:[#allocation34 + $0x144] ss:$16 sps:$4 sm:$0xff]   ;;  %v22259_v35 = vld [vmem:[#allocation34 + $0x14c] ss:$16 sps:$4 sm:$0xff]   ;;  %v22254_v9 = vld [vmem:[#allocation34 + $0x140] ss:$16 sps:$4 sm:$0xff]  }
0x1859   : > { %20137 = vmatprep.subr.bf16.mxu1 %v25313_v43  ;;  %v22257_v37 = vld [vmem:[#allocation34 + $0x148] ss:$16 sps:$4 sm:$0xff]   ;;  %v22262_v11 = vld [vmem:[#allocation34 + $0x164] ss:$16 sps:$4 sm:$0xff]   ;;  %v22265_v46 = vld [vmem:[#allocation34 + $0x16c] ss:$16 sps:$4 sm:$0xff]  }
0x185a   : > { %18605 = vmatmul.mubr.msk.f32.vlgmr.msra.gmra.mrb[104].mxu0 %vm2763_vm5, %v24320_v8  ;;  %v22260_v13 = vld [vmem:[#allocation34 + $0x160] ss:$16 sps:$4 sm:$0xff]   ;;  %v22263_v26 = vld [vmem:[#allocation34 + $0x168] ss:$16 sps:$4 sm:$0xff]   ;;  %v22268_v54 = vld [vmem:[#allocation34 + $0x184] ss:$16 sps:$4 sm:$0xff]  }
0x185b   : > { %18607 = vmatmul.mubr.msk.f32.vlgmr.msra.gmra.mrb[144].mxu1 %vm2763_vm5, %v24320_v8  ;;  %20135 = vmatpush1.bf16.msra.mxu0 %v25307_v24  ;;  %v22197_v8 = vld [vmem:[#allocation34 + $0x8] ss:$16 sps:$4 sm:$0xff]   ;;  %v22271_v27 = vld [vmem:[#allocation34 + $0x18c] ss:$16 sps:$4 sm:$0xff]   ;;  %v22266_v39 = vld [vmem:[#allocation34 + $0x180] ss:$16 sps:$4 sm:$0xff]  }
0x185c   : > { %20139 = vmatpush1.bf16.msra.mxu1 %v25309_v33  ;;  %13616 = vmatprep.mubr.f32.mxu0 %v25563_v25 }
0x185d   : > { %13693 = vmatprep.mubr.f32.mxu1 %v25563_v25  ;;  %16170 = vmatprep.subr.bf16.mxu0 %v22196_v40  ;;  %v22269_v40 = vld [vmem:[#allocation34 + $0x188] ss:$16 sps:$4 sm:$0xff]  }
0x185e   : > { %18606 = vmatmul.mubr.msk.f32.gmra.mrb[106].mxu0 %vm2763_vm5, %v24391_v38  ;;  %16428 = vmatprep.subr.bf16.mxu1 %v22199_v5  ;;  %v22274_v5 = vld [vmem:[#allocation34 + $0x1a4] ss:$16 sps:$4 sm:$0xff]  }
0x185f   : > { %18608 = vmatmul.mubr.msk.f32.gmra.mrb[146].mxu1 %vm2763_vm5, %v24391_v38  ;;  %13772 = vmatprep.mubr.f32.mxu0 %v25563_v25  ;;  %v22208_v38 = vld [vmem:[#allocation34 + $0x44] ss:$16 sps:$4 sm:$0xff]  }
0x1860   : > { %13849 = vmatprep.mubr.f32.mxu1 %v25563_v25 }
0x1862   : > { %18609 = vmatmul.mubr.msk.f32.vlgmr.msra.gmra.mrb[108].mxu0 %vm2763_vm5, %v24496_v61 }
0x1863   : > { %18611 = vmatmul.mubr.msk.f32.vlgmr.msra.gmra.mrb[148].mxu1 %vm2763_vm5, %v24496_v61  ;;  %16171 = vmatpush1.bf16.msra.mxu0 %v22194_v49  ;;  %v22277_v49 = vld [vmem:[#allocation34 + $0x1ac] ss:$16 sps:$4 sm:$0xff]  }
0x1864   : > { %16429 = vmatpush1.bf16.msra.mxu1 %v22197_v8  ;;  %16172 = vmatprep.subr.bf16.mxu0 %v22202_v56  ;;  %v22272_v8 = vld [vmem:[#allocation34 + $0x1a0] ss:$16 sps:$4 sm:$0xff]   ;;  %v22275_v56 = vld [vmem:[#allocation34 + $0x1a8] ss:$16 sps:$4 sm:$0xff]  }
0x1865   : > { %16430 = vmatprep.subr.bf16.mxu1 %v22205_v18  ;;  %13778 = vmatprep.mubr.f32.mxu0 %v25563_v25  ;;  %v22280_v18 = vld [vmem:[#allocation34 + $0x1c4] ss:$16 sps:$4 sm:$0xff]  }
0x1866   : > { %13855 = vmatprep.mubr.f32.mxu1 %v25563_v25  ;;  %18610 = vmatmul.mubr.msk.f32.gmra.mrb[110].mxu0 %vm2763_vm5, %v24523_v6 }
0x1867   : > { %16173 = vmatpush1.bf16.msra.mxu0 %v22200_v45  ;;  %18612 = vmatmul.mubr.msk.f32.gmra.mrb[150].mxu1 %vm2763_vm5, %v24523_v6  ;;  %v22283_v45 = vld [vmem:[#allocation34 + $0x1cc] ss:$16 sps:$4 sm:$0xff]  }
0x1868   : > { %16431 = vmatpush1.bf16.msra.mxu1 %v22203_v48  ;;  %16174 = vmatprep.subr.bf16.mxu0 %v22208_v38  ;;  %v22278_v48 = vld [vmem:[#allocation34 + $0x1c0] ss:$16 sps:$4 sm:$0xff]   ;;  %v22281_v38 = vld [vmem:[#allocation34 + $0x1c8] ss:$16 sps:$4 sm:$0xff]  }
0x1869   : > { %16432 = vmatprep.subr.bf16.mxu1 %v22211_v20  ;;  %v22286_v20 = vld [vmem:[#allocation34 + $0x1e4] ss:$16 sps:$4 sm:$0xff]  }
0x186b   : > { %16175 = vmatpush1.bf16.msra.mxu0 %v22206_v50  ;;  %v22289_v50 = vld [vmem:[#allocation34 + $0x1ec] ss:$16 sps:$4 sm:$0xff]  }
0x186c   : > { %16433 = vmatpush1.bf16.msra.mxu1 %v22209_v34  ;;  %16176 = vmatprep.subr.bf16.mxu0 %v22214_v15  ;;  %v22284_v34 = vld [vmem:[#allocation34 + $0x1e0] ss:$16 sps:$4 sm:$0xff]   ;;  %v22287_v15 = vld [vmem:[#allocation34 + $0x1e8] ss:$16 sps:$4 sm:$0xff]  }
0x186d   : > { %16434 = vmatprep.subr.bf16.mxu1 %v22217_v32  ;;  %v22292_v32 = vld [vmem:[#allocation34 + $0x204] ss:$16 sps:$4 sm:$0xff]  }
0x186f   : > { %16177 = vmatpush1.bf16.msra.mxu0 %v22212_v19  ;;  %v22295_v19 = vld [vmem:[#allocation34 + $0x20c] ss:$16 sps:$4 sm:$0xff]  }
0x1870   : > { %16435 = vmatpush1.bf16.msra.mxu1 %v22215_v53  ;;  %16178 = vmatprep.subr.bf16.mxu0 %v22220_v55 }
0x1871   : > { %16436 = vmatprep.subr.bf16.mxu1 %v22223_v60 }
0x1873   : > { %16179 = vmatpush1.bf16.msra.mxu0 %v22218_v47 }
0x1874   : > { %16437 = vmatpush1.bf16.msra.mxu1 %v22221_v21  ;;  %16180 = vmatprep.subr.bf16.mxu0 %v22226_v12 }
0x1875   : > { %16438 = vmatprep.subr.bf16.mxu1 %v22229_v7 }
0x1877   : > { %16181 = vmatpush1.bf16.msra.mxu0 %v22224_v30 }
0x1878   : > { %16439 = vmatpush1.bf16.msra.mxu1 %v22227_v17  ;;  %16182 = vmatprep.subr.bf16.mxu0 %v22232_v36  ;;  %v22290_v36 = vld [vmem:[#allocation34 + $0x200] ss:$16 sps:$4 sm:$0xff]  }
0x1879   : > { %16440 = vmatprep.subr.bf16.mxu1 %v22235_v52  ;;  %v22293_v52 = vld [vmem:[#allocation34 + $0x208] ss:$16 sps:$4 sm:$0xff]  }
0x187b   : > { %16183 = vmatpush1.bf16.msra.mxu0 %v22230_v2 }
0x187c   : > { %16441 = vmatpush1.bf16.msra.mxu1 %v22233_v63  ;;  %16184 = vmatprep.subr.bf16.mxu0 %v22238_v41  ;;  %v22298_v41 = vld [vmem:[#allocation34 + $0x224] ss:$16 sps:$4 sm:$0xff]  }
0x187d   : > { %16442 = vmatprep.subr.bf16.mxu1 %v22241_v51  ;;  %v22301_v51 = vld [vmem:[#allocation34 + $0x22c] ss:$16 sps:$4 sm:$0xff]  }
0x187f   : > { %16185 = vmatpush1.bf16.msra.mxu0 %v22236_v10 }
0x1880   : > { %16443 = vmatpush1.bf16.msra.mxu1 %v22239_v59  ;;  %16186 = vmatprep.subr.bf16.mxu0 %v22244_v16  ;;  %v22296_v59 = vld [vmem:[#allocation34 + $0x220] ss:$16 sps:$4 sm:$0xff]   ;;  %v22299_v16 = vld [vmem:[#allocation34 + $0x228] ss:$16 sps:$4 sm:$0xff]  }
0x1881   : > { %16444 = vmatprep.subr.bf16.mxu1 %v22247_v42  ;;  %v22304_v42 = vld [vmem:[#allocation34 + $0x244] ss:$16 sps:$4 sm:$0xff]  }
0x1883   : > { %16187 = vmatpush1.bf16.msra.mxu0 %v22242_v4  ;;  %v22307_v4 = vld [vmem:[#allocation34 + $0x24c] ss:$16 sps:$4 sm:$0xff]  }
0x1884   : > { %16445 = vmatpush1.bf16.msra.mxu1 %v22245_v22  ;;  %16188 = vmatprep.subr.bf16.mxu0 %v22250_v29  ;;  %v22302_v22 = vld [vmem:[#allocation34 + $0x240] ss:$16 sps:$4 sm:$0xff]   ;;  %v22305_v29 = vld [vmem:[#allocation34 + $0x248] ss:$16 sps:$4 sm:$0xff]  }
0x1885   : > { %16446 = vmatprep.subr.bf16.mxu1 %v22253_v57  ;;  %v22310_v57 = vld [vmem:[#allocation34 + $0x264] ss:$16 sps:$4 sm:$0xff]  }
0x1887   : > { %16189 = vmatpush1.bf16.msra.mxu0 %v22248_v3  ;;  %v22313_v3 = vld [vmem:[#allocation34 + $0x26c] ss:$16 sps:$4 sm:$0xff]  }
0x1888   : > { %16447 = vmatpush1.bf16.msra.mxu1 %v22251_v58  ;;  %16190 = vmatprep.subr.bf16.mxu0 %v22256_v31  ;;  %v22308_v58 = vld [vmem:[#allocation34 + $0x260] ss:$16 sps:$4 sm:$0xff]   ;;  %v22311_v31 = vld [vmem:[#allocation34 + $0x268] ss:$16 sps:$4 sm:$0xff]  }
0x1889   : > { %16448 = vmatprep.subr.bf16.mxu1 %v22259_v35  ;;  %v22316_v35 = vld [vmem:[#allocation34 + $0x284] ss:$16 sps:$4 sm:$0xff]  }
0x188b   : > { %16191 = vmatpush1.bf16.msra.mxu0 %v22254_v9  ;;  %v22319_v9 = vld [vmem:[#allocation34 + $0x28c] ss:$16 sps:$4 sm:$0xff]  }
0x188c   : > { %16449 = vmatpush1.bf16.msra.mxu1 %v22257_v37  ;;  %16192 = vmatprep.subr.bf16.mxu0 %v22262_v11  ;;  %v22314_v37 = vld [vmem:[#allocation34 + $0x280] ss:$16 sps:$4 sm:$0xff]   ;;  %v22317_v11 = vld [vmem:[#allocation34 + $0x288] ss:$16 sps:$4 sm:$0xff]  }
0x188d   : > { %16450 = vmatprep.subr.bf16.mxu1 %v22265_v46  ;;  %v22322_v46 = vld [vmem:[#allocation34 + $0x2a4] ss:$16 sps:$4 sm:$0xff]  }
0x188f   : > { %16193 = vmatpush1.bf16.msra.mxu0 %v22260_v13  ;;  %v22325_v13 = vld [vmem:[#allocation34 + $0x2ac] ss:$16 sps:$4 sm:$0xff]  }
0x1890   : > { %16451 = vmatpush1.bf16.msra.mxu1 %v22263_v26  ;;  %16194 = vmatprep.subr.bf16.mxu0 %v22268_v54  ;;  %v22320_v26 = vld [vmem:[#allocation34 + $0x2a0] ss:$16 sps:$4 sm:$0xff]   ;;  %v22323_v54 = vld [vmem:[#allocation34 + $0x2a8] ss:$16 sps:$4 sm:$0xff]  }
0x1891   : > { %16452 = vmatprep.subr.bf16.mxu1 %v22271_v27  ;;  %v22328_v27 = vld [vmem:[#allocation34 + $0x2c4] ss:$16 sps:$4 sm:$0xff]  }
0x1893   : > { %16195 = vmatpush1.bf16.msra.mxu0 %v22266_v39  ;;  %v22331_v39 = vld [vmem:[#allocation34 + $0x2cc] ss:$16 sps:$4 sm:$0xff]  }
0x1894   : > { %16453 = vmatpush1.bf16.msra.mxu1 %v22269_v40  ;;  %16196 = vmatprep.subr.bf16.mxu0 %v22274_v5 }
0x1895   : > { %16454 = vmatprep.subr.bf16.mxu1 %v22277_v49 }
0x1897   : > { %16197 = vmatpush1.bf16.msra.mxu0 %v22272_v8 }
0x1898   : > { %16455 = vmatpush1.bf16.msra.mxu1 %v22275_v56  ;;  %16198 = vmatprep.subr.bf16.mxu0 %v22280_v18  ;;  %v22326_v56 = vld [vmem:[#allocation34 + $0x2c0] ss:$16 sps:$4 sm:$0xff]   ;;  %v22329_v18 = vld [vmem:[#allocation34 + $0x2c8] ss:$16 sps:$4 sm:$0xff]  }
0x1899   : > { %16456 = vmatprep.subr.bf16.mxu1 %v22283_v45 }
0x189b   : > { %16199 = vmatpush1.bf16.msra.mxu0 %v22278_v48 }
0x189c   : > { %16457 = vmatpush1.bf16.msra.mxu1 %v22281_v38  ;;  %16200 = vmatprep.subr.bf16.mxu0 %v22286_v20  ;;  %v22334_v38 = vld [vmem:[#allocation34 + $0x2e4] ss:$16 sps:$4 sm:$0xff]   ;;  %v22337_v20 = vld [vmem:[#allocation34 + $0x2ec] ss:$16 sps:$4 sm:$0xff]  }
0x189d   : > { %16458 = vmatprep.subr.bf16.mxu1 %v22289_v50 }
0x189f   : > { %16201 = vmatpush1.bf16.msra.mxu0 %v22284_v34 }
0x18a0   : > { %16459 = vmatpush1.bf16.msra.mxu1 %v22287_v15  ;;  %16213 = vmatprep.subr.bf16.mxu0 %v22292_v32 }
0x18a1   : > { %16471 = vmatprep.subr.bf16.mxu1 %v22295_v19 }
0x192d   : > { %v13612_v53 = vpop.f32.mrb[104].mxu0 }
0x192e   : > { %v13614_v55 = vpop.f32.mrb[105].mxu0  ;;  %v13689_v60 = vpop.f32.mrb[144].mxu1 }
0x192f   : > { %v13691_v47 = vpop.f32.mrb[145].mxu1 }
0x1931   : > { %v13618_v21 = vpop.f32.mrb[106].mxu0 }
0x1932   : > { %v13700_v12 = vpack.c.bf16 %v13618_v21, %v13612_v53  ;;  %v13620_v7 = vpop.f32.mrb[107].mxu0  ;;  %v13695_v30 = vpop.f32.mrb[146].mxu1  ;;  %v22343_v21 = vld [vmem:[#allocation34 + $0x30c] ss:$16 sps:$4 sm:$0xff]  }
0x1933   : > { %v13701_v17 = vpack.c.bf16 %v13620_v7, %v13614_v55  ;;  %v25345_v2 = vpack.c.bf16 %v13695_v30, %v13689_v60  ;;  %v13697_v63 = vpop.f32.mrb[147].mxu1  ;;  %v22332_v55 = vld [vmem:[#allocation34 + $0x2e0] ss:$16 sps:$4 sm:$0xff]   ;;  %v22335_v60 = vld [vmem:[#allocation34 + $0x2e8] ss:$16 sps:$4 sm:$0xff]  }
0x1934   : > { %v13703_v10 = vpack.c.bf16 %v13697_v63, %v13691_v47  ;;  %v22340_v47 = vld [vmem:[#allocation34 + $0x304] ss:$16 sps:$4 sm:$0xff]   ;;  %v22341_v7 = vld [vmem:[#allocation34 + $0x308] ss:$16 sps:$4 sm:$0xff]  }
0x1935   : > { %16202 = vmatprep.mubr.bf16.mxu0 %v13701_v17  ;;  %16460 = vmatprep.mubr.bf16.mxu1 %v13701_v17  ;;  %v13774_v40 = vpop.f32.mrb[108].mxu0  ;;  %v22346_v30 = vld [vmem:[#allocation34 + $0x324] ss:$16 sps:$4 sm:$0xff]   ;;  %v22349_v17 = vld [vmem:[#allocation34 + $0x32c] ss:$16 sps:$4 sm:$0xff]  }
0x1936   : > { %16203 = vmatmul.mubr.bf16.vlgmr.msra.gmra.mrb[112].mxu0 %v13700_v12  ;;  %16461 = vmatmul.mubr.bf16.vlgmr.msra.gmra.mrb[152].mxu1 %v13700_v12  ;;  %v13851_v5 = vpop.f32.mrb[148].mxu1  ;;  %v13776_v49 = vpop.f32.mrb[109].mxu0  ;;  %v22338_v12 = vld [vmem:[#allocation34 + $0x300] ss:$16 sps:$4 sm:$0xff]   ;;  %v22352_v63 = vld [vmem:[#allocation34 + $0x344] ss:$16 sps:$4 sm:$0xff]  }
0x1937   : > { %16214 = vmatpush1.bf16.msra.mxu0 %v22290_v36  ;;  %16472 = vmatpush1.bf16.msra.mxu1 %v22293_v52  ;;  %v13853_v8 = vpop.f32.mrb[149].mxu1  ;;  %v22344_v36 = vld [vmem:[#allocation34 + $0x320] ss:$16 sps:$4 sm:$0xff]   ;;  %v22347_v52 = vld [vmem:[#allocation34 + $0x328] ss:$16 sps:$4 sm:$0xff]  }
0x1938   : > { %16215 = vmatprep.subr.bf16.mxu0 %v22298_v41  ;;  %16473 = vmatprep.subr.bf16.mxu1 %v22301_v51  ;;  %v22355_v41 = vld [vmem:[#allocation34 + $0x34c] ss:$16 sps:$4 sm:$0xff]   ;;  %v22350_v51 = vld [vmem:[#allocation34 + $0x340] ss:$16 sps:$4 sm:$0xff]  }
0x1939   : > { %16245 = vmatprep.mubr.bf16.mxu0 %v13703_v10  ;;  %16503 = vmatprep.mubr.bf16.mxu1 %v13703_v10  ;;  %v13780_v45 = vpop.f32.mrb[110].mxu0  ;;  %v22353_v10 = vld [vmem:[#allocation34 + $0x348] ss:$16 sps:$4 sm:$0xff]  }
0x193a   : > { %v13857_v48 = vpop.f32.mrb[150].mxu1  ;;  %v25347_v50 = vpack.c.bf16 %v13780_v45, %v13774_v40  ;;  %v13782_v15 = vpop.f32.mrb[111].mxu0  ;;  %v22388_v40 = vld [vmem:[#allocation34 + $0x404] ss:$16 sps:$4 sm:$0xff]   ;;  %v22392_v45 = vld [vmem:[#allocation34 + $0x420] ss:$16 sps:$4 sm:$0xff]  }
0x193b   : > { %16216 = vmatpush1.bf16.msra.mxu0 %v22296_v59  ;;  %16474 = vmatpush1.bf16.msra.mxu1 %v22299_v16  ;;  %v25349_v34 = vpack.c.bf16 %v13857_v48, %v13851_v5  ;;  %v13859_v32 = vpop.f32.mrb[151].mxu1  ;;  %v25351_v19 = vpack.c.bf16 %v13782_v15, %v13776_v49  ;;  %v22358_v59 = vld [vmem:[#allocation34 + $0x364] ss:$16 sps:$4 sm:$0xff]   ;;  %v22361_v16 = vld [vmem:[#allocation34 + $0x36c] ss:$16 sps:$4 sm:$0xff]  }
0x193c   : > { %16217 = vmatprep.subr.bf16.mxu0 %v22304_v42  ;;  %16475 = vmatprep.subr.bf16.mxu1 %v22307_v4  ;;  %v25353_v53 = vpack.c.bf16 %v13859_v32, %v13853_v8  ;;  %v22356_v42 = vld [vmem:[#allocation34 + $0x360] ss:$16 sps:$4 sm:$0xff]   ;;  %v22359_v4 = vld [vmem:[#allocation34 + $0x368] ss:$16 sps:$4 sm:$0xff]   ;;  %v22391_v5 = vld [vmem:[#allocation34 + $0x40c] ss:$16 sps:$4 sm:$0xff]  }
0x193d   : > { %v22386_v49 = vld [vmem:[#allocation34 + $0x400] ss:$16 sps:$4 sm:$0xff]   ;;  %v22389_v8 = vld [vmem:[#allocation34 + $0x408] ss:$16 sps:$4 sm:$0xff]  }
0x193e   : > { %v22395_v48 = vld [vmem:[#allocation34 + $0x428] ss:$16 sps:$4 sm:$0xff]   ;;  %v22398_v15 = vld [vmem:[#allocation34 + $0x440] ss:$16 sps:$4 sm:$0xff]  }
0x193f   : > { %16218 = vmatpush1.bf16.msra.mxu0 %v22302_v22  ;;  %16476 = vmatpush1.bf16.msra.mxu1 %v22305_v29  ;;  %v22364_v22 = vld [vmem:[#allocation34 + $0x384] ss:$16 sps:$4 sm:$0xff]   ;;  %v22367_v29 = vld [vmem:[#allocation34 + $0x38c] ss:$16 sps:$4 sm:$0xff]   ;;  %v22401_v32 = vld [vmem:[#allocation34 + $0x448] ss:$16 sps:$4 sm:$0xff]  }
0x1940   : > { %16219 = vmatprep.subr.bf16.mxu0 %v22310_v57  ;;  %16477 = vmatprep.subr.bf16.mxu1 %v22313_v3  ;;  %v22362_v57 = vld [vmem:[#allocation34 + $0x380] ss:$16 sps:$4 sm:$0xff]   ;;  %v22365_v3 = vld [vmem:[#allocation34 + $0x388] ss:$16 sps:$4 sm:$0xff]  }
0x1943   : > { %16220 = vmatpush1.bf16.msra.mxu0 %v22308_v58  ;;  %16478 = vmatpush1.bf16.msra.mxu1 %v22311_v31  ;;  %v22370_v58 = vld [vmem:[#allocation34 + $0x3a4] ss:$16 sps:$4 sm:$0xff]   ;;  %v22373_v31 = vld [vmem:[#allocation34 + $0x3ac] ss:$16 sps:$4 sm:$0xff]  }
0x1944   : > { %16221 = vmatprep.subr.bf16.mxu0 %v22316_v35  ;;  %16479 = vmatprep.subr.bf16.mxu1 %v22319_v9  ;;  %v22368_v35 = vld [vmem:[#allocation34 + $0x3a0] ss:$16 sps:$4 sm:$0xff]   ;;  %v22371_v9 = vld [vmem:[#allocation34 + $0x3a8] ss:$16 sps:$4 sm:$0xff]  }
0x1947   : > { %16222 = vmatpush1.bf16.msra.mxu0 %v22314_v37  ;;  %16480 = vmatpush1.bf16.msra.mxu1 %v22317_v11  ;;  %v22376_v37 = vld [vmem:[#allocation34 + $0x3c4] ss:$16 sps:$4 sm:$0xff]   ;;  %v22379_v11 = vld [vmem:[#allocation34 + $0x3cc] ss:$16 sps:$4 sm:$0xff]  }
0x1948   : > { %16223 = vmatprep.subr.bf16.mxu0 %v22322_v46  ;;  %16481 = vmatprep.subr.bf16.mxu1 %v22325_v13  ;;  %v22374_v46 = vld [vmem:[#allocation34 + $0x3c0] ss:$16 sps:$4 sm:$0xff]   ;;  %v22377_v13 = vld [vmem:[#allocation34 + $0x3c8] ss:$16 sps:$4 sm:$0xff]  }
0x194b   : > { %16224 = vmatpush1.bf16.msra.mxu0 %v22320_v26  ;;  %16482 = vmatpush1.bf16.msra.mxu1 %v22323_v54  ;;  %v22382_v26 = vld [vmem:[#allocation34 + $0x3e4] ss:$16 sps:$4 sm:$0xff]   ;;  %v22385_v54 = vld [vmem:[#allocation34 + $0x3ec] ss:$16 sps:$4 sm:$0xff]  }
0x194c   : > { %16225 = vmatprep.subr.bf16.mxu0 %v22328_v27  ;;  %16483 = vmatprep.subr.bf16.mxu1 %v22331_v39  ;;  %v22380_v27 = vld [vmem:[#allocation34 + $0x3e0] ss:$16 sps:$4 sm:$0xff]   ;;  %v22383_v39 = vld [vmem:[#allocation34 + $0x3e8] ss:$16 sps:$4 sm:$0xff]  }
0x194f   : > { %16226 = vmatpush1.bf16.msra.mxu0 %v22326_v56  ;;  %16484 = vmatpush1.bf16.msra.mxu1 %v22329_v18  ;;  %v22394_v56 = vld [vmem:[#allocation34 + $0x424] ss:$16 sps:$4 sm:$0xff]   ;;  %v22397_v18 = vld [vmem:[#allocation34 + $0x42c] ss:$16 sps:$4 sm:$0xff]  }
0x1950   : > { %16227 = vmatprep.subr.bf16.mxu0 %v22334_v38  ;;  %16485 = vmatprep.subr.bf16.mxu1 %v22337_v20  ;;  %v22400_v38 = vld [vmem:[#allocation34 + $0x444] ss:$16 sps:$4 sm:$0xff]   ;;  %v22403_v20 = vld [vmem:[#allocation34 + $0x44c] ss:$16 sps:$4 sm:$0xff]  }
0x1953   : > { %16228 = vmatpush1.bf16.msra.mxu0 %v22332_v55  ;;  %16486 = vmatpush1.bf16.msra.mxu1 %v22335_v60  ;;  %v22406_v55 = vld [vmem:[#allocation34 + $0x464] ss:$16 sps:$4 sm:$0xff]   ;;  %v22404_v60 = vld [vmem:[#allocation34 + $0x460] ss:$16 sps:$4 sm:$0xff]  }
0x1954   : > { %16229 = vmatprep.subr.bf16.mxu0 %v22340_v47  ;;  %16487 = vmatprep.subr.bf16.mxu1 %v22343_v21  ;;  %v22407_v47 = vld [vmem:[#allocation34 + $0x468] ss:$16 sps:$4 sm:$0xff]   ;;  %v22412_v21 = vld [vmem:[#allocation34 + $0x484] ss:$16 sps:$4 sm:$0xff]  }
0x1957   : > { %16230 = vmatpush1.bf16.msra.mxu0 %v22338_v12  ;;  %16488 = vmatpush1.bf16.msra.mxu1 %v22341_v7  ;;  %v22410_v12 = vld [vmem:[#allocation34 + $0x480] ss:$16 sps:$4 sm:$0xff]   ;;  %v22413_v7 = vld [vmem:[#allocation34 + $0x488] ss:$16 sps:$4 sm:$0xff]  }
0x1958   : > { %16231 = vmatprep.subr.bf16.mxu0 %v22346_v30  ;;  %16489 = vmatprep.subr.bf16.mxu1 %v22349_v17  ;;  %v22418_v30 = vld [vmem:[#allocation34 + $0x4a4] ss:$16 sps:$4 sm:$0xff]   ;;  %v22421_v17 = vld [vmem:[#allocation34 + $0x4ac] ss:$16 sps:$4 sm:$0xff]  }
0x195b   : > { %16232 = vmatpush1.bf16.msra.mxu0 %v22344_v36  ;;  %16490 = vmatpush1.bf16.msra.mxu1 %v22347_v52  ;;  %v22416_v36 = vld [vmem:[#allocation34 + $0x4a0] ss:$16 sps:$4 sm:$0xff]   ;;  %v22419_v52 = vld [vmem:[#allocation34 + $0x4a8] ss:$16 sps:$4 sm:$0xff]  }
0x195c   : > { %16233 = vmatprep.subr.bf16.mxu0 %v22352_v63  ;;  %16491 = vmatprep.subr.bf16.mxu1 %v22355_v41  ;;  %v22424_v63 = vld [vmem:[#allocation34 + $0x4c4] ss:$16 sps:$4 sm:$0xff]   ;;  %v22427_v41 = vld [vmem:[#allocation34 + $0x4cc] ss:$16 sps:$4 sm:$0xff]  }
0x195f   : > { %16234 = vmatpush1.bf16.msra.mxu0 %v22350_v51  ;;  %16492 = vmatpush1.bf16.msra.mxu1 %v22353_v10  ;;  %v22422_v51 = vld [vmem:[#allocation34 + $0x4c0] ss:$16 sps:$4 sm:$0xff]   ;;  %v22425_v10 = vld [vmem:[#allocation34 + $0x4c8] ss:$16 sps:$4 sm:$0xff]  }
0x1960   : > { %16235 = vmatprep.subr.bf16.mxu0 %v22358_v59  ;;  %16493 = vmatprep.subr.bf16.mxu1 %v22361_v16  ;;  %v22430_v59 = vld [vmem:[#allocation34 + $0x4e4] ss:$16 sps:$4 sm:$0xff]   ;;  %v22433_v16 = vld [vmem:[#allocation34 + $0x4ec] ss:$16 sps:$4 sm:$0xff]  }
0x1963   : > { %16236 = vmatpush1.bf16.msra.mxu0 %v22356_v42  ;;  %16494 = vmatpush1.bf16.msra.mxu1 %v22359_v4  ;;  %v22428_v42 = vld [vmem:[#allocation34 + $0x4e0] ss:$16 sps:$4 sm:$0xff]   ;;  %v22431_v4 = vld [vmem:[#allocation34 + $0x4e8] ss:$16 sps:$4 sm:$0xff]  }
0x1964   : > { %16237 = vmatprep.subr.bf16.mxu0 %v22364_v22  ;;  %16495 = vmatprep.subr.bf16.mxu1 %v22367_v29  ;;  %v22436_v22 = vld [vmem:[#allocation34 + $0x504] ss:$16 sps:$4 sm:$0xff]   ;;  %v22439_v29 = vld [vmem:[#allocation34 + $0x50c] ss:$16 sps:$4 sm:$0xff]  }
0x1967   : > { %16238 = vmatpush1.bf16.msra.mxu0 %v22362_v57  ;;  %16496 = vmatpush1.bf16.msra.mxu1 %v22365_v3  ;;  %v22434_v57 = vld [vmem:[#allocation34 + $0x500] ss:$16 sps:$4 sm:$0xff]   ;;  %v22437_v3 = vld [vmem:[#allocation34 + $0x508] ss:$16 sps:$4 sm:$0xff]  }
0x1968   : > { %16239 = vmatprep.subr.bf16.mxu0 %v22370_v58  ;;  %16497 = vmatprep.subr.bf16.mxu1 %v22373_v31  ;;  %v22442_v58 = vld [vmem:[#allocation34 + $0x524] ss:$16 sps:$4 sm:$0xff]   ;;  %v22445_v31 = vld [vmem:[#allocation34 + $0x52c] ss:$16 sps:$4 sm:$0xff]  }
0x196b   : > { %16240 = vmatpush1.bf16.msra.mxu0 %v22368_v35  ;;  %16498 = vmatpush1.bf16.msra.mxu1 %v22371_v9  ;;  %v22440_v35 = vld [vmem:[#allocation34 + $0x520] ss:$16 sps:$4 sm:$0xff]   ;;  %v22443_v9 = vld [vmem:[#allocation34 + $0x528] ss:$16 sps:$4 sm:$0xff]  }
0x196c   : > { %16241 = vmatprep.subr.bf16.mxu0 %v22376_v37  ;;  %16499 = vmatprep.subr.bf16.mxu1 %v22379_v11  ;;  %v22448_v37 = vld [vmem:[#allocation34 + $0x544] ss:$16 sps:$4 sm:$0xff]   ;;  %v22451_v11 = vld [vmem:[#allocation34 + $0x54c] ss:$16 sps:$4 sm:$0xff]  }
0x196f   : > { %16242 = vmatpush1.bf16.msra.mxu0 %v22374_v46  ;;  %16500 = vmatpush1.bf16.msra.mxu1 %v22377_v13  ;;  %v22446_v46 = vld [vmem:[#allocation34 + $0x540] ss:$16 sps:$4 sm:$0xff]   ;;  %v22449_v13 = vld [vmem:[#allocation34 + $0x548] ss:$16 sps:$4 sm:$0xff]  }
0x1970   : > { %16243 = vmatprep.subr.bf16.mxu0 %v22382_v26  ;;  %16501 = vmatprep.subr.bf16.mxu1 %v22385_v54  ;;  %v22454_v26 = vld [vmem:[#allocation34 + $0x564] ss:$16 sps:$4 sm:$0xff]   ;;  %v22457_v54 = vld [vmem:[#allocation34 + $0x56c] ss:$16 sps:$4 sm:$0xff]  }
0x1973   : > { %16244 = vmatpush1.bf16.msra.mxu0 %v22380_v27  ;;  %16502 = vmatpush1.bf16.msra.mxu1 %v22383_v39  ;;  %v22452_v27 = vld [vmem:[#allocation34 + $0x560] ss:$16 sps:$4 sm:$0xff]   ;;  %v22455_v39 = vld [vmem:[#allocation34 + $0x568] ss:$16 sps:$4 sm:$0xff]  }
0x1974   : > { %16256 = vmatprep.subr.bf16.mxu0 %v22388_v40  ;;  %16514 = vmatprep.subr.bf16.mxu1 %v22391_v5  ;;  %v22460_v40 = vld [vmem:[#allocation34 + $0x584] ss:$16 sps:$4 sm:$0xff]   ;;  %v22463_v5 = vld [vmem:[#allocation34 + $0x58c] ss:$16 sps:$4 sm:$0xff]  }
0x1976   : > { %16246 = vmatmul.mubr.bf16.vlgmr.msra.gmra.mrb[112].mxu0 %v25345_v2  ;;  %16504 = vmatmul.mubr.bf16.vlgmr.msra.gmra.mrb[152].mxu1 %v25345_v2  ;;  %v22409_v2 = vld [vmem:[#allocation34 + $0x46c] ss:$16 sps:$4 sm:$0xff]  }
0x1977   : > { %16257 = vmatpush1.bf16.msra.mxu0 %v22386_v49  ;;  %16288 = vmatprep.mubr.bf16.mxu0 %v25311_v23  ;;  %v22458_v49 = vld [vmem:[#allocation34 + $0x580] ss:$16 sps:$4 sm:$0xff]  }
0x1978   : > { %16515 = vmatpush1.bf16.msra.mxu1 %v22389_v8  ;;  %16546 = vmatprep.mubr.bf16.mxu1 %v25311_v23  ;;  %v22415_v23 = vld [vmem:[#allocation34 + $0x48c] ss:$16 sps:$4 sm:$0xff]   ;;  %v22461_v8 = vld [vmem:[#allocation34 + $0x588] ss:$16 sps:$4 sm:$0xff]  }
0x1979   : > { %16258 = vmatprep.subr.bf16.mxu0 %v22394_v56  ;;  %16516 = vmatprep.subr.bf16.mxu1 %v22397_v18  ;;  %v22466_v56 = vld [vmem:[#allocation34 + $0x5a4] ss:$16 sps:$4 sm:$0xff]   ;;  %v22469_v18 = vld [vmem:[#allocation34 + $0x5ac] ss:$16 sps:$4 sm:$0xff]  }
0x197b   : > { %16259 = vmatpush1.bf16.msra.mxu0 %v22392_v45  ;;  %v22464_v45 = vld [vmem:[#allocation34 + $0x5a0] ss:$16 sps:$4 sm:$0xff]  }
0x197c   : > { %16517 = vmatpush1.bf16.msra.mxu1 %v22395_v48  ;;  %16260 = vmatprep.subr.bf16.mxu0 %v22400_v38  ;;  %v22467_v48 = vld [vmem:[#allocation34 + $0x5a8] ss:$16 sps:$4 sm:$0xff]   ;;  %v22472_v38 = vld [vmem:[#allocation34 + $0x5c4] ss:$16 sps:$4 sm:$0xff]  }
0x197d   : > { %16518 = vmatprep.subr.bf16.mxu1 %v22403_v20  ;;  %v22475_v20 = vld [vmem:[#allocation34 + $0x5cc] ss:$16 sps:$4 sm:$0xff]  }
0x197f   : > { %16261 = vmatpush1.bf16.msra.mxu0 %v22398_v15  ;;  %v22470_v15 = vld [vmem:[#allocation34 + $0x5c0] ss:$16 sps:$4 sm:$0xff]  }
0x1980   : > { %16519 = vmatpush1.bf16.msra.mxu1 %v22401_v32  ;;  %16262 = vmatprep.subr.bf16.mxu0 %v22406_v55  ;;  %v22473_v32 = vld [vmem:[#allocation34 + $0x5c8] ss:$16 sps:$4 sm:$0xff]   ;;  %v22478_v55 = vld [vmem:[#allocation34 + $0x5e4] ss:$16 sps:$4 sm:$0xff]  }
0x1981   : > { %16520 = vmatprep.subr.bf16.mxu1 %v22409_v2  ;;  %v22481_v2 = vld [vmem:[#allocation34 + $0x5ec] ss:$16 sps:$4 sm:$0xff]  }
0x1983   : > { %16263 = vmatpush1.bf16.msra.mxu0 %v22404_v60  ;;  %v22476_v60 = vld [vmem:[#allocation34 + $0x5e0] ss:$16 sps:$4 sm:$0xff]  }
0x1984   : > { %16521 = vmatpush1.bf16.msra.mxu1 %v22407_v47  ;;  %16264 = vmatprep.subr.bf16.mxu0 %v22412_v21  ;;  %v22479_v47 = vld [vmem:[#allocation34 + $0x5e8] ss:$16 sps:$4 sm:$0xff]   ;;  %v22484_v21 = vld [vmem:[#allocation34 + $0x604] ss:$16 sps:$4 sm:$0xff]  }
0x1985   : > { %16522 = vmatprep.subr.bf16.mxu1 %v22415_v23  ;;  %v22487_v23 = vld [vmem:[#allocation34 + $0x60c] ss:$16 sps:$4 sm:$0xff]  }
0x1987   : > { %16265 = vmatpush1.bf16.msra.mxu0 %v22410_v12  ;;  %v22482_v12 = vld [vmem:[#allocation34 + $0x600] ss:$16 sps:$4 sm:$0xff]  }
0x1988   : > { %16523 = vmatpush1.bf16.msra.mxu1 %v22413_v7  ;;  %16266 = vmatprep.subr.bf16.mxu0 %v22418_v30  ;;  %v22485_v7 = vld [vmem:[#allocation34 + $0x608] ss:$16 sps:$4 sm:$0xff]   ;;  %v22490_v30 = vld [vmem:[#allocation34 + $0x624] ss:$16 sps:$4 sm:$0xff]  }
0x1989   : > { %16524 = vmatprep.subr.bf16.mxu1 %v22421_v17  ;;  %v22493_v17 = vld [vmem:[#allocation34 + $0x62c] ss:$16 sps:$4 sm:$0xff]  }
0x198b   : > { %16267 = vmatpush1.bf16.msra.mxu0 %v22416_v36  ;;  %v22488_v36 = vld [vmem:[#allocation34 + $0x620] ss:$16 sps:$4 sm:$0xff]  }
0x198c   : > { %16525 = vmatpush1.bf16.msra.mxu1 %v22419_v52  ;;  %16268 = vmatprep.subr.bf16.mxu0 %v22424_v63  ;;  %v22491_v52 = vld [vmem:[#allocation34 + $0x628] ss:$16 sps:$4 sm:$0xff]   ;;  %v22496_v63 = vld [vmem:[#allocation34 + $0x644] ss:$16 sps:$4 sm:$0xff]  }
0x198d   : > { %16526 = vmatprep.subr.bf16.mxu1 %v22427_v41  ;;  %v22499_v41 = vld [vmem:[#allocation34 + $0x64c] ss:$16 sps:$4 sm:$0xff]  }
0x198f   : > { %16269 = vmatpush1.bf16.msra.mxu0 %v22422_v51  ;;  %v22494_v51 = vld [vmem:[#allocation34 + $0x640] ss:$16 sps:$4 sm:$0xff]  }
0x1990   : > { %16527 = vmatpush1.bf16.msra.mxu1 %v22425_v10  ;;  %16270 = vmatprep.subr.bf16.mxu0 %v22430_v59  ;;  %v22497_v10 = vld [vmem:[#allocation34 + $0x648] ss:$16 sps:$4 sm:$0xff]   ;;  %v22502_v59 = vld [vmem:[#allocation34 + $0x664] ss:$16 sps:$4 sm:$0xff]  }
0x1991   : > { %16528 = vmatprep.subr.bf16.mxu1 %v22433_v16  ;;  %v22500_v16 = vld [vmem:[#allocation34 + $0x660] ss:$16 sps:$4 sm:$0xff]  }
0x1993   : > { %16271 = vmatpush1.bf16.msra.mxu0 %v22428_v42  ;;  %v22503_v42 = vld [vmem:[#allocation34 + $0x668] ss:$16 sps:$4 sm:$0xff]  }
0x1994   : > { %16529 = vmatpush1.bf16.msra.mxu1 %v22431_v4  ;;  %16272 = vmatprep.subr.bf16.mxu0 %v22436_v22  ;;  %v22508_v4 = vld [vmem:[#allocation34 + $0x684] ss:$16 sps:$4 sm:$0xff]   ;;  %v22511_v22 = vld [vmem:[#allocation34 + $0x68c] ss:$16 sps:$4 sm:$0xff]  }
0x1995   : > { %16530 = vmatprep.subr.bf16.mxu1 %v22439_v29  ;;  %v22509_v29 = vld [vmem:[#allocation34 + $0x688] ss:$16 sps:$4 sm:$0xff]  }
0x1997   : > { %16273 = vmatpush1.bf16.msra.mxu0 %v22434_v57  ;;  %v22514_v57 = vld [vmem:[#allocation34 + $0x6a4] ss:$16 sps:$4 sm:$0xff]  }
0x1998   : > { %16531 = vmatpush1.bf16.msra.mxu1 %v22437_v3  ;;  %16274 = vmatprep.subr.bf16.mxu0 %v22442_v58  ;;  %v22517_v3 = vld [vmem:[#allocation34 + $0x6ac] ss:$16 sps:$4 sm:$0xff]   ;;  %v22512_v58 = vld [vmem:[#allocation34 + $0x6a0] ss:$16 sps:$4 sm:$0xff]  }
0x1999   : > { %16532 = vmatprep.subr.bf16.mxu1 %v22445_v31  ;;  %v22515_v31 = vld [vmem:[#allocation34 + $0x6a8] ss:$16 sps:$4 sm:$0xff]  }
0x199b   : > { %16275 = vmatpush1.bf16.msra.mxu0 %v22440_v35  ;;  %v22520_v35 = vld [vmem:[#allocation34 + $0x6c4] ss:$16 sps:$4 sm:$0xff]  }
0x199c   : > { %16533 = vmatpush1.bf16.msra.mxu1 %v22443_v9  ;;  %16276 = vmatprep.subr.bf16.mxu0 %v22448_v37  ;;  %v22523_v9 = vld [vmem:[#allocation34 + $0x6cc] ss:$16 sps:$4 sm:$0xff]   ;;  %v22518_v37 = vld [vmem:[#allocation34 + $0x6c0] ss:$16 sps:$4 sm:$0xff]  }
0x199d   : > { %16534 = vmatprep.subr.bf16.mxu1 %v22451_v11  ;;  %v22521_v11 = vld [vmem:[#allocation34 + $0x6c8] ss:$16 sps:$4 sm:$0xff]  }
0x199f   : > { %16277 = vmatpush1.bf16.msra.mxu0 %v22446_v46  ;;  %v22526_v46 = vld [vmem:[#allocation34 + $0x6e4] ss:$16 sps:$4 sm:$0xff]  }
0x19a0   : > { %16535 = vmatpush1.bf16.msra.mxu1 %v22449_v13  ;;  %16278 = vmatprep.subr.bf16.mxu0 %v22454_v26  ;;  %v22529_v13 = vld [vmem:[#allocation34 + $0x6ec] ss:$16 sps:$4 sm:$0xff]   ;;  %v22524_v26 = vld [vmem:[#allocation34 + $0x6e0] ss:$16 sps:$4 sm:$0xff]  }
0x19a1   : > { %16536 = vmatprep.subr.bf16.mxu1 %v22457_v54  ;;  %v22527_v54 = vld [vmem:[#allocation34 + $0x6e8] ss:$16 sps:$4 sm:$0xff]  }
0x19a3   : > { %16279 = vmatpush1.bf16.msra.mxu0 %v22452_v27  ;;  %v22532_v27 = vld [vmem:[#allocation34 + $0x704] ss:$16 sps:$4 sm:$0xff]  }
0x19a4   : > { %16537 = vmatpush1.bf16.msra.mxu1 %v22455_v39  ;;  %16280 = vmatprep.subr.bf16.mxu0 %v22460_v40  ;;  %v22535_v39 = vld [vmem:[#allocation34 + $0x70c] ss:$16 sps:$4 sm:$0xff]   ;;  %v22530_v40 = vld [vmem:[#allocation34 + $0x700] ss:$16 sps:$4 sm:$0xff]  }
0x19a5   : > { %16538 = vmatprep.subr.bf16.mxu1 %v22463_v5  ;;  %v22533_v5 = vld [vmem:[#allocation34 + $0x708] ss:$16 sps:$4 sm:$0xff]  }
0x19a7   : > { %16281 = vmatpush1.bf16.msra.mxu0 %v22458_v49  ;;  %v22538_v49 = vld [vmem:[#allocation34 + $0x724] ss:$16 sps:$4 sm:$0xff]  }
0x19a8   : > { %16539 = vmatpush1.bf16.msra.mxu1 %v22461_v8  ;;  %16282 = vmatprep.subr.bf16.mxu0 %v22466_v56  ;;  %v22541_v8 = vld [vmem:[#allocation34 + $0x72c] ss:$16 sps:$4 sm:$0xff]   ;;  %v22536_v56 = vld [vmem:[#allocation34 + $0x720] ss:$16 sps:$4 sm:$0xff]  }
0x19a9   : > { %16540 = vmatprep.subr.bf16.mxu1 %v22469_v18  ;;  %v22539_v18 = vld [vmem:[#allocation34 + $0x728] ss:$16 sps:$4 sm:$0xff]  }
0x19ab   : > { %16283 = vmatpush1.bf16.msra.mxu0 %v22464_v45  ;;  %v22544_v45 = vld [vmem:[#allocation34 + $0x744] ss:$16 sps:$4 sm:$0xff]  }
0x19ac   : > { %16541 = vmatpush1.bf16.msra.mxu1 %v22467_v48  ;;  %16284 = vmatprep.subr.bf16.mxu0 %v22472_v38  ;;  %v22547_v48 = vld [vmem:[#allocation34 + $0x74c] ss:$16 sps:$4 sm:$0xff]   ;;  %v22542_v38 = vld [vmem:[#allocation34 + $0x740] ss:$16 sps:$4 sm:$0xff]  }
0x19ad   : > { %16542 = vmatprep.subr.bf16.mxu1 %v22475_v20  ;;  %v22545_v20 = vld [vmem:[#allocation34 + $0x748] ss:$16 sps:$4 sm:$0xff]  }
0x19af   : > { %16285 = vmatpush1.bf16.msra.mxu0 %v22470_v15  ;;  %v22550_v15 = vld [vmem:[#allocation34 + $0x764] ss:$16 sps:$4 sm:$0xff]  }
0x19b0   : > { %16543 = vmatpush1.bf16.msra.mxu1 %v22473_v32  ;;  %16286 = vmatprep.subr.bf16.mxu0 %v22478_v55  ;;  %v22553_v32 = vld [vmem:[#allocation34 + $0x76c] ss:$16 sps:$4 sm:$0xff]   ;;  %v22548_v55 = vld [vmem:[#allocation34 + $0x760] ss:$16 sps:$4 sm:$0xff]  }
0x19b1   : > { %16544 = vmatprep.subr.bf16.mxu1 %v22481_v2  ;;  %v22551_v2 = vld [vmem:[#allocation34 + $0x768] ss:$16 sps:$4 sm:$0xff]  }
0x19b3   : > { %16287 = vmatpush1.bf16.msra.mxu0 %v22476_v60  ;;  %v22556_v60 = vld [vmem:[#allocation34 + $0x784] ss:$16 sps:$4 sm:$0xff]  }
0x19b4   : > { %16545 = vmatpush1.bf16.msra.mxu1 %v22479_v47  ;;  %16299 = vmatprep.subr.bf16.mxu0 %v22484_v21  ;;  %v22559_v47 = vld [vmem:[#allocation34 + $0x78c] ss:$16 sps:$4 sm:$0xff]   ;;  %v22554_v21 = vld [vmem:[#allocation34 + $0x780] ss:$16 sps:$4 sm:$0xff]  }
0x19b5   : > { %16557 = vmatprep.subr.bf16.mxu1 %v22487_v23  ;;  %v22557_v23 = vld [vmem:[#allocation34 + $0x788] ss:$16 sps:$4 sm:$0xff]  }
0x19b6   : > { %16289 = vmatmul.mubr.bf16.vlgmr.msra.gmra.mrb[112].mxu0 %v25307_v24 }
0x19b7   : > { %16547 = vmatmul.mubr.bf16.vlgmr.msra.gmra.mrb[152].mxu1 %v25307_v24  ;;  %16300 = vmatpush1.bf16.msra.mxu0 %v22482_v12  ;;  %v22505_v24 = vld [vmem:[#allocation34 + $0x66c] ss:$16 sps:$4 sm:$0xff]   ;;  %v22562_v12 = vld [vmem:[#allocation34 + $0x7a4] ss:$16 sps:$4 sm:$0xff]  }
0x19b8   : > { %16331 = vmatprep.mubr.bf16.mxu0 %v25313_v43  ;;  %16558 = vmatpush1.bf16.msra.mxu1 %v22485_v7  ;;  %v22565_v7 = vld [vmem:[#allocation34 + $0x7ac] ss:$16 sps:$4 sm:$0xff]  }
0x19b9   : > { %16589 = vmatprep.mubr.bf16.mxu1 %v25313_v43  ;;  %16301 = vmatprep.subr.bf16.mxu0 %v22490_v30  ;;  %v22506_v43 = vld [vmem:[#allocation34 + $0x680] ss:$16 sps:$4 sm:$0xff]  }
0x19ba   : > { %16559 = vmatprep.subr.bf16.mxu1 %v22493_v17  ;;  %v22560_v30 = vld [vmem:[#allocation34 + $0x7a0] ss:$16 sps:$4 sm:$0xff]   ;;  %v22563_v17 = vld [vmem:[#allocation34 + $0x7a8] ss:$16 sps:$4 sm:$0xff]  }
0x19bb   : > { %16302 = vmatpush1.bf16.msra.mxu0 %v22488_v36  ;;  %v22568_v36 = vld [vmem:[#allocation34 + $0x7c4] ss:$16 sps:$4 sm:$0xff]  }
0x19bc   : > { %16560 = vmatpush1.bf16.msra.mxu1 %v22491_v52  ;;  %16303 = vmatprep.subr.bf16.mxu0 %v22496_v63  ;;  %v22571_v52 = vld [vmem:[#allocation34 + $0x7cc] ss:$16 sps:$4 sm:$0xff]   ;;  %v22566_v63 = vld [vmem:[#allocation34 + $0x7c0] ss:$16 sps:$4 sm:$0xff]  }
0x19bd   : > { %16561 = vmatprep.subr.bf16.mxu1 %v22499_v41  ;;  %v22569_v41 = vld [vmem:[#allocation34 + $0x7c8] ss:$16 sps:$4 sm:$0xff]  }
0x19bf   : > { %16304 = vmatpush1.bf16.msra.mxu0 %v22494_v51  ;;  %v22574_v51 = vld [vmem:[#allocation34 + $0x7e4] ss:$16 sps:$4 sm:$0xff]  }
0x19c0   : > { %16562 = vmatpush1.bf16.msra.mxu1 %v22497_v10  ;;  %16305 = vmatprep.subr.bf16.mxu0 %v22502_v59  ;;  %v22577_v10 = vld [vmem:[#allocation34 + $0x7ec] ss:$16 sps:$4 sm:$0xff]   ;;  %v22572_v59 = vld [vmem:[#allocation34 + $0x7e0] ss:$16 sps:$4 sm:$0xff]  }
0x19c1   : > { %16563 = vmatprep.subr.bf16.mxu1 %v22505_v24  ;;  %v22575_v24 = vld [vmem:[#allocation34 + $0x7e8] ss:$16 sps:$4 sm:$0xff]  }
0x19c3   : > { %16306 = vmatpush1.bf16.msra.mxu0 %v22500_v16  ;;  %v22580_v16 = vld [vmem:[#allocation34 + $0x804] ss:$16 sps:$4 sm:$0xff]  }
0x19c4   : > { %16564 = vmatpush1.bf16.msra.mxu1 %v22503_v42  ;;  %16307 = vmatprep.subr.bf16.mxu0 %v22508_v4  ;;  %v22583_v42 = vld [vmem:[#allocation34 + $0x80c] ss:$16 sps:$4 sm:$0xff]   ;;  %v22578_v4 = vld [vmem:[#allocation34 + $0x800] ss:$16 sps:$4 sm:$0xff]  }
0x19c5   : > { %16565 = vmatprep.subr.bf16.mxu1 %v22511_v22  ;;  %v22581_v22 = vld [vmem:[#allocation34 + $0x808] ss:$16 sps:$4 sm:$0xff]  }
0x19c7   : > { %16308 = vmatpush1.bf16.msra.mxu0 %v22506_v43  ;;  %v22586_v43 = vld [vmem:[#allocation34 + $0x824] ss:$16 sps:$4 sm:$0xff]  }
0x19c8   : > { %16566 = vmatpush1.bf16.msra.mxu1 %v22509_v29  ;;  %16309 = vmatprep.subr.bf16.mxu0 %v22514_v57  ;;  %v22589_v29 = vld [vmem:[#allocation34 + $0x82c] ss:$16 sps:$4 sm:$0xff]   ;;  %v22584_v57 = vld [vmem:[#allocation34 + $0x820] ss:$16 sps:$4 sm:$0xff]  }
0x19c9   : > { %16567 = vmatprep.subr.bf16.mxu1 %v22517_v3  ;;  %v22587_v3 = vld [vmem:[#allocation34 + $0x828] ss:$16 sps:$4 sm:$0xff]  }
0x19cb   : > { %16310 = vmatpush1.bf16.msra.mxu0 %v22512_v58  ;;  %v22592_v58 = vld [vmem:[#allocation34 + $0x844] ss:$16 sps:$4 sm:$0xff]  }
0x19cc   : > { %16568 = vmatpush1.bf16.msra.mxu1 %v22515_v31  ;;  %16311 = vmatprep.subr.bf16.mxu0 %v22520_v35  ;;  %v22595_v31 = vld [vmem:[#allocation34 + $0x84c] ss:$16 sps:$4 sm:$0xff]   ;;  %v22590_v35 = vld [vmem:[#allocation34 + $0x840] ss:$16 sps:$4 sm:$0xff]  }
0x19cd   : > { %16569 = vmatprep.subr.bf16.mxu1 %v22523_v9  ;;  %v22593_v9 = vld [vmem:[#allocation34 + $0x848] ss:$16 sps:$4 sm:$0xff]  }
0x19cf   : > { %16312 = vmatpush1.bf16.msra.mxu0 %v22518_v37  ;;  %v22598_v37 = vld [vmem:[#allocation34 + $0x864] ss:$16 sps:$4 sm:$0xff]  }
0x19d0   : > { %16570 = vmatpush1.bf16.msra.mxu1 %v22521_v11  ;;  %16313 = vmatprep.subr.bf16.mxu0 %v22526_v46  ;;  %v22596_v11 = vld [vmem:[#allocation34 + $0x860] ss:$16 sps:$4 sm:$0xff]   ;;  %v22599_v46 = vld [vmem:[#allocation34 + $0x868] ss:$16 sps:$4 sm:$0xff]  }
0x19d1   : > { %16571 = vmatprep.subr.bf16.mxu1 %v22529_v13  ;;  %v22604_v13 = vld [vmem:[#allocation34 + $0x884] ss:$16 sps:$4 sm:$0xff]  }
0x19d3   : > { %16314 = vmatpush1.bf16.msra.mxu0 %v22524_v26  ;;  %v22607_v26 = vld [vmem:[#allocation34 + $0x88c] ss:$16 sps:$4 sm:$0xff]  }
0x19d4   : > { %16572 = vmatpush1.bf16.msra.mxu1 %v22527_v54  ;;  %16315 = vmatprep.subr.bf16.mxu0 %v22532_v27  ;;  %v22605_v54 = vld [vmem:[#allocation34 + $0x888] ss:$16 sps:$4 sm:$0xff]   ;;  %v22610_v27 = vld [vmem:[#allocation34 + $0x8a4] ss:$16 sps:$4 sm:$0xff]  }
0x19d5   : > { %16573 = vmatprep.subr.bf16.mxu1 %v22535_v39  ;;  %v22613_v39 = vld [vmem:[#allocation34 + $0x8ac] ss:$16 sps:$4 sm:$0xff]  }
0x19d7   : > { %16316 = vmatpush1.bf16.msra.mxu0 %v22530_v40  ;;  %v22608_v40 = vld [vmem:[#allocation34 + $0x8a0] ss:$16 sps:$4 sm:$0xff]  }
0x19d8   : > { %16574 = vmatpush1.bf16.msra.mxu1 %v22533_v5  ;;  %16317 = vmatprep.subr.bf16.mxu0 %v22538_v49  ;;  %v22611_v5 = vld [vmem:[#allocation34 + $0x8a8] ss:$16 sps:$4 sm:$0xff]   ;;  %v22616_v49 = vld [vmem:[#allocation34 + $0x8c4] ss:$16 sps:$4 sm:$0xff]  }
0x19d9   : > { %16575 = vmatprep.subr.bf16.mxu1 %v22541_v8  ;;  %v22619_v8 = vld [vmem:[#allocation34 + $0x8cc] ss:$16 sps:$4 sm:$0xff]  }
0x19db   : > { %16318 = vmatpush1.bf16.msra.mxu0 %v22536_v56  ;;  %v22614_v56 = vld [vmem:[#allocation34 + $0x8c0] ss:$16 sps:$4 sm:$0xff]  }
0x19dc   : > { %16576 = vmatpush1.bf16.msra.mxu1 %v22539_v18  ;;  %16319 = vmatprep.subr.bf16.mxu0 %v22544_v45  ;;  %v22617_v18 = vld [vmem:[#allocation34 + $0x8c8] ss:$16 sps:$4 sm:$0xff]   ;;  %v22622_v45 = vld [vmem:[#allocation34 + $0x8e4] ss:$16 sps:$4 sm:$0xff]  }
0x19dd   : > { %16577 = vmatprep.subr.bf16.mxu1 %v22547_v48  ;;  %v22625_v48 = vld [vmem:[#allocation34 + $0x8ec] ss:$16 sps:$4 sm:$0xff]  }
0x19df   : > { %16320 = vmatpush1.bf16.msra.mxu0 %v22542_v38  ;;  %v22620_v38 = vld [vmem:[#allocation34 + $0x8e0] ss:$16 sps:$4 sm:$0xff]  }
0x19e0   : > { %16578 = vmatpush1.bf16.msra.mxu1 %v22545_v20  ;;  %16321 = vmatprep.subr.bf16.mxu0 %v22550_v15  ;;  %v22623_v20 = vld [vmem:[#allocation34 + $0x8e8] ss:$16 sps:$4 sm:$0xff]   ;;  %v22628_v15 = vld [vmem:[#allocation34 + $0x904] ss:$16 sps:$4 sm:$0xff]  }
0x19e1   : > { %16579 = vmatprep.subr.bf16.mxu1 %v22553_v32  ;;  %v22631_v32 = vld [vmem:[#allocation34 + $0x90c] ss:$16 sps:$4 sm:$0xff]  }
0x19e3   : > { %16322 = vmatpush1.bf16.msra.mxu0 %v22548_v55  ;;  %v22626_v55 = vld [vmem:[#allocation34 + $0x900] ss:$16 sps:$4 sm:$0xff]  }
0x19e4   : > { %16580 = vmatpush1.bf16.msra.mxu1 %v22551_v2  ;;  %16323 = vmatprep.subr.bf16.mxu0 %v22556_v60  ;;  %v22629_v2 = vld [vmem:[#allocation34 + $0x908] ss:$16 sps:$4 sm:$0xff]   ;;  %v22634_v60 = vld [vmem:[#allocation34 + $0x924] ss:$16 sps:$4 sm:$0xff]  }
0x19e5   : > { %16581 = vmatprep.subr.bf16.mxu1 %v22559_v47  ;;  %v22637_v47 = vld [vmem:[#allocation34 + $0x92c] ss:$16 sps:$4 sm:$0xff]  }
0x19e7   : > { %16324 = vmatpush1.bf16.msra.mxu0 %v22554_v21  ;;  %v22632_v21 = vld [vmem:[#allocation34 + $0x920] ss:$16 sps:$4 sm:$0xff]  }
0x19e8   : > { %16582 = vmatpush1.bf16.msra.mxu1 %v22557_v23  ;;  %16325 = vmatprep.subr.bf16.mxu0 %v22562_v12  ;;  %v22635_v23 = vld [vmem:[#allocation34 + $0x928] ss:$16 sps:$4 sm:$0xff]   ;;  %v22640_v12 = vld [vmem:[#allocation34 + $0x944] ss:$16 sps:$4 sm:$0xff]  }
0x19e9   : > { %16583 = vmatprep.subr.bf16.mxu1 %v22565_v7  ;;  %v22643_v7 = vld [vmem:[#allocation34 + $0x94c] ss:$16 sps:$4 sm:$0xff]  }
0x19eb   : > { %16326 = vmatpush1.bf16.msra.mxu0 %v22560_v30  ;;  %v22638_v30 = vld [vmem:[#allocation34 + $0x940] ss:$16 sps:$4 sm:$0xff]  }
0x19ec   : > { %16584 = vmatpush1.bf16.msra.mxu1 %v22563_v17  ;;  %16327 = vmatprep.subr.bf16.mxu0 %v22568_v36  ;;  %v22641_v17 = vld [vmem:[#allocation34 + $0x948] ss:$16 sps:$4 sm:$0xff]   ;;  %v22646_v36 = vld [vmem:[#allocation34 + $0x964] ss:$16 sps:$4 sm:$0xff]  }
0x19ed   : > { %16585 = vmatprep.subr.bf16.mxu1 %v22571_v52  ;;  %v22649_v52 = vld [vmem:[#allocation34 + $0x96c] ss:$16 sps:$4 sm:$0xff]  }
0x19ef   : > { %16328 = vmatpush1.bf16.msra.mxu0 %v22566_v63  ;;  %v22644_v63 = vld [vmem:[#allocation34 + $0x960] ss:$16 sps:$4 sm:$0xff]  }
0x19f0   : > { %16586 = vmatpush1.bf16.msra.mxu1 %v22569_v41  ;;  %16329 = vmatprep.subr.bf16.mxu0 %v22574_v51  ;;  %v22647_v41 = vld [vmem:[#allocation34 + $0x968] ss:$16 sps:$4 sm:$0xff]   ;;  %v22652_v51 = vld [vmem:[#allocation34 + $0x984] ss:$16 sps:$4 sm:$0xff]  }
0x19f1   : > { %16587 = vmatprep.subr.bf16.mxu1 %v22577_v10  ;;  %v22655_v10 = vld [vmem:[#allocation34 + $0x98c] ss:$16 sps:$4 sm:$0xff]  }
0x19f3   : > { %16330 = vmatpush1.bf16.msra.mxu0 %v22572_v59  ;;  %v22650_v59 = vld [vmem:[#allocation34 + $0x980] ss:$16 sps:$4 sm:$0xff]  }
0x19f4   : > { %16588 = vmatpush1.bf16.msra.mxu1 %v22575_v24  ;;  %16342 = vmatprep.subr.bf16.mxu0 %v22580_v16  ;;  %v22653_v24 = vld [vmem:[#allocation34 + $0x988] ss:$16 sps:$4 sm:$0xff]   ;;  %v22658_v16 = vld [vmem:[#allocation34 + $0x9a4] ss:$16 sps:$4 sm:$0xff]  }
0x19f5   : > { %16600 = vmatprep.subr.bf16.mxu1 %v22583_v42  ;;  %v22661_v42 = vld [vmem:[#allocation34 + $0x9ac] ss:$16 sps:$4 sm:$0xff]  }
0x19f6   : > { %16332 = vmatmul.mubr.bf16.vlgmr.msra.gmra.mrb[112].mxu0 %v25309_v33 }
0x19f7   : > { %16590 = vmatmul.mubr.bf16.vlgmr.msra.gmra.mrb[152].mxu1 %v25309_v33  ;;  %16343 = vmatpush1.bf16.msra.mxu0 %v22578_v4  ;;  %v22601_v33 = vld [vmem:[#allocation34 + $0x86c] ss:$16 sps:$4 sm:$0xff]   ;;  %v22656_v4 = vld [vmem:[#allocation34 + $0x9a0] ss:$16 sps:$4 sm:$0xff]  }
0x19f8   : > { %16374 = vmatprep.mubr.bf16.mxu0 %v25351_v19  ;;  %16601 = vmatpush1.bf16.msra.mxu1 %v22581_v22  ;;  %v22659_v22 = vld [vmem:[#allocation34 + $0x9a8] ss:$16 sps:$4 sm:$0xff]  }
0x19f9   : > { %16632 = vmatprep.mubr.bf16.mxu1 %v25351_v19  ;;  %16344 = vmatprep.subr.bf16.mxu0 %v22586_v43  ;;  %v22602_v19 = vld [vmem:[#allocation34 + $0x880] ss:$16 sps:$4 sm:$0xff]   ;;  %v22664_v43 = vld [vmem:[#allocation34 + $0x9c4] ss:$16 sps:$4 sm:$0xff]  }
0x19fa   : > { %16602 = vmatprep.subr.bf16.mxu1 %v22589_v29  ;;  %v22667_v29 = vld [vmem:[#allocation34 + $0x9cc] ss:$16 sps:$4 sm:$0xff]  }
0x19fb   : > { %16345 = vmatpush1.bf16.msra.mxu0 %v22584_v57  ;;  %v22662_v57 = vld [vmem:[#allocation34 + $0x9c0] ss:$16 sps:$4 sm:$0xff]  }
0x19fc   : > { %16603 = vmatpush1.bf16.msra.mxu1 %v22587_v3  ;;  %16346 = vmatprep.subr.bf16.mxu0 %v22592_v58  ;;  %v22665_v3 = vld [vmem:[#allocation34 + $0x9c8] ss:$16 sps:$4 sm:$0xff]   ;;  %v22670_v58 = vld [vmem:[#allocation34 + $0x9e4] ss:$16 sps:$4 sm:$0xff]  }
0x19fd   : > { %16604 = vmatprep.subr.bf16.mxu1 %v22595_v31  ;;  %v22673_v31 = vld [vmem:[#allocation34 + $0x9ec] ss:$16 sps:$4 sm:$0xff]  }
0x19ff   : > { %16347 = vmatpush1.bf16.msra.mxu0 %v22590_v35  ;;  %v22668_v35 = vld [vmem:[#allocation34 + $0x9e0] ss:$16 sps:$4 sm:$0xff]  }
0x1a00   : > { %16605 = vmatpush1.bf16.msra.mxu1 %v22593_v9  ;;  %16348 = vmatprep.subr.bf16.mxu0 %v22598_v37  ;;  %v22671_v9 = vld [vmem:[#allocation34 + $0x9e8] ss:$16 sps:$4 sm:$0xff]   ;;  %v22676_v37 = vld [vmem:[#allocation34 + $0xa04] ss:$16 sps:$4 sm:$0xff]  }
0x1a01   : > { %16606 = vmatprep.subr.bf16.mxu1 %v22601_v33  ;;  %v22679_v33 = vld [vmem:[#allocation34 + $0xa0c] ss:$16 sps:$4 sm:$0xff]  }
0x1a03   : > { %16349 = vmatpush1.bf16.msra.mxu0 %v22596_v11  ;;  %v22674_v11 = vld [vmem:[#allocation34 + $0xa00] ss:$16 sps:$4 sm:$0xff]  }
0x1a04   : > { %16607 = vmatpush1.bf16.msra.mxu1 %v22599_v46  ;;  %16350 = vmatprep.subr.bf16.mxu0 %v22604_v13  ;;  %v22677_v46 = vld [vmem:[#allocation34 + $0xa08] ss:$16 sps:$4 sm:$0xff]   ;;  %v22682_v13 = vld [vmem:[#allocation34 + $0xa24] ss:$16 sps:$4 sm:$0xff]  }
0x1a05   : > { %16608 = vmatprep.subr.bf16.mxu1 %v22607_v26  ;;  %v22685_v26 = vld [vmem:[#allocation34 + $0xa2c] ss:$16 sps:$4 sm:$0xff]  }
0x1a07   : > { %16351 = vmatpush1.bf16.msra.mxu0 %v22602_v19  ;;  %v22680_v19 = vld [vmem:[#allocation34 + $0xa20] ss:$16 sps:$4 sm:$0xff]  }
0x1a08   : > { %16609 = vmatpush1.bf16.msra.mxu1 %v22605_v54  ;;  %16352 = vmatprep.subr.bf16.mxu0 %v22610_v27  ;;  %v22683_v54 = vld [vmem:[#allocation34 + $0xa28] ss:$16 sps:$4 sm:$0xff]   ;;  %v22688_v27 = vld [vmem:[#allocation34 + $0xa44] ss:$16 sps:$4 sm:$0xff]  }
0x1a09   : > { %16610 = vmatprep.subr.bf16.mxu1 %v22613_v39  ;;  %v22691_v39 = vld [vmem:[#allocation34 + $0xa4c] ss:$16 sps:$4 sm:$0xff]  }
0x1a0b   : > { %16353 = vmatpush1.bf16.msra.mxu0 %v22608_v40  ;;  %v22686_v40 = vld [vmem:[#allocation34 + $0xa40] ss:$16 sps:$4 sm:$0xff]  }
0x1a0c   : > { %16611 = vmatpush1.bf16.msra.mxu1 %v22611_v5  ;;  %16354 = vmatprep.subr.bf16.mxu0 %v22616_v49  ;;  %v22689_v5 = vld [vmem:[#allocation34 + $0xa48] ss:$16 sps:$4 sm:$0xff]   ;;  %v22694_v49 = vld [vmem:[#allocation34 + $0xa64] ss:$16 sps:$4 sm:$0xff]  }
0x1a0d   : > { %16612 = vmatprep.subr.bf16.mxu1 %v22619_v8  ;;  %v22692_v8 = vld [vmem:[#allocation34 + $0xa60] ss:$16 sps:$4 sm:$0xff]  }
0x1a0f   : > { %16355 = vmatpush1.bf16.msra.mxu0 %v22614_v56  ;;  %v22695_v56 = vld [vmem:[#allocation34 + $0xa68] ss:$16 sps:$4 sm:$0xff]  }
0x1a10   : > { %16613 = vmatpush1.bf16.msra.mxu1 %v22617_v18  ;;  %16356 = vmatprep.subr.bf16.mxu0 %v22622_v45  ;;  %v22700_v18 = vld [vmem:[#allocation34 + $0xa84] ss:$16 sps:$4 sm:$0xff]   ;;  %v22703_v45 = vld [vmem:[#allocation34 + $0xa8c] ss:$16 sps:$4 sm:$0xff]  }
0x1a11   : > { %16614 = vmatprep.subr.bf16.mxu1 %v22625_v48  ;;  %v22701_v48 = vld [vmem:[#allocation34 + $0xa88] ss:$16 sps:$4 sm:$0xff]  }
0x1a13   : > { %16357 = vmatpush1.bf16.msra.mxu0 %v22620_v38  ;;  %v22706_v38 = vld [vmem:[#allocation34 + $0xaa4] ss:$16 sps:$4 sm:$0xff]  }
0x1a14   : > { %16615 = vmatpush1.bf16.msra.mxu1 %v22623_v20  ;;  %16358 = vmatprep.subr.bf16.mxu0 %v22628_v15  ;;  %v22709_v20 = vld [vmem:[#allocation34 + $0xaac] ss:$16 sps:$4 sm:$0xff]   ;;  %v22704_v15 = vld [vmem:[#allocation34 + $0xaa0] ss:$16 sps:$4 sm:$0xff]  }
0x1a15   : > { %16616 = vmatprep.subr.bf16.mxu1 %v22631_v32  ;;  %v22707_v32 = vld [vmem:[#allocation34 + $0xaa8] ss:$16 sps:$4 sm:$0xff]  }
0x1a17   : > { %16359 = vmatpush1.bf16.msra.mxu0 %v22626_v55  ;;  %v22712_v55 = vld [vmem:[#allocation34 + $0xac4] ss:$16 sps:$4 sm:$0xff]  }
0x1a18   : > { %16617 = vmatpush1.bf16.msra.mxu1 %v22629_v2  ;;  %16360 = vmatprep.subr.bf16.mxu0 %v22634_v60  ;;  %v22715_v2 = vld [vmem:[#allocation34 + $0xacc] ss:$16 sps:$4 sm:$0xff]   ;;  %v22710_v60 = vld [vmem:[#allocation34 + $0xac0] ss:$16 sps:$4 sm:$0xff]  }
0x1a19   : > { %16618 = vmatprep.subr.bf16.mxu1 %v22637_v47  ;;  %v22713_v47 = vld [vmem:[#allocation34 + $0xac8] ss:$16 sps:$4 sm:$0xff]  }
0x1a1b   : > { %16361 = vmatpush1.bf16.msra.mxu0 %v22632_v21  ;;  %v22718_v21 = vld [vmem:[#allocation34 + $0xae4] ss:$16 sps:$4 sm:$0xff]  }
0x1a1c   : > { %16619 = vmatpush1.bf16.msra.mxu1 %v22635_v23  ;;  %16362 = vmatprep.subr.bf16.mxu0 %v22640_v12  ;;  %v22721_v23 = vld [vmem:[#allocation34 + $0xaec] ss:$16 sps:$4 sm:$0xff]   ;;  %v22716_v12 = vld [vmem:[#allocation34 + $0xae0] ss:$16 sps:$4 sm:$0xff]  }
0x1a1d   : > { %16620 = vmatprep.subr.bf16.mxu1 %v22643_v7  ;;  %v22719_v7 = vld [vmem:[#allocation34 + $0xae8] ss:$16 sps:$4 sm:$0xff]  }
0x1a1f   : > { %16363 = vmatpush1.bf16.msra.mxu0 %v22638_v30  ;;  %v22724_v30 = vld [vmem:[#allocation34 + $0xb04] ss:$16 sps:$4 sm:$0xff]  }
0x1a20   : > { %16621 = vmatpush1.bf16.msra.mxu1 %v22641_v17  ;;  %16364 = vmatprep.subr.bf16.mxu0 %v22646_v36  ;;  %v22727_v17 = vld [vmem:[#allocation34 + $0xb0c] ss:$16 sps:$4 sm:$0xff]   ;;  %v22722_v36 = vld [vmem:[#allocation34 + $0xb00] ss:$16 sps:$4 sm:$0xff]  }
0x1a21   : > { %16622 = vmatprep.subr.bf16.mxu1 %v22649_v52  ;;  %v22725_v52 = vld [vmem:[#allocation34 + $0xb08] ss:$16 sps:$4 sm:$0xff]  }
0x1a23   : > { %16365 = vmatpush1.bf16.msra.mxu0 %v22644_v63  ;;  %v22730_v63 = vld [vmem:[#allocation34 + $0xb24] ss:$16 sps:$4 sm:$0xff]  }
0x1a24   : > { %16623 = vmatpush1.bf16.msra.mxu1 %v22647_v41  ;;  %16366 = vmatprep.subr.bf16.mxu0 %v22652_v51  ;;  %v22733_v41 = vld [vmem:[#allocation34 + $0xb2c] ss:$16 sps:$4 sm:$0xff]   ;;  %v22728_v51 = vld [vmem:[#allocation34 + $0xb20] ss:$16 sps:$4 sm:$0xff]  }
0x1a25   : > { %16624 = vmatprep.subr.bf16.mxu1 %v22655_v10  ;;  %v22731_v10 = vld [vmem:[#allocation34 + $0xb28] ss:$16 sps:$4 sm:$0xff]  }
0x1a27   : > { %16367 = vmatpush1.bf16.msra.mxu0 %v22650_v59  ;;  %v22736_v59 = vld [vmem:[#allocation34 + $0xb44] ss:$16 sps:$4 sm:$0xff]  }
0x1a28   : > { %16625 = vmatpush1.bf16.msra.mxu1 %v22653_v24  ;;  %16368 = vmatprep.subr.bf16.mxu0 %v22658_v16  ;;  %v22739_v24 = vld [vmem:[#allocation34 + $0xb4c] ss:$16 sps:$4 sm:$0xff]   ;;  %v22734_v16 = vld [vmem:[#allocation34 + $0xb40] ss:$16 sps:$4 sm:$0xff]  }
0x1a29   : > { %16626 = vmatprep.subr.bf16.mxu1 %v22661_v42  ;;  %v22737_v42 = vld [vmem:[#allocation34 + $0xb48] ss:$16 sps:$4 sm:$0xff]  }
0x1a2b   : > { %16369 = vmatpush1.bf16.msra.mxu0 %v22656_v4  ;;  %v22742_v4 = vld [vmem:[#allocation34 + $0xb64] ss:$16 sps:$4 sm:$0xff]  }
0x1a2c   : > { %16627 = vmatpush1.bf16.msra.mxu1 %v22659_v22  ;;  %16370 = vmatprep.subr.bf16.mxu0 %v22664_v43  ;;  %v22745_v22 = vld [vmem:[#allocation34 + $0xb6c] ss:$16 sps:$4 sm:$0xff]   ;;  %v22740_v43 = vld [vmem:[#allocation34 + $0xb60] ss:$16 sps:$4 sm:$0xff]  }
0x1a2d   : > { %16628 = vmatprep.subr.bf16.mxu1 %v22667_v29  ;;  %v22743_v29 = vld [vmem:[#allocation34 + $0xb68] ss:$16 sps:$4 sm:$0xff]  }
0x1a2f   : > { %16371 = vmatpush1.bf16.msra.mxu0 %v22662_v57  ;;  %v22748_v57 = vld [vmem:[#allocation34 + $0xb84] ss:$16 sps:$4 sm:$0xff]  }
0x1a30   : > { %16629 = vmatpush1.bf16.msra.mxu1 %v22665_v3  ;;  %16372 = vmatprep.subr.bf16.mxu0 %v22670_v58  ;;  %v22751_v3 = vld [vmem:[#allocation34 + $0xb8c] ss:$16 sps:$4 sm:$0xff]   ;;  %v22746_v58 = vld [vmem:[#allocation34 + $0xb80] ss:$16 sps:$4 sm:$0xff]  }
0x1a31   : > { %16630 = vmatprep.subr.bf16.mxu1 %v22673_v31  ;;  %v22749_v31 = vld [vmem:[#allocation34 + $0xb88] ss:$16 sps:$4 sm:$0xff]  }
0x1a33   : > { %16373 = vmatpush1.bf16.msra.mxu0 %v22668_v35  ;;  %v22754_v35 = vld [vmem:[#allocation34 + $0xba4] ss:$16 sps:$4 sm:$0xff]  }
0x1a34   : > { %16631 = vmatpush1.bf16.msra.mxu1 %v22671_v9  ;;  %16385 = vmatprep.subr.bf16.mxu0 %v22676_v37  ;;  %v22757_v9 = vld [vmem:[#allocation34 + $0xbac] ss:$16 sps:$4 sm:$0xff]   ;;  %v22752_v37 = vld [vmem:[#allocation34 + $0xba0] ss:$16 sps:$4 sm:$0xff]  }
0x1a35   : > { %16643 = vmatprep.subr.bf16.mxu1 %v22679_v33  ;;  %v22755_v33 = vld [vmem:[#allocation34 + $0xba8] ss:$16 sps:$4 sm:$0xff]  }
0x1a36   : > { %16375 = vmatmul.mubr.bf16.vlgmr.msra.gmra.mrb[112].mxu0 %v25347_v50 }
0x1a37   : > { %16633 = vmatmul.mubr.bf16.vlgmr.msra.gmra.mrb[152].mxu1 %v25347_v50  ;;  %16386 = vmatpush1.bf16.msra.mxu0 %v22674_v11  ;;  %v22697_v50 = vld [vmem:[#allocation34 + $0xa6c] ss:$16 sps:$4 sm:$0xff]   ;;  %v22760_v11 = vld [vmem:[#allocation34 + $0xbc4] ss:$16 sps:$4 sm:$0xff]  }
0x1a38   : > { %16417 = vmatprep.mubr.bf16.mxu0 %v25353_v53  ;;  %16644 = vmatpush1.bf16.msra.mxu1 %v22677_v46  ;;  %v22763_v46 = vld [vmem:[#allocation34 + $0xbcc] ss:$16 sps:$4 sm:$0xff]  }
0x1a39   : > { %16675 = vmatprep.mubr.bf16.mxu1 %v25353_v53  ;;  %16387 = vmatprep.subr.bf16.mxu0 %v22682_v13  ;;  %v22698_v53 = vld [vmem:[#allocation34 + $0xa80] ss:$16 sps:$4 sm:$0xff]  }
0x1a3a   : > { %16645 = vmatprep.subr.bf16.mxu1 %v22685_v26  ;;  %v22758_v13 = vld [vmem:[#allocation34 + $0xbc0] ss:$16 sps:$4 sm:$0xff]   ;;  %v22761_v26 = vld [vmem:[#allocation34 + $0xbc8] ss:$16 sps:$4 sm:$0xff]  }
0x1a3b   : > { %16388 = vmatpush1.bf16.msra.mxu0 %v22680_v19  ;;  %v22766_v19 = vld [vmem:[#allocation34 + $0xbe4] ss:$16 sps:$4 sm:$0xff]  }
0x1a3c   : > { %16646 = vmatpush1.bf16.msra.mxu1 %v22683_v54  ;;  %16389 = vmatprep.subr.bf16.mxu0 %v22688_v27  ;;  %v22769_v54 = vld [vmem:[#allocation34 + $0xbec] ss:$16 sps:$4 sm:$0xff]   ;;  %v22764_v27 = vld [vmem:[#allocation34 + $0xbe0] ss:$16 sps:$4 sm:$0xff]  }
0x1a3d   : > { %16647 = vmatprep.subr.bf16.mxu1 %v22691_v39  ;;  %v22767_v39 = vld [vmem:[#allocation34 + $0xbe8] ss:$16 sps:$4 sm:$0xff]  }
0x1a3f   : > { %16390 = vmatpush1.bf16.msra.mxu0 %v22686_v40  ;;  %v13544_v40 = vld [vmem:[#allocation36] sm:$0xf] }
0x1a40   : > { %16648 = vmatpush1.bf16.msra.mxu1 %v22689_v5  ;;  %16391 = vmatprep.subr.bf16.mxu0 %v22694_v49  ;;  %v13545_v5 = vld [vmem:[#allocation37] sm:$0xf]  ;;  %v16690_v49 = vrot.slane %v13544_v40, %v24945_v28 }
0x1a41   : > { %16649 = vmatprep.subr.bf16.mxu1 %v22697_v50  ;;  %v16698_v50 = vrot.slane %v13544_v40, %v25031_v44 }
0x1a43   : > { %16392 = vmatpush1.bf16.msra.mxu0 %v22692_v8  ;;  %v16694_v8 = vrot.slane %v13544_v40, %v24948_v62 }
0x1a44   : > { %16650 = vmatpush1.bf16.msra.mxu1 %v22695_v56  ;;  %16393 = vmatprep.subr.bf16.mxu0 %v22700_v18  ;;  %v16702_v56 = vrot.slane %v13544_v40, %v25024_v0 }
0x1a45   : > { %16651 = vmatprep.subr.bf16.mxu1 %v22703_v45  ;;  %v16723_v45 = vrot.slane %v13545_v5, %v24948_v62 }
0x1a47   : > { %16394 = vmatpush1.bf16.msra.mxu0 %v22698_v53 }
0x1a48   : > { %16652 = vmatpush1.bf16.msra.mxu1 %v22701_v48  ;;  %16395 = vmatprep.subr.bf16.mxu0 %v22706_v38 }
0x1a49   : > { %16653 = vmatprep.subr.bf16.mxu1 %v22709_v20  ;;  %v16731_v20 = vrot.slane %v13545_v5, %v25024_v0 }
0x1a4b   : > { %16396 = vmatpush1.bf16.msra.mxu0 %v22704_v15 }
0x1a4c   : > { %16654 = vmatpush1.bf16.msra.mxu1 %v22707_v32  ;;  %16397 = vmatprep.subr.bf16.mxu0 %v22712_v55  ;;  %v16727_v32 = vrot.slane %v13545_v5, %v25031_v44 }
0x1a4d   : > { %16655 = vmatprep.subr.bf16.mxu1 %v22715_v2 }
0x1a4f   : > { %16398 = vmatpush1.bf16.msra.mxu0 %v22710_v60 }
0x1a50   : > { %16656 = vmatpush1.bf16.msra.mxu1 %v22713_v47  ;;  %16399 = vmatprep.subr.bf16.mxu0 %v22718_v21 }
0x1a51   : > { %16657 = vmatprep.subr.bf16.mxu1 %v22721_v23 }
0x1a53   : > { %16400 = vmatpush1.bf16.msra.mxu0 %v22716_v12 }
0x1a54   : > { %16658 = vmatpush1.bf16.msra.mxu1 %v22719_v7  ;;  %16401 = vmatprep.subr.bf16.mxu0 %v22724_v30 }
0x1a55   : > { %16659 = vmatprep.subr.bf16.mxu1 %v22727_v17 }
0x1a57   : > { %16402 = vmatpush1.bf16.msra.mxu0 %v22722_v36 }
0x1a58   : > { %16660 = vmatpush1.bf16.msra.mxu1 %v22725_v52  ;;  %16403 = vmatprep.subr.bf16.mxu0 %v22730_v63 }
0x1a59   : > { %16661 = vmatprep.subr.bf16.mxu1 %v22733_v41 }
0x1a5b   : > { %16404 = vmatpush1.bf16.msra.mxu0 %v22728_v51 }
0x1a5c   : > { %16662 = vmatpush1.bf16.msra.mxu1 %v22731_v10  ;;  %16405 = vmatprep.subr.bf16.mxu0 %v22736_v59 }
0x1a5d   : > { %16663 = vmatprep.subr.bf16.mxu1 %v22739_v24 }
0x1a5f   : > { %16406 = vmatpush1.bf16.msra.mxu0 %v22734_v16 }
0x1a60   : > { %16664 = vmatpush1.bf16.msra.mxu1 %v22737_v42  ;;  %16407 = vmatprep.subr.bf16.mxu0 %v22742_v4 }
0x1a61   : > { %16665 = vmatprep.subr.bf16.mxu1 %v22745_v22 }
0x1a63   : > { %16408 = vmatpush1.bf16.msra.mxu0 %v22740_v43 }
0x1a64   : > { %16666 = vmatpush1.bf16.msra.mxu1 %v22743_v29  ;;  %16409 = vmatprep.subr.bf16.mxu0 %v22748_v57 }
0x1a65   : > { %16667 = vmatprep.subr.bf16.mxu1 %v22751_v3 }
0x1a67   : > { %16410 = vmatpush1.bf16.msra.mxu0 %v22746_v58 }
0x1a68   : > { %16668 = vmatpush1.bf16.msra.mxu1 %v22749_v31  ;;  %16411 = vmatprep.subr.bf16.mxu0 %v22754_v35  ;;  %v16914_v35 = vand.u32 1, %v24308_v1 }
0x1a69   : > { %16669 = vmatprep.subr.bf16.mxu1 %v22757_v9  ;;  %v16915_v9 = vand.u32 1, %v24329_v14 }
0x1a6a   : > { %vm25395_vm0 = vcmp.eq.s32.totalorder %v16914_v35, 0 }
0x1a6b   : > { %16412 = vmatpush1.bf16.msra.mxu0 %v22752_v37  ;;  %vm25399_vm11 = vcmp.eq.s32.totalorder %v16915_v9, 0 }
0x1a6c   : > { %16670 = vmatpush1.bf16.msra.mxu1 %v22755_v33  ;;  %16413 = vmatprep.subr.bf16.mxu0 %v22760_v11 }
0x1a6d   : > { %16671 = vmatprep.subr.bf16.mxu1 %v22763_v46 }
0x1a6f   : > { %16414 = vmatpush1.bf16.msra.mxu0 %v22758_v13 }
0x1a70   : > { %16672 = vmatpush1.bf16.msra.mxu1 %v22761_v26  ;;  %16415 = vmatprep.subr.bf16.mxu0 %v22766_v19 }
0x1a71   : > { %16673 = vmatprep.subr.bf16.mxu1 %v22769_v54 }
0x1a73   : > { %16416 = vmatpush1.bf16.msra.mxu0 %v22764_v27 }
0x1a74   : > { %16674 = vmatpush1.bf16.msra.mxu1 %v22767_v39 }
0x1a76   : > { %16418 = vmatmul.mubr.bf16.vlgmr.msra.gmra.mrb[112].mxu0 %v25349_v34 }
0x1a77   : > { %16676 = vmatmul.mubr.bf16.vlgmr.msra.gmra.mrb[152].mxu1 %v25349_v34  ;;  %16816 = vmatprep.mubr.f32.mxu0 %v25563_v25  ;;  %v16719_v34 = vrot.slane %v13545_v5, %v24945_v28 }
0x1a78   : > { %16893 = vmatprep.mubr.f32.mxu1 %v25563_v25 }
0x1b49   : > { %v16419_v18 = vpop.f32.mrb[112].mxu0 }
0x1b4a   : > { %v16707_v53 = vmul.f32 %v16690_v49, %v16419_v18  ;;  %v16677_v48 = vpop.f32.mrb[152].mxu1  ;;  %v16421_v38 = vpop.f32.mrb[113].mxu0 }
0x1b4b   : > { %v16709_v15 = vmul.f32 %v16698_v50, %v16677_v48  ;;  %v16708_v55 = vmul.f32 %v16694_v8, %v16421_v38  ;;  %v16679_v2 = vpop.f32.mrb[153].mxu1  ;;  %v16423_v60 = vpop.f32.mrb[114].mxu0 }
0x1b4c   : > { %v16710_v47 = vmul.f32 %v16702_v56, %v16679_v2  ;;  %v16711_v21 = vmul.f32 %v16690_v49, %v16423_v60  ;;  %v16681_v23 = vpop.f32.mrb[154].mxu1  ;;  %v16425_v12 = vpop.f32.mrb[115].mxu0  ;;  %v16736_v36 = vadd.f32 %v16719_v34, %v16707_v53 }
0x1b4d   : > { %v16737_v7 = vadd.f32 %v16723_v45, %v16708_v55  ;;  %v16713_v30 = vmul.f32 %v16698_v50, %v16681_v23  ;;  %v16712_v62 = vmul.f32 %v16694_v8, %v16425_v12  ;;  %v16683_v17 = vpop.f32.mrb[155].mxu1  ;;  %v16738_v41 = vadd.f32 %v16727_v32, %v16709_v15 }
0x1b4e   : > { %v16739_v28 = vadd.f32 %v16731_v20, %v16710_v47  ;;  %v16740_v52 = vadd.f32 %v16719_v34, %v16711_v21  ;;  %v16714_v63 = vmul.f32 %v16702_v56, %v16683_v17  ;;  %v16744_v42 = vmax.f32 %v16736_v36, 0.0 }
0x1b4f   : > { %v16742_v0 = vadd.f32 %v16727_v32, %v16713_v30  ;;  %v16741_v51 = vadd.f32 %v16723_v45, %v16712_v62  ;;  %v16745_v59 = vmax.f32 %v16737_v7, 0.0  ;;  %v16746_v43 = vmax.f32 %v16738_v41, 0.0 }
0x1b50   : > { %v16748_v10 = vmax.f32 %v16740_v52, 0.0  ;;  %v16743_v44 = vadd.f32 %v16731_v20, %v16714_v63  ;;  %v16747_v4 = vmax.f32 %v16739_v28, 0.0  ;;  %v23534_v36 = vmov 1966171168  }
0x1b51   : > { %v16750_v24 = vmax.f32 %v16742_v0, 0.0  ;;  %v16749_v16 = vmax.f32 %v16741_v51, 0.0  ;;  %v16965_v28 = vunpack.c.l.s4 %v23534_v36 }
0x1b52   : > { %v16751_v22 = vmax.f32 %v16743_v44, 0.0  ;;  %v20142_v57 = vpack.c.bf16 %v16748_v10, %v16744_v42 }
0x1b53   : > { %v20140_v29 = vpack.c.bf16 %v16749_v16, %v16745_v59  ;;  %v20146_v58 = vpack.c.bf16 %v16750_v24, %v16746_v43 }
0x1b54   : > { %v20144_v3 = vpack.c.bf16 %v16751_v22, %v16747_v4 }
0x1b55   : > { %20141 = vmatprep.subr.bf16.mxu0 %v20140_v29 }
0x1b56   : > { %20145 = vmatprep.subr.bf16.mxu1 %v20144_v3  ;;  %20143 = vmatpush1.bf16.msra.mxu0 %v20142_v57 }
0x1b57   : > { %20147 = vmatpush1.bf16.msra.mxu1 %v20146_v58 }
0x1b59   : > { %18997 = vmatmul.mubr.msk.f32.vlgmr.msra.gmra.mrb[116].mxu0 %vm2763_vm5, %v24496_v61 }
0x1b5a   : > { %18999 = vmatmul.mubr.msk.f32.vlgmr.msra.gmra.mrb[156].mxu1 %vm2763_vm5, %v24496_v61  ;;  %16822 = vmatprep.mubr.f32.mxu0 %v25563_v25 }
0x1b5b   : > { %16899 = vmatprep.mubr.f32.mxu1 %v25563_v25 }
0x1b5d   : > { %18998 = vmatmul.mubr.msk.f32.gmra.mrb[118].mxu0 %vm2763_vm5, %v24523_v6 }
0x1b5e   : > { %19000 = vmatmul.mubr.msk.f32.gmra.mrb[158].mxu1 %vm2763_vm5, %v24523_v6 }
0x1c2c   : > { %v16818_v31 = vpop.f32.mrb[116].mxu0 }
0x1c2d   : > { %v16895_v37 = vpop.f32.mrb[156].mxu1  ;;  %v16820_v33 = vpop.f32.mrb[117].mxu0  ;;  %v16906_v46 = vmax.f32 %v16744_v42, %v16818_v31 }
0x1c2e   : > { %v16897_v11 = vpop.f32.mrb[157].mxu1  ;;  %v16908_v61 = vmax.f32 %v16746_v43, %v16895_v37  ;;  %v16907_v25 = vmax.f32 %v16745_v59, %v16820_v33 }
0x1c2f   : > { %v16909_v6 = vmax.f32 %v16747_v4, %v16897_v11  ;;  %v16918_v49 = vsel %vm25395_vm0, %v16906_v46, 0.0  ;;  %v25569_v46 = vlaneseq }
0x1c30   : > { %v16824_v26 = vpop.f32.mrb[118].mxu0  ;;  %v16920_v50 = vsel %vm25395_vm0, %v16908_v61, 0.0  ;;  %v16919_v18 = vsel %vm25395_vm0, %v16907_v25, 0.0 }
0x1c31   : > { %v16910_v54 = vmax.f32 %v16748_v10, %v16824_v26  ;;  %v16901_v27 = vpop.f32.mrb[158].mxu1  ;;  %v16826_v39 = vpop.f32.mrb[119].mxu0  ;;  %v16921_v48 = vsel %vm25395_vm0, %v16909_v6, 0.0  ;;  %vm16989_vm12 = vcmp.lt.s32.totalorder %v25569_v46, 512 }
0x1c32   : > { %v16912_v14 = vmax.f32 %v16750_v24, %v16901_v27  ;;  %v16911_v40 = vmax.f32 %v16749_v16, %v16826_v39  ;;  %v16903_v5 = vpop.f32.mrb[159].mxu1  ;;  %v16966_v24 = vunpack.c.0.s8 %v16965_v28 }
0x1c33   : > { %v16922_v8 = vsel %vm25399_vm11, %v16910_v54, 0.0  ;;  %v16913_v56 = vmax.f32 %v16751_v22, %v16903_v5 }
0x1c34   : > { %v16926_v45 = vadd.f32 %v16922_v8, %v16918_v49  ;;  %v16924_v53 = vsel %vm25399_vm11, %v16912_v14, 0.0  ;;  %v16923_v34 = vsel %vm25399_vm11, %v16911_v40, 0.0  ;;  %v16969_v58 = vsub.s32 %v16966_v24, %v24308_v1 }
0x1c35   : > { %v16940_v38 = vadd.f32 %v16924_v53, %v16920_v50  ;;  %v16933_v20 = vadd.f32 %v16923_v34, %v16919_v18  ;;  %v16925_v15 = vsel %vm25399_vm11, %v16913_v56, 0.0 }
0x1c36   : > { %v16927_v32 = vrot.slane %v16926_v45, 4  ;;  %v16947_v55 = vadd.f32 %v16925_v15, %v16921_v48 }
0x1c37   : > { %v16941_v2 = vrot.slane %v16940_v38, 4  ;;  %v16934_v60 = vrot.slane %v16933_v20, 4 }
0x1c38   : > { %v16928_v47 = vadd.f32 %v16927_v32, %v16926_v45  ;;  %v16948_v21 = vrot.slane %v16947_v55, 4 }
0x1c39   : > { %v16942_v23 = vadd.f32 %v16941_v2, %v16940_v38  ;;  %v16935_v12 = vadd.f32 %v16934_v60, %v16933_v20 }
0x1c3a   : > { %v16929_v7 = vrot.slane %v16928_v47, 2  ;;  %v16949_v30 = vadd.f32 %v16948_v21, %v16947_v55 }
0x1c3b   : > { %v16943_v62 = vrot.slane %v16942_v23, 2  ;;  %v16936_v17 = vrot.slane %v16935_v12, 2 }
0x1c3c   : > { %v16930_v52 = vadd.f32 %v16929_v7, %v16928_v47  ;;  %v16950_v63 = vrot.slane %v16949_v30, 2 }
0x1c3d   : > { %v16944_v41 = vadd.f32 %v16943_v62, %v16942_v23  ;;  %v16937_v0 = vadd.f32 %v16936_v17, %v16935_v12 }
0x1c3e   : > { %v16931_v51 = vrot.slane %v16930_v52, 1  ;;  %v16951_v10 = vadd.f32 %v16950_v63, %v16949_v30 }
0x1c3f   : > { %v16945_v44 = vrot.slane %v16944_v41, 1  ;;  %v16938_v59 = vrot.slane %v16937_v0, 1 }
0x1c40   : > { %v16932_v16 = vadd.f32 %v16931_v51, %v16930_v52  ;;  %v16952_v42 = vrot.slane %v16951_v10, 1 }
0x1c41   : > { %v16946_v4 = vadd.f32 %v16945_v44, %v16944_v41  ;;  %v16939_v22 = vadd.f32 %v16938_v59, %v16937_v0 }
0x1c42   : > { %v16954_v43 = vmul.f32 0.125, %v16932_v16  ;;  %v16953_v29 = vadd.f32 %v16952_v42, %v16951_v10 }
0x1c43   : > { %v16956_v57 = vmul.f32 0.125, %v16946_v4  ;;  %v16955_v3 = vmul.f32 0.125, %v16939_v22 }
0x1c44   : > { %v16957_v31 = vmul.f32 0.125, %v16953_v29 }
0x1c45   : > { %v16962_v35 = vcombine.low %v16954_v43, %v16955_v3 }
0x1c46   : > { %v16963_v9 = vcombine.low %v16956_v57, %v16957_v31 }
0x1c47   : > { %v16970_v37 = vrot.slane %v16962_v35, %v16969_v58 }
0x1c48   : > { %v16977_v33 = vrot.slane %v16963_v9, %v16969_v58 }
0x1c4a   : > { %v16978_v11 = vcombine.low %v16970_v37, %v16977_v33 }
0x1c4c   : > { %v16985_v61 = vrot.slane %v16978_v11, %v16969_v58 }
0x1c4e   : > { %16991 = vst.msk [vmem:[%s1156_s4] sm:$0xf] %vm16989_vm12, %v16985_v61 }
0x1c4f PF: > { %s25570_s3 = sld [smem:[#allocation52_spill]] }
0x1c55   : > { %s51_s8 = sadd.s32 1, %s25570_s3  }
0x1c56   : > { %p48_p2 = scmp.ge.s32.totalorder %s51_s8, 4  }
0x1c58   :  { %50 = sbr.rel (!%p48_p2) target bundleno = 32 (0x20), region = 259 }
0x1c5f   :  { %17011 = vsyncpa [#allocation3], 1 }
0x1c60   :  { %17013 = vsyncpa [#allocation3 + $0x1], 1 }
0x1c61   :  { %17014 = vsyncpa [#allocation5], 1 }
0x1c62   :  { %17015 = vsyncpa [#allocation8], 1 }
0x1c63   :  { %17016 = vsyncpa [#allocation11], 1 }
0x1c64   :  { %17017 = vsyncpa [#allocation14], 1 }
0x1c65   :  { %17018 = vsyncpa [#allocation17], 1 }
0x1c66   :  { %17019 = vsyncpa [#allocation20], 1 }
0x1c67   :  { %17020 = vsyncpa [#allocation23], 1 }
0x1c68   :  { %17021 = vsyncpa [#allocation26], 1 }
0x1c69   :  { %17022 = vsyncpa [#allocation29], 1 }
0x1c6a   :  { %17023 = vsyncpa [#allocation32], 1 }
0x1c6b   :  { %17024 = vsyncpa [#allocation35], 1 }
0x1c6c   :  { %17025 = vsyncpa [#allocation38], 1 }

</bundles_post_ra>
